<compile_context>
chip_gen: v7x
topology: tpu7x:2x2x1
jax: 0.10.0
libtpu: 0.0.40
codegen_flags: <defaults>
</compile_context>

<pallas_src>
import functools

import jax
import jax.numpy as jnp
import numpy as np
from jax import lax
from jax.experimental import pallas as pl
from jax.experimental.pallas import tpu as pltpu

# ---------------------------------------------------------------------------
# Static geometry (28x28 input is forced by fc = Linear(32*7*7, 10)).
# ---------------------------------------------------------------------------
_T1 = 420     # conv1 output rows per column parity: t = 15*h + (w // 2)
_P1L = 272    # zero-padded 16x16 pool1 grid (256) + slack rows for conv2 taps
_R2Y = 232    # conv2 rows computed (valid outputs at r2 = 16*h2 + w2, h2,w2<14)
_R2M = 208    # pool2 window-max rows (anchors at 32*ho2 + 2*wo2)
_NQ = 56      # pooled feature rows per image: q = 8*ho2 + wo2 (wo2 == 7 unused)
_NFC = _NQ * 32   # 1792 = FC input width after folding the flatten permutation
_NOUT = 128       # FC output padded to a full lane width (sliced back to 10)


def _build_static_tables():
    # pool2 compaction: window-max anchor rows (32*ho2 + 2*wo2) -> [56, .] rows.
    s2 = np.zeros((_NQ, _R2M), np.float32)
    for ho in range(7):
        for wo in range(7):
            s2[8 * ho + wo, 32 * ho + 2 * wo] = 1.0
    # FC weight row permutation: feature g = (8*ho2 + wo2)*32 + c maps to torch
    # NCHW-flatten index c*49 + ho2*7 + wo2 (rows with wo2 == 7 stay zero).
    idx = np.zeros((_NFC,), np.int32)
    msk = np.zeros((_NFC,), np.bool_)
    for ho in range(7):
        for wo in range(7):
            for c in range(32):
                g = (8 * ho + wo) * 32 + c
                idx[g] = c * 49 + ho * 7 + wo
                msk[g] = True
    return s2, idx, msk


_S2_NP, _FC_IDX_NP, _FC_MSK_NP = _build_static_tables()


# ---------------------------------------------------------------------------
# Pallas kernels
# ---------------------------------------------------------------------------
def _fused_cnn_kernel(xe_ref, xo_ref, w1_ref, b1_ref, w2_ref, b2_ref, s2_ref,
                      feat_ref, y1e_ref, y1o_ref, p1_ref, p1im_ref, y2_ref,
                      m2_ref, *, block_b):
    """conv1+ReLU+pool1+conv2+ReLU+pool2 for one block of `block_b` images.

    Lane layouts (per block): conv1/pool1 columns = b*16 + c1,
    conv2/pool2/features columns = b*32 + c2.
    """
    c1 = 16 * block_b
    b1t = b1_ref[...]                      # [1, 16*bb]
    b2t = b2_ref[...]                      # [1, 32*bb]

    # ---- conv1: one MXU matmul per output-column parity (batched im2col) ----
    y1e_ref[...] = jnp.dot(xe_ref[0], w1_ref[...],
                           preferred_element_type=jnp.float32)
    y1o_ref[...] = jnp.dot(xo_ref[0], w1_ref[...],
                           preferred_element_type=jnp.float32)

    # ---- pool1 (+bias+ReLU) fused with compaction onto padded 16x16 grid ----
    # Pool window for output (ho, wo): y1e/y1o rows u and u+15, u = 30*ho + wo.
    # All reads/writes are contiguous sublane slices (no strides, no gathers).
    p1_ref[...] = jnp.zeros_like(p1_ref)   # pad ring + slack rows must be 0
    for ho in range(14):
        u = 30 * ho
        m = jnp.maximum(
            jnp.maximum(y1e_ref[u:u + 14, :], y1o_ref[u:u + 14, :]),
            jnp.maximum(y1e_ref[u + 15:u + 29, :], y1o_ref[u + 15:u + 29, :]))
        r = 16 * (ho + 1) + 1
        p1_ref[r:r + 14, :] = jnp.maximum(m + b1t, 0.0)

    # ---- conv2: 9-tap im2col built in VMEM, then ONE block-diagonal matmul --
    # (K = 9*16*bb; the 9-tap accumulation happens inside the MXU.)
    for k in range(9):
        off = 16 * (k // 3) + (k % 3)
        p1im_ref[:, k * c1:(k + 1) * c1] = p1_ref[off:off + _R2Y, :]
    y2_ref[...] = jnp.dot(p1im_ref[...], w2_ref[...],
                          preferred_element_type=jnp.float32)

    # ---- pool2 (+bias+ReLU), chunked to bound live vreg pressure ------------
    for r0 in range(0, _R2M, 52):
        m = jnp.maximum(
            jnp.maximum(y2_ref[r0:r0 + 52, :], y2_ref[r0 + 1:r0 + 53, :]),
            jnp.maximum(y2_ref[r0 + 16:r0 + 68, :], y2_ref[r0 + 17:r0 + 69, :]))
        m2_ref[r0:r0 + 52, :] = jnp.maximum(m + b2t, 0.0)

    # ---- pool2 compaction: one small selection matmul -> [56, 32*bb] --------
    feat_ref[0] = jnp.dot(s2_ref[...], m2_ref[...],
                          preferred_element_type=jnp.float32)


def _fc_kernel(x_ref, w_ref, b_ref, o_ref):
    """o = x @ w + b  with a lane-dense (128-wide) output."""
    o_ref[...] = (jnp.dot(x_ref[...], w_ref[...],
                          preferred_element_type=jnp.float32)
                  + b_ref[...]).astype(o_ref.dtype)


# ---------------------------------------------------------------------------
# Block-size selection (v7x/v4/v5p have 2 TensorCores -> keep the grid even;
# single-TC v5e/v6e prefer one wide step).
# ---------------------------------------------------------------------------
def _dual_tensorcore_chip():
    try:
        kind = jax.devices()[0].device_kind.lower()
    except Exception:
        return False
    return any(t in kind for t in ("v4", "v5p", "v7"))


def _pick_block_b(batch):
    cands = [bb for bb in (8, 4, 2, 1) if batch % bb == 0]
    if _dual_tensorcore_chip():
        for bb in cands:
            if (batch // bb) % 2 == 0:   # grid % 2 == 0: both cores get work
                return bb
    return cands[0]                      # single-TC: widest block, fewest steps


# ---------------------------------------------------------------------------
# Forward pass (mirrors SimpleCNN.forward)
# ---------------------------------------------------------------------------
def simple_cnn_forward(x_nchw, params, *, block_b=None):
    w1, b1, w2, b2, wfc, bfc = params
    B = x_nchw.shape[0]
    assert x_nchw.shape[1:] == (1, 28, 28)
    if block_b is None:
        block_b = _pick_block_b(B)
    assert B % block_b == 0, f"batch {B} must be divisible by block_b {block_b}"
    nb = B // block_b
    f32 = jnp.float32

    # ---- input prep (tiny XLA glue): pad to 30x30, flatten row-major, build
    # the conv1 im2col split by output-column parity.  The parity split is what
    # keeps every in-kernel access contiguous (no strided pool1 compaction).
    xpad = jnp.pad(x_nchw.reshape(B, 28, 28), ((0, 0), (1, 1), (1, 1)))
    xflat = jnp.pad(xpad.reshape(B, 900), ((0, 0), (0, 2)))           # [B, 902]
    offs = [30 * (k // 3) + (k % 3) for k in range(9)]
    xe = jnp.stack([xflat[:, o:o + 840:2] for o in offs], axis=-1)    # [B,420,9]
    xo = jnp.stack([xflat[:, o + 1:o + 841:2] for o in offs], axis=-1)

    def _to_blocks(a):   # [B, 420, 9] -> [nb, 420, 9*block_b] (col = b*9 + k)
        return (a.reshape(nb, block_b, _T1, 9).transpose(0, 2, 1, 3)
                .reshape(nb, _T1, 9 * block_b))

    xe3, xo3 = _to_blocks(xe), _to_blocks(xo)

    # ---- batched (block-diagonal) weights / lane-tiled biases (trace time) --
    eye = jnp.eye(block_b, dtype=f32)
    w1v = w1.reshape(9, 16).astype(f32)            # (kh,kw) taps -> rows, Cin=1
    w2v = w2.reshape(9, 16, 32).astype(f32)
    w1big = jnp.einsum("kc,bd->bkdc", w1v, eye).reshape(9 * block_b,
                                                        16 * block_b)
    w2big = jnp.einsum("kio,bd->kbido", w2v, eye).reshape(9 * 16 * block_b,
                                                          32 * block_b)
    b1t = jnp.tile(b1.reshape(1, 16).astype(f32), (1, block_b))
    b2t = jnp.tile(b2.reshape(1, 32).astype(f32), (1, block_b))
    s2 = jnp.asarray(_S2_NP)

    feats = pl.pallas_call(
        functools.partial(_fused_cnn_kernel, block_b=block_b),
        out_shape=jax.ShapeDtypeStruct((nb, _NQ, 32 * block_b), f32),
        grid=(nb,),
        in_specs=[
            pl.BlockSpec((1, _T1, 9 * block_b), lambda i: (i, 0, 0)),
            pl.BlockSpec((1, _T1, 9 * block_b), lambda i: (i, 0, 0)),
            pl.BlockSpec((9 * block_b, 16 * block_b), lambda i: (0, 0)),
            pl.BlockSpec((1, 16 * block_b), lambda i: (0, 0)),
            pl.BlockSpec((9 * 16 * block_b, 32 * block_b), lambda i: (0, 0)),
            pl.BlockSpec((1, 32 * block_b), lambda i: (0, 0)),
            pl.BlockSpec((_NQ, _R2M), lambda i: (0, 0)),
        ],
        out_specs=pl.BlockSpec((1, _NQ, 32 * block_b), lambda i: (i, 0, 0)),
        scratch_shapes=[
            pltpu.VMEM((_T1, 16 * block_b), f32),        # conv1 (even columns)
            pltpu.VMEM((_T1, 16 * block_b), f32),        # conv1 (odd columns)
            pltpu.VMEM((_P1L, 16 * block_b), f32),       # padded pool1 grid
            pltpu.VMEM((_R2Y, 9 * 16 * block_b), f32),   # conv2 im2col
            pltpu.VMEM((_R2Y, 32 * block_b), f32),       # conv2 output
            pltpu.VMEM((_R2M, 32 * block_b), f32),       # pool2 window maxes
        ],
        compiler_params=pltpu.CompilerParams(
            dimension_semantics=("parallel",)),
    )(xe3, xo3, w1big, b1t, w2big, b2t, s2)

    # ---- FC: torch flatten permutation folded into the weight; N padded to
    # 128 lanes.  (Could be fused into the kernel above, but the feats->per-
    # image transpose is cheapest as one tiny XLA op between two kernels.)
    x_fc = (feats.reshape(nb, _NQ, block_b, 32).transpose(0, 2, 1, 3)
            .reshape(B, _NFC))
    wfc_fold = jnp.where(jnp.asarray(_FC_MSK_NP)[:, None],
                         wfc[jnp.asarray(_FC_IDX_NP)], 0.0).astype(f32)
    wfc_pad = jnp.pad(wfc_fold, ((0, 0), (0, _NOUT - 10)))
    bfc_pad = jnp.pad(bfc.reshape(1, 10).astype(f32), ((0, 0), (0, _NOUT - 10)))

    bm = B if B <= 256 else 256
    assert B % bm == 0
    out = pl.pallas_call(
        _fc_kernel,
        out_shape=jax.ShapeDtypeStruct((B, _NOUT), f32),
        grid=(B // bm,),
        in_specs=[
            pl.BlockSpec((bm, _NFC), lambda i: (i, 0)),
            pl.BlockSpec((_NFC, _NOUT), lambda i: (0, 0)),
            pl.BlockSpec((1, _NOUT), lambda i: (0, 0)),
        ],
        out_specs=pl.BlockSpec((bm, _NOUT), lambda i: (i, 0)),
        compiler_params=pltpu.CompilerParams(
            dimension_semantics=("parallel",)),
    )(x_fc, wfc_pad, bfc_pad)
    return out[:, :10]


# ---------------------------------------------------------------------------
# Pure-JAX reference (independent of the Pallas path) for validation
# ---------------------------------------------------------------------------
def ref_forward(x_nchw, params):
    w1, b1, w2, b2, wfc, bfc = params
    x = jnp.transpose(x_nchw, (0, 2, 3, 1))
    dn = ("NHWC", "HWIO", "NHWC")
    B = x.shape[0]
    y = lax.conv_general_dilated(x, w1, (1, 1), "SAME",
                                 dimension_numbers=dn) + b1
    y = jnp.maximum(y, 0.0)
    y = y.reshape(B, 14, 2, 14, 2, 16).max(axis=(2, 4))
    y = lax.conv_general_dilated(y, w2, (1, 1), "SAME",
                                 dimension_numbers=dn) + b2
    y = jnp.maximum(y, 0.0)
    y = y.reshape(B, 7, 2, 7, 2, 32).max(axis=(2, 4))
    flat = jnp.transpose(y, (0, 3, 1, 2)).reshape(B, 32 * 7 * 7)
    return flat @ wfc + bfc


# ---------------------------------------------------------------------------
if __name__ == "__main__":
    key = jax.random.PRNGKey(0)
    kx, k1, k2, k3, k4, k5, k6 = jax.random.split(key, 7)

    # Input: NCHW, single-channel 28x28 (forced by fc = Linear(32*7*7, 10)).
    x = jax.random.normal(kx, (8, 1, 28, 28), dtype=jnp.float32)

    # Deterministic synthetic parameters (HWIO conv weights, [K, N] fc weight).
    params = (
        jax.random.normal(k1, (3, 3, 1, 16), jnp.float32) * 0.1,
        jax.random.normal(k2, (1, 16), jnp.float32) * 0.1,
        jax.random.normal(k3, (3, 3, 16, 32), jnp.float32) * 0.1,
        jax.random.normal(k4, (1, 32), jnp.float32) * 0.1,
        jax.random.normal(k5, (32 * 7 * 7, 10), jnp.float32) * 0.05,
        jax.random.normal(k6, (1, 10), jnp.float32) * 0.1,
    )

    out = jax.jit(simple_cnn_forward)(x, params)
    out = jax.block_until_ready(out)
    assert out.shape == (8, 10) and out.dtype == jnp.float32

    ref = ref_forward(x, params)
    np.testing.assert_allclose(np.asarray(out), np.asarray(ref),
                               rtol=2e-3, atol=2e-3)
    print("KERNEL_OK")
</pallas_src>

<mosaic_0001>
module attributes {stable_mosaic.version = 11 : i64} {
  func.func private @main(%arg0: i32) attributes {dimension_semantics = [#tpu.dimension_semantics<core_parallel>], iteration_bounds = array<i64: 2>, tpu.core_type = #tpu.core_type<sc_scalar_subcore>, window_params = []} {
    return
  }
}

module attributes {stable_mosaic.version = 11 : i64} {
  func.func private @main(%arg0: i32) attributes {dimension_semantics = [#tpu.dimension_semantics<core_parallel>], iteration_bounds = array<i64: 2>, tpu.core_type = #tpu.core_type<sc_scalar_subcore>, window_params = []} {
    return
  }
}

module attributes {stable_mosaic.version = 11 : i64} {
  func.func @_fused_cnn_kernel(%arg0: i32, %arg1: memref<1x420x72xf32, #tpu.memory_space<vmem>>, %arg2: memref<1x420x72xf32, #tpu.memory_space<vmem>>, %arg3: memref<72x128xf32, #tpu.memory_space<vmem>>, %arg4: memref<1x128xf32, #tpu.memory_space<vmem>>, %arg5: memref<1152x256xf32, #tpu.memory_space<vmem>>, %arg6: memref<1x256xf32, #tpu.memory_space<vmem>>, %arg7: memref<56x208xf32, #tpu.memory_space<vmem>>, %arg8: memref<1x56x256xf32, #tpu.memory_space<vmem>>, %arg9: memref<420x128xf32, #tpu.memory_space<vmem>>, %arg10: memref<420x128xf32, #tpu.memory_space<vmem>>, %arg11: memref<272x128xf32, #tpu.memory_space<vmem>>, %arg12: memref<232x1152xf32, #tpu.memory_space<vmem>>, %arg13: memref<232x256xf32, #tpu.memory_space<vmem>>, %arg14: memref<208x256xf32, #tpu.memory_space<vmem>>) attributes {dimension_semantics = [#tpu.dimension_semantics<parallel>], iteration_bounds = array<i64: 1>, scalar_prefetch = 0 : i64, scratch_operands = 6 : i64, tpu.core_type = #tpu.core_type<tc>, window_params = [{transform_indices = @transform_0, window_bounds = array<i64: 1, 420, 72>}, {transform_indices = @transform_1, window_bounds = array<i64: 1, 420, 72>}, {pipeline_mode = #tpu.pipeline_mode<synchronous>, transform_indices = @transform_2, window_bounds = array<i64: 72, 128>}, {pipeline_mode = #tpu.pipeline_mode<synchronous>, transform_indices = @transform_3, window_bounds = array<i64: 1, 128>}, {pipeline_mode = #tpu.pipeline_mode<synchronous>, transform_indices = @transform_4, window_bounds = array<i64: 1152, 256>}, {pipeline_mode = #tpu.pipeline_mode<synchronous>, transform_indices = @transform_5, window_bounds = array<i64: 1, 256>}, {pipeline_mode = #tpu.pipeline_mode<synchronous>, transform_indices = @transform_6, window_bounds = array<i64: 56, 208>}, {transform_indices = @transform_7, window_bounds = array<i64: 1, 56, 256>}]} {
    %c0 = arith.constant 0 : index
    %c0_0 = arith.constant 0 : index
    %0 = vector.load %arg4[%c0, %c0_0] : memref<1x128xf32, #tpu.memory_space<vmem>>, vector<1x128xf32>
    %c0_1 = arith.constant 0 : index
    %c0_2 = arith.constant 0 : index
    %1 = vector.load %arg6[%c0_1, %c0_2] : memref<1x256xf32, #tpu.memory_space<vmem>>, vector<1x256xf32>
    %c0_3 = arith.constant 0 : index
    %c0_4 = arith.constant 0 : index
    %c0_5 = arith.constant 0 : index
    %2 = vector.load %arg1[%c0_3, %c0_4, %c0_5] : memref<1x420x72xf32, #tpu.memory_space<vmem>>, vector<1x420x72xf32>
    %3 = vector.shape_cast %2 : vector<1x420x72xf32> to vector<420x72xf32>
    %c0_6 = arith.constant 0 : index
    %c0_7 = arith.constant 0 : index
    %4 = vector.load %arg3[%c0_6, %c0_7] : memref<72x128xf32, #tpu.memory_space<vmem>>, vector<72x128xf32>
    %cst = arith.constant dense<0.000000e+00> : vector<420x128xf32>
    %5 = tpu.matmul %3, %4, %cst {dimension_numbers = #tpu.dot_dimension_numbers<[1], [0], [0], [1], [0, 0, 1, 1], [], []>} : vector<420x72xf32>, vector<72x128xf32>, vector<420x128xf32> -> vector<420x128xf32>
    %c0_8 = arith.constant 0 : index
    %c0_9 = arith.constant 0 : index
    %6 = vector.load %arg9[%c0_8, %c0_9] : memref<420x128xf32, #tpu.memory_space<vmem>>, vector<420x128xf32>
    tpu.vector_store %arg9[%c0_8, %c0_9], %5 {strides = array<i32>} : memref<420x128xf32, #tpu.memory_space<vmem>>, vector<420x128xf32>,
    %c0_10 = arith.constant 0 : index
    %c0_11 = arith.constant 0 : index
    %c0_12 = arith.constant 0 : index
    %7 = vector.load %arg2[%c0_10, %c0_11, %c0_12] : memref<1x420x72xf32, #tpu.memory_space<vmem>>, vector<1x420x72xf32>
    %8 = vector.shape_cast %7 : vector<1x420x72xf32> to vector<420x72xf32>
    %c0_13 = arith.constant 0 : index
    %c0_14 = arith.constant 0 : index
    %9 = vector.load %arg3[%c0_13, %c0_14] : memref<72x128xf32, #tpu.memory_space<vmem>>, vector<72x128xf32>
    %cst_15 = arith.constant dense<0.000000e+00> : vector<420x128xf32>
    %10 = tpu.matmul %8, %9, %cst_15 {dimension_numbers = #tpu.dot_dimension_numbers<[1], [0], [0], [1], [0, 0, 1, 1], [], []>} : vector<420x72xf32>, vector<72x128xf32>, vector<420x128xf32> -> vector<420x128xf32>
    %c0_16 = arith.constant 0 : index
    %c0_17 = arith.constant 0 : index
    %11 = vector.load %arg10[%c0_16, %c0_17] : memref<420x128xf32, #tpu.memory_space<vmem>>, vector<420x128xf32>
    tpu.vector_store %arg10[%c0_16, %c0_17], %10 {strides = array<i32>} : memref<420x128xf32, #tpu.memory_space<vmem>>, vector<420x128xf32>,
    %cst_18 = arith.constant 0.000000e+00 : f32
    %12 = vector.broadcast %cst_18 : f32 to vector<272x128xf32>
    %c0_19 = arith.constant 0 : index
    %c0_20 = arith.constant 0 : index
    %13 = vector.load %arg11[%c0_19, %c0_20] : memref<272x128xf32, #tpu.memory_space<vmem>>, vector<272x128xf32>
    tpu.vector_store %arg11[%c0_19, %c0_20], %12 {strides = array<i32>} : memref<272x128xf32, #tpu.memory_space<vmem>>, vector<272x128xf32>,
    %c0_21 = arith.constant 0 : index
    %c0_22 = arith.constant 0 : index
    %14 = vector.load %arg9[%c0_21, %c0_22] : memref<420x128xf32, #tpu.memory_space<vmem>>, vector<14x128xf32>
    %c0_23 = arith.constant 0 : index
    %c0_24 = arith.constant 0 : index
    %15 = vector.load %arg10[%c0_23, %c0_24] : memref<420x128xf32, #tpu.memory_space<vmem>>, vector<14x128xf32>
    %16 = arith.maximumf %14, %15 : vector<14x128xf32>
    %c15 = arith.constant 15 : index
    %c0_25 = arith.constant 0 : index
    %17 = vector.load %arg9[%c15, %c0_25] : memref<420x128xf32, #tpu.memory_space<vmem>>, vector<14x128xf32>
    %c15_26 = arith.constant 15 : index
    %c0_27 = arith.constant 0 : index
    %18 = vector.load %arg10[%c15_26, %c0_27] : memref<420x128xf32, #tpu.memory_space<vmem>>, vector<14x128xf32>
    %19 = arith.maximumf %17, %18 : vector<14x128xf32>
    %20 = arith.maximumf %16, %19 : vector<14x128xf32>
    %21 = vector.broadcast %0 : vector<1x128xf32> to vector<14x128xf32>
    %22 = arith.addf %20, %21 : vector<14x128xf32>
    %cst_28 = arith.constant 0.000000e+00 : f32
    %23 = vector.broadcast %cst_28 : f32 to vector<14x128xf32>
    %24 = arith.maximumf %22, %23 : vector<14x128xf32>
    %c17 = arith.constant 17 : index
    %c0_29 = arith.constant 0 : index
    %25 = vector.load %arg11[%c17, %c0_29] : memref<272x128xf32, #tpu.memory_space<vmem>>, vector<14x128xf32>
    tpu.vector_store %arg11[%c17, %c0_29], %24 {strides = array<i32>} : memref<272x128xf32, #tpu.memory_space<vmem>>, vector<14x128xf32>,
    %c30 = arith.constant 30 : index
    %c0_30 = arith.constant 0 : index
    %26 = vector.load %arg9[%c30, %c0_30] : memref<420x128xf32, #tpu.memory_space<vmem>>, vector<14x128xf32>
    %c30_31 = arith.constant 30 : index
    %c0_32 = arith.constant 0 : index
    %27 = vector.load %arg10[%c30_31, %c0_32] : memref<420x128xf32, #tpu.memory_space<vmem>>, vector<14x128xf32>
    %28 = arith.maximumf %26, %27 : vector<14x128xf32>
    %c45 = arith.constant 45 : index
    %c0_33 = arith.constant 0 : index
    %29 = vector.load %arg9[%c45, %c0_33] : memref<420x128xf32, #tpu.memory_space<vmem>>, vector<14x128xf32>
    %c45_34 = arith.constant 45 : index
    %c0_35 = arith.constant 0 : index
    %30 = vector.load %arg10[%c45_34, %c0_35] : memref<420x128xf32, #tpu.memory_space<vmem>>, vector<14x128xf32>
    %31 = arith.maximumf %29, %30 : vector<14x128xf32>
    %32 = arith.maximumf %28, %31 : vector<14x128xf32>
    %33 = vector.broadcast %0 : vector<1x128xf32> to vector<14x128xf32>
    %34 = arith.addf %32, %33 : vector<14x128xf32>
    %cst_36 = arith.constant 0.000000e+00 : f32
    %35 = vector.broadcast %cst_36 : f32 to vector<14x128xf32>
    %36 = arith.maximumf %34, %35 : vector<14x128xf32>
    %c33 = arith.constant 33 : index
    %c0_37 = arith.constant 0 : index
    %37 = vector.load %arg11[%c33, %c0_37] : memref<272x128xf32, #tpu.memory_space<vmem>>, vector<14x128xf32>
    tpu.vector_store %arg11[%c33, %c0_37], %36 {strides = array<i32>} : memref<272x128xf32, #tpu.memory_space<vmem>>, vector<14x128xf32>,
    %c60 = arith.constant 60 : index
    %c0_38 = arith.constant 0 : index
    %38 = vector.load %arg9[%c60, %c0_38] : memref<420x128xf32, #tpu.memory_space<vmem>>, vector<14x128xf32>
    %c60_39 = arith.constant 60 : index
    %c0_40 = arith.constant 0 : index
    %39 = vector.load %arg10[%c60_39, %c0_40] : memref<420x128xf32, #tpu.memory_space<vmem>>, vector<14x128xf32>
    %40 = arith.maximumf %38, %39 : vector<14x128xf32>
    %c75 = arith.constant 75 : index
    %c0_41 = arith.constant 0 : index
    %41 = vector.load %arg9[%c75, %c0_41] : memref<420x128xf32, #tpu.memory_space<vmem>>, vector<14x128xf32>
    %c75_42 = arith.constant 75 : index
    %c0_43 = arith.constant 0 : index
    %42 = vector.load %arg10[%c75_42, %c0_43] : memref<420x128xf32, #tpu.memory_space<vmem>>, vector<14x128xf32>
    %43 = arith.maximumf %41, %42 : vector<14x128xf32>
    %44 = arith.maximumf %40, %43 : vector<14x128xf32>
    %45 = vector.broadcast %0 : vector<1x128xf32> to vector<14x128xf32>
    %46 = arith.addf %44, %45 : vector<14x128xf32>
    %cst_44 = arith.constant 0.000000e+00 : f32
    %47 = vector.broadcast %cst_44 : f32 to vector<14x128xf32>
    %48 = arith.maximumf %46, %47 : vector<14x128xf32>
    %c49 = arith.constant 49 : index
    %c0_45 = arith.constant 0 : index
    %49 = vector.load %arg11[%c49, %c0_45] : memref<272x128xf32, #tpu.memory_space<vmem>>, vector<14x128xf32>
    tpu.vector_store %arg11[%c49, %c0_45], %48 {strides = array<i32>} : memref<272x128xf32, #tpu.memory_space<vmem>>, vector<14x128xf32>,
    %c90 = arith.constant 90 : index
    %c0_46 = arith.constant 0 : index
    %50 = vector.load %arg9[%c90, %c0_46] : memref<420x128xf32, #tpu.memory_space<vmem>>, vector<14x128xf32>
    %c90_47 = arith.constant 90 : index
    %c0_48 = arith.constant 0 : index
    %51 = vector.load %arg10[%c90_47, %c0_48] : memref<420x128xf32, #tpu.memory_space<vmem>>, vector<14x128xf32>
    %52 = arith.maximumf %50, %51 : vector<14x128xf32>
    %c105 = arith.constant 105 : index
    %c0_49 = arith.constant 0 : index
    %53 = vector.load %arg9[%c105, %c0_49] : memref<420x128xf32, #tpu.memory_space<vmem>>, vector<14x128xf32>
    %c105_50 = arith.constant 105 : index
    %c0_51 = arith.constant 0 : index
    %54 = vector.load %arg10[%c105_50, %c0_51] : memref<420x128xf32, #tpu.memory_space<vmem>>, vector<14x128xf32>
    %55 = arith.maximumf %53, %54 : vector<14x128xf32>
    %56 = arith.maximumf %52, %55 : vector<14x128xf32>
    %57 = vector.broadcast %0 : vector<1x128xf32> to vector<14x128xf32>
    %58 = arith.addf %56, %57 : vector<14x128xf32>
    %cst_52 = arith.constant 0.000000e+00 : f32
    %59 = vector.broadcast %cst_52 : f32 to vector<14x128xf32>
    %60 = arith.maximumf %58, %59 : vector<14x128xf32>
    %c65 = arith.constant 65 : index
    %c0_53 = arith.constant 0 : index
    %61 = vector.load %arg11[%c65, %c0_53] : memref<272x128xf32, #tpu.memory_space<vmem>>, vector<14x128xf32>
    tpu.vector_store %arg11[%c65, %c0_53], %60 {strides = array<i32>} : memref<272x128xf32, #tpu.memory_space<vmem>>, vector<14x128xf32>,
    %c120 = arith.constant 120 : index
    %c0_54 = arith.constant 0 : index
    %62 = vector.load %arg9[%c120, %c0_54] : memref<420x128xf32, #tpu.memory_space<vmem>>, vector<14x128xf32>
    %c120_55 = arith.constant 120 : index
    %c0_56 = arith.constant 0 : index
    %63 = vector.load %arg10[%c120_55, %c0_56] : memref<420x128xf32, #tpu.memory_space<vmem>>, vector<14x128xf32>
    %64 = arith.maximumf %62, %63 : vector<14x128xf32>
    %c135 = arith.constant 135 : index
    %c0_57 = arith.constant 0 : index
    %65 = vector.load %arg9[%c135, %c0_57] : memref<420x128xf32, #tpu.memory_space<vmem>>, vector<14x128xf32>
    %c135_58 = arith.constant 135 : index
    %c0_59 = arith.constant 0 : index
    %66 = vector.load %arg10[%c135_58, %c0_59] : memref<420x128xf32, #tpu.memory_space<vmem>>, vector<14x128xf32>
    %67 = arith.maximumf %65, %66 : vector<14x128xf32>
    %68 = arith.maximumf %64, %67 : vector<14x128xf32>
    %69 = vector.broadcast %0 : vector<1x128xf32> to vector<14x128xf32>
    %70 = arith.addf %68, %69 : vector<14x128xf32>
    %cst_60 = arith.constant 0.000000e+00 : f32
    %71 = vector.broadcast %cst_60 : f32 to vector<14x128xf32>
    %72 = arith.maximumf %70, %71 : vector<14x128xf32>
    %c81 = arith.constant 81 : index
    %c0_61 = arith.constant 0 : index
    %73 = vector.load %arg11[%c81, %c0_61] : memref<272x128xf32, #tpu.memory_space<vmem>>, vector<14x128xf32>
    tpu.vector_store %arg11[%c81, %c0_61], %72 {strides = array<i32>} : memref<272x128xf32, #tpu.memory_space<vmem>>, vector<14x128xf32>,
    %c150 = arith.constant 150 : index
    %c0_62 = arith.constant 0 : index
    %74 = vector.load %arg9[%c150, %c0_62] : memref<420x128xf32, #tpu.memory_space<vmem>>, vector<14x128xf32>
    %c150_63 = arith.constant 150 : index
    %c0_64 = arith.constant 0 : index
    %75 = vector.load %arg10[%c150_63, %c0_64] : memref<420x128xf32, #tpu.memory_space<vmem>>, vector<14x128xf32>
    %76 = arith.maximumf %74, %75 : vector<14x128xf32>
    %c165 = arith.constant 165 : index
    %c0_65 = arith.constant 0 : index
    %77 = vector.load %arg9[%c165, %c0_65] : memref<420x128xf32, #tpu.memory_space<vmem>>, vector<14x128xf32>
    %c165_66 = arith.constant 165 : index
    %c0_67 = arith.constant 0 : index
    %78 = vector.load %arg10[%c165_66, %c0_67] : memref<420x128xf32, #tpu.memory_space<vmem>>, vector<14x128xf32>
    %79 = arith.maximumf %77, %78 : vector<14x128xf32>
    %80 = arith.maximumf %76, %79 : vector<14x128xf32>
    %81 = vector.broadcast %0 : vector<1x128xf32> to vector<14x128xf32>
    %82 = arith.addf %80, %81 : vector<14x128xf32>
    %cst_68 = arith.constant 0.000000e+00 : f32
    %83 = vector.broadcast %cst_68 : f32 to vector<14x128xf32>
    %84 = arith.maximumf %82, %83 : vector<14x128xf32>
    %c97 = arith.constant 97 : index
    %c0_69 = arith.constant 0 : index
    %85 = vector.load %arg11[%c97, %c0_69] : memref<272x128xf32, #tpu.memory_space<vmem>>, vector<14x128xf32>
    tpu.vector_store %arg11[%c97, %c0_69], %84 {strides = array<i32>} : memref<272x128xf32, #tpu.memory_space<vmem>>, vector<14x128xf32>,
    %c180 = arith.constant 180 : index
    %c0_70 = arith.constant 0 : index
    %86 = vector.load %arg9[%c180, %c0_70] : memref<420x128xf32, #tpu.memory_space<vmem>>, vector<14x128xf32>
    %c180_71 = arith.constant 180 : index
    %c0_72 = arith.constant 0 : index
    %87 = vector.load %arg10[%c180_71, %c0_72] : memref<420x128xf32, #tpu.memory_space<vmem>>, vector<14x128xf32>
    %88 = arith.maximumf %86, %87 : vector<14x128xf32>
    %c195 = arith.constant 195 : index
    %c0_73 = arith.constant 0 : index
    %89 = vector.load %arg9[%c195, %c0_73] : memref<420x128xf32, #tpu.memory_space<vmem>>, vector<14x128xf32>
    %c195_74 = arith.constant 195 : index
    %c0_75 = arith.constant 0 : index
    %90 = vector.load %arg10[%c195_74, %c0_75] : memref<420x128xf32, #tpu.memory_space<vmem>>, vector<14x128xf32>
    %91 = arith.maximumf %89, %90 : vector<14x128xf32>
    %92 = arith.maximumf %88, %91 : vector<14x128xf32>
    %93 = vector.broadcast %0 : vector<1x128xf32> to vector<14x128xf32>
    %94 = arith.addf %92, %93 : vector<14x128xf32>
    %cst_76 = arith.constant 0.000000e+00 : f32
    %95 = vector.broadcast %cst_76 : f32 to vector<14x128xf32>
    %96 = arith.maximumf %94, %95 : vector<14x128xf32>
    %c113 = arith.constant 113 : index
    %c0_77 = arith.constant 0 : index
    %97 = vector.load %arg11[%c113, %c0_77] : memref<272x128xf32, #tpu.memory_space<vmem>>, vector<14x128xf32>
    tpu.vector_store %arg11[%c113, %c0_77], %96 {strides = array<i32>} : memref<272x128xf32, #tpu.memory_space<vmem>>, vector<14x128xf32>,
    %c210 = arith.constant 210 : index
    %c0_78 = arith.constant 0 : index
    %98 = vector.load %arg9[%c210, %c0_78] : memref<420x128xf32, #tpu.memory_space<vmem>>, vector<14x128xf32>
    %c210_79 = arith.constant 210 : index
    %c0_80 = arith.constant 0 : index
    %99 = vector.load %arg10[%c210_79, %c0_80] : memref<420x128xf32, #tpu.memory_space<vmem>>, vector<14x128xf32>
    %100 = arith.maximumf %98, %99 : vector<14x128xf32>
    %c225 = arith.constant 225 : index
    %c0_81 = arith.constant 0 : index
    %101 = vector.load %arg9[%c225, %c0_81] : memref<420x128xf32, #tpu.memory_space<vmem>>, vector<14x128xf32>
    %c225_82 = arith.constant 225 : index
    %c0_83 = arith.constant 0 : index
    %102 = vector.load %arg10[%c225_82, %c0_83] : memref<420x128xf32, #tpu.memory_space<vmem>>, vector<14x128xf32>
    %103 = arith.maximumf %101, %102 : vector<14x128xf32>
    %104 = arith.maximumf %100, %103 : vector<14x128xf32>
    %105 = vector.broadcast %0 : vector<1x128xf32> to vector<14x128xf32>
    %106 = arith.addf %104, %105 : vector<14x128xf32>
    %cst_84 = arith.constant 0.000000e+00 : f32
    %107 = vector.broadcast %cst_84 : f32 to vector<14x128xf32>
    %108 = arith.maximumf %106, %107 : vector<14x128xf32>
    %c129 = arith.constant 129 : index
    %c0_85 = arith.constant 0 : index
    %109 = vector.load %arg11[%c129, %c0_85] : memref<272x128xf32, #tpu.memory_space<vmem>>, vector<14x128xf32>
    tpu.vector_store %arg11[%c129, %c0_85], %108 {strides = array<i32>} : memref<272x128xf32, #tpu.memory_space<vmem>>, vector<14x128xf32>,
    %c240 = arith.constant 240 : index
    %c0_86 = arith.constant 0 : index
    %110 = vector.load %arg9[%c240, %c0_86] : memref<420x128xf32, #tpu.memory_space<vmem>>, vector<14x128xf32>
    %c240_87 = arith.constant 240 : index
    %c0_88 = arith.constant 0 : index
    %111 = vector.load %arg10[%c240_87, %c0_88] : memref<420x128xf32, #tpu.memory_space<vmem>>, vector<14x128xf32>
    %112 = arith.maximumf %110, %111 : vector<14x128xf32>
    %c255 = arith.constant 255 : index
    %c0_89 = arith.constant 0 : index
    %113 = vector.load %arg9[%c255, %c0_89] : memref<420x128xf32, #tpu.memory_space<vmem>>, vector<14x128xf32>
    %c255_90 = arith.constant 255 : index
    %c0_91 = arith.constant 0 : index
    %114 = vector.load %arg10[%c255_90, %c0_91] : memref<420x128xf32, #tpu.memory_space<vmem>>, vector<14x128xf32>
    %115 = arith.maximumf %113, %114 : vector<14x128xf32>
    %116 = arith.maximumf %112, %115 : vector<14x128xf32>
    %117 = vector.broadcast %0 : vector<1x128xf32> to vector<14x128xf32>
    %118 = arith.addf %116, %117 : vector<14x128xf32>
    %cst_92 = arith.constant 0.000000e+00 : f32
    %119 = vector.broadcast %cst_92 : f32 to vector<14x128xf32>
    %120 = arith.maximumf %118, %119 : vector<14x128xf32>
    %c145 = arith.constant 145 : index
    %c0_93 = arith.constant 0 : index
    %121 = vector.load %arg11[%c145, %c0_93] : memref<272x128xf32, #tpu.memory_space<vmem>>, vector<14x128xf32>
    tpu.vector_store %arg11[%c145, %c0_93], %120 {strides = array<i32>} : memref<272x128xf32, #tpu.memory_space<vmem>>, vector<14x128xf32>,
    %c270 = arith.constant 270 : index
    %c0_94 = arith.constant 0 : index
    %122 = vector.load %arg9[%c270, %c0_94] : memref<420x128xf32, #tpu.memory_space<vmem>>, vector<14x128xf32>
    %c270_95 = arith.constant 270 : index
    %c0_96 = arith.constant 0 : index
    %123 = vector.load %arg10[%c270_95, %c0_96] : memref<420x128xf32, #tpu.memory_space<vmem>>, vector<14x128xf32>
    %124 = arith.maximumf %122, %123 : vector<14x128xf32>
    %c285 = arith.constant 285 : index
    %c0_97 = arith.constant 0 : index
    %125 = vector.load %arg9[%c285, %c0_97] : memref<420x128xf32, #tpu.memory_space<vmem>>, vector<14x128xf32>
    %c285_98 = arith.constant 285 : index
    %c0_99 = arith.constant 0 : index
    %126 = vector.load %arg10[%c285_98, %c0_99] : memref<420x128xf32, #tpu.memory_space<vmem>>, vector<14x128xf32>
    %127 = arith.maximumf %125, %126 : vector<14x128xf32>
    %128 = arith.maximumf %124, %127 : vector<14x128xf32>
    %129 = vector.broadcast %0 : vector<1x128xf32> to vector<14x128xf32>
    %130 = arith.addf %128, %129 : vector<14x128xf32>
    %cst_100 = arith.constant 0.000000e+00 : f32
    %131 = vector.broadcast %cst_100 : f32 to vector<14x128xf32>
    %132 = arith.maximumf %130, %131 : vector<14x128xf32>
    %c161 = arith.constant 161 : index
    %c0_101 = arith.constant 0 : index
    %133 = vector.load %arg11[%c161, %c0_101] : memref<272x128xf32, #tpu.memory_space<vmem>>, vector<14x128xf32>
    tpu.vector_store %arg11[%c161, %c0_101], %132 {strides = array<i32>} : memref<272x128xf32, #tpu.memory_space<vmem>>, vector<14x128xf32>,
    %c300 = arith.constant 300 : index
    %c0_102 = arith.constant 0 : index
    %134 = vector.load %arg9[%c300, %c0_102] : memref<420x128xf32, #tpu.memory_space<vmem>>, vector<14x128xf32>
    %c300_103 = arith.constant 300 : index
    %c0_104 = arith.constant 0 : index
    %135 = vector.load %arg10[%c300_103, %c0_104] : memref<420x128xf32, #tpu.memory_space<vmem>>, vector<14x128xf32>
    %136 = arith.maximumf %134, %135 : vector<14x128xf32>
    %c315 = arith.constant 315 : index
    %c0_105 = arith.constant 0 : index
    %137 = vector.load %arg9[%c315, %c0_105] : memref<420x128xf32, #tpu.memory_space<vmem>>, vector<14x128xf32>
    %c315_106 = arith.constant 315 : index
    %c0_107 = arith.constant 0 : index
    %138 = vector.load %arg10[%c315_106, %c0_107] : memref<420x128xf32, #tpu.memory_space<vmem>>, vector<14x128xf32>
    %139 = arith.maximumf %137, %138 : vector<14x128xf32>
    %140 = arith.maximumf %136, %139 : vector<14x128xf32>
    %141 = vector.broadcast %0 : vector<1x128xf32> to vector<14x128xf32>
    %142 = arith.addf %140, %141 : vector<14x128xf32>
    %cst_108 = arith.constant 0.000000e+00 : f32
    %143 = vector.broadcast %cst_108 : f32 to vector<14x128xf32>
    %144 = arith.maximumf %142, %143 : vector<14x128xf32>
    %c177 = arith.constant 177 : index
    %c0_109 = arith.constant 0 : index
    %145 = vector.load %arg11[%c177, %c0_109] : memref<272x128xf32, #tpu.memory_space<vmem>>, vector<14x128xf32>
    tpu.vector_store %arg11[%c177, %c0_109], %144 {strides = array<i32>} : memref<272x128xf32, #tpu.memory_space<vmem>>, vector<14x128xf32>,
    %c330 = arith.constant 330 : index
    %c0_110 = arith.constant 0 : index
    %146 = vector.load %arg9[%c330, %c0_110] : memref<420x128xf32, #tpu.memory_space<vmem>>, vector<14x128xf32>
    %c330_111 = arith.constant 330 : index
    %c0_112 = arith.constant 0 : index
    %147 = vector.load %arg10[%c330_111, %c0_112] : memref<420x128xf32, #tpu.memory_space<vmem>>, vector<14x128xf32>
    %148 = arith.maximumf %146, %147 : vector<14x128xf32>
    %c345 = arith.constant 345 : index
    %c0_113 = arith.constant 0 : index
    %149 = vector.load %arg9[%c345, %c0_113] : memref<420x128xf32, #tpu.memory_space<vmem>>, vector<14x128xf32>
    %c345_114 = arith.constant 345 : index
    %c0_115 = arith.constant 0 : index
    %150 = vector.load %arg10[%c345_114, %c0_115] : memref<420x128xf32, #tpu.memory_space<vmem>>, vector<14x128xf32>
    %151 = arith.maximumf %149, %150 : vector<14x128xf32>
    %152 = arith.maximumf %148, %151 : vector<14x128xf32>
    %153 = vector.broadcast %0 : vector<1x128xf32> to vector<14x128xf32>
    %154 = arith.addf %152, %153 : vector<14x128xf32>
    %cst_116 = arith.constant 0.000000e+00 : f32
    %155 = vector.broadcast %cst_116 : f32 to vector<14x128xf32>
    %156 = arith.maximumf %154, %155 : vector<14x128xf32>
    %c193 = arith.constant 193 : index
    %c0_117 = arith.constant 0 : index
    %157 = vector.load %arg11[%c193, %c0_117] : memref<272x128xf32, #tpu.memory_space<vmem>>, vector<14x128xf32>
    tpu.vector_store %arg11[%c193, %c0_117], %156 {strides = array<i32>} : memref<272x128xf32, #tpu.memory_space<vmem>>, vector<14x128xf32>,
    %c360 = arith.constant 360 : index
    %c0_118 = arith.constant 0 : index
    %158 = vector.load %arg9[%c360, %c0_118] : memref<420x128xf32, #tpu.memory_space<vmem>>, vector<14x128xf32>
    %c360_119 = arith.constant 360 : index
    %c0_120 = arith.constant 0 : index
    %159 = vector.load %arg10[%c360_119, %c0_120] : memref<420x128xf32, #tpu.memory_space<vmem>>, vector<14x128xf32>
    %160 = arith.maximumf %158, %159 : vector<14x128xf32>
    %c375 = arith.constant 375 : index
    %c0_121 = arith.constant 0 : index
    %161 = vector.load %arg9[%c375, %c0_121] : memref<420x128xf32, #tpu.memory_space<vmem>>, vector<14x128xf32>
    %c375_122 = arith.constant 375 : index
    %c0_123 = arith.constant 0 : index
    %162 = vector.load %arg10[%c375_122, %c0_123] : memref<420x128xf32, #tpu.memory_space<vmem>>, vector<14x128xf32>
    %163 = arith.maximumf %161, %162 : vector<14x128xf32>
    %164 = arith.maximumf %160, %163 : vector<14x128xf32>
    %165 = vector.broadcast %0 : vector<1x128xf32> to vector<14x128xf32>
    %166 = arith.addf %164, %165 : vector<14x128xf32>
    %cst_124 = arith.constant 0.000000e+00 : f32
    %167 = vector.broadcast %cst_124 : f32 to vector<14x128xf32>
    %168 = arith.maximumf %166, %167 : vector<14x128xf32>
    %c209 = arith.constant 209 : index
    %c0_125 = arith.constant 0 : index
    %169 = vector.load %arg11[%c209, %c0_125] : memref<272x128xf32, #tpu.memory_space<vmem>>, vector<14x128xf32>
    tpu.vector_store %arg11[%c209, %c0_125], %168 {strides = array<i32>} : memref<272x128xf32, #tpu.memory_space<vmem>>, vector<14x128xf32>,
    %c390 = arith.constant 390 : index
    %c0_126 = arith.constant 0 : index
    %170 = vector.load %arg9[%c390, %c0_126] : memref<420x128xf32, #tpu.memory_space<vmem>>, vector<14x128xf32>
    %c390_127 = arith.constant 390 : index
    %c0_128 = arith.constant 0 : index
    %171 = vector.load %arg10[%c390_127, %c0_128] : memref<420x128xf32, #tpu.memory_space<vmem>>, vector<14x128xf32>
    %172 = arith.maximumf %170, %171 : vector<14x128xf32>
    %c405 = arith.constant 405 : index
    %c0_129 = arith.constant 0 : index
    %173 = vector.load %arg9[%c405, %c0_129] : memref<420x128xf32, #tpu.memory_space<vmem>>, vector<14x128xf32>
    %c405_130 = arith.constant 405 : index
    %c0_131 = arith.constant 0 : index
    %174 = vector.load %arg10[%c405_130, %c0_131] : memref<420x128xf32, #tpu.memory_space<vmem>>, vector<14x128xf32>
    %175 = arith.maximumf %173, %174 : vector<14x128xf32>
    %176 = arith.maximumf %172, %175 : vector<14x128xf32>
    %177 = vector.broadcast %0 : vector<1x128xf32> to vector<14x128xf32>
    %178 = arith.addf %176, %177 : vector<14x128xf32>
    %cst_132 = arith.constant 0.000000e+00 : f32
    %179 = vector.broadcast %cst_132 : f32 to vector<14x128xf32>
    %180 = arith.maximumf %178, %179 : vector<14x128xf32>
    %c225_133 = arith.constant 225 : index
    %c0_134 = arith.constant 0 : index
    %181 = vector.load %arg11[%c225_133, %c0_134] : memref<272x128xf32, #tpu.memory_space<vmem>>, vector<14x128xf32>
    tpu.vector_store %arg11[%c225_133, %c0_134], %180 {strides = array<i32>} : memref<272x128xf32, #tpu.memory_space<vmem>>, vector<14x128xf32>,
    %c0_135 = arith.constant 0 : index
    %c0_136 = arith.constant 0 : index
    %182 = vector.load %arg11[%c0_135, %c0_136] : memref<272x128xf32, #tpu.memory_space<vmem>>, vector<232x128xf32>
    %c0_137 = arith.constant 0 : index
    %c0_138 = arith.constant 0 : index
    %183 = vector.load %arg12[%c0_137, %c0_138] : memref<232x1152xf32, #tpu.memory_space<vmem>>, vector<232x128xf32>
    tpu.vector_store %arg12[%c0_137, %c0_138], %182 {strides = array<i32>} : memref<232x1152xf32, #tpu.memory_space<vmem>>, vector<232x128xf32>,
    %c1 = arith.constant 1 : index
    %c0_139 = arith.constant 0 : index
    %184 = vector.load %arg11[%c1, %c0_139] : memref<272x128xf32, #tpu.memory_space<vmem>>, vector<232x128xf32>
    %c0_140 = arith.constant 0 : index
    %c128 = arith.constant 128 : index
    %185 = vector.load %arg12[%c0_140, %c128] : memref<232x1152xf32, #tpu.memory_space<vmem>>, vector<232x128xf32>
    tpu.vector_store %arg12[%c0_140, %c128], %184 {strides = array<i32>} : memref<232x1152xf32, #tpu.memory_space<vmem>>, vector<232x128xf32>,
    %c2 = arith.constant 2 : index
    %c0_141 = arith.constant 0 : index
    %186 = vector.load %arg11[%c2, %c0_141] : memref<272x128xf32, #tpu.memory_space<vmem>>, vector<232x128xf32>
    %c0_142 = arith.constant 0 : index
    %c256 = arith.constant 256 : index
    %187 = vector.load %arg12[%c0_142, %c256] : memref<232x1152xf32, #tpu.memory_space<vmem>>, vector<232x128xf32>
    tpu.vector_store %arg12[%c0_142, %c256], %186 {strides = array<i32>} : memref<232x1152xf32, #tpu.memory_space<vmem>>, vector<232x128xf32>,
    %c16 = arith.constant 16 : index
    %c0_143 = arith.constant 0 : index
    %188 = vector.load %arg11[%c16, %c0_143] : memref<272x128xf32, #tpu.memory_space<vmem>>, vector<232x128xf32>
    %c0_144 = arith.constant 0 : index
    %c384 = arith.constant 384 : index
    %189 = vector.load %arg12[%c0_144, %c384] : memref<232x1152xf32, #tpu.memory_space<vmem>>, vector<232x128xf32>
    tpu.vector_store %arg12[%c0_144, %c384], %188 {strides = array<i32>} : memref<232x1152xf32, #tpu.memory_space<vmem>>, vector<232x128xf32>,
    %c17_145 = arith.constant 17 : index
    %c0_146 = arith.constant 0 : index
    %190 = vector.load %arg11[%c17_145, %c0_146] : memref<272x128xf32, #tpu.memory_space<vmem>>, vector<232x128xf32>
    %c0_147 = arith.constant 0 : index
    %c512 = arith.constant 512 : index
    %191 = vector.load %arg12[%c0_147, %c512] : memref<232x1152xf32, #tpu.memory_space<vmem>>, vector<232x128xf32>
    tpu.vector_store %arg12[%c0_147, %c512], %190 {strides = array<i32>} : memref<232x1152xf32, #tpu.memory_space<vmem>>, vector<232x128xf32>,
    %c18 = arith.constant 18 : index
    %c0_148 = arith.constant 0 : index
    %192 = vector.load %arg11[%c18, %c0_148] : memref<272x128xf32, #tpu.memory_space<vmem>>, vector<232x128xf32>
    %c0_149 = arith.constant 0 : index
    %c640 = arith.constant 640 : index
    %193 = vector.load %arg12[%c0_149, %c640] : memref<232x1152xf32, #tpu.memory_space<vmem>>, vector<232x128xf32>
    tpu.vector_store %arg12[%c0_149, %c640], %192 {strides = array<i32>} : memref<232x1152xf32, #tpu.memory_space<vmem>>, vector<232x128xf32>,
    %c32 = arith.constant 32 : index
    %c0_150 = arith.constant 0 : index
    %194 = vector.load %arg11[%c32, %c0_150] : memref<272x128xf32, #tpu.memory_space<vmem>>, vector<232x128xf32>
    %c0_151 = arith.constant 0 : index
    %c768 = arith.constant 768 : index
    %195 = vector.load %arg12[%c0_151, %c768] : memref<232x1152xf32, #tpu.memory_space<vmem>>, vector<232x128xf32>
    tpu.vector_store %arg12[%c0_151, %c768], %194 {strides = array<i32>} : memref<232x1152xf32, #tpu.memory_space<vmem>>, vector<232x128xf32>,
    %c33_152 = arith.constant 33 : index
    %c0_153 = arith.constant 0 : index
    %196 = vector.load %arg11[%c33_152, %c0_153] : memref<272x128xf32, #tpu.memory_space<vmem>>, vector<232x128xf32>
    %c0_154 = arith.constant 0 : index
    %c896 = arith.constant 896 : index
    %197 = vector.load %arg12[%c0_154, %c896] : memref<232x1152xf32, #tpu.memory_space<vmem>>, vector<232x128xf32>
    tpu.vector_store %arg12[%c0_154, %c896], %196 {strides = array<i32>} : memref<232x1152xf32, #tpu.memory_space<vmem>>, vector<232x128xf32>,
    %c34 = arith.constant 34 : index
    %c0_155 = arith.constant 0 : index
    %198 = vector.load %arg11[%c34, %c0_155] : memref<272x128xf32, #tpu.memory_space<vmem>>, vector<232x128xf32>
    %c0_156 = arith.constant 0 : index
    %c1024 = arith.constant 1024 : index
    %199 = vector.load %arg12[%c0_156, %c1024] : memref<232x1152xf32, #tpu.memory_space<vmem>>, vector<232x128xf32>
    tpu.vector_store %arg12[%c0_156, %c1024], %198 {strides = array<i32>} : memref<232x1152xf32, #tpu.memory_space<vmem>>, vector<232x128xf32>,
    %c0_157 = arith.constant 0 : index
    %c0_158 = arith.constant 0 : index
    %200 = vector.load %arg12[%c0_157, %c0_158] : memref<232x1152xf32, #tpu.memory_space<vmem>>, vector<232x1152xf32>
    %c0_159 = arith.constant 0 : index
    %c0_160 = arith.constant 0 : index
    %201 = vector.load %arg5[%c0_159, %c0_160] : memref<1152x256xf32, #tpu.memory_space<vmem>>, vector<1152x256xf32>
    %cst_161 = arith.constant dense<0.000000e+00> : vector<232x256xf32>
    %202 = tpu.matmul %200, %201, %cst_161 {dimension_numbers = #tpu.dot_dimension_numbers<[1], [0], [0], [1], [0, 0, 1, 1], [], []>} : vector<232x1152xf32>, vector<1152x256xf32>, vector<232x256xf32> -> vector<232x256xf32>
    %c0_162 = arith.constant 0 : index
    %c0_163 = arith.constant 0 : index
    %203 = vector.load %arg13[%c0_162, %c0_163] : memref<232x256xf32, #tpu.memory_space<vmem>>, vector<232x256xf32>
    tpu.vector_store %arg13[%c0_162, %c0_163], %202 {strides = array<i32>} : memref<232x256xf32, #tpu.memory_space<vmem>>, vector<232x256xf32>,
    %c0_164 = arith.constant 0 : index
    %c0_165 = arith.constant 0 : index
    %204 = vector.load %arg13[%c0_164, %c0_165] : memref<232x256xf32, #tpu.memory_space<vmem>>, vector<52x256xf32>
    %c1_166 = arith.constant 1 : index
    %c0_167 = arith.constant 0 : index
    %205 = vector.load %arg13[%c1_166, %c0_167] : memref<232x256xf32, #tpu.memory_space<vmem>>, vector<52x256xf32>
    %206 = arith.maximumf %204, %205 : vector<52x256xf32>
    %c16_168 = arith.constant 16 : index
    %c0_169 = arith.constant 0 : index
    %207 = vector.load %arg13[%c16_168, %c0_169] : memref<232x256xf32, #tpu.memory_space<vmem>>, vector<52x256xf32>
    %c17_170 = arith.constant 17 : index
    %c0_171 = arith.constant 0 : index
    %208 = vector.load %arg13[%c17_170, %c0_171] : memref<232x256xf32, #tpu.memory_space<vmem>>, vector<52x256xf32>
    %209 = arith.maximumf %207, %208 : vector<52x256xf32>
    %210 = arith.maximumf %206, %209 : vector<52x256xf32>
    %211 = vector.broadcast %1 : vector<1x256xf32> to vector<52x256xf32>
    %212 = arith.addf %210, %211 : vector<52x256xf32>
    %cst_172 = arith.constant 0.000000e+00 : f32
    %213 = vector.broadcast %cst_172 : f32 to vector<52x256xf32>
    %214 = arith.maximumf %212, %213 : vector<52x256xf32>
    %c0_173 = arith.constant 0 : index
    %c0_174 = arith.constant 0 : index
    %215 = vector.load %arg14[%c0_173, %c0_174] : memref<208x256xf32, #tpu.memory_space<vmem>>, vector<52x256xf32>
    tpu.vector_store %arg14[%c0_173, %c0_174], %214 {strides = array<i32>} : memref<208x256xf32, #tpu.memory_space<vmem>>, vector<52x256xf32>,
    %c52 = arith.constant 52 : index
    %c0_175 = arith.constant 0 : index
    %216 = vector.load %arg13[%c52, %c0_175] : memref<232x256xf32, #tpu.memory_space<vmem>>, vector<52x256xf32>
    %c53 = arith.constant 53 : index
    %c0_176 = arith.constant 0 : index
    %217 = vector.load %arg13[%c53, %c0_176] : memref<232x256xf32, #tpu.memory_space<vmem>>, vector<52x256xf32>
    %218 = arith.maximumf %216, %217 : vector<52x256xf32>
    %c68 = arith.constant 68 : index
    %c0_177 = arith.constant 0 : index
    %219 = vector.load %arg13[%c68, %c0_177] : memref<232x256xf32, #tpu.memory_space<vmem>>, vector<52x256xf32>
    %c69 = arith.constant 69 : index
    %c0_178 = arith.constant 0 : index
    %220 = vector.load %arg13[%c69, %c0_178] : memref<232x256xf32, #tpu.memory_space<vmem>>, vector<52x256xf32>
    %221 = arith.maximumf %219, %220 : vector<52x256xf32>
    %222 = arith.maximumf %218, %221 : vector<52x256xf32>
    %223 = vector.broadcast %1 : vector<1x256xf32> to vector<52x256xf32>
    %224 = arith.addf %222, %223 : vector<52x256xf32>
    %cst_179 = arith.constant 0.000000e+00 : f32
    %225 = vector.broadcast %cst_179 : f32 to vector<52x256xf32>
    %226 = arith.maximumf %224, %225 : vector<52x256xf32>
    %c52_180 = arith.constant 52 : index
    %c0_181 = arith.constant 0 : index
    %227 = vector.load %arg14[%c52_180, %c0_181] : memref<208x256xf32, #tpu.memory_space<vmem>>, vector<52x256xf32>
    tpu.vector_store %arg14[%c52_180, %c0_181], %226 {strides = array<i32>} : memref<208x256xf32, #tpu.memory_space<vmem>>, vector<52x256xf32>,
    %c104 = arith.constant 104 : index
    %c0_182 = arith.constant 0 : index
    %228 = vector.load %arg13[%c104, %c0_182] : memref<232x256xf32, #tpu.memory_space<vmem>>, vector<52x256xf32>
    %c105_183 = arith.constant 105 : index
    %c0_184 = arith.constant 0 : index
    %229 = vector.load %arg13[%c105_183, %c0_184] : memref<232x256xf32, #tpu.memory_space<vmem>>, vector<52x256xf32>
    %230 = arith.maximumf %228, %229 : vector<52x256xf32>
    %c120_185 = arith.constant 120 : index
    %c0_186 = arith.constant 0 : index
    %231 = vector.load %arg13[%c120_185, %c0_186] : memref<232x256xf32, #tpu.memory_space<vmem>>, vector<52x256xf32>
    %c121 = arith.constant 121 : index
    %c0_187 = arith.constant 0 : index
    %232 = vector.load %arg13[%c121, %c0_187] : memref<232x256xf32, #tpu.memory_space<vmem>>, vector<52x256xf32>
    %233 = arith.maximumf %231, %232 : vector<52x256xf32>
    %234 = arith.maximumf %230, %233 : vector<52x256xf32>
    %235 = vector.broadcast %1 : vector<1x256xf32> to vector<52x256xf32>
    %236 = arith.addf %234, %235 : vector<52x256xf32>
    %cst_188 = arith.constant 0.000000e+00 : f32
    %237 = vector.broadcast %cst_188 : f32 to vector<52x256xf32>
    %238 = arith.maximumf %236, %237 : vector<52x256xf32>
    %c104_189 = arith.constant 104 : index
    %c0_190 = arith.constant 0 : index
    %239 = vector.load %arg14[%c104_189, %c0_190] : memref<208x256xf32, #tpu.memory_space<vmem>>, vector<52x256xf32>
    tpu.vector_store %arg14[%c104_189, %c0_190], %238 {strides = array<i32>} : memref<208x256xf32, #tpu.memory_space<vmem>>, vector<52x256xf32>,
    %c156 = arith.constant 156 : index
    %c0_191 = arith.constant 0 : index
    %240 = vector.load %arg13[%c156, %c0_191] : memref<232x256xf32, #tpu.memory_space<vmem>>, vector<52x256xf32>
    %c157 = arith.constant 157 : index
    %c0_192 = arith.constant 0 : index
    %241 = vector.load %arg13[%c157, %c0_192] : memref<232x256xf32, #tpu.memory_space<vmem>>, vector<52x256xf32>
    %242 = arith.maximumf %240, %241 : vector<52x256xf32>
    %c172 = arith.constant 172 : index
    %c0_193 = arith.constant 0 : index
    %243 = vector.load %arg13[%c172, %c0_193] : memref<232x256xf32, #tpu.memory_space<vmem>>, vector<52x256xf32>
    %c173 = arith.constant 173 : index
    %c0_194 = arith.constant 0 : index
    %244 = vector.load %arg13[%c173, %c0_194] : memref<232x256xf32, #tpu.memory_space<vmem>>, vector<52x256xf32>
    %245 = arith.maximumf %243, %244 : vector<52x256xf32>
    %246 = arith.maximumf %242, %245 : vector<52x256xf32>
    %247 = vector.broadcast %1 : vector<1x256xf32> to vector<52x256xf32>
    %248 = arith.addf %246, %247 : vector<52x256xf32>
    %cst_195 = arith.constant 0.000000e+00 : f32
    %249 = vector.broadcast %cst_195 : f32 to vector<52x256xf32>
    %250 = arith.maximumf %248, %249 : vector<52x256xf32>
    %c156_196 = arith.constant 156 : index
    %c0_197 = arith.constant 0 : index
    %251 = vector.load %arg14[%c156_196, %c0_197] : memref<208x256xf32, #tpu.memory_space<vmem>>, vector<52x256xf32>
    tpu.vector_store %arg14[%c156_196, %c0_197], %250 {strides = array<i32>} : memref<208x256xf32, #tpu.memory_space<vmem>>, vector<52x256xf32>,
    %c0_198 = arith.constant 0 : index
    %c0_199 = arith.constant 0 : index
    %252 = vector.load %arg7[%c0_198, %c0_199] : memref<56x208xf32, #tpu.memory_space<vmem>>, vector<56x208xf32>
    %c0_200 = arith.constant 0 : index
    %c0_201 = arith.constant 0 : index
    %253 = vector.load %arg14[%c0_200, %c0_201] : memref<208x256xf32, #tpu.memory_space<vmem>>, vector<208x256xf32>
    %cst_202 = arith.constant dense<0.000000e+00> : vector<56x256xf32>
    %254 = tpu.matmul %252, %253, %cst_202 {dimension_numbers = #tpu.dot_dimension_numbers<[1], [0], [0], [1], [0, 0, 1, 1], [], []>} : vector<56x208xf32>, vector<208x256xf32>, vector<56x256xf32> -> vector<56x256xf32>
    %c0_203 = arith.constant 0 : index
    %c0_204 = arith.constant 0 : index
    %c0_205 = arith.constant 0 : index
    %255 = vector.load %arg8[%c0_203, %c0_204, %c0_205] : memref<1x56x256xf32, #tpu.memory_space<vmem>>, vector<1x56x256xf32>
    %256 = vector.shape_cast %255 : vector<1x56x256xf32> to vector<56x256xf32>
    %257 = vector.shape_cast %254 : vector<56x256xf32> to vector<1x56x256xf32>
    tpu.vector_store %arg8[%c0_203, %c0_204, %c0_205], %257 {strides = array<i32>} : memref<1x56x256xf32, #tpu.memory_space<vmem>>, vector<1x56x256xf32>,
    return
  }
  func.func @transform_0(%arg0: i32) -> (i32, i32, i32) {
    %c0_i32 = arith.constant 0 : i32
    %c0_i32_0 = arith.constant 0 : i32
    %c0_i32_1 = arith.constant 0 : i32
    return %arg0, %c0_i32, %c0_i32_0 : i32, i32, i32
  }
  func.func @transform_1(%arg0: i32) -> (i32, i32, i32) {
    %c0_i32 = arith.constant 0 : i32
    %c0_i32_0 = arith.constant 0 : i32
    %c0_i32_1 = arith.constant 0 : i32
    return %arg0, %c0_i32, %c0_i32_0 : i32, i32, i32
  }
  func.func @transform_2(%arg0: i32) -> (i32, i32) {
    %c0_i32 = arith.constant 0 : i32
    %c0_i32_0 = arith.constant 0 : i32
    %c0_i32_1 = arith.constant 0 : i32
    return %c0_i32, %c0_i32_0 : i32, i32
  }
  func.func @transform_3(%arg0: i32) -> (i32, i32) {
    %c0_i32 = arith.constant 0 : i32
    %c0_i32_0 = arith.constant 0 : i32
    %c0_i32_1 = arith.constant 0 : i32
    return %c0_i32, %c0_i32_0 : i32, i32
  }
  func.func @transform_4(%arg0: i32) -> (i32, i32) {
    %c0_i32 = arith.constant 0 : i32
    %c0_i32_0 = arith.constant 0 : i32
    %c0_i32_1 = arith.constant 0 : i32
    return %c0_i32, %c0_i32_0 : i32, i32
  }
  func.func @transform_5(%arg0: i32) -> (i32, i32) {
    %c0_i32 = arith.constant 0 : i32
    %c0_i32_0 = arith.constant 0 : i32
    %c0_i32_1 = arith.constant 0 : i32
    return %c0_i32, %c0_i32_0 : i32, i32
  }
  func.func @transform_6(%arg0: i32) -> (i32, i32) {
    %c0_i32 = arith.constant 0 : i32
    %c0_i32_0 = arith.constant 0 : i32
    %c0_i32_1 = arith.constant 0 : i32
    return %c0_i32, %c0_i32_0 : i32, i32
  }
  func.func @transform_7(%arg0: i32) -> (i32, i32, i32) {
    %c0_i32 = arith.constant 0 : i32
    %c0_i32_0 = arith.constant 0 : i32
    %c0_i32_1 = arith.constant 0 : i32
    return %arg0, %c0_i32, %c0_i32_0 : i32, i32, i32
  }
}

module attributes {stable_mosaic.version = 11 : i64} {
  func.func @_fc_kernel(%arg0: i32, %arg1: memref<8x1792xf32, #tpu.memory_space<vmem>>, %arg2: memref<1792x128xf32, #tpu.memory_space<vmem>>, %arg3: memref<1x128xf32, #tpu.memory_space<vmem>>, %arg4: memref<8x128xf32, #tpu.memory_space<vmem>>) attributes {dimension_semantics = [#tpu.dimension_semantics<parallel>], iteration_bounds = array<i64: 1>, scalar_prefetch = 0 : i64, scratch_operands = 0 : i64, tpu.core_type = #tpu.core_type<tc>, window_params = [{transform_indices = @transform_0, window_bounds = array<i64: 8, 1792>}, {pipeline_mode = #tpu.pipeline_mode<synchronous>, transform_indices = @transform_1, window_bounds = array<i64: 1792, 128>}, {pipeline_mode = #tpu.pipeline_mode<synchronous>, transform_indices = @transform_2, window_bounds = array<i64: 1, 128>}, {transform_indices = @transform_3, window_bounds = array<i64: 8, 128>}]} {
    %c0 = arith.constant 0 : index
    %c0_0 = arith.constant 0 : index
    %0 = vector.load %arg1[%c0, %c0_0] : memref<8x1792xf32, #tpu.memory_space<vmem>>, vector<8x1792xf32>
    %c0_1 = arith.constant 0 : index
    %c0_2 = arith.constant 0 : index
    %1 = vector.load %arg2[%c0_1, %c0_2] : memref<1792x128xf32, #tpu.memory_space<vmem>>, vector<1792x128xf32>
    %cst = arith.constant dense<0.000000e+00> : vector<8x128xf32>
    %2 = tpu.matmul %0, %1, %cst {dimension_numbers = #tpu.dot_dimension_numbers<[1], [0], [0], [1], [0, 0, 1, 1], [], []>} : vector<8x1792xf32>, vector<1792x128xf32>, vector<8x128xf32> -> vector<8x128xf32>
    %c0_3 = arith.constant 0 : index
    %c0_4 = arith.constant 0 : index
    %3 = vector.load %arg3[%c0_3, %c0_4] : memref<1x128xf32, #tpu.memory_space<vmem>>, vector<1x128xf32>
    %4 = vector.broadcast %3 : vector<1x128xf32> to vector<8x128xf32>
    %5 = arith.addf %2, %4 : vector<8x128xf32>
    %c0_5 = arith.constant 0 : index
    %c0_6 = arith.constant 0 : index
    %6 = vector.load %arg4[%c0_5, %c0_6] : memref<8x128xf32, #tpu.memory_space<vmem>>, vector<8x128xf32>
    tpu.vector_store %arg4[%c0_5, %c0_6], %5 {strides = array<i32>} : memref<8x128xf32, #tpu.memory_space<vmem>>, vector<8x128xf32>,
    return
  }
  func.func @transform_0(%arg0: i32) -> (i32, i32) {
    %c0_i32 = arith.constant 0 : i32
    %c0_i32_0 = arith.constant 0 : i32
    return %arg0, %c0_i32 : i32, i32
  }
  func.func @transform_1(%arg0: i32) -> (i32, i32) {
    %c0_i32 = arith.constant 0 : i32
    %c0_i32_0 = arith.constant 0 : i32
    %c0_i32_1 = arith.constant 0 : i32
    return %c0_i32, %c0_i32_0 : i32, i32
  }
  func.func @transform_2(%arg0: i32) -> (i32, i32) {
    %c0_i32 = arith.constant 0 : i32
    %c0_i32_0 = arith.constant 0 : i32
    %c0_i32_1 = arith.constant 0 : i32
    return %c0_i32, %c0_i32_0 : i32, i32
  }
  func.func @transform_3(%arg0: i32) -> (i32, i32) {
    %c0_i32 = arith.constant 0 : i32
    %c0_i32_0 = arith.constant 0 : i32
    return %arg0, %c0_i32 : i32, i32
  }
}

</mosaic_0001>

<bundles_post_ra>
// kernel: simple_cnn_forward.3
= control target key start
LH: loop header
LB: loop body
LE: loop exit
PB: predicated region body
PF: predicated region fallthrough
CT: control target
= control target key end

     0   :  { %s2010_s0 = inlined_call_operand.vmem [shape: f32[8,1792], index: 0, kind: input, shape index: {}]   ;;  %s2011_s1 = inlined_call_operand.vmem [shape: f32[1792,128], index: 1, kind: input, shape index: {}]   ;;  %s2012_s2 = inlined_call_operand.vmem [shape: f32[1,128], index: 2, kind: input, shape index: {}]   ;;  %s2013_s3 = inlined_call_operand.hbm [shape: f32[8,128], index: 3, kind: output, shape index: {}]  }
   0x1   :  { %v45_v0 = vld [vmem:[%s2011_s1 + $0x80] sm:$0xff]  ;;  %v46_v1 = vld [vmem:[%s2011_s1 + $0x88] sm:$0xff]  ;;  %v47_v11 = vld [vmem:[%s2011_s1 + $0x90] sm:$0xff] }
   0x2   :  { %v29_v2 = vld [vmem:[%s2011_s1] sm:$0xff]  ;;  %v1011_v3 = vpack.c.bf16 %v46_v1, %v45_v0  ;;  %v30_v4 = vld [vmem:[%s2011_s1 + $0x8] sm:$0xff]  ;;  %v48_v13 = vld [vmem:[%s2011_s1 + $0x98] sm:$0xff] }
   0x3   :  { %v77_v5 = vld [vmem:[%s2011_s1 + $0x180] sm:$0xff]  ;;  %v78_v6 = vld [vmem:[%s2011_s1 + $0x188] sm:$0xff]  ;;  %v1013_v7 = vpack.c.bf16 %v30_v4, %v29_v2  ;;  %v31_v14 = vld [vmem:[%s2011_s1 + $0x10] sm:$0xff]  ;;  %v1015_v16 = vpack.c.bf16 %v48_v13, %v47_v11 }
   0x4   :  { %v1043_v8 = vpack.c.bf16 %v78_v6, %v77_v5  ;;  %v61_v9 = vld [vmem:[%s2011_s1 + $0x100] sm:$0xff]  ;;  %v62_v10 = vld [vmem:[%s2011_s1 + $0x108] sm:$0xff]  ;;  %1012 = vmatprep.subr.bf16.mxu0 %v1011_v3  ;;  %v32_v15 = vld [vmem:[%s2011_s1 + $0x18] sm:$0xff] }
   0x5   :  { %v1045_v12 = vpack.c.bf16 %v62_v10, %v61_v9  ;;  %1014 = vmatpush3.bf16.msra.mxu0 %v1013_v7  ;;  %v1017_v17 = vpack.c.bf16 %v32_v15, %v31_v14  ;;  %v79_v18 = vld [vmem:[%s2011_s1 + $0x190] sm:$0xff]  ;;  %v80_v19 = vld [vmem:[%s2011_s1 + $0x198] sm:$0xff]  ;;  %v49_v23 = vld [vmem:[%s2011_s1 + $0xa0] sm:$0xff] }
   0x6   :  { %1044 = vmatprep.subr.bf16.mxu1 %v1043_v8  ;;  %v63_v20 = vld [vmem:[%s2011_s1 + $0x110] sm:$0xff]  ;;  %v1047_v21 = vpack.c.bf16 %v80_v19, %v79_v18  ;;  %v64_v22 = vld [vmem:[%s2011_s1 + $0x118] sm:$0xff]  ;;  %v50_v24 = vld [vmem:[%s2011_s1 + $0xa8] sm:$0xff]  ;;  %1016 = vmatprep.subr.bf16.mxu0 %v1015_v16 }
   0x7   :  { %1046 = vmatpush3.bf16.msra.mxu1 %v1045_v12  ;;  %v1049_v25 = vpack.c.bf16 %v64_v22, %v63_v20  ;;  %v1019_v26 = vpack.c.bf16 %v50_v24, %v49_v23  ;;  %v33_v27 = vld [vmem:[%s2011_s1 + $0x20] sm:$0xff]  ;;  %v34_v28 = vld [vmem:[%s2011_s1 + $0x28] sm:$0xff]  ;;  %v51_v35 = vld [vmem:[%s2011_s1 + $0xb0] sm:$0xff] }
   0x8   :  { %v81_v29 = vld [vmem:[%s2011_s1 + $0x1a0] sm:$0xff]  ;;  %1048 = vmatprep.subr.bf16.mxu1 %v1047_v21  ;;  %v82_v30 = vld [vmem:[%s2011_s1 + $0x1a8] sm:$0xff]  ;;  %v1021_v33 = vpack.c.bf16 %v34_v28, %v33_v27  ;;  %v52_v36 = vld [vmem:[%s2011_s1 + $0xb8] sm:$0xff] }
   0x9   :  { %v65_v31 = vld [vmem:[%s2011_s1 + $0x120] sm:$0xff]  ;;  %v66_v32 = vld [vmem:[%s2011_s1 + $0x128] sm:$0xff]  ;;  %1018 = vmatpush3.bf16.msra.mxu0 %v1017_v17  ;;  %v1051_v34 = vpack.c.bf16 %v82_v30, %v81_v29  ;;  %v35_v37 = vld [vmem:[%s2011_s1 + $0x30] sm:$0xff]  ;;  %v1023_v39 = vpack.c.bf16 %v52_v36, %v51_v35 }
   0xa   :  { %1020 = vmatprep.subr.bf16.mxu0 %v1019_v26  ;;  %v1053_v38 = vpack.c.bf16 %v66_v32, %v65_v31  ;;  %v36_v40 = vld [vmem:[%s2011_s1 + $0x38] sm:$0xff]  ;;  %v83_v41 = vld [vmem:[%s2011_s1 + $0x1b0] sm:$0xff]  ;;  %v53_v46 = vld [vmem:[%s2011_s1 + $0xc0] sm:$0xff] }
   0xb   :  { %1050 = vmatpush3.bf16.msra.mxu1 %v1049_v25  ;;  %v84_v42 = vld [vmem:[%s2011_s1 + $0x1b8] sm:$0xff]  ;;  %v67_v44 = vld [vmem:[%s2011_s1 + $0x130] sm:$0xff]  ;;  %v54_v47 = vld [vmem:[%s2011_s1 + $0xc8] sm:$0xff]  ;;  %v1025_v48 = vpack.c.bf16 %v36_v40, %v35_v37 }
   0xc   :  { %1052 = vmatprep.subr.bf16.mxu1 %v1051_v34  ;;  %v1055_v43 = vpack.c.bf16 %v84_v42, %v83_v41  ;;  %v68_v45 = vld [vmem:[%s2011_s1 + $0x138] sm:$0xff]  ;;  %v85_v49 = vld [vmem:[%s2011_s1 + $0x1c0] sm:$0xff]  ;;  %v86_v50 = vld [vmem:[%s2011_s1 + $0x1c8] sm:$0xff]  ;;  %v1027_v52 = vpack.c.bf16 %v54_v47, %v53_v46 }
   0xd   :  { %1022 = vmatpush3.bf16.msra.mxu0 %v1021_v33  ;;  %v1057_v51 = vpack.c.bf16 %v68_v45, %v67_v44  ;;  %v37_v53 = vld [vmem:[%s2011_s1 + $0x40] sm:$0xff]  ;;  %v38_v54 = vld [vmem:[%s2011_s1 + $0x48] sm:$0xff]  ;;  %v1059_v56 = vpack.c.bf16 %v86_v50, %v85_v49  ;;  %v55_v58 = vld [vmem:[%s2011_s1 + $0xd0] sm:$0xff] }
   0xe   :  { %1024 = vmatprep.subr.bf16.mxu0 %v1023_v39  ;;  %v69_v55 = vld [vmem:[%s2011_s1 + $0x140] sm:$0xff]  ;;  %v70_v57 = vld [vmem:[%s2011_s1 + $0x148] sm:$0xff]  ;;  %v56_v59 = vld [vmem:[%s2011_s1 + $0xd8] sm:$0xff]  ;;  %v1029_v62 = vpack.c.bf16 %v38_v54, %v37_v53 }
   0xf   :  { %1054 = vmatpush3.bf16.msra.mxu1 %v1053_v38  ;;  %v87_v60 = vld [vmem:[%s2011_s1 + $0x1d0] sm:$0xff]  ;;  %v88_v61 = vld [vmem:[%s2011_s1 + $0x1d8] sm:$0xff]  ;;  %v1061_v63 = vpack.c.bf16 %v70_v57, %v69_v55  ;;  %v1031_v0 = vpack.c.bf16 %v56_v59, %v55_v58  ;;  %v57_v6 = vld [vmem:[%s2011_s1 + $0xe0] sm:$0xff] }
  0x10   :  { %1056 = vmatprep.subr.bf16.mxu1 %v1055_v43  ;;  %v39_v1 = vld [vmem:[%s2011_s1 + $0x50] sm:$0xff]  ;;  %v40_v2 = vld [vmem:[%s2011_s1 + $0x58] sm:$0xff]  ;;  %v1063_v4 = vpack.c.bf16 %v88_v61, %v87_v60  ;;  %v58_v7 = vld [vmem:[%s2011_s1 + $0xe8] sm:$0xff] }
  0x11   :  { %1026 = vmatpush3.bf16.msra.mxu0 %v1025_v48  ;;  %v71_v3 = vld [vmem:[%s2011_s1 + $0x150] sm:$0xff]  ;;  %v72_v5 = vld [vmem:[%s2011_s1 + $0x158] sm:$0xff]  ;;  %v89_v8 = vld [vmem:[%s2011_s1 + $0x1e0] sm:$0xff]  ;;  %v1033_v10 = vpack.c.bf16 %v40_v2, %v39_v1  ;;  %v1035_v14 = vpack.c.bf16 %v58_v7, %v57_v6 }
  0x12   :  { %1028 = vmatprep.subr.bf16.mxu0 %v1027_v52  ;;  %v90_v9 = vld [vmem:[%s2011_s1 + $0x1e8] sm:$0xff]  ;;  %v41_v11 = vld [vmem:[%s2011_s1 + $0x60] sm:$0xff]  ;;  %v1065_v13 = vpack.c.bf16 %v72_v5, %v71_v3  ;;  %v59_v19 = vld [vmem:[%s2011_s1 + $0xf0] sm:$0xff] }
  0x13   :  { %1058 = vmatpush3.bf16.msra.mxu1 %v1057_v51  ;;  %v16_v12 = vld [vmem:[%s2010_s0 + $0x8] sm:$0xff]  ;;  %v73_v16 = vld [vmem:[%s2011_s1 + $0x160] sm:$0xff]  ;;  %v1067_v18 = vpack.c.bf16 %v90_v9, %v89_v8  ;;  %v60_v20 = vld [vmem:[%s2011_s1 + $0xf8] sm:$0xff] }
  0x14   :  { %1060 = vmatprep.subr.bf16.mxu1 %v1059_v56  ;;  %v42_v15 = vld [vmem:[%s2011_s1 + $0x68] sm:$0xff]  ;;  %324 = vmatprep.mubr.f32.mxu0 %v16_v12  ;;  %v18_v21 = vld [vmem:[%s2010_s0 + $0x18] sm:$0xff]  ;;  %v91_v22 = vld [vmem:[%s2011_s1 + $0x1f0] sm:$0xff]  ;;  %v1039_v26 = vpack.c.bf16 %v60_v20, %v59_v19 }
  0x15   :  { %1030 = vmatpush3.bf16.msra.mxu0 %v1029_v62  ;;  %v74_v17 = vld [vmem:[%s2011_s1 + $0x168] sm:$0xff]  ;;  %v92_v23 = vld [vmem:[%s2011_s1 + $0x1f8] sm:$0xff]  ;;  %394 = vmatprep.mubr.f32.mxu1 %v18_v21  ;;  %v1037_v24 = vpack.c.bf16 %v42_v15, %v41_v11  ;;  %v43_v27 = vld [vmem:[%s2011_s1 + $0x70] sm:$0xff] }
  0x16   :  { %1032 = vmatprep.subr.bf16.mxu0 %v1031_v0  ;;  %v1069_v25 = vpack.c.bf16 %v74_v17, %v73_v16  ;;  %v44_v28 = vld [vmem:[%s2011_s1 + $0x78] sm:$0xff]  ;;  %v75_v29 = vld [vmem:[%s2011_s1 + $0x170] sm:$0xff]  ;;  %v1071_v30 = vpack.c.bf16 %v92_v23, %v91_v22  ;;  %v109_v32 = vld [vmem:[%s2011_s1 + $0x280] sm:$0xff] }
  0x17   :  { %1062 = vmatpush3.bf16.msra.mxu1 %v1061_v63  ;;  %v76_v31 = vld [vmem:[%s2011_s1 + $0x178] sm:$0xff]  ;;  %v110_v33 = vld [vmem:[%s2011_s1 + $0x288] sm:$0xff]  ;;  %v141_v34 = vld [vmem:[%s2011_s1 + $0x380] sm:$0xff]  ;;  %v1041_v36 = vpack.c.bf16 %v44_v28, %v43_v27 }
  0x18   :  { %1064 = vmatprep.subr.bf16.mxu1 %v1063_v4  ;;  %v142_v35 = vld [vmem:[%s2011_s1 + $0x388] sm:$0xff]  ;;  %v1073_v37 = vpack.c.bf16 %v76_v31, %v75_v29  ;;  %v1075_v38 = vpack.c.bf16 %v110_v33, %v109_v32  ;;  %v93_v39 = vld [vmem:[%s2011_s1 + $0x200] sm:$0xff]  ;;  %v111_v44 = vld [vmem:[%s2011_s1 + $0x290] sm:$0xff] }
  0x19   :  { %1034 = vmatpush3.bf16.msra.mxu0 %v1033_v10  ;;  %v94_v40 = vld [vmem:[%s2011_s1 + $0x208] sm:$0xff]  ;;  %v125_v41 = vld [vmem:[%s2011_s1 + $0x300] sm:$0xff]  ;;  %v1107_v42 = vpack.c.bf16 %v142_v35, %v141_v34  ;;  %v112_v45 = vld [vmem:[%s2011_s1 + $0x298] sm:$0xff] }
  0x1a   :  { %1036 = vmatprep.subr.bf16.mxu0 %v1035_v14  ;;  %v126_v43 = vld [vmem:[%s2011_s1 + $0x308] sm:$0xff]  ;;  %v143_v46 = vld [vmem:[%s2011_s1 + $0x390] sm:$0xff]  ;;  %v144_v47 = vld [vmem:[%s2011_s1 + $0x398] sm:$0xff]  ;;  %v1077_v49 = vpack.c.bf16 %v94_v40, %v93_v39  ;;  %v1079_v52 = vpack.c.bf16 %v112_v45, %v111_v44 }
  0x1b   :  { %1066 = vmatpush3.bf16.msra.mxu1 %v1065_v13  ;;  %v15_v48 = vld [vmem:[%s2010_s0] sm:$0xff]  ;;  %v17_v50 = vld [vmem:[%s2010_s0 + $0x10] sm:$0xff]  ;;  %v1109_v51 = vpack.c.bf16 %v126_v43, %v125_v41  ;;  %v96_v54 = vld [vmem:[%s2011_s1 + $0x218] sm:$0xff]  ;;  %v1111_v56 = vpack.c.bf16 %v144_v47, %v143_v46 }
  0x1c   :  { %1068 = vmatprep.subr.bf16.mxu1 %v1067_v18  ;;  %v95_v53 = vld [vmem:[%s2011_s1 + $0x210] sm:$0xff]  ;;  %v128_v57 = vld [vmem:[%s2011_s1 + $0x318] sm:$0xff]  ;;  %v113_v58 = vld [vmem:[%s2011_s1 + $0x2a0] sm:$0xff] }
  0x1d   :  { %1038 = vmatpush3.bf16.msra.mxu0 %v1037_v24  ;;  %v127_v55 = vld [vmem:[%s2011_s1 + $0x310] sm:$0xff]  ;;  %v114_v59 = vld [vmem:[%s2011_s1 + $0x2a8] sm:$0xff]  ;;  %v145_v60 = vld [vmem:[%s2011_s1 + $0x3a0] sm:$0xff]  ;;  %v1081_v62 = vpack.c.bf16 %v96_v54, %v95_v53 }
  0x1e   :  { %1040 = vmatprep.subr.bf16.mxu0 %v1039_v26  ;;  %v146_v61 = vld [vmem:[%s2011_s1 + $0x3a8] sm:$0xff]  ;;  %v1113_v63 = vpack.c.bf16 %v128_v57, %v127_v55  ;;  %v1083_v0 = vpack.c.bf16 %v114_v59, %v113_v58  ;;  %v97_v1 = vld [vmem:[%s2011_s1 + $0x220] sm:$0xff]  ;;  %v115_v6 = vld [vmem:[%s2011_s1 + $0x2b0] sm:$0xff] }
  0x1f   :  { %1070 = vmatpush3.bf16.msra.mxu1 %v1069_v25  ;;  %v98_v2 = vld [vmem:[%s2011_s1 + $0x228] sm:$0xff]  ;;  %v129_v3 = vld [vmem:[%s2011_s1 + $0x320] sm:$0xff]  ;;  %v1115_v4 = vpack.c.bf16 %v146_v61, %v145_v60  ;;  %v116_v7 = vld [vmem:[%s2011_s1 + $0x2b8] sm:$0xff] }
  0x20   :  { %1072 = vmatprep.subr.bf16.mxu1 %v1071_v30  ;;  %v130_v5 = vld [vmem:[%s2011_s1 + $0x328] sm:$0xff]  ;;  %v147_v8 = vld [vmem:[%s2011_s1 + $0x3b0] sm:$0xff]  ;;  %v148_v9 = vld [vmem:[%s2011_s1 + $0x3b8] sm:$0xff]  ;;  %v1085_v10 = vpack.c.bf16 %v98_v2, %v97_v1  ;;  %v1087_v12 = vpack.c.bf16 %v116_v7, %v115_v6 }
  0x21   :  { %1042 = vmatpush3.bf16.msra.mxu0 %v1041_v36  ;;  %v1117_v11 = vpack.c.bf16 %v130_v5, %v129_v3  ;;  %v99_v13 = vld [vmem:[%s2011_s1 + $0x230] sm:$0xff]  ;;  %v100_v14 = vld [vmem:[%s2011_s1 + $0x238] sm:$0xff]  ;;  %v1119_v16 = vpack.c.bf16 %v148_v9, %v147_v8  ;;  %v117_v18 = vld [vmem:[%s2011_s1 + $0x2c0] sm:$0xff] }
  0x22   :  { %1076 = vmatprep.subr.bf16.mxu0 %v1075_v38  ;;  %v131_v15 = vld [vmem:[%s2011_s1 + $0x330] sm:$0xff]  ;;  %v132_v17 = vld [vmem:[%s2011_s1 + $0x338] sm:$0xff]  ;;  %v118_v19 = vld [vmem:[%s2011_s1 + $0x2c8] sm:$0xff]  ;;  %v1089_v23 = vpack.c.bf16 %v100_v14, %v99_v13 }
  0x23   :  { %1074 = vmatpush3.bf16.msra.mxu1 %v1073_v37  ;;  %v149_v20 = vld [vmem:[%s2011_s1 + $0x3c0] sm:$0xff]  ;;  %v150_v21 = vld [vmem:[%s2011_s1 + $0x3c8] sm:$0xff]  ;;  %v1121_v25 = vpack.c.bf16 %v132_v17, %v131_v15  ;;  %v1091_v26 = vpack.c.bf16 %v118_v19, %v117_v18  ;;  %v22_v29 = vld [vmem:[%s2010_s0 + $0x38] sm:$0xff] }
  0x24   :  { %1108 = vmatprep.subr.bf16.mxu1 %v1107_v42  ;;  %325 = vmatmul.mubr.f32.vlgmr.msra.gmra.mrb[0].mxu0 %v15_v48  ;;  %v20_v22 = vld [vmem:[%s2010_s0 + $0x28] sm:$0xff]  ;;  %v101_v24 = vld [vmem:[%s2011_s1 + $0x240] sm:$0xff]  ;;  %v1123_v30 = vpack.c.bf16 %v150_v21, %v149_v20  ;;  %v119_v32 = vld [vmem:[%s2011_s1 + $0x2d0] sm:$0xff] }
  0x25   :  { %1078 = vmatpush3.bf16.msra.mxu0 %v1077_v49  ;;  %464 = vmatprep.mubr.f32.mxu0 %v20_v22  ;;  %v102_v27 = vld [vmem:[%s2011_s1 + $0x248] sm:$0xff]  ;;  %v133_v28 = vld [vmem:[%s2011_s1 + $0x340] sm:$0xff]  ;;  %v120_v33 = vld [vmem:[%s2011_s1 + $0x2d8] sm:$0xff] }
  0x26   :  { %395 = vmatmul.mubr.f32.vlgmr.msra.gmra.mrb[0].mxu1 %v17_v50  ;;  %1080 = vmatprep.subr.bf16.mxu0 %v1079_v52  ;;  %v134_v31 = vld [vmem:[%s2011_s1 + $0x348] sm:$0xff]  ;;  %v151_v34 = vld [vmem:[%s2011_s1 + $0x3d0] sm:$0xff]  ;;  %v152_v35 = vld [vmem:[%s2011_s1 + $0x3d8] sm:$0xff]  ;;  %v1093_v36 = vpack.c.bf16 %v102_v27, %v101_v24  ;;  %v1095_v38 = vpack.c.bf16 %v120_v33, %v119_v32 }
  0x27   :  { %1110 = vmatpush3.bf16.msra.mxu1 %v1109_v51  ;;  %534 = vmatprep.mubr.f32.mxu1 %v22_v29  ;;  %v1125_v37 = vpack.c.bf16 %v134_v31, %v133_v28  ;;  %v103_v39 = vld [vmem:[%s2011_s1 + $0x250] sm:$0xff]  ;;  %v104_v40 = vld [vmem:[%s2011_s1 + $0x258] sm:$0xff]  ;;  %v1127_v42 = vpack.c.bf16 %v152_v35, %v151_v34  ;;  %v121_v44 = vld [vmem:[%s2011_s1 + $0x2e0] sm:$0xff] }
  0x28   :  { %1112 = vmatprep.subr.bf16.mxu1 %v1111_v56  ;;  %v135_v41 = vld [vmem:[%s2011_s1 + $0x350] sm:$0xff]  ;;  %v136_v43 = vld [vmem:[%s2011_s1 + $0x358] sm:$0xff]  ;;  %v122_v45 = vld [vmem:[%s2011_s1 + $0x2e8] sm:$0xff]  ;;  %v1097_v48 = vpack.c.bf16 %v104_v40, %v103_v39 }
  0x29   :  { %1082 = vmatpush3.bf16.msra.mxu0 %v1081_v62  ;;  %v153_v46 = vld [vmem:[%s2011_s1 + $0x3e0] sm:$0xff]  ;;  %v154_v47 = vld [vmem:[%s2011_s1 + $0x3e8] sm:$0xff]  ;;  %v1129_v49 = vpack.c.bf16 %v136_v43, %v135_v41  ;;  %v1099_v50 = vpack.c.bf16 %v122_v45, %v121_v44  ;;  %v123_v56 = vld [vmem:[%s2011_s1 + $0x2f0] sm:$0xff] }
  0x2a   :  { %1084 = vmatprep.subr.bf16.mxu0 %v1083_v0  ;;  %v105_v51 = vld [vmem:[%s2011_s1 + $0x260] sm:$0xff]  ;;  %v106_v52 = vld [vmem:[%s2011_s1 + $0x268] sm:$0xff]  ;;  %v1131_v54 = vpack.c.bf16 %v154_v47, %v153_v46  ;;  %v124_v57 = vld [vmem:[%s2011_s1 + $0x2f8] sm:$0xff] }
  0x2b   :  { %1114 = vmatpush3.bf16.msra.mxu1 %v1113_v63  ;;  %v137_v53 = vld [vmem:[%s2011_s1 + $0x360] sm:$0xff]  ;;  %v138_v55 = vld [vmem:[%s2011_s1 + $0x368] sm:$0xff]  ;;  %v155_v58 = vld [vmem:[%s2011_s1 + $0x3f0] sm:$0xff]  ;;  %v1101_v60 = vpack.c.bf16 %v106_v52, %v105_v51  ;;  %v1103_v62 = vpack.c.bf16 %v124_v57, %v123_v56 }
  0x2c   :  { %1116 = vmatprep.subr.bf16.mxu1 %v1115_v4  ;;  %v156_v59 = vld [vmem:[%s2011_s1 + $0x3f8] sm:$0xff]  ;;  %v1133_v61 = vpack.c.bf16 %v138_v55, %v137_v53  ;;  %v107_v63 = vld [vmem:[%s2011_s1 + $0x270] sm:$0xff]  ;;  %v173_v4 = vld [vmem:[%s2011_s1 + $0x480] sm:$0xff] }
  0x2d   :  { %1086 = vmatpush3.bf16.msra.mxu0 %v1085_v10  ;;  %v108_v0 = vld [vmem:[%s2011_s1 + $0x278] sm:$0xff]  ;;  %v139_v1 = vld [vmem:[%s2011_s1 + $0x370] sm:$0xff]  ;;  %v1135_v2 = vpack.c.bf16 %v156_v59, %v155_v58  ;;  %v174_v5 = vld [vmem:[%s2011_s1 + $0x488] sm:$0xff] }
  0x2e   :  { %1088 = vmatprep.subr.bf16.mxu0 %v1087_v12  ;;  %v140_v3 = vld [vmem:[%s2011_s1 + $0x378] sm:$0xff]  ;;  %v205_v6 = vld [vmem:[%s2011_s1 + $0x580] sm:$0xff]  ;;  %v206_v7 = vld [vmem:[%s2011_s1 + $0x588] sm:$0xff]  ;;  %v1105_v8 = vpack.c.bf16 %v108_v0, %v107_v63  ;;  %v1139_v10 = vpack.c.bf16 %v174_v5, %v173_v4 }
  0x2f   :  { %1118 = vmatpush3.bf16.msra.mxu1 %v1117_v11  ;;  %v1137_v9 = vpack.c.bf16 %v140_v3, %v139_v1  ;;  %v157_v11 = vld [vmem:[%s2011_s1 + $0x400] sm:$0xff]  ;;  %v158_v12 = vld [vmem:[%s2011_s1 + $0x408] sm:$0xff]  ;;  %v1171_v14 = vpack.c.bf16 %v206_v7, %v205_v6  ;;  %v176_v17 = vld [vmem:[%s2011_s1 + $0x498] sm:$0xff] }
  0x30   :  { %1120 = vmatprep.subr.bf16.mxu1 %v1119_v16  ;;  %v189_v13 = vld [vmem:[%s2011_s1 + $0x500] sm:$0xff]  ;;  %v190_v15 = vld [vmem:[%s2011_s1 + $0x508] sm:$0xff]  ;;  %v175_v16 = vld [vmem:[%s2011_s1 + $0x490] sm:$0xff]  ;;  %v1141_v21 = vpack.c.bf16 %v158_v12, %v157_v11 }
  0x31   :  { %1090 = vmatpush3.bf16.msra.mxu0 %v1089_v23  ;;  %v207_v18 = vld [vmem:[%s2011_s1 + $0x590] sm:$0xff]  ;;  %v208_v19 = vld [vmem:[%s2011_s1 + $0x598] sm:$0xff]  ;;  %v19_v20 = vld [vmem:[%s2010_s0 + $0x20] sm:$0xff]  ;;  %v1173_v23 = vpack.c.bf16 %v190_v15, %v189_v13  ;;  %v1143_v24 = vpack.c.bf16 %v176_v17, %v175_v16 }
  0x32   :  { %1092 = vmatprep.subr.bf16.mxu0 %v1091_v26  ;;  %v21_v22 = vld [vmem:[%s2010_s0 + $0x30] sm:$0xff]  ;;  %v160_v26 = vld [vmem:[%s2011_s1 + $0x418] sm:$0xff]  ;;  %v1175_v28 = vpack.c.bf16 %v208_v19, %v207_v18  ;;  %v178_v31 = vld [vmem:[%s2011_s1 + $0x4a8] sm:$0xff] }
  0x33   :  { %1122 = vmatpush3.bf16.msra.mxu1 %v1121_v25  ;;  %v159_v25 = vld [vmem:[%s2011_s1 + $0x410] sm:$0xff]  ;;  %v192_v29 = vld [vmem:[%s2011_s1 + $0x518] sm:$0xff]  ;;  %v209_v32 = vld [vmem:[%s2011_s1 + $0x5a0] sm:$0xff] }
  0x34   :  { %1124 = vmatprep.subr.bf16.mxu1 %v1123_v30  ;;  %v191_v27 = vld [vmem:[%s2011_s1 + $0x510] sm:$0xff]  ;;  %v177_v30 = vld [vmem:[%s2011_s1 + $0x4a0] sm:$0xff]  ;;  %v210_v33 = vld [vmem:[%s2011_s1 + $0x5a8] sm:$0xff]  ;;  %v1145_v35 = vpack.c.bf16 %v160_v26, %v159_v25 }
  0x35   :  { %1094 = vmatpush3.bf16.msra.mxu0 %v1093_v36  ;;  %v24_v34 = vld [vmem:[%s2010_s0 + $0x48] sm:$0xff]  ;;  %v26_v36 = vld [vmem:[%s2010_s0 + $0x58] sm:$0xff]  ;;  %v161_v39 = vld [vmem:[%s2011_s1 + $0x420] sm:$0xff] }
  0x36   :  { %1096 = vmatprep.subr.bf16.mxu0 %v1095_v38  ;;  %v1147_v38 = vpack.c.bf16 %v178_v31, %v177_v30  ;;  %v162_v40 = vld [vmem:[%s2011_s1 + $0x428] sm:$0xff]  ;;  %v193_v41 = vld [vmem:[%s2011_s1 + $0x520] sm:$0xff]  ;;  %v179_v44 = vld [vmem:[%s2011_s1 + $0x4b0] sm:$0xff] }
  0x37   :  { %1126 = vmatpush3.bf16.msra.mxu1 %v1125_v37  ;;  %v1177_v37 = vpack.c.bf16 %v192_v29, %v191_v27  ;;  %v194_v43 = vld [vmem:[%s2011_s1 + $0x528] sm:$0xff]  ;;  %v180_v45 = vld [vmem:[%s2011_s1 + $0x4b8] sm:$0xff]  ;;  %v211_v46 = vld [vmem:[%s2011_s1 + $0x5b0] sm:$0xff] }
  0x38   :  { %1128 = vmatprep.subr.bf16.mxu1 %v1127_v42  ;;  %v1179_v42 = vpack.c.bf16 %v210_v33, %v209_v32  ;;  %v212_v47 = vld [vmem:[%s2011_s1 + $0x5b8] sm:$0xff]  ;;  %v163_v51 = vld [vmem:[%s2011_s1 + $0x430] sm:$0xff]  ;;  %v181_v56 = vld [vmem:[%s2011_s1 + $0x4c0] sm:$0xff] }
  0x39   :  { %1098 = vmatpush3.bf16.msra.mxu0 %v1097_v48  ;;  %v1149_v48 = vpack.c.bf16 %v162_v40, %v161_v39  ;;  %v164_v52 = vld [vmem:[%s2011_s1 + $0x438] sm:$0xff]  ;;  %v195_v53 = vld [vmem:[%s2011_s1 + $0x530] sm:$0xff]  ;;  %v182_v57 = vld [vmem:[%s2011_s1 + $0x4c8] sm:$0xff] }
  0x3a   :  { %1100 = vmatprep.subr.bf16.mxu0 %v1099_v50  ;;  %v1151_v50 = vpack.c.bf16 %v180_v45, %v179_v44  ;;  %v196_v55 = vld [vmem:[%s2011_s1 + $0x538] sm:$0xff]  ;;  %v213_v58 = vld [vmem:[%s2011_s1 + $0x5c0] sm:$0xff]  ;;  %v214_v59 = vld [vmem:[%s2011_s1 + $0x5c8] sm:$0xff] }
  0x3b   :  { %1130 = vmatpush3.bf16.msra.mxu1 %v1129_v49  ;;  %v1181_v49 = vpack.c.bf16 %v194_v43, %v193_v41  ;;  %v165_v63 = vld [vmem:[%s2011_s1 + $0x440] sm:$0xff]  ;;  %v166_v0 = vld [vmem:[%s2011_s1 + $0x448] sm:$0xff]  ;;  %v183_v4 = vld [vmem:[%s2011_s1 + $0x4d0] sm:$0xff] }
  0x3c   :  { %1132 = vmatprep.subr.bf16.mxu1 %v1131_v54  ;;  %v1183_v54 = vpack.c.bf16 %v212_v47, %v211_v46  ;;  %v197_v1 = vld [vmem:[%s2011_s1 + $0x540] sm:$0xff]  ;;  %v198_v3 = vld [vmem:[%s2011_s1 + $0x548] sm:$0xff]  ;;  %v184_v5 = vld [vmem:[%s2011_s1 + $0x4d8] sm:$0xff] }
  0x3d   :  { %1102 = vmatpush3.bf16.msra.mxu0 %v1101_v60  ;;  %v1153_v60 = vpack.c.bf16 %v164_v52, %v163_v51  ;;  %v215_v6 = vld [vmem:[%s2011_s1 + $0x5d0] sm:$0xff]  ;;  %v216_v7 = vld [vmem:[%s2011_s1 + $0x5d8] sm:$0xff] }
  0x3e   :  { %1104 = vmatprep.subr.bf16.mxu0 %v1103_v62  ;;  %v1155_v62 = vpack.c.bf16 %v182_v57, %v181_v56 }
  0x3f   :  { %1134 = vmatpush3.bf16.msra.mxu1 %v1133_v61  ;;  %v1185_v61 = vpack.c.bf16 %v196_v55, %v195_v53 }
  0x40   :  { %1136 = vmatprep.subr.bf16.mxu1 %v1135_v2  ;;  %v1187_v2 = vpack.c.bf16 %v214_v59, %v213_v58 }
  0x41   :  { %1106 = vmatpush3.bf16.msra.mxu0 %v1105_v8 }
  0x42   :  { %1140 = vmatprep.subr.bf16.mxu0 %v1139_v10 }
  0x43   :  { %1138 = vmatpush3.bf16.msra.mxu1 %v1137_v9 }
  0x44   :  { %1172 = vmatprep.subr.bf16.mxu1 %v1171_v14  ;;  %465 = vmatmul.mubr.f32.vlgmr.msra.gmra.mrb[2].mxu0 %v19_v20 }
  0x45   :  { %1142 = vmatpush3.bf16.msra.mxu0 %v1141_v21  ;;  %604 = vmatprep.mubr.f32.mxu0 %v24_v34 }
  0x46   :  { %535 = vmatmul.mubr.f32.vlgmr.msra.gmra.mrb[2].mxu1 %v21_v22  ;;  %1144 = vmatprep.subr.bf16.mxu0 %v1143_v24 }
  0x47   :  { %1174 = vmatpush3.bf16.msra.mxu1 %v1173_v23  ;;  %674 = vmatprep.mubr.f32.mxu1 %v26_v36 }
  0x48   :  { %1176 = vmatprep.subr.bf16.mxu1 %v1175_v28 }
  0x49   :  { %1146 = vmatpush3.bf16.msra.mxu0 %v1145_v35 }
  0x4a   :  { %1148 = vmatprep.subr.bf16.mxu0 %v1147_v38 }
  0x4b   :  { %1178 = vmatpush3.bf16.msra.mxu1 %v1177_v37 }
  0x4c   :  { %1180 = vmatprep.subr.bf16.mxu1 %v1179_v42 }
  0x4d   :  { %1150 = vmatpush3.bf16.msra.mxu0 %v1149_v48 }
  0x4e   :  { %1152 = vmatprep.subr.bf16.mxu0 %v1151_v50 }
  0x4f   :  { %1182 = vmatpush3.bf16.msra.mxu1 %v1181_v49 }
  0x50   :  { %1184 = vmatprep.subr.bf16.mxu1 %v1183_v54 }
  0x51   :  { %8 = vsyncpa [#allocation3], 0  ;;  %1154 = vmatpush3.bf16.msra.mxu0 %v1153_v60  ;;  %v1157_v8 = vpack.c.bf16 %v166_v0, %v165_v63  ;;  %v1189_v9 = vpack.c.bf16 %v198_v3, %v197_v1  ;;  %v1159_v10 = vpack.c.bf16 %v184_v5, %v183_v4  ;;  %v167_v11 = vld [vmem:[%s2011_s1 + $0x450] sm:$0xff]  ;;  %v168_v12 = vld [vmem:[%s2011_s1 + $0x458] sm:$0xff]  ;;  %v1191_v14 = vpack.c.bf16 %v216_v7, %v215_v6 }
  0x52   :  { %1156 = vmatprep.subr.bf16.mxu0 %v1155_v62  ;;  %v199_v13 = vld [vmem:[%s2011_s1 + $0x550] sm:$0xff]  ;;  %v200_v15 = vld [vmem:[%s2011_s1 + $0x558] sm:$0xff]  ;;  %v185_v16 = vld [vmem:[%s2011_s1 + $0x4e0] sm:$0xff]  ;;  %v1161_v20 = vpack.c.bf16 %v168_v12, %v167_v11 }
  0x53   :  { %1186 = vmatpush3.bf16.msra.mxu1 %v1185_v61  ;;  %v186_v17 = vld [vmem:[%s2011_s1 + $0x4e8] sm:$0xff]  ;;  %v217_v18 = vld [vmem:[%s2011_s1 + $0x5e0] sm:$0xff]  ;;  %v1193_v21 = vpack.c.bf16 %v200_v15, %v199_v13  ;;  %v187_v28 = vld [vmem:[%s2011_s1 + $0x4f0] sm:$0xff] }
  0x54   :  { %1188 = vmatprep.subr.bf16.mxu1 %v1187_v2  ;;  %v218_v19 = vld [vmem:[%s2011_s1 + $0x5e8] sm:$0xff]  ;;  %v1163_v22 = vpack.c.bf16 %v186_v17, %v185_v16  ;;  %v169_v23 = vld [vmem:[%s2011_s1 + $0x460] sm:$0xff]  ;;  %v188_v29 = vld [vmem:[%s2011_s1 + $0x4f8] sm:$0xff] }
  0x55   :  { %1158 = vmatpush3.bf16.msra.mxu0 %v1157_v8  ;;  %v170_v24 = vld [vmem:[%s2011_s1 + $0x468] sm:$0xff]  ;;  %v201_v25 = vld [vmem:[%s2011_s1 + $0x560] sm:$0xff]  ;;  %v1195_v26 = vpack.c.bf16 %v218_v19, %v217_v18  ;;  %v219_v30 = vld [vmem:[%s2011_s1 + $0x5f0] sm:$0xff]  ;;  %v1167_v34 = vpack.c.bf16 %v188_v29, %v187_v28 }
  0x56   :  { %1160 = vmatprep.subr.bf16.mxu0 %v1159_v10  ;;  %v202_v27 = vld [vmem:[%s2011_s1 + $0x568] sm:$0xff]  ;;  %v220_v31 = vld [vmem:[%s2011_s1 + $0x5f8] sm:$0xff]  ;;  %v1165_v32 = vpack.c.bf16 %v170_v24, %v169_v23  ;;  %v171_v35 = vld [vmem:[%s2011_s1 + $0x470] sm:$0xff] }
  0x57   :  { %1190 = vmatpush3.bf16.msra.mxu1 %v1189_v9  ;;  %v1197_v33 = vpack.c.bf16 %v202_v27, %v201_v25  ;;  %v172_v36 = vld [vmem:[%s2011_s1 + $0x478] sm:$0xff]  ;;  %v203_v37 = vld [vmem:[%s2011_s1 + $0x570] sm:$0xff]  ;;  %v1199_v38 = vpack.c.bf16 %v220_v31, %v219_v30  ;;  %v237_v40 = vld [vmem:[%s2011_s1 + $0x680] sm:$0xff] }
  0x58   :  { %1192 = vmatprep.subr.bf16.mxu1 %v1191_v14  ;;  %v204_v39 = vld [vmem:[%s2011_s1 + $0x578] sm:$0xff]  ;;  %v238_v41 = vld [vmem:[%s2011_s1 + $0x688] sm:$0xff]  ;;  %v1169_v42 = vpack.c.bf16 %v172_v36, %v171_v35  ;;  %v221_v45 = vld [vmem:[%s2011_s1 + $0x600] sm:$0xff] }
  0x59   :  { %1162 = vmatpush3.bf16.msra.mxu0 %v1161_v20  ;;  %v1201_v43 = vpack.c.bf16 %v204_v39, %v203_v37  ;;  %v1203_v44 = vpack.c.bf16 %v238_v41, %v237_v40  ;;  %v222_v46 = vld [vmem:[%s2011_s1 + $0x608] sm:$0xff]  ;;  %v239_v47 = vld [vmem:[%s2011_s1 + $0x690] sm:$0xff]  ;;  %v240_v48 = vld [vmem:[%s2011_s1 + $0x698] sm:$0xff] }
  0x5a   :  { %1164 = vmatprep.subr.bf16.mxu0 %v1163_v22  ;;  %v23_v49 = vld [vmem:[%s2010_s0 + $0x40] sm:$0xff]  ;;  %v1205_v50 = vpack.c.bf16 %v222_v46, %v221_v45  ;;  %v25_v51 = vld [vmem:[%s2010_s0 + $0x50] sm:$0xff]  ;;  %v1207_v52 = vpack.c.bf16 %v240_v48, %v239_v47  ;;  %v224_v54 = vld [vmem:[%s2011_s1 + $0x618] sm:$0xff] }
  0x5b   :  { %1194 = vmatpush3.bf16.msra.mxu1 %v1193_v21  ;;  %v223_v53 = vld [vmem:[%s2011_s1 + $0x610] sm:$0xff]  ;;  %v241_v55 = vld [vmem:[%s2011_s1 + $0x6a0] sm:$0xff]  ;;  %v242_v56 = vld [vmem:[%s2011_s1 + $0x6a8] sm:$0xff] }
  0x5c   :  { %1196 = vmatprep.subr.bf16.mxu1 %v1195_v26  ;;  %v28_v57 = vld [vmem:[%s2010_s0 + $0x68] sm:$0xff]  ;;  %v1209_v58 = vpack.c.bf16 %v224_v54, %v223_v53  ;;  %v1211_v59 = vpack.c.bf16 %v242_v56, %v241_v55  ;;  %v225_v60 = vld [vmem:[%s2011_s1 + $0x620] sm:$0xff]  ;;  %v243_v62 = vld [vmem:[%s2011_s1 + $0x6b0] sm:$0xff] }
  0x5d   :  { %1166 = vmatpush3.bf16.msra.mxu0 %v1165_v32  ;;  %v226_v61 = vld [vmem:[%s2011_s1 + $0x628] sm:$0xff]  ;;  %v244_v63 = vld [vmem:[%s2011_s1 + $0x6b8] sm:$0xff]  ;;  %v227_v2 = vld [vmem:[%s2011_s1 + $0x630] sm:$0xff] }
  0x5e   :  { %1168 = vmatprep.subr.bf16.mxu0 %v1167_v34  ;;  %v1213_v0 = vpack.c.bf16 %v226_v61, %v225_v60  ;;  %v1215_v1 = vpack.c.bf16 %v244_v63, %v243_v62  ;;  %v228_v3 = vld [vmem:[%s2011_s1 + $0x638] sm:$0xff]  ;;  %v245_v4 = vld [vmem:[%s2011_s1 + $0x6c0] sm:$0xff]  ;;  %v246_v5 = vld [vmem:[%s2011_s1 + $0x6c8] sm:$0xff] }
  0x5f   :  { %1198 = vmatpush3.bf16.msra.mxu1 %v1197_v33  ;;  %v1217_v6 = vpack.c.bf16 %v228_v3, %v227_v2  ;;  %v1219_v7 = vpack.c.bf16 %v246_v5, %v245_v4  ;;  %v229_v8 = vld [vmem:[%s2011_s1 + $0x640] sm:$0xff]  ;;  %v230_v9 = vld [vmem:[%s2011_s1 + $0x648] sm:$0xff]  ;;  %v247_v10 = vld [vmem:[%s2011_s1 + $0x6d0] sm:$0xff] }
  0x60   :  { %1200 = vmatprep.subr.bf16.mxu1 %v1199_v38  ;;  %v248_v11 = vld [vmem:[%s2011_s1 + $0x6d8] sm:$0xff]  ;;  %v1221_v12 = vpack.c.bf16 %v230_v9, %v229_v8  ;;  %v231_v14 = vld [vmem:[%s2011_s1 + $0x650] sm:$0xff]  ;;  %v249_v16 = vld [vmem:[%s2011_s1 + $0x6e0] sm:$0xff] }
  0x61   :  { %1170 = vmatpush3.bf16.msra.mxu0 %v1169_v42  ;;  %v1223_v13 = vpack.c.bf16 %v248_v11, %v247_v10  ;;  %v232_v15 = vld [vmem:[%s2011_s1 + $0x658] sm:$0xff]  ;;  %v250_v17 = vld [vmem:[%s2011_s1 + $0x6e8] sm:$0xff]  ;;  %v233_v20 = vld [vmem:[%s2011_s1 + $0x660] sm:$0xff] }
  0x62   :  { %1204 = vmatprep.subr.bf16.mxu0 %v1203_v44  ;;  %v1225_v18 = vpack.c.bf16 %v232_v15, %v231_v14  ;;  %v1227_v19 = vpack.c.bf16 %v250_v17, %v249_v16  ;;  %v234_v21 = vld [vmem:[%s2011_s1 + $0x668] sm:$0xff]  ;;  %v251_v22 = vld [vmem:[%s2011_s1 + $0x6f0] sm:$0xff]  ;;  %v252_v23 = vld [vmem:[%s2011_s1 + $0x6f8] sm:$0xff] }
  0x63   :  { %1202 = vmatpush3.bf16.msra.mxu1 %v1201_v43  ;;  %v1229_v24 = vpack.c.bf16 %v234_v21, %v233_v20  ;;  %v1231_v25 = vpack.c.bf16 %v252_v23, %v251_v22  ;;  %v235_v26 = vld [vmem:[%s2011_s1 + $0x670] sm:$0xff]  ;;  %v236_v27 = vld [vmem:[%s2011_s1 + $0x678] sm:$0xff]  ;;  %v27_v29 = vld [vmem:[%s2010_s0 + $0x60] sm:$0xff]  ;;  %s1260_s0 = smov [#allocation2]  }
  0x64   :  { %605 = vmatmul.mubr.f32.vlgmr.msra.gmra.mrb[4].mxu0 %v23_v49  ;;  %v1233_v28 = vpack.c.bf16 %v236_v27, %v235_v26  ;;  %v765_v31 = vld [vmem:[%s2012_s2] ss:$0 sm:$0xff]  ;;  %s757_s1 = sshll.u32 %s1260_s0, 4  ;;  %s758_s1 = int_to_ptr.vmem [resolvable:$true] %s757_s1 }
  0x65   :  { %1206 = vmatpush3.bf16.msra.mxu0 %v1205_v50  ;;  %744 = vmatprep.mubr.f32.mxu0 %v28_v57  ;;  %s1236_s2 = scalar_lea.vmem %s758_s1, 128  ;;  %p1241_p1 = scmp.lt.s32.totalorder %s758_s1, %s758_s1 }
  0x66   :  { %675 = vmatmul.mubr.f32.vlgmr.msra.gmra.mrb[4].mxu1 %v25_v51  ;;  %1208 = vmatprep.subr.bf16.mxu0 %v1207_v52  ;;  %p1237_p0 = scmp.ne.s32.totalorder %s758_s1, %s1236_s2  ;;  %p1242_p2 = scmp.lt.s32.totalorder %s1236_s2, %s1236_s2 }
  0x68   :  { %p1243_p3 = por %p1242_p2, %p1241_p1 }
  0x69   :  { %1210 = vmatpush3.bf16.msra.mxu0 %v1209_v58 }
  0x6a   :  { %1212 = vmatprep.subr.bf16.mxu0 %v1211_v59  ;;  %p1244_p4 = pnand %p1243_p3, %p1237_p0 }
  0x6d   :  { %1214 = vmatpush3.bf16.msra.mxu0 %v1213_v0 }
  0x6e   :  { %1216 = vmatprep.subr.bf16.mxu0 %v1215_v1 }
  0x71   :  { %1218 = vmatpush3.bf16.msra.mxu0 %v1217_v6 }
  0x72   :  { %1220 = vmatprep.subr.bf16.mxu0 %v1219_v7 }
  0x75   :  { %1222 = vmatpush3.bf16.msra.mxu0 %v1221_v12 }
  0x76   :  { %1224 = vmatprep.subr.bf16.mxu0 %v1223_v13 }
  0x79   :  { %1226 = vmatpush3.bf16.msra.mxu0 %v1225_v18 }
  0x7a   :  { %1228 = vmatprep.subr.bf16.mxu0 %v1227_v19 }
  0x7d   :  { %1230 = vmatpush3.bf16.msra.mxu0 %v1229_v24 }
  0x7e   :  { %1232 = vmatprep.subr.bf16.mxu0 %v1231_v25 }
  0x81   :  { %1234 = vmatpush3.bf16.msra.mxu0 %v1233_v28 }
  0x84   :  { %745 = vmatmul.mubr.f32.vlgmr.msra.gmra.mrb[6].mxu0 %v27_v29 }
  0xf7   :  { %v798_v30 = vpop.f32.mrb[0].mxu0 }
  0xf8   :  { %v799_v32 = vpop.f32.mrb[1].mxu0 }
  0xf9   :  { %v833_v33 = vpop.f32.mrb[0].mxu1  ;;  %v800_v34 = vadd.f32 %v799_v32, %v798_v30 }
  0xfa   :  { %v834_v35 = vpop.f32.mrb[1].mxu1 }
  0xfb   :  { %v835_v36 = vadd.f32 %v834_v35, %v833_v33  ;;  %v327_v37 = vadd.f32 %v800_v34, %v765_v31 }
  0xfd   :  { %v397_v38 = vadd.f32 %v835_v36, %v327_v37 }
 0x117   :  { %v868_v39 = vpop.f32.mrb[2].mxu0 }
 0x118   :  { %v869_v40 = vpop.f32.mrb[3].mxu0 }
 0x119   :  { %v903_v41 = vpop.f32.mrb[2].mxu1  ;;  %v870_v42 = vadd.f32 %v869_v40, %v868_v39 }
 0x11a   :  { %v904_v43 = vpop.f32.mrb[3].mxu1 }
 0x11b   :  { %v905_v44 = vadd.f32 %v904_v43, %v903_v41  ;;  %v467_v45 = vadd.f32 %v870_v42, %v397_v38 }
 0x11d   :  { %v537_v46 = vadd.f32 %v905_v44, %v467_v45 }
 0x137   :  { %v938_v47 = vpop.f32.mrb[4].mxu0 }
 0x138   :  { %v939_v48 = vpop.f32.mrb[5].mxu0 }
 0x139   :  { %v973_v49 = vpop.f32.mrb[4].mxu1  ;;  %v940_v50 = vadd.f32 %v939_v48, %v938_v47 }
 0x13a   :  { %v974_v51 = vpop.f32.mrb[5].mxu1 }
 0x13b   :  { %v975_v52 = vadd.f32 %v974_v51, %v973_v49  ;;  %v607_v53 = vadd.f32 %v940_v50, %v537_v46 }
 0x13d   :  { %v677_v54 = vadd.f32 %v975_v52, %v607_v53 }
 0x157   :  { %v1008_v55 = vpop.f32.mrb[6].mxu0 }
 0x158   :  { %v1009_v56 = vpop.f32.mrb[7].mxu0 }
 0x159   :  { %v1010_v57 = vadd.f32 %v1009_v56, %v1008_v55 }
 0x15b   :  { %v747_v58 = vadd.f32 %v1010_v57, %v677_v54 }
 0x15d   :  { %750 = vst [vmem:[#allocation2] sm:$0xff] %v747_v58 }
 0x15e   :  { %1247 = shalt.err (!%p1244_p4)
}
 0x15f   :  { %s1248_s6 = scalar_lea.hbm %s2013_s3, 128 }
 0x160   :  { %p1249_p5 = scmp.ne.s32.totalorder %s2013_s3, %s1248_s6  ;;  %p1252_p6 = scmp.lt.u32.totalorder %s1248_s6, %s2013_s3 }
 0x162   :  { %p1254_p7 = pnand %p1252_p6, %p1249_p5 }
 0x164   :  { %1257 = shalt.err (!%p1254_p7)
}
 0x165   :  { %760 = dma.vmem_to_hbm [thread:$0]  %s758_s1, 128, %s2013_s3, [#allocation3]  }
 0x166   :  { %1258 = dma.done.wait [#allocation3], 128  }
 0x167   :  { %1259 = vsyncadd [#allocation3], 4294967168 }
 0x168   :  { %764 = vsyncpa [#allocation3], 1 }

// kernel: simple_cnn_forward.2
= control target key start
LH: loop header
LB: loop body
LE: loop exit
PB: predicated region body
PF: predicated region fallthrough
CT: control target
= control target key end

     0   :  { %v6170_v0 = vmov 0.0|0.0   ;;  %v6171_v4 = vmov 0.0   ;;  %vm6172_vm0 = vmmov 0   ;;  %vm90_vm1 = vcmask 588800   ;;  %s9383_s2 = inlined_call_operand.vmem [shape: f32[72,128], index: 2, kind: input, shape index: {}]   ;;  %s9384_s0 = inlined_call_operand.vmem [shape: f32[1,420,72], index: 0, kind: input, shape index: {}]   ;;  %s9385_s1 = inlined_call_operand.vmem [shape: f32[1,420,72], index: 1, kind: input, shape index: {}]   ;;  %s9386_s4 = inlined_call_operand.vmem [shape: f32[1152,256], index: 4, kind: input, shape index: {}]   ;;  %s9387_s3 = inlined_call_operand.vmem [shape: f32[1,128], index: 3, kind: input, shape index: {}]   ;;  %s9388_s5 = inlined_call_operand.vmem [shape: f32[1,256], index: 5, kind: input, shape index: {}]   ;;  %s9389_s6 = inlined_call_operand.vmem [shape: f32[56,208], index: 6, kind: input, shape index: {}]   ;;  %s9390_s7 = inlined_call_operand.vmem [shape: f32[1,56,256], index: 7, kind: output, shape index: {}]  }
   0x1   :  { %5532 = vmatprep.subr.bf16.mxu1 %v6170_v0  ;;  %v81_v1 = vld [vmem:[%s9383_s2] sm:$0xff]  ;;  %v82_v2 = vld [vmem:[%s9383_s2 + $0x8] sm:$0xff]  ;;  %v83_v3 = vld [vmem:[%s9383_s2 + $0x10] sm:$0xff]  ;;  %1237 = vst [vmem:[#allocation4] sm:$0xff] %v6171_v4  ;;  %5196 = vmatprep.mubr.msk.f32.mxu1 %vm6172_vm0, %v6171_v4  ;;  %vm3913_vm2 = vcmask 1046528   ;;  %vm4793_vm3 = vcmask 654336  }
   0x2   :  { %1238 = vst [vmem:[#allocation4 + $0x8] sm:$0xff] %v6171_v4  ;;  %1239 = vst [vmem:[#allocation4 + $0x10] sm:$0xff] %v6171_v4  ;;  %v5533_v5 = vpack.c.bf16 %v82_v2, %v81_v1  ;;  %v84_v6 = vld [vmem:[%s9383_s2 + $0x18] sm:$0xff]  ;;  %v85_v8 = vld [vmem:[%s9383_s2 + $0x20] sm:$0xff] }
   0x3   :  { %1240 = vst [vmem:[#allocation4 + $0x18] sm:$0xff] %v6171_v4  ;;  %1241 = vst [vmem:[#allocation4 + $0x20] sm:$0xff] %v6171_v4  ;;  %v5536_v7 = vpack.c.bf16 %v84_v6, %v83_v3  ;;  %v86_v9 = vld [vmem:[%s9383_s2 + $0x28] sm:$0xff]  ;;  %v87_v11 = vld [vmem:[%s9383_s2 + $0x30] sm:$0xff] }
   0x4   :  { %1242 = vst [vmem:[#allocation4 + $0x28] sm:$0xff] %v6171_v4  ;;  %1243 = vst [vmem:[#allocation4 + $0x30] sm:$0xff] %v6171_v4  ;;  %5534 = vmatpush3.bf16.msra.mxu1 %v5533_v5  ;;  %v5539_v10 = vpack.c.bf16 %v86_v9, %v85_v8  ;;  %v88_v12 = vld [vmem:[%s9383_s2 + $0x38] sm:$0xff]  ;;  %v89_v14 = vld [vmem:[%s9383_s2 + $0x40] sm:$0xff] }
   0x5   :  { %1244 = vst [vmem:[#allocation4 + $0x38] sm:$0xff] %v6171_v4  ;;  %1245 = vst [vmem:[#allocation4 + $0x40] sm:$0xff] %v6171_v4  ;;  %5535 = vmatprep.subr.bf16.mxu1 %v6170_v0  ;;  %v5542_v13 = vpack.c.bf16 %v88_v12, %v87_v11  ;;  %v28_v15 = vld [vmem:[%s9384_s0] sm:$0xff]  ;;  %v29_v16 = vld [vmem:[%s9384_s0 + $0x8] sm:$0xff] }
   0x6   :  { %1246 = vst [vmem:[#allocation4 + $0x48] sm:$0xff] %v6171_v4  ;;  %1247 = vst [vmem:[#allocation4 + $0x50] sm:$0xff] %v6171_v4  ;;  %v30_v17 = vld [vmem:[%s9384_s0 + $0x10] sm:$0xff]  ;;  %v31_v18 = vld [vmem:[%s9384_s0 + $0x18] sm:$0xff] }
   0x7   :  { %1248 = vst [vmem:[#allocation4 + $0x58] sm:$0xff] %v6171_v4  ;;  %1249 = vst [vmem:[#allocation4 + $0x60] sm:$0xff] %v6171_v4  ;;  %v32_v19 = vld [vmem:[%s9384_s0 + $0x20] sm:$0xff]  ;;  %v33_v20 = vld [vmem:[%s9384_s0 + $0x28] sm:$0xff] }
   0x8   :  { %1250 = vst [vmem:[#allocation4 + $0x68] sm:$0xff] %v6171_v4  ;;  %1251 = vst [vmem:[#allocation4 + $0x70] sm:$0xff] %v6171_v4  ;;  %5537 = vmatpush3.bf16.msra.mxu1 %v5536_v7  ;;  %v34_v21 = vld [vmem:[%s9384_s0 + $0x30] sm:$0xff]  ;;  %v35_v22 = vld [vmem:[%s9384_s0 + $0x38] sm:$0xff] }
   0x9   :  { %1252 = vst [vmem:[#allocation4 + $0x78] sm:$0xff] %v6171_v4  ;;  %1253 = vst [vmem:[#allocation4 + $0x80] sm:$0xff] %v6171_v4  ;;  %5538 = vmatprep.subr.bf16.mxu1 %v6170_v0  ;;  %v36_v23 = vld [vmem:[%s9384_s0 + $0x40] sm:$0xff]  ;;  %v37_v24 = vld [vmem:[%s9384_s0 + $0x48] sm:$0xff] }
   0xa   :  { %1254 = vst [vmem:[#allocation4 + $0x88] sm:$0xff] %v6171_v4  ;;  %1255 = vst [vmem:[#allocation4 + $0x90] sm:$0xff] %v6171_v4  ;;  %v38_v25 = vld [vmem:[%s9384_s0 + $0x50] sm:$0xff]  ;;  %v39_v26 = vld [vmem:[%s9384_s0 + $0x58] sm:$0xff] }
   0xb   :  { %1256 = vst [vmem:[#allocation4 + $0x98] sm:$0xff] %v6171_v4  ;;  %1257 = vst [vmem:[#allocation4 + $0xa0] sm:$0xff] %v6171_v4  ;;  %v40_v27 = vld [vmem:[%s9384_s0 + $0x60] sm:$0xff]  ;;  %v41_v28 = vld [vmem:[%s9384_s0 + $0x68] sm:$0xff] }
   0xc   :  { %1258 = vst [vmem:[#allocation4 + $0xa8] sm:$0xff] %v6171_v4  ;;  %1259 = vst [vmem:[#allocation4 + $0xb0] sm:$0xff] %v6171_v4  ;;  %5540 = vmatpush3.bf16.msra.mxu1 %v5539_v10  ;;  %v42_v29 = vld [vmem:[%s9384_s0 + $0x70] sm:$0xff]  ;;  %v43_v30 = vld [vmem:[%s9384_s0 + $0x78] sm:$0xff] }
   0xd   :  { %1260 = vst [vmem:[#allocation4 + $0xb8] sm:$0xff] %v6171_v4  ;;  %1261 = vst [vmem:[#allocation4 + $0xc0] sm:$0xff] %v6171_v4  ;;  %5541 = vmatprep.subr.bf16.mxu1 %v6170_v0  ;;  %v44_v31 = vld [vmem:[%s9384_s0 + $0x80] sm:$0xff]  ;;  %v45_v32 = vld [vmem:[%s9384_s0 + $0x88] sm:$0xff] }
   0xe   :  { %1262 = vst [vmem:[#allocation4 + $0xc8] sm:$0xff] %v6171_v4  ;;  %1263 = vst [vmem:[#allocation4 + $0xd0] sm:$0xff] %v6171_v4  ;;  %v46_v33 = vld [vmem:[%s9384_s0 + $0x90] sm:$0xff]  ;;  %v47_v34 = vld [vmem:[%s9384_s0 + $0x98] sm:$0xff] }
   0xf   :  { %1264 = vst [vmem:[#allocation4 + $0xd8] sm:$0xff] %v6171_v4  ;;  %1265 = vst [vmem:[#allocation4 + $0xe0] sm:$0xff] %v6171_v4  ;;  %v48_v35 = vld [vmem:[%s9384_s0 + $0xa0] sm:$0xff]  ;;  %v49_v36 = vld [vmem:[%s9384_s0 + $0xa8] sm:$0xff] }
  0x10   :  { %1266 = vst [vmem:[#allocation4 + $0xe8] sm:$0xff] %v6171_v4  ;;  %1267 = vst [vmem:[#allocation4 + $0xf0] sm:$0xff] %v6171_v4  ;;  %5543 = vmatpush3.bf16.msra.mxu1 %v5542_v13  ;;  %v50_v37 = vld [vmem:[%s9384_s0 + $0xb0] sm:$0xff]  ;;  %v51_v38 = vld [vmem:[%s9384_s0 + $0xb8] sm:$0xff] }
  0x11   :  { %1268 = vst [vmem:[#allocation4 + $0xf8] sm:$0xff] %v6171_v4  ;;  %1269 = vst [vmem:[#allocation4 + $0x100] sm:$0xff] %v6171_v4  ;;  %5194 = vmatprep.subr.mxu1 %v6171_v4  ;;  %v52_v39 = vld [vmem:[%s9384_s0 + $0xc0] sm:$0xff]  ;;  %v53_v40 = vld [vmem:[%s9384_s0 + $0xc8] sm:$0xff] }
  0x12   :  { %1270 = vst [vmem:[#allocation4 + $0x108] sm:$0xff] %v6171_v4  ;;  %v54_v41 = vld [vmem:[%s9384_s0 + $0xd0] sm:$0xff]  ;;  %v55_v42 = vld [vmem:[%s9384_s0 + $0xd8] sm:$0xff]  ;;  %v56_v43 = vld [vmem:[%s9384_s0 + $0xe0] sm:$0xff] }
  0x13   :  { %v57_v44 = vld [vmem:[%s9384_s0 + $0xe8] sm:$0xff]  ;;  %v58_v45 = vld [vmem:[%s9384_s0 + $0xf0] sm:$0xff]  ;;  %v59_v46 = vld [vmem:[%s9384_s0 + $0xf8] sm:$0xff] }
  0x14   :  { %5195 = vmatpush3.msra.mxu1 %v89_v14  ;;  %v60_v47 = vld [vmem:[%s9384_s0 + $0x100] sm:$0xff]  ;;  %v61_v48 = vld [vmem:[%s9384_s0 + $0x108] sm:$0xff]  ;;  %v62_v49 = vld [vmem:[%s9384_s0 + $0x110] sm:$0xff] }
  0x15   :  { %5197 = vmatmul.mubr.msk.f32.vlgmr.msra.gmra.mrb[0].mxu1 %vm90_vm1, %v28_v15  ;;  %5544 = vmatprep.subr.bf16.mxu1 %v6170_v0  ;;  %v63_v50 = vld [vmem:[%s9384_s0 + $0x118] sm:$0xff]  ;;  %v64_v51 = vld [vmem:[%s9384_s0 + $0x120] sm:$0xff]  ;;  %v65_v52 = vld [vmem:[%s9384_s0 + $0x128] sm:$0xff] }
  0x16   :  { %5199 = vmatprep.mubr.msk.f32.mxu1 %vm6172_vm0, %v6171_v4  ;;  %5546 = vmatpush3.bf16.msra.mxu1 %v5533_v5  ;;  %v66_v53 = vld [vmem:[%s9384_s0 + $0x130] sm:$0xff]  ;;  %v67_v54 = vld [vmem:[%s9384_s0 + $0x138] sm:$0xff]  ;;  %v68_v55 = vld [vmem:[%s9384_s0 + $0x140] sm:$0xff] }
  0x17   :  { %5547 = vmatprep.subr.bf16.mxu1 %v6170_v0  ;;  %v69_v56 = vld [vmem:[%s9384_s0 + $0x148] sm:$0xff]  ;;  %v70_v57 = vld [vmem:[%s9384_s0 + $0x150] sm:$0xff]  ;;  %v71_v58 = vld [vmem:[%s9384_s0 + $0x158] sm:$0xff] }
  0x18   :  { %v72_v59 = vld [vmem:[%s9384_s0 + $0x160] sm:$0xff]  ;;  %v73_v60 = vld [vmem:[%s9384_s0 + $0x168] sm:$0xff]  ;;  %v74_v61 = vld [vmem:[%s9384_s0 + $0x170] sm:$0xff] }
  0x19   :  { %5200 = vmatmul.mubr.msk.f32.gmra.mrb[2].mxu1 %vm90_vm1, %v29_v16  ;;  %v75_v62 = vld [vmem:[%s9384_s0 + $0x178] sm:$0xff]  ;;  %v76_v63 = vld [vmem:[%s9384_s0 + $0x180] sm:$0xff]  ;;  %v78_v1 = vld [vmem:[%s9384_s0 + $0x190] sm:$0xff] }
  0x1a   :  { %5202 = vmatprep.mubr.msk.f32.mxu1 %vm6172_vm0, %v6171_v4  ;;  %5549 = vmatpush3.bf16.msra.mxu1 %v5536_v7  ;;  %v79_v2 = vld [vmem:[%s9384_s0 + $0x198] sm:$0xff]  ;;  %v80_v3 = vld [vmem:[%s9384_s0 + $0x1a0] sm:$0xf]  ;;  %v634_v8 = vld [vmem:[%s9385_s1 + $0x8] sm:$0xff] }
  0x1b   :  { %5550 = vmatprep.subr.bf16.mxu1 %v6170_v0  ;;  %v633_v5 = vld [vmem:[%s9385_s1] sm:$0xff]  ;;  %v635_v11 = vld [vmem:[%s9385_s1 + $0x10] sm:$0xff] }
  0x1d   :  { %5203 = vmatmul.mubr.msk.f32.gmra.mrb[4].mxu1 %vm90_vm1, %v30_v17  ;;  %v637_v17 = vld [vmem:[%s9385_s1 + $0x20] sm:$0xff] }
  0x1e   :  { %5205 = vmatprep.mubr.msk.f32.mxu1 %vm6172_vm0, %v6171_v4  ;;  %5552 = vmatpush3.bf16.msra.mxu1 %v5539_v10 }
  0x1f   :  { %5553 = vmatprep.subr.bf16.mxu1 %v6170_v0  ;;  %v77_v0 = vld [vmem:[%s9384_s0 + $0x188] sm:$0xff] }
  0x21   :  { %5206 = vmatmul.mubr.msk.f32.gmra.mrb[6].mxu1 %vm90_vm1, %v31_v18 }
  0x22   :  { %5208 = vmatprep.mubr.msk.f32.mxu1 %vm6172_vm0, %v6171_v4  ;;  %5555 = vmatpush3.bf16.msra.mxu1 %v5542_v13 }
  0x23   :  { %5371 = vmatprep.subr.mxu1 %v6171_v4 }
  0x25   :  { %5209 = vmatmul.mubr.msk.f32.gmra.mrb[8].mxu1 %vm90_vm1, %v32_v19 }
  0x26   :  { %5211 = vmatprep.mubr.msk.f32.mxu1 %vm6172_vm0, %v6171_v4  ;;  %5372 = vmatpush3.msra.mxu1 %v89_v14  ;;  %v636_v14 = vld [vmem:[%s9385_s1 + $0x18] sm:$0xff] }
  0x29   :  { %5212 = vmatmul.mubr.msk.f32.gmra.mrb[10].mxu1 %vm90_vm1, %v33_v20  ;;  %v638_v20 = vld [vmem:[%s9385_s1 + $0x28] sm:$0xff] }
  0x2a   :  { %5214 = vmatprep.mubr.msk.f32.mxu1 %vm6172_vm0, %v6171_v4 }
  0x2d   :  { %5215 = vmatmul.mubr.msk.f32.gmra.mrb[12].mxu1 %vm90_vm1, %v34_v21 }
  0x2e   :  { %5217 = vmatprep.mubr.msk.f32.mxu1 %vm6172_vm0, %v6171_v4 }
  0x31   :  { %5218 = vmatmul.mubr.msk.f32.gmra.mrb[14].mxu1 %vm90_vm1, %v35_v22 }
  0x32   :  { %5220 = vmatprep.mubr.msk.f32.mxu1 %vm6172_vm0, %v6171_v4 }
  0x35   :  { %5221 = vmatmul.mubr.msk.f32.gmra.mrb[16].mxu1 %vm90_vm1, %v36_v23  ;;  %v639_v23 = vld [vmem:[%s9385_s1 + $0x30] sm:$0xff] }
  0x36   :  { %5223 = vmatprep.mubr.msk.f32.mxu1 %vm6172_vm0, %v6171_v4 }
  0x39   :  { %5224 = vmatmul.mubr.msk.f32.gmra.mrb[18].mxu1 %vm90_vm1, %v37_v24 }
  0x3a   :  { %5226 = vmatprep.mubr.msk.f32.mxu1 %vm6172_vm0, %v6171_v4 }
  0x3d   :  { %5227 = vmatmul.mubr.msk.f32.gmra.mrb[20].mxu1 %vm90_vm1, %v38_v25 }
  0x3e   :  { %5229 = vmatprep.mubr.msk.f32.mxu1 %vm6172_vm0, %v6171_v4 }
  0x41   :  { %5230 = vmatmul.mubr.msk.f32.gmra.mrb[22].mxu1 %vm90_vm1, %v39_v26  ;;  %v640_v26 = vld [vmem:[%s9385_s1 + $0x38] sm:$0xff] }
  0x42   :  { %5232 = vmatprep.mubr.msk.f32.mxu1 %vm6172_vm0, %v6171_v4 }
  0x45   :  { %5233 = vmatmul.mubr.msk.f32.gmra.mrb[24].mxu1 %vm90_vm1, %v40_v27 }
  0x46   :  { %5235 = vmatprep.mubr.msk.f32.mxu1 %vm6172_vm0, %v6171_v4 }
  0x49   :  { %5236 = vmatmul.mubr.msk.f32.gmra.mrb[26].mxu1 %vm90_vm1, %v41_v28 }
  0x4a   :  { %5238 = vmatprep.mubr.msk.f32.mxu1 %vm6172_vm0, %v6171_v4 }
  0x4d   :  { %5239 = vmatmul.mubr.msk.f32.gmra.mrb[28].mxu1 %vm90_vm1, %v42_v29  ;;  %v641_v29 = vld [vmem:[%s9385_s1 + $0x40] sm:$0xff] }
  0x4e   :  { %5241 = vmatprep.mubr.msk.f32.mxu1 %vm6172_vm0, %v6171_v4 }
  0x51   :  { %5242 = vmatmul.mubr.msk.f32.gmra.mrb[30].mxu1 %vm90_vm1, %v43_v30 }
  0x52   :  { %5244 = vmatprep.mubr.msk.f32.mxu1 %vm6172_vm0, %v6171_v4 }
  0x55   :  { %5245 = vmatmul.mubr.msk.f32.gmra.mrb[32].mxu1 %vm90_vm1, %v44_v31 }
  0x56   :  { %5247 = vmatprep.mubr.msk.f32.mxu1 %vm6172_vm0, %v6171_v4 }
  0x59   :  { %5248 = vmatmul.mubr.msk.f32.gmra.mrb[34].mxu1 %vm90_vm1, %v45_v32  ;;  %v642_v32 = vld [vmem:[%s9385_s1 + $0x48] sm:$0xff] }
  0x5a   :  { %5250 = vmatprep.mubr.msk.f32.mxu1 %vm6172_vm0, %v6171_v4 }
  0x5d   :  { %5251 = vmatmul.mubr.msk.f32.gmra.mrb[36].mxu1 %vm90_vm1, %v46_v33 }
  0x5e   :  { %5253 = vmatprep.mubr.msk.f32.mxu1 %vm6172_vm0, %v6171_v4 }
  0x61   :  { %5254 = vmatmul.mubr.msk.f32.gmra.mrb[38].mxu1 %vm90_vm1, %v47_v34 }
  0x62   :  { %5256 = vmatprep.mubr.msk.f32.mxu1 %vm6172_vm0, %v6171_v4 }
  0x65   :  { %5257 = vmatmul.mubr.msk.f32.gmra.mrb[40].mxu1 %vm90_vm1, %v48_v35  ;;  %v2341_v35 = vld [vmem:[%s9386_s4 + $0x8] sm:$0xff] }
  0x66   :  { %5259 = vmatprep.mubr.msk.f32.mxu1 %vm6172_vm0, %v6171_v4 }
  0x69   :  { %5260 = vmatmul.mubr.msk.f32.gmra.mrb[42].mxu1 %vm90_vm1, %v49_v36  ;;  %v2343_v36 = vld [vmem:[%s9386_s4 + $0x18] sm:$0xff] }
  0x6a   :  { %5262 = vmatprep.mubr.msk.f32.mxu1 %vm6172_vm0, %v6171_v4 }
  0x6d   :  { %5263 = vmatmul.mubr.msk.f32.gmra.mrb[44].mxu1 %vm90_vm1, %v50_v37  ;;  %v643_v37 = vld [vmem:[%s9385_s1 + $0x50] sm:$0xff] }
  0x6e   :  { %5265 = vmatprep.mubr.msk.f32.mxu1 %vm6172_vm0, %v6171_v4 }
  0x71   :  { %5266 = vmatmul.mubr.msk.f32.gmra.mrb[46].mxu1 %vm90_vm1, %v51_v38  ;;  %v5556_v38 = vpack.c.bf16 %v2343_v36, %v2341_v35  ;;  %v2369_v35 = vld [vmem:[%s9386_s4 + $0xe8] sm:$0xff]  ;;  %v2371_v36 = vld [vmem:[%s9386_s4 + $0xf8] sm:$0xff] }
  0x72   :  { %5268 = vmatprep.mubr.msk.f32.mxu1 %vm6172_vm0, %v6171_v4 }
  0x73   :  { %5557 = vmatprep.subr.bf16.mxu0 %v5556_v38  ;;  %v5584_v38 = vpack.c.bf16 %v2371_v36, %v2369_v35  ;;  %v2397_v35 = vld [vmem:[%s9386_s4 + $0x1c8] sm:$0xff]  ;;  %v2399_v36 = vld [vmem:[%s9386_s4 + $0x1d8] sm:$0xff] }
  0x75   :  { %5269 = vmatmul.mubr.msk.f32.gmra.mrb[48].mxu1 %vm90_vm1, %v52_v39  ;;  %v2340_v39 = vld [vmem:[%s9386_s4] sm:$0xff] }
  0x76   :  { %5271 = vmatprep.mubr.msk.f32.mxu1 %vm6172_vm0, %v6171_v4 }
  0x79   :  { %5272 = vmatmul.mubr.msk.f32.gmra.mrb[50].mxu1 %vm90_vm1, %v53_v40  ;;  %v2342_v40 = vld [vmem:[%s9386_s4 + $0x10] sm:$0xff] }
  0x7a   :  { %5274 = vmatprep.mubr.msk.f32.mxu1 %vm6172_vm0, %v6171_v4 }
  0x7d   :  { %5275 = vmatmul.mubr.msk.f32.gmra.mrb[52].mxu1 %vm90_vm1, %v54_v41  ;;  %v5558_v41 = vpack.c.bf16 %v2342_v40, %v2340_v39  ;;  %v2368_v39 = vld [vmem:[%s9386_s4 + $0xe0] sm:$0xff]  ;;  %v2370_v40 = vld [vmem:[%s9386_s4 + $0xf0] sm:$0xff] }
  0x7e   :  { %5277 = vmatprep.mubr.msk.f32.mxu1 %vm6172_vm0, %v6171_v4 }
  0x7f   :  { %5559 = vmatpush1.bf16.msra.mxu0 %v5558_v41  ;;  %v5586_v41 = vpack.c.bf16 %v2370_v40, %v2368_v39  ;;  %v2396_v39 = vld [vmem:[%s9386_s4 + $0x1c0] sm:$0xff]  ;;  %v2398_v40 = vld [vmem:[%s9386_s4 + $0x1d0] sm:$0xff] }
  0x81   :  { %5278 = vmatmul.mubr.msk.f32.gmra.mrb[54].mxu1 %vm90_vm1, %v55_v42 }
  0x82   :  { %5280 = vmatprep.mubr.msk.f32.mxu1 %vm6172_vm0, %v6171_v4 }
  0x85   :  { %5281 = vmatmul.mubr.msk.f32.gmra.mrb[56].mxu1 %vm90_vm1, %v56_v43 }
  0x86   :  { %5283 = vmatprep.mubr.msk.f32.mxu1 %vm6172_vm0, %v6171_v4 }
  0x89   :  { %5284 = vmatmul.mubr.msk.f32.gmra.mrb[58].mxu1 %vm90_vm1, %v57_v44  ;;  %v2345_v44 = vld [vmem:[%s9386_s4 + $0x28] sm:$0xff] }
  0x8a   :  { %5286 = vmatprep.mubr.msk.f32.mxu1 %vm6172_vm0, %v6171_v4 }
  0x8d   :  { %5287 = vmatmul.mubr.msk.f32.gmra.mrb[60].mxu1 %vm90_vm1, %v58_v45  ;;  %v2347_v45 = vld [vmem:[%s9386_s4 + $0x38] sm:$0xff] }
  0x8e   :  { %5289 = vmatprep.mubr.msk.f32.mxu1 %vm6172_vm0, %v6171_v4 }
  0x91   :  { %5290 = vmatmul.mubr.msk.f32.gmra.mrb[62].mxu1 %vm90_vm1, %v59_v46  ;;  %v644_v46 = vld [vmem:[%s9385_s1 + $0x58] sm:$0xff] }
  0x92   :  { %5292 = vmatprep.mubr.msk.f32.mxu1 %vm6172_vm0, %v6171_v4 }
  0x95   :  { %5293 = vmatmul.mubr.msk.f32.gmra.mrb[64].mxu1 %vm90_vm1, %v60_v47  ;;  %v5560_v47 = vpack.c.bf16 %v2347_v45, %v2345_v44  ;;  %v2373_v44 = vld [vmem:[%s9386_s4 + $0x108] sm:$0xff]  ;;  %v2375_v45 = vld [vmem:[%s9386_s4 + $0x118] sm:$0xff] }
  0x96   :  { %5295 = vmatprep.mubr.msk.f32.mxu1 %vm6172_vm0, %v6171_v4 }
  0x97   :  { %5561 = vmatprep.subr.bf16.mxu0 %v5560_v47  ;;  %v5588_v47 = vpack.c.bf16 %v2375_v45, %v2373_v44  ;;  %v2401_v44 = vld [vmem:[%s9386_s4 + $0x1e8] sm:$0xff]  ;;  %v2403_v45 = vld [vmem:[%s9386_s4 + $0x1f8] sm:$0xff] }
  0x99   :  { %5296 = vmatmul.mubr.msk.f32.gmra.mrb[66].mxu1 %vm90_vm1, %v61_v48  ;;  %v2344_v48 = vld [vmem:[%s9386_s4 + $0x20] sm:$0xff] }
  0x9a   :  { %5298 = vmatprep.mubr.msk.f32.mxu1 %vm6172_vm0, %v6171_v4 }
  0x9d   :  { %5299 = vmatmul.mubr.msk.f32.gmra.mrb[68].mxu1 %vm90_vm1, %v62_v49  ;;  %v2346_v49 = vld [vmem:[%s9386_s4 + $0x30] sm:$0xff] }
  0x9e   :  { %5301 = vmatprep.mubr.msk.f32.mxu1 %vm6172_vm0, %v6171_v4 }
  0xa1   :  { %5302 = vmatmul.mubr.msk.f32.gmra.mrb[70].mxu1 %vm90_vm1, %v63_v50  ;;  %v5562_v50 = vpack.c.bf16 %v2346_v49, %v2344_v48  ;;  %v2372_v48 = vld [vmem:[%s9386_s4 + $0x100] sm:$0xff]  ;;  %v2374_v49 = vld [vmem:[%s9386_s4 + $0x110] sm:$0xff] }
  0xa2   :  { %5304 = vmatprep.mubr.msk.f32.mxu1 %vm6172_vm0, %v6171_v4 }
  0xa3   :  { %5563 = vmatpush1.bf16.msra.mxu0 %v5562_v50  ;;  %v5590_v50 = vpack.c.bf16 %v2374_v49, %v2372_v48  ;;  %v2400_v48 = vld [vmem:[%s9386_s4 + $0x1e0] sm:$0xff]  ;;  %v2402_v49 = vld [vmem:[%s9386_s4 + $0x1f0] sm:$0xff] }
  0xa5   :  { %5305 = vmatmul.mubr.msk.f32.gmra.mrb[72].mxu1 %vm90_vm1, %v64_v51 }
  0xa6   :  { %5307 = vmatprep.mubr.msk.f32.mxu1 %vm6172_vm0, %v6171_v4 }
  0xa9   :  { %5308 = vmatmul.mubr.msk.f32.gmra.mrb[74].mxu1 %vm90_vm1, %v65_v52 }
  0xaa   :  { %5310 = vmatprep.mubr.msk.f32.mxu1 %vm6172_vm0, %v6171_v4 }
  0xad   :  { %5311 = vmatmul.mubr.msk.f32.gmra.mrb[76].mxu1 %vm90_vm1, %v66_v53  ;;  %v2349_v53 = vld [vmem:[%s9386_s4 + $0x48] sm:$0xff] }
  0xae   :  { %5313 = vmatprep.mubr.msk.f32.mxu1 %vm6172_vm0, %v6171_v4 }
  0xb1   :  { %5314 = vmatmul.mubr.msk.f32.gmra.mrb[78].mxu1 %vm90_vm1, %v67_v54  ;;  %v2351_v54 = vld [vmem:[%s9386_s4 + $0x58] sm:$0xff] }
  0xb2   :  { %5316 = vmatprep.mubr.msk.f32.mxu1 %vm6172_vm0, %v6171_v4 }
  0xb5   :  { %5317 = vmatmul.mubr.msk.f32.gmra.mrb[80].mxu1 %vm90_vm1, %v68_v55  ;;  %v645_v55 = vld [vmem:[%s9385_s1 + $0x60] sm:$0xff] }
  0xb6   :  { %5319 = vmatprep.mubr.msk.f32.mxu1 %vm6172_vm0, %v6171_v4 }
  0xb9   :  { %5320 = vmatmul.mubr.msk.f32.gmra.mrb[82].mxu1 %vm90_vm1, %v69_v56  ;;  %v5564_v56 = vpack.c.bf16 %v2351_v54, %v2349_v53  ;;  %v2377_v53 = vld [vmem:[%s9386_s4 + $0x128] sm:$0xff]  ;;  %v2379_v54 = vld [vmem:[%s9386_s4 + $0x138] sm:$0xff] }
  0xba   :  { %5322 = vmatprep.mubr.msk.f32.mxu1 %vm6172_vm0, %v6171_v4 }
  0xbb   :  { %5565 = vmatprep.subr.bf16.mxu0 %v5564_v56  ;;  %v5592_v56 = vpack.c.bf16 %v2379_v54, %v2377_v53  ;;  %v659_v53 = vld [vmem:[%s9385_s1 + $0xd0] sm:$0xff] }
  0xbc   :  { %v1615_v54 = vld [vmem:[#allocation4 + $0x1] sm:$0xff] }
  0xbd   :  { %5323 = vmatmul.mubr.msk.f32.gmra.mrb[84].mxu1 %vm90_vm1, %v70_v57  ;;  %v2348_v57 = vld [vmem:[%s9386_s4 + $0x40] sm:$0xff]  ;;  %2692 = vmatprep.mubr.f32.mxu0 %v1615_v54 }
  0xbe   :  { %5325 = vmatprep.mubr.msk.f32.mxu1 %vm6172_vm0, %v6171_v4 }
  0xc1   :  { %5326 = vmatmul.mubr.msk.f32.gmra.mrb[86].mxu1 %vm90_vm1, %v71_v58  ;;  %v2350_v58 = vld [vmem:[%s9386_s4 + $0x50] sm:$0xff] }
  0xc2   :  { %5328 = vmatprep.mubr.msk.f32.mxu1 %vm6172_vm0, %v6171_v4 }
  0xc5   :  { %5329 = vmatmul.mubr.msk.f32.gmra.mrb[88].mxu1 %vm90_vm1, %v72_v59  ;;  %v5566_v59 = vpack.c.bf16 %v2350_v58, %v2348_v57  ;;  %v2376_v57 = vld [vmem:[%s9386_s4 + $0x120] sm:$0xff]  ;;  %v2378_v58 = vld [vmem:[%s9386_s4 + $0x130] sm:$0xff] }
  0xc6   :  { %5331 = vmatprep.mubr.msk.f32.mxu1 %vm6172_vm0, %v6171_v4 }
  0xc7   :  { %5567 = vmatpush1.bf16.msra.mxu0 %v5566_v59  ;;  %v5594_v59 = vpack.c.bf16 %v2378_v58, %v2376_v57  ;;  %v1616_v58 = vld [vmem:[#allocation4 + $0x9] sm:$0xff] }
  0xc9   :  { %5332 = vmatmul.mubr.msk.f32.gmra.mrb[90].mxu1 %vm90_vm1, %v73_v60 }
  0xca   :  { %5334 = vmatprep.mubr.msk.f32.mxu1 %vm6172_vm0, %v6171_v4 }
  0xcd   :  { %5335 = vmatmul.mubr.msk.f32.gmra.mrb[92].mxu1 %vm90_vm1, %v74_v61 }
  0xce   :  { %5337 = vmatprep.mubr.msk.f32.mxu1 %vm6172_vm0, %v6171_v4 }
  0xd1   :  { %5338 = vmatmul.mubr.msk.f32.gmra.mrb[94].mxu1 %vm90_vm1, %v75_v62  ;;  %v2353_v62 = vld [vmem:[%s9386_s4 + $0x68] sm:$0xff] }
  0xd2   :  { %5340 = vmatprep.mubr.msk.f32.mxu1 %vm6172_vm0, %v6171_v4 }
  0xd5   :  { %5341 = vmatmul.mubr.msk.f32.gmra.mrb[96].mxu1 %vm90_vm1, %v76_v63  ;;  %v2355_v63 = vld [vmem:[%s9386_s4 + $0x78] sm:$0xff] }
  0xd6   :  { %5343 = vmatprep.mubr.msk.f32.mxu1 %vm6172_vm0, %v6171_v4 }
  0xd9   :  { %5344 = vmatmul.mubr.msk.f32.gmra.mrb[98].mxu1 %vm90_vm1, %v77_v0  ;;  %v646_v0 = vld [vmem:[%s9385_s1 + $0x68] sm:$0xff] }
  0xda   :  { %5346 = vmatprep.mubr.msk.f32.mxu1 %vm6172_vm0, %v6171_v4 }
  0xdd   :  { %5347 = vmatmul.mubr.msk.f32.gmra.mrb[100].mxu1 %vm90_vm1, %v78_v1  ;;  %v5568_v1 = vpack.c.bf16 %v2355_v63, %v2353_v62  ;;  %v2381_v62 = vld [vmem:[%s9386_s4 + $0x148] sm:$0xff]  ;;  %v2383_v63 = vld [vmem:[%s9386_s4 + $0x158] sm:$0xff] }
  0xde   :  { %5349 = vmatprep.mubr.msk.f32.mxu1 %vm6172_vm0, %v6171_v4 }
  0xdf   :  { %5569 = vmatprep.subr.bf16.mxu0 %v5568_v1  ;;  %v5596_v1 = vpack.c.bf16 %v2383_v63, %v2381_v62 }
  0xe1   :  { %5350 = vmatmul.mubr.msk.f32.gmra.mrb[102].mxu1 %vm90_vm1, %v79_v2  ;;  %v2352_v2 = vld [vmem:[%s9386_s4 + $0x60] sm:$0xff] }
  0xe2   :  { %5352 = vmatprep.mubr.msk.f32.mxu1 %vm6172_vm0, %v6171_v4 }
  0xe5   :  { %5353 = vmatmul.mubr.msk.f32.gmra.mrb[104].mxu1 %vm90_vm1, %v80_v3  ;;  %v2354_v3 = vld [vmem:[%s9386_s4 + $0x70] sm:$0xff] }
  0xe6   :  { %5373 = vmatprep.mubr.msk.f32.mxu1 %vm6172_vm0, %v6171_v4 }
  0xe8   :  { %v316_v6 = vpop.f32.mrb[0].mxu1 }
  0xe9   :  { %580 = vst [vmem:[#allocation2] sm:$0xff] %v316_v6  ;;  %v5198_v7 = vpop.f32.mrb[1].mxu1  ;;  %5374 = vmatmul.mubr.msk.f32.vlgmr.msra.gmra.mrb[106].mxu1 %vm90_vm1, %v633_v5  ;;  %v5570_v5 = vpack.c.bf16 %v2354_v3, %v2352_v2  ;;  %v2380_v2 = vld [vmem:[%s9386_s4 + $0x140] sm:$0xff]  ;;  %v2382_v3 = vld [vmem:[%s9386_s4 + $0x150] sm:$0xff] }
  0xea   :  { %5376 = vmatprep.mubr.msk.f32.mxu1 %vm6172_vm0, %v6171_v4 }
  0xeb   :  { %5571 = vmatpush1.bf16.msra.mxu0 %v5570_v5  ;;  %v5598_v5 = vpack.c.bf16 %v2382_v3, %v2380_v2  ;;  %v663_v3 = vld [vmem:[%s9385_s1 + $0xf0] sm:$0xff] }
  0xec   :  { %v321_v9 = vpop.f32.mrb[2].mxu1 }
  0xed   :  { %581 = vst [vmem:[#allocation2 + $0x8] sm:$0xff] %v321_v9  ;;  %v5201_v10 = vpop.f32.mrb[3].mxu1  ;;  %5377 = vmatmul.mubr.msk.f32.gmra.mrb[108].mxu1 %vm90_vm1, %v634_v8  ;;  %v2357_v8 = vld [vmem:[%s9386_s4 + $0x88] sm:$0xff]  ;;  %v2359_v9 = vld [vmem:[%s9386_s4 + $0x98] sm:$0xff] }
  0xee   :  { %5379 = vmatprep.mubr.msk.f32.mxu1 %vm6172_vm0, %v6171_v4  ;;  %v647_v10 = vld [vmem:[%s9385_s1 + $0x70] sm:$0xff] }
  0xf0   :  { %v326_v12 = vpop.f32.mrb[4].mxu1 }
  0xf1   :  { %582 = vst [vmem:[#allocation2 + $0x10] sm:$0xff] %v326_v12  ;;  %v5204_v13 = vpop.f32.mrb[5].mxu1  ;;  %5380 = vmatmul.mubr.msk.f32.gmra.mrb[110].mxu1 %vm90_vm1, %v635_v11  ;;  %v5572_v11 = vpack.c.bf16 %v2359_v9, %v2357_v8  ;;  %v2356_v12 = vld [vmem:[%s9386_s4 + $0x80] sm:$0xff]  ;;  %v2385_v8 = vld [vmem:[%s9386_s4 + $0x168] sm:$0xff]  ;;  %v2387_v9 = vld [vmem:[%s9386_s4 + $0x178] sm:$0xff] }
  0xf2   :  { %5382 = vmatprep.mubr.msk.f32.mxu1 %vm6172_vm0, %v6171_v4  ;;  %v2358_v13 = vld [vmem:[%s9386_s4 + $0x90] sm:$0xff] }
  0xf3   :  { %5573 = vmatprep.subr.bf16.mxu0 %v5572_v11  ;;  %v5600_v11 = vpack.c.bf16 %v2387_v9, %v2385_v8 }
  0xf4   :  { %v331_v15 = vpop.f32.mrb[6].mxu1 }
  0xf5   :  { %583 = vst [vmem:[#allocation2 + $0x18] sm:$0xff] %v331_v15  ;;  %v5207_v16 = vpop.f32.mrb[7].mxu1  ;;  %5383 = vmatmul.mubr.msk.f32.gmra.mrb[112].mxu1 %vm90_vm1, %v636_v14  ;;  %v5574_v14 = vpack.c.bf16 %v2358_v13, %v2356_v12  ;;  %v2384_v12 = vld [vmem:[%s9386_s4 + $0x160] sm:$0xff]  ;;  %v2386_v13 = vld [vmem:[%s9386_s4 + $0x170] sm:$0xff] }
  0xf6   :  { %5385 = vmatprep.mubr.msk.f32.mxu1 %vm6172_vm0, %v6171_v4 }
  0xf7   :  { %5575 = vmatpush1.bf16.msra.mxu0 %v5574_v14  ;;  %v5602_v14 = vpack.c.bf16 %v2386_v13, %v2384_v12  ;;  %v2535_v12 = vld [vmem:[%s9386_s4 + $0x618] sm:$0xff] }
  0xf8   :  { %v336_v18 = vpop.f32.mrb[8].mxu1 }
  0xf9   :  { %584 = vst [vmem:[#allocation2 + $0x20] sm:$0xff] %v336_v18  ;;  %v5210_v19 = vpop.f32.mrb[9].mxu1  ;;  %5386 = vmatmul.mubr.msk.f32.gmra.mrb[114].mxu1 %vm90_vm1, %v637_v17  ;;  %v2361_v17 = vld [vmem:[%s9386_s4 + $0xa8] sm:$0xff]  ;;  %v2363_v18 = vld [vmem:[%s9386_s4 + $0xb8] sm:$0xff] }
  0xfa   :  { %5388 = vmatprep.mubr.msk.f32.mxu1 %vm6172_vm0, %v6171_v4  ;;  %v648_v19 = vld [vmem:[%s9385_s1 + $0x78] sm:$0xff] }
  0xfc   :  { %v341_v21 = vpop.f32.mrb[10].mxu1 }
  0xfd   :  { %585 = vst [vmem:[#allocation2 + $0x28] sm:$0xff] %v341_v21  ;;  %v5213_v22 = vpop.f32.mrb[11].mxu1  ;;  %5389 = vmatmul.mubr.msk.f32.gmra.mrb[116].mxu1 %vm90_vm1, %v638_v20  ;;  %v5576_v20 = vpack.c.bf16 %v2363_v18, %v2361_v17  ;;  %v2360_v21 = vld [vmem:[%s9386_s4 + $0xa0] sm:$0xff]  ;;  %v2389_v17 = vld [vmem:[%s9386_s4 + $0x188] sm:$0xff]  ;;  %v2391_v18 = vld [vmem:[%s9386_s4 + $0x198] sm:$0xff] }
  0xfe   :  { %5391 = vmatprep.mubr.msk.f32.mxu1 %vm6172_vm0, %v6171_v4  ;;  %v2362_v22 = vld [vmem:[%s9386_s4 + $0xb0] sm:$0xff] }
  0xff   :  { %5577 = vmatprep.subr.bf16.mxu0 %v5576_v20  ;;  %v5604_v20 = vpack.c.bf16 %v2391_v18, %v2389_v17 }
 0x100   :  { %v346_v24 = vpop.f32.mrb[12].mxu1 }
 0x101   :  { %586 = vst [vmem:[#allocation2 + $0x30] sm:$0xff] %v346_v24  ;;  %v5216_v25 = vpop.f32.mrb[13].mxu1  ;;  %5392 = vmatmul.mubr.msk.f32.gmra.mrb[118].mxu1 %vm90_vm1, %v639_v23  ;;  %v5578_v23 = vpack.c.bf16 %v2362_v22, %v2360_v21  ;;  %v2388_v21 = vld [vmem:[%s9386_s4 + $0x180] sm:$0xff]  ;;  %v2390_v22 = vld [vmem:[%s9386_s4 + $0x190] sm:$0xff] }
 0x102   :  { %5394 = vmatprep.mubr.msk.f32.mxu1 %vm6172_vm0, %v6171_v4 }
 0x103   :  { %5579 = vmatpush1.bf16.msra.mxu0 %v5578_v23  ;;  %v5606_v23 = vpack.c.bf16 %v2390_v22, %v2388_v21  ;;  %v2539_v21 = vld [vmem:[%s9386_s4 + $0x638] sm:$0xff] }
 0x104   :  { %v351_v27 = vpop.f32.mrb[14].mxu1 }
 0x105   :  { %587 = vst [vmem:[#allocation2 + $0x38] sm:$0xff] %v351_v27  ;;  %v5219_v28 = vpop.f32.mrb[15].mxu1  ;;  %5395 = vmatmul.mubr.msk.f32.gmra.mrb[120].mxu1 %vm90_vm1, %v640_v26  ;;  %v2365_v26 = vld [vmem:[%s9386_s4 + $0xc8] sm:$0xff]  ;;  %v2367_v27 = vld [vmem:[%s9386_s4 + $0xd8] sm:$0xff] }
 0x106   :  { %5397 = vmatprep.mubr.msk.f32.mxu1 %vm6172_vm0, %v6171_v4  ;;  %v649_v28 = vld [vmem:[%s9385_s1 + $0x80] sm:$0xff] }
 0x108   :  { %v356_v30 = vpop.f32.mrb[16].mxu1 }
 0x109   :  { %588 = vst [vmem:[#allocation2 + $0x40] sm:$0xff] %v356_v30  ;;  %v5222_v31 = vpop.f32.mrb[17].mxu1  ;;  %5398 = vmatmul.mubr.msk.f32.gmra.mrb[122].mxu1 %vm90_vm1, %v641_v29  ;;  %v5580_v29 = vpack.c.bf16 %v2367_v27, %v2365_v26  ;;  %v2364_v30 = vld [vmem:[%s9386_s4 + $0xc0] sm:$0xff]  ;;  %v2393_v26 = vld [vmem:[%s9386_s4 + $0x1a8] sm:$0xff]  ;;  %v2395_v27 = vld [vmem:[%s9386_s4 + $0x1b8] sm:$0xff] }
 0x10a   :  { %5400 = vmatprep.mubr.msk.f32.mxu1 %vm6172_vm0, %v6171_v4  ;;  %v2366_v31 = vld [vmem:[%s9386_s4 + $0xd0] sm:$0xff] }
 0x10b   :  { %5581 = vmatprep.subr.bf16.mxu0 %v5580_v29  ;;  %v5608_v29 = vpack.c.bf16 %v2395_v27, %v2393_v26 }
 0x10c   :  { %v361_v33 = vpop.f32.mrb[18].mxu1 }
 0x10d   :  { %589 = vst [vmem:[#allocation2 + $0x48] sm:$0xff] %v361_v33  ;;  %v5225_v34 = vpop.f32.mrb[19].mxu1  ;;  %5401 = vmatmul.mubr.msk.f32.gmra.mrb[124].mxu1 %vm90_vm1, %v642_v32  ;;  %v5582_v32 = vpack.c.bf16 %v2366_v31, %v2364_v30  ;;  %v2392_v30 = vld [vmem:[%s9386_s4 + $0x1a0] sm:$0xff]  ;;  %v2394_v31 = vld [vmem:[%s9386_s4 + $0x1b0] sm:$0xff] }
 0x10e   :  { %5403 = vmatprep.mubr.msk.f32.mxu1 %vm6172_vm0, %v6171_v4 }
 0x10f   :  { %5583 = vmatpush1.bf16.msra.mxu0 %v5582_v32  ;;  %v5610_v32 = vpack.c.bf16 %v2394_v31, %v2392_v30  ;;  %v2543_v30 = vld [vmem:[%s9386_s4 + $0x658] sm:$0xff] }
 0x110   :  { %v366_v42 = vpop.f32.mrb[20].mxu1  ;;  %5585 = vmatprep.subr.bf16.mxu0 %v5584_v38  ;;  %v5612_v38 = vpack.c.bf16 %v2399_v36, %v2397_v35 }
 0x111   :  { %590 = vst [vmem:[#allocation2 + $0x50] sm:$0xff] %v366_v42  ;;  %v5228_v43 = vpop.f32.mrb[21].mxu1  ;;  %5404 = vmatmul.mubr.msk.f32.gmra.mrb[126].mxu1 %vm90_vm1, %v643_v37  ;;  %v650_v37 = vld [vmem:[%s9385_s1 + $0x88] sm:$0xff] }
 0x112   :  { %5406 = vmatprep.mubr.msk.f32.mxu1 %vm6172_vm0, %v6171_v4 }
 0x113   :  { %5587 = vmatpush1.bf16.msra.mxu0 %v5586_v41  ;;  %v5614_v41 = vpack.c.bf16 %v2398_v40, %v2396_v39  ;;  %v2547_v39 = vld [vmem:[%s9386_s4 + $0x678] sm:$0xff] }
 0x114   :  { %v371_v51 = vpop.f32.mrb[22].mxu1  ;;  %5589 = vmatprep.subr.bf16.mxu0 %v5588_v47  ;;  %v5616_v47 = vpack.c.bf16 %v2403_v45, %v2401_v44 }
 0x115   :  { %591 = vst [vmem:[#allocation2 + $0x58] sm:$0xff] %v371_v51  ;;  %v5231_v52 = vpop.f32.mrb[23].mxu1  ;;  %5407 = vmatmul.mubr.msk.f32.gmra.mrb[128].mxu1 %vm90_vm1, %v644_v46  ;;  %v651_v46 = vld [vmem:[%s9385_s1 + $0x90] sm:$0xff] }
 0x116   :  { %5409 = vmatprep.mubr.msk.f32.mxu1 %vm6172_vm0, %v6171_v4 }
 0x117   :  { %5591 = vmatpush1.bf16.msra.mxu0 %v5590_v50  ;;  %v5618_v50 = vpack.c.bf16 %v2402_v49, %v2400_v48  ;;  %v2551_v48 = vld [vmem:[%s9386_s4 + $0x698] sm:$0xff] }
 0x118   :  { %v376_v60 = vpop.f32.mrb[24].mxu1  ;;  %5593 = vmatprep.subr.bf16.mxu0 %v5592_v56  ;;  %v6955_v56 = vld [vmem:[#allocation4] sm:$0xff] }
 0x119   :  { %592 = vst [vmem:[#allocation2 + $0x60] sm:$0xff] %v376_v60  ;;  %v5234_v61 = vpop.f32.mrb[25].mxu1  ;;  %5410 = vmatmul.mubr.msk.f32.gmra.mrb[130].mxu1 %vm90_vm1, %v645_v55  ;;  %v652_v55 = vld [vmem:[%s9385_s1 + $0x98] sm:$0xff] }
 0x11a   :  { %5412 = vmatprep.mubr.msk.f32.mxu1 %vm6172_vm0, %v6171_v4 }
 0x11b   :  { %5595 = vmatpush1.bf16.msra.mxu0 %v5594_v59 }
 0x11c   :  { %v381_v6 = vpop.f32.mrb[26].mxu1  ;;  %5597 = vmatprep.subr.bf16.mxu0 %v5596_v1 }
 0x11d   :  { %593 = vst [vmem:[#allocation2 + $0x68] sm:$0xff] %v381_v6  ;;  %v5237_v7 = vpop.f32.mrb[27].mxu1  ;;  %5413 = vmatmul.mubr.msk.f32.gmra.mrb[132].mxu1 %vm90_vm1, %v646_v0  ;;  %v653_v0 = vld [vmem:[%s9385_s1 + $0xa0] sm:$0xff] }
 0x11e   :  { %5415 = vmatprep.mubr.msk.f32.mxu1 %vm6172_vm0, %v6171_v4 }
 0x11f   :  { %5599 = vmatpush1.bf16.msra.mxu0 %v5598_v5 }
 0x120   :  { %v386_v15 = vpop.f32.mrb[28].mxu1  ;;  %5601 = vmatprep.subr.bf16.mxu0 %v5600_v11  ;;  %v2533_v11 = vld [vmem:[%s9386_s4 + $0x608] sm:$0xff] }
 0x121   :  { %594 = vst [vmem:[#allocation2 + $0x70] sm:$0xff] %v386_v15  ;;  %v5240_v16 = vpop.f32.mrb[29].mxu1  ;;  %5416 = vmatmul.mubr.msk.f32.gmra.mrb[134].mxu1 %vm90_vm1, %v647_v10  ;;  %v654_v10 = vld [vmem:[%s9385_s1 + $0xa8] sm:$0xff]  ;;  %v7001_v13 = vpack.c.bf16 %v2535_v12, %v2533_v11  ;;  %v2563_v12 = vld [vmem:[%s9386_s4 + $0x6f8] sm:$0xff] }
 0x122   :  { %5418 = vmatprep.mubr.msk.f32.mxu1 %vm6172_vm0, %v6171_v4  ;;  %v2561_v11 = vld [vmem:[%s9386_s4 + $0x6e8] sm:$0xff] }
 0x123   :  { %5603 = vmatpush1.bf16.msra.mxu0 %v5602_v14  ;;  %v2532_v14 = vld [vmem:[%s9386_s4 + $0x600] sm:$0xff]  ;;  %5896 = vmatprep.subr.bf16.mxu1 %v7001_v13 }
 0x124   :  { %v391_v24 = vpop.f32.mrb[30].mxu1  ;;  %5605 = vmatprep.subr.bf16.mxu0 %v5604_v20  ;;  %v2537_v20 = vld [vmem:[%s9386_s4 + $0x628] sm:$0xff] }
 0x125   :  { %595 = vst [vmem:[#allocation2 + $0x78] sm:$0xff] %v391_v24  ;;  %v5243_v25 = vpop.f32.mrb[31].mxu1  ;;  %5419 = vmatmul.mubr.msk.f32.gmra.mrb[136].mxu1 %vm90_vm1, %v648_v19  ;;  %v655_v19 = vld [vmem:[%s9385_s1 + $0xb0] sm:$0xff]  ;;  %v7025_v22 = vpack.c.bf16 %v2539_v21, %v2537_v20  ;;  %v673_v21 = vld [vmem:[%s9385_s1 + $0x140] sm:$0xff] }
 0x126   :  { %5421 = vmatprep.mubr.msk.f32.mxu1 %vm6172_vm0, %v6171_v4 }
 0x127   :  { %5607 = vmatpush1.bf16.msra.mxu0 %v5606_v23  ;;  %v2536_v23 = vld [vmem:[%s9386_s4 + $0x620] sm:$0xff] }
 0x128   :  { %v396_v33 = vpop.f32.mrb[32].mxu1  ;;  %5609 = vmatprep.subr.bf16.mxu0 %v5608_v29  ;;  %v2541_v29 = vld [vmem:[%s9386_s4 + $0x648] sm:$0xff] }
 0x129   :  { %596 = vst [vmem:[#allocation2 + $0x80] sm:$0xff] %v396_v33  ;;  %v5246_v34 = vpop.f32.mrb[33].mxu1  ;;  %5422 = vmatmul.mubr.msk.f32.gmra.mrb[138].mxu1 %vm90_vm1, %v649_v28  ;;  %v656_v28 = vld [vmem:[%s9385_s1 + $0xb8] sm:$0xff]  ;;  %v7049_v31 = vpack.c.bf16 %v2543_v30, %v2541_v29 }
 0x12a   :  { %5424 = vmatprep.mubr.msk.f32.mxu1 %vm6172_vm0, %v6171_v4 }
 0x12b   :  { %5611 = vmatpush1.bf16.msra.mxu0 %v5610_v32  ;;  %v2540_v32 = vld [vmem:[%s9386_s4 + $0x640] sm:$0xff] }
 0x12c   :  { %v401_v42 = vpop.f32.mrb[34].mxu1  ;;  %5613 = vmatprep.subr.bf16.mxu0 %v5612_v38  ;;  %v2545_v38 = vld [vmem:[%s9386_s4 + $0x668] sm:$0xff] }
 0x12d   :  { %597 = vst [vmem:[#allocation2 + $0x88] sm:$0xff] %v401_v42  ;;  %v5249_v43 = vpop.f32.mrb[35].mxu1  ;;  %5425 = vmatmul.mubr.msk.f32.gmra.mrb[140].mxu1 %vm90_vm1, %v650_v37  ;;  %v657_v37 = vld [vmem:[%s9385_s1 + $0xc0] sm:$0xff]  ;;  %v7073_v40 = vpack.c.bf16 %v2547_v39, %v2545_v38  ;;  %v2570_v39 = vld [vmem:[%s9386_s4 + $0x730] sm:$0xff] }
 0x12e   :  { %5427 = vmatprep.mubr.msk.f32.mxu1 %vm6172_vm0, %v6171_v4  ;;  %v2568_v38 = vld [vmem:[%s9386_s4 + $0x720] sm:$0xff] }
 0x12f   :  { %5615 = vmatpush1.bf16.msra.mxu0 %v5614_v41  ;;  %v2544_v41 = vld [vmem:[%s9386_s4 + $0x660] sm:$0xff] }
 0x130   :  { %v406_v51 = vpop.f32.mrb[36].mxu1  ;;  %5617 = vmatprep.subr.bf16.mxu0 %v5616_v47  ;;  %v2549_v47 = vld [vmem:[%s9386_s4 + $0x688] sm:$0xff] }
 0x131   :  { %598 = vst [vmem:[#allocation2 + $0x90] sm:$0xff] %v406_v51  ;;  %v5252_v52 = vpop.f32.mrb[37].mxu1  ;;  %5428 = vmatmul.mubr.msk.f32.gmra.mrb[142].mxu1 %vm90_vm1, %v651_v46  ;;  %v658_v46 = vld [vmem:[%s9385_s1 + $0xc8] sm:$0xff]  ;;  %v7097_v49 = vpack.c.bf16 %v2551_v48, %v2549_v47  ;;  %v2575_v47 = vld [vmem:[%s9386_s4 + $0x758] sm:$0xff] }
 0x132   :  { %5430 = vmatprep.mubr.msk.f32.mxu1 %vm6172_vm0, %v6171_v4 }
 0x133   :  { %5619 = vmatpush1.bf16.msra.mxu0 %v5618_v50  ;;  %v2548_v50 = vld [vmem:[%s9386_s4 + $0x680] sm:$0xff] }
 0x134   :  { %v411_v60 = vpop.f32.mrb[38].mxu1 }
 0x135   :  { %599 = vst [vmem:[#allocation2 + $0x98] sm:$0xff] %v411_v60  ;;  %v5255_v61 = vpop.f32.mrb[39].mxu1  ;;  %5431 = vmatmul.mubr.msk.f32.gmra.mrb[144].mxu1 %vm90_vm1, %v652_v55 }
 0x136   :  { %5433 = vmatprep.mubr.msk.f32.mxu1 %vm6172_vm0, %v6171_v4  ;;  %2693 = vmatmul.mubr.f32.vlgmr.msra.gmra.mrb[0].mxu0 %v6955_v56  ;;  %v661_v61 = vld [vmem:[%s9385_s1 + $0xe0] sm:$0xff] }
 0x137   :  { %2698 = vmatprep.mubr.f32.mxu0 %v1616_v58 }
 0x138   :  { %v416_v6 = vpop.f32.mrb[40].mxu1 }
 0x139   :  { %600 = vst [vmem:[#allocation2 + $0xa0] sm:$0xff] %v416_v6  ;;  %v5258_v7 = vpop.f32.mrb[41].mxu1  ;;  %5434 = vmatmul.mubr.msk.f32.gmra.mrb[146].mxu1 %vm90_vm1, %v653_v0  ;;  %v662_v0 = vld [vmem:[%s9385_s1 + $0xe8] sm:$0xff] }
 0x13a   :  { %5436 = vmatprep.mubr.msk.f32.mxu1 %vm6172_vm0, %v6171_v4  ;;  %2699 = vmatmul.mubr.f32.gmra.mrb[2].mxu0 %v6955_v56  ;;  %v664_v7 = vld [vmem:[%s9385_s1 + $0xf8] sm:$0xff] }
 0x13c   :  { %v421_v15 = vpop.f32.mrb[42].mxu1 }
 0x13d   :  { %601 = vst [vmem:[#allocation2 + $0xa8] sm:$0xff] %v421_v15  ;;  %v5261_v16 = vpop.f32.mrb[43].mxu1  ;;  %5437 = vmatmul.mubr.msk.f32.gmra.mrb[148].mxu1 %vm90_vm1, %v654_v10  ;;  %v665_v10 = vld [vmem:[%s9385_s1 + $0x100] sm:$0xff]  ;;  %v2534_v15 = vld [vmem:[%s9386_s4 + $0x610] sm:$0xff] }
 0x13e   :  { %5439 = vmatprep.mubr.msk.f32.mxu1 %vm6172_vm0, %v6171_v4  ;;  %v7009_v17 = vpack.c.bf16 %v2534_v15, %v2532_v14  ;;  %v7169_v14 = vpack.c.bf16 %v2563_v12, %v2561_v11  ;;  %v2560_v15 = vld [vmem:[%s9386_s4 + $0x6e0] sm:$0xff] }
 0x13f   :  { %v2580_v11 = vld [vmem:[%s9386_s4 + $0x780] sm:$0xff] }
 0x140   :  { %v426_v24 = vpop.f32.mrb[44].mxu1  ;;  %5912 = vmatpush1.bf16.msra.mxu1 %v7009_v17 }
 0x141   :  { %602 = vst [vmem:[#allocation2 + $0xb0] sm:$0xff] %v426_v24  ;;  %v5264_v25 = vpop.f32.mrb[45].mxu1  ;;  %5440 = vmatmul.mubr.msk.f32.gmra.mrb[150].mxu1 %vm90_vm1, %v655_v19  ;;  %v666_v19 = vld [vmem:[%s9385_s1 + $0x108] sm:$0xff]  ;;  %v2538_v24 = vld [vmem:[%s9386_s4 + $0x630] sm:$0xff]  ;;  %5897 = vmatprep.subr.bf16.mxu1 %v7025_v22 }
 0x142   :  { %5442 = vmatprep.mubr.msk.f32.mxu1 %vm6172_vm0, %v6171_v4  ;;  %v7033_v26 = vpack.c.bf16 %v2538_v24, %v2536_v23  ;;  %v2565_v23 = vld [vmem:[%s9386_s4 + $0x708] sm:$0xff]  ;;  %v2567_v24 = vld [vmem:[%s9386_s4 + $0x718] sm:$0xff] }
 0x144   :  { %v431_v33 = vpop.f32.mrb[46].mxu1  ;;  %5913 = vmatpush1.bf16.msra.mxu1 %v7033_v26 }
 0x145   :  { %603 = vst [vmem:[#allocation2 + $0xb8] sm:$0xff] %v431_v33  ;;  %v5267_v34 = vpop.f32.mrb[47].mxu1  ;;  %5443 = vmatmul.mubr.msk.f32.gmra.mrb[152].mxu1 %vm90_vm1, %v656_v28  ;;  %v667_v28 = vld [vmem:[%s9385_s1 + $0x110] sm:$0xff]  ;;  %5898 = vmatprep.subr.bf16.mxu1 %v7049_v31 }
 0x146   :  { %5445 = vmatprep.mubr.msk.f32.mxu1 %vm6172_vm0, %v6171_v4  ;;  %v2542_v33 = vld [vmem:[%s9386_s4 + $0x650] sm:$0xff] }
 0x147   :  { %v7057_v35 = vpack.c.bf16 %v2542_v33, %v2540_v32  ;;  %v674_v33 = vld [vmem:[%s9385_s1 + $0x148] sm:$0xff] }
 0x148   :  { %v436_v42 = vpop.f32.mrb[48].mxu1 }
 0x149   :  { %604 = vst [vmem:[#allocation2 + $0xc0] sm:$0xff] %v436_v42  ;;  %v5270_v43 = vpop.f32.mrb[49].mxu1  ;;  %5446 = vmatmul.mubr.msk.f32.gmra.mrb[154].mxu1 %vm90_vm1, %v657_v37  ;;  %v668_v37 = vld [vmem:[%s9385_s1 + $0x118] sm:$0xff]  ;;  %v2546_v42 = vld [vmem:[%s9386_s4 + $0x670] sm:$0xff] }
 0x14a   :  { %5448 = vmatprep.mubr.msk.f32.mxu1 %vm6172_vm0, %v6171_v4  ;;  %5914 = vmatpush1.bf16.msra.mxu1 %v7057_v35  ;;  %v7081_v44 = vpack.c.bf16 %v2546_v42, %v2544_v41  ;;  %v7225_v42 = vpack.c.bf16 %v2570_v39, %v2568_v38 }
 0x14b   :  { %5899 = vmatprep.subr.bf16.mxu1 %v7073_v40 }
 0x14c   :  { %v441_v51 = vpop.f32.mrb[50].mxu1 }
 0x14d   :  { %605 = vst [vmem:[#allocation2 + $0xc8] sm:$0xff] %v441_v51  ;;  %v5273_v52 = vpop.f32.mrb[51].mxu1  ;;  %5449 = vmatmul.mubr.msk.f32.gmra.mrb[156].mxu1 %vm90_vm1, %v658_v46  ;;  %v669_v46 = vld [vmem:[%s9385_s1 + $0x120] sm:$0xff]  ;;  %v2550_v51 = vld [vmem:[%s9386_s4 + $0x690] sm:$0xff] }
 0x14e   :  { %5451 = vmatprep.mubr.msk.f32.mxu1 %vm6172_vm0, %v6171_v4  ;;  %v660_v4 = vld [vmem:[%s9385_s1 + $0xd8] sm:$0xff]  ;;  %5915 = vmatpush1.bf16.msra.mxu1 %v7081_v44 }
 0x14f   :  { %5900 = vmatprep.subr.bf16.mxu1 %v7097_v49 }
 0x150   :  { %v446_v55 = vpop.f32.mrb[52].mxu1 }
 0x151   :  { %606 = vst [vmem:[#allocation2 + $0xd0] sm:$0xff] %v446_v55  ;;  %v5276_v57 = vpop.f32.mrb[53].mxu1  ;;  %5452 = vmatmul.mubr.msk.f32.gmra.mrb[158].mxu1 %vm90_vm1, %v659_v53  ;;  %v7105_v53 = vpack.c.bf16 %v2550_v51, %v2548_v50  ;;  %v670_v55 = vld [vmem:[%s9385_s1 + $0x128] sm:$0xff]  ;;  %v2572_v51 = vld [vmem:[%s9386_s4 + $0x740] sm:$0xff] }
 0x152   :  { %5454 = vmatprep.mubr.msk.f32.mxu1 %vm6172_vm0, %v6955_v56  ;;  %v2553_v57 = vld [vmem:[%s9386_s4 + $0x6a8] sm:$0xff] }
 0x153   :  { %5916 = vmatpush1.bf16.msra.mxu1 %v7105_v53 }
 0x154   :  { %v451_v59 = vpop.f32.mrb[54].mxu1 }
 0x155   :  { %607 = vst [vmem:[#allocation2 + $0xd8] sm:$0xff] %v451_v59  ;;  %v5279_v60 = vpop.f32.mrb[55].mxu1  ;;  %5455 = vmatmul.mubr.msk.f32.gmra.mrb[160].mxu1 %vm90_vm1, %v660_v4  ;;  %v2555_v4 = vld [vmem:[%s9386_s4 + $0x6b8] sm:$0xff]  ;;  %v2552_v59 = vld [vmem:[%s9386_s4 + $0x6a0] sm:$0xff] }
 0x156   :  { %5457 = vmatprep.mubr.msk.f32.mxu1 %vm6172_vm0, %v6955_v56  ;;  %v7121_v58 = vpack.c.bf16 %v2555_v4, %v2553_v57  ;;  %v2554_v60 = vld [vmem:[%s9386_s4 + $0x6b0] sm:$0xff]  ;;  %v676_v57 = vld [vmem:[%s9385_s1 + $0x158] sm:$0xff]  ;;  %v2577_v4 = vld [vmem:[%s9386_s4 + $0x768] sm:$0xff] }
 0x158   :  { %v456_v62 = vpop.f32.mrb[56].mxu1  ;;  %5901 = vmatprep.subr.bf16.mxu1 %v7121_v58 }
 0x159   :  { %608 = vst [vmem:[#allocation2 + $0xe0] sm:$0xff] %v456_v62  ;;  %v5282_v63 = vpop.f32.mrb[57].mxu1  ;;  %5458 = vmatmul.mubr.msk.f32.gmra.mrb[162].mxu1 %vm90_vm1, %v661_v61  ;;  %v7129_v62 = vpack.c.bf16 %v2554_v60, %v2552_v59  ;;  %v2579_v59 = vld [vmem:[%s9386_s4 + $0x778] sm:$0xff] }
 0x15a   :  { %5460 = vmatprep.mubr.msk.f32.mxu1 %vm6172_vm0, %v6955_v56 }
 0x15b   :  { %5917 = vmatpush1.bf16.msra.mxu1 %v7129_v62 }
 0x15c   :  { %v461_v1 = vpop.f32.mrb[58].mxu1 }
 0x15d   :  { %609 = vst [vmem:[#allocation2 + $0xe8] sm:$0xff] %v461_v1  ;;  %v5285_v2 = vpop.f32.mrb[59].mxu1  ;;  %5461 = vmatmul.mubr.msk.f32.gmra.mrb[164].mxu1 %vm90_vm1, %v662_v0  ;;  %v671_v0 = vld [vmem:[%s9385_s1 + $0x130] sm:$0xff]  ;;  %v2557_v1 = vld [vmem:[%s9386_s4 + $0x6c8] sm:$0xff] }
 0x15e   :  { %5463 = vmatprep.mubr.msk.f32.mxu1 %vm6172_vm0, %v6955_v56  ;;  %v2559_v2 = vld [vmem:[%s9386_s4 + $0x6d8] sm:$0xff] }
 0x160   :  { %v466_v5 = vpop.f32.mrb[60].mxu1 }
 0x161   :  { %610 = vst [vmem:[#allocation2 + $0xf0] sm:$0xff] %v466_v5  ;;  %v5288_v6 = vpop.f32.mrb[61].mxu1  ;;  %5464 = vmatmul.mubr.msk.f32.gmra.mrb[166].mxu1 %vm90_vm1, %v663_v3  ;;  %v7145_v3 = vpack.c.bf16 %v2559_v2, %v2557_v1  ;;  %v2556_v5 = vld [vmem:[%s9386_s4 + $0x6c0] sm:$0xff] }
 0x162   :  { %5466 = vmatprep.mubr.msk.f32.mxu1 %vm6172_vm0, %v6955_v56  ;;  %v2558_v6 = vld [vmem:[%s9386_s4 + $0x6d0] sm:$0xff] }
 0x163   :  { %5902 = vmatprep.subr.bf16.mxu1 %v7145_v3 }
 0x164   :  { %v471_v8 = vpop.f32.mrb[62].mxu1 }
 0x165   :  { %611 = vst [vmem:[#allocation2 + $0xf8] sm:$0xff] %v471_v8  ;;  %v5291_v9 = vpop.f32.mrb[63].mxu1  ;;  %5467 = vmatmul.mubr.msk.f32.gmra.mrb[168].mxu1 %vm90_vm1, %v664_v7  ;;  %v7153_v8 = vpack.c.bf16 %v2558_v6, %v2556_v5  ;;  %v677_v5 = vld [vmem:[%s9385_s1 + $0x160] sm:$0xff]  ;;  %v2581_v6 = vld [vmem:[%s9386_s4 + $0x788] sm:$0xff] }
 0x166   :  { %5469 = vmatprep.mubr.msk.f32.mxu1 %vm6172_vm0, %v6955_v56 }
 0x167   :  { %5918 = vmatpush1.bf16.msra.mxu1 %v7153_v8 }
 0x168   :  { %v476_v16 = vpop.f32.mrb[64].mxu1  ;;  %5903 = vmatprep.subr.bf16.mxu1 %v7169_v14 }
 0x169   :  { %612 = vst [vmem:[#allocation2 + $0x100] sm:$0xff] %v476_v16  ;;  %v5294_v18 = vpop.f32.mrb[65].mxu1  ;;  %5470 = vmatmul.mubr.msk.f32.gmra.mrb[170].mxu1 %vm90_vm1, %v665_v10  ;;  %v672_v10 = vld [vmem:[%s9385_s1 + $0x138] sm:$0xff]  ;;  %v2562_v16 = vld [vmem:[%s9386_s4 + $0x6f0] sm:$0xff] }
 0x16a   :  { %5472 = vmatprep.mubr.msk.f32.mxu1 %vm6172_vm0, %v6955_v56 }
 0x16c   :  { %v481_v25 = vpop.f32.mrb[66].mxu1 }
 0x16d   :  { %613 = vst [vmem:[#allocation2 + $0x108] sm:$0xff] %v481_v25  ;;  %v5297_v27 = vpop.f32.mrb[67].mxu1  ;;  %5473 = vmatmul.mubr.msk.f32.gmra.mrb[172].mxu1 %vm90_vm1, %v666_v19  ;;  %v7177_v19 = vpack.c.bf16 %v2562_v16, %v2560_v15  ;;  %v7193_v25 = vpack.c.bf16 %v2567_v24, %v2565_v23  ;;  %v2582_v15 = vld [vmem:[%s9386_s4 + $0x790] sm:$0xff]  ;;  %v678_v16 = vld [vmem:[%s9385_s1 + $0x168] sm:$0xff] }
 0x16e   :  { %5475 = vmatprep.mubr.msk.f32.mxu1 %vm6172_vm0, %v6955_v56  ;;  %v2564_v27 = vld [vmem:[%s9386_s4 + $0x700] sm:$0xff] }
 0x16f   :  { %5919 = vmatpush1.bf16.msra.mxu1 %v7177_v19 }
 0x170   :  { %v486_v34 = vpop.f32.mrb[68].mxu1  ;;  %5904 = vmatprep.subr.bf16.mxu1 %v7193_v25 }
 0x171   :  { %614 = vst [vmem:[#allocation2 + $0x110] sm:$0xff] %v486_v34  ;;  %v5300_v36 = vpop.f32.mrb[69].mxu1  ;;  %5476 = vmatmul.mubr.msk.f32.gmra.mrb[174].mxu1 %vm90_vm1, %v667_v28  ;;  %v2566_v28 = vld [vmem:[%s9386_s4 + $0x710] sm:$0xff]  ;;  %v2569_v34 = vld [vmem:[%s9386_s4 + $0x728] sm:$0xff] }
 0x172   :  { %5478 = vmatprep.mubr.msk.f32.mxu1 %vm6172_vm0, %v6955_v56  ;;  %v7201_v30 = vpack.c.bf16 %v2566_v28, %v2564_v27  ;;  %v2571_v36 = vld [vmem:[%s9386_s4 + $0x738] sm:$0xff]  ;;  %v2584_v27 = vld [vmem:[%s9386_s4 + $0x7a0] sm:$0xff]  ;;  %v2586_v28 = vld [vmem:[%s9386_s4 + $0x7b0] sm:$0xff] }
 0x174   :  { %v491_v43 = vpop.f32.mrb[70].mxu1  ;;  %5920 = vmatpush1.bf16.msra.mxu1 %v7201_v30 }
 0x175   :  { %615 = vst [vmem:[#allocation2 + $0x118] sm:$0xff] %v491_v43  ;;  %v5303_v45 = vpop.f32.mrb[71].mxu1  ;;  %5479 = vmatmul.mubr.msk.f32.gmra.mrb[176].mxu1 %vm90_vm1, %v668_v37  ;;  %v7217_v37 = vpack.c.bf16 %v2571_v36, %v2569_v34  ;;  %v2589_v34 = vld [vmem:[%s9386_s4 + $0x7c8] sm:$0xff]  ;;  %v2591_v36 = vld [vmem:[%s9386_s4 + $0x7d8] sm:$0xff] }
 0x176   :  { %5481 = vmatprep.mubr.msk.f32.mxu1 %vm6172_vm0, %v6955_v56  ;;  %v675_v45 = vld [vmem:[%s9385_s1 + $0x150] sm:$0xff]  ;;  %v7337_v39 = vpack.c.bf16 %v2591_v36, %v2589_v34 }
 0x177   :  { %5905 = vmatprep.subr.bf16.mxu1 %v7217_v37 }
 0x178   :  { %v496_v52 = vpop.f32.mrb[72].mxu1  ;;  %5921 = vmatpush1.bf16.msra.mxu1 %v7225_v42  ;;  %9418 = vst [vmem:[#allocation9_spill] sm:$0xff] %v7337_v39 }
 0x179   :  { %616 = vst [vmem:[#allocation2 + $0x120] sm:$0xff] %v496_v52  ;;  %v5306_v54 = vpop.f32.mrb[73].mxu1  ;;  %5482 = vmatmul.mubr.msk.f32.gmra.mrb[178].mxu1 %vm90_vm1, %v669_v46  ;;  %v2573_v46 = vld [vmem:[%s9386_s4 + $0x748] sm:$0xff]  ;;  %v2574_v52 = vld [vmem:[%s9386_s4 + $0x750] sm:$0xff] }
 0x17a   :  { %5484 = vmatprep.mubr.msk.f32.mxu1 %vm6172_vm0, %v6955_v56  ;;  %v7241_v50 = vpack.c.bf16 %v2575_v47, %v2573_v46  ;;  %v680_v46 = vld [vmem:[%s9385_s1 + $0x178] sm:$0xff] }
 0x17c   :  { %v501_v61 = vpop.f32.mrb[74].mxu1  ;;  %5906 = vmatprep.subr.bf16.mxu1 %v7241_v50 }
 0x17d   :  { %617 = vst [vmem:[#allocation2 + $0x128] sm:$0xff] %v501_v61  ;;  %v5309_v63 = vpop.f32.mrb[75].mxu1  ;;  %5485 = vmatmul.mubr.msk.f32.gmra.mrb[180].mxu1 %vm90_vm1, %v670_v55  ;;  %v7250_v55 = vpack.c.bf16 %v2574_v52, %v2572_v51  ;;  %v7265_v61 = vpack.c.bf16 %v2579_v59, %v2577_v4  ;;  %v2595_v51 = vld [vmem:[%s9386_s4 + $0x7f8] sm:$0xff]  ;;  %v2594_v4 = vld [vmem:[%s9386_s4 + $0x7f0] sm:$0xff] }
 0x17e   :  { %5487 = vmatprep.mubr.msk.f32.mxu1 %vm6172_vm0, %v6955_v56  ;;  %v2576_v63 = vld [vmem:[%s9386_s4 + $0x760] sm:$0xff] }
 0x17f   :  { %5922 = vmatpush1.bf16.msra.mxu1 %v7250_v55 }
 0x180   :  { %v506_v7 = vpop.f32.mrb[76].mxu1  ;;  %5907 = vmatprep.subr.bf16.mxu1 %v7265_v61 }
 0x181   :  { %618 = vst [vmem:[#allocation2 + $0x130] sm:$0xff] %v506_v7  ;;  %v5312_v9 = vpop.f32.mrb[77].mxu1  ;;  %5488 = vmatmul.mubr.msk.f32.gmra.mrb[182].mxu1 %vm90_vm1, %v671_v0  ;;  %v2578_v0 = vld [vmem:[%s9386_s4 + $0x770] sm:$0xff]  ;;  %v2583_v7 = vld [vmem:[%s9386_s4 + $0x798] sm:$0xff] }
 0x182   :  { %5490 = vmatprep.mubr.msk.f32.mxu1 %vm6172_vm0, %v6955_v56  ;;  %v7274_v2 = vpack.c.bf16 %v2578_v0, %v2576_v63  ;;  %v681_v63 = vld [vmem:[%s9385_s1 + $0x180] sm:$0xff] }
 0x184   :  { %v511_v18 = vpop.f32.mrb[78].mxu1  ;;  %5923 = vmatpush1.bf16.msra.mxu1 %v7274_v2 }
 0x185   :  { %619 = vst [vmem:[#allocation2 + $0x138] sm:$0xff] %v511_v18  ;;  %v5315_v20 = vpop.f32.mrb[79].mxu1  ;;  %5491 = vmatmul.mubr.msk.f32.gmra.mrb[184].mxu1 %vm90_vm1, %v672_v10  ;;  %v7289_v10 = vpack.c.bf16 %v2583_v7, %v2581_v6  ;;  %v7304_v18 = vpack.c.bf16 %v2582_v15, %v2580_v11  ;;  %v684_v15 = vld [vmem:[%s9385_s1 + $0x198] sm:$0xff] }
 0x186   :  { %5493 = vmatprep.mubr.msk.f32.mxu1 %vm6172_vm0, %v6955_v56  ;;  %v2585_v20 = vld [vmem:[%s9386_s4 + $0x7a8] sm:$0xff] }
 0x187   :  { %5908 = vmatprep.subr.bf16.mxu1 %v7289_v10 }
 0x188   :  { %v516_v29 = vpop.f32.mrb[80].mxu1  ;;  %5924 = vmatpush1.bf16.msra.mxu1 %v7304_v18 }
 0x189   :  { %620 = vst [vmem:[#allocation2 + $0x140] sm:$0xff] %v516_v29  ;;  %v5318_v32 = vpop.f32.mrb[81].mxu1  ;;  %5494 = vmatmul.mubr.msk.f32.gmra.mrb[186].mxu1 %vm90_vm1, %v673_v21  ;;  %v2587_v21 = vld [vmem:[%s9386_s4 + $0x7b8] sm:$0xff] }
 0x18a   :  { %5496 = vmatprep.mubr.msk.f32.mxu1 %vm6172_vm0, %v6955_v56  ;;  %v7313_v24 = vpack.c.bf16 %v2587_v21, %v2585_v20  ;;  %v7322_v32 = vpack.c.bf16 %v2586_v28, %v2584_v27  ;;  %v685_v21 = vld [vmem:[%s9385_s1 + $0x1a0] sm:$0xf] }
 0x18c   :  { %v521_v41 = vpop.f32.mrb[82].mxu1  ;;  %9417 = vst [vmem:[#allocation8_spill] sm:$0xff] %v7322_v32  ;;  %5909 = vmatprep.subr.bf16.mxu1 %v7313_v24 }
 0x18d   :  { %621 = vst [vmem:[#allocation2 + $0x148] sm:$0xff] %v521_v41  ;;  %v5321_v43 = vpop.f32.mrb[83].mxu1  ;;  %5497 = vmatmul.mubr.msk.f32.gmra.mrb[188].mxu1 %vm90_vm1, %v674_v33  ;;  %v679_v33 = vld [vmem:[%s9385_s1 + $0x170] sm:$0xff]  ;;  %v2588_v41 = vld [vmem:[%s9386_s4 + $0x7c0] sm:$0xff] }
 0x18e   :  { %5499 = vmatprep.mubr.msk.f32.mxu1 %vm6172_vm0, %v6955_v56  ;;  %5925 = vmatpush1.bf16.msra.mxu1 %v7322_v32 }
 0x18f   :  { %5910 = vmatprep.subr.bf16.mxu1 %v7337_v39 }
 0x190   :  { %v526_v48 = vpop.f32.mrb[84].mxu1 }
 0x191   :  { %622 = vst [vmem:[#allocation2 + $0x150] sm:$0xff] %v526_v48  ;;  %v5324_v54 = vpop.f32.mrb[85].mxu1  ;;  %5500 = vmatmul.mubr.msk.f32.gmra.mrb[190].mxu1 %vm90_vm1, %v675_v45  ;;  %v2590_v45 = vld [vmem:[%s9386_s4 + $0x7d0] sm:$0xff]  ;;  %v2593_v48 = vld [vmem:[%s9386_s4 + $0x7e8] sm:$0xff] }
 0x192   :  { %5502 = vmatprep.mubr.msk.f32.mxu1 %vm6172_vm0, %v6955_v56  ;;  %v7352_v47 = vpack.c.bf16 %v2590_v45, %v2588_v41  ;;  %v7361_v54 = vpack.c.bf16 %v2595_v51, %v2593_v48  ;;  %v2407_v41 = vld [vmem:[%s9386_s4 + $0x218] sm:$0xff] }
 0x194   :  { %v531_v60 = vpop.f32.mrb[86].mxu1  ;;  %9419 = vst [vmem:[#allocation10_spill] sm:$0xff] %v7352_v47  ;;  %5926 = vmatpush1.bf16.msra.mxu1 %v7352_v47  ;;  %9420 = vst [vmem:[#allocation11_spill] sm:$0xff] %v7361_v54 }
 0x195   :  { %623 = vst [vmem:[#allocation2 + $0x158] sm:$0xff] %v531_v60  ;;  %v5327_v1 = vpop.f32.mrb[87].mxu1  ;;  %5503 = vmatmul.mubr.msk.f32.gmra.mrb[192].mxu1 %vm90_vm1, %v676_v57  ;;  %v2592_v57 = vld [vmem:[%s9386_s4 + $0x7e0] sm:$0xff]  ;;  %5911 = vmatprep.subr.bf16.mxu1 %v7361_v54 }
 0x196   :  { %5505 = vmatprep.mubr.msk.f32.mxu1 %vm6172_vm0, %v6955_v56  ;;  %v7370_v60 = vpack.c.bf16 %v2594_v4, %v2592_v57 }
 0x198   :  { %v536_v9 = vpop.f32.mrb[88].mxu1  ;;  %9421 = vst [vmem:[#allocation12_spill] sm:$0xff] %v7370_v60  ;;  %5927 = vmatpush1.bf16.msra.mxu1 %v7370_v60 }
 0x199   :  { %624 = vst [vmem:[#allocation2 + $0x160] sm:$0xff] %v536_v9  ;;  %v5330_v12 = vpop.f32.mrb[89].mxu1  ;;  %5506 = vmatmul.mubr.msk.f32.gmra.mrb[194].mxu1 %vm90_vm1, %v677_v5  ;;  %v682_v5 = vld [vmem:[%s9385_s1 + $0x188] sm:$0xff]  ;;  %v683_v9 = vld [vmem:[%s9385_s1 + $0x190] sm:$0xff] }
 0x19a   :  { %5508 = vmatprep.mubr.msk.f32.mxu1 %vm6172_vm0, %v6955_v56 }
 0x19c   :  { %v541_v23 = vpop.f32.mrb[90].mxu1 }
 0x19d   :  { %625 = vst [vmem:[#allocation2 + $0x168] sm:$0xff] %v541_v23  ;;  %v5333_v29 = vpop.f32.mrb[91].mxu1  ;;  %5509 = vmatmul.mubr.msk.f32.gmra.mrb[196].mxu1 %vm90_vm1, %v678_v16 }
 0x19e   :  { %5511 = vmatprep.mubr.msk.f32.mxu1 %vm6172_vm0, %v6955_v56  ;;  %v6164_v29 = vld [vmem:[#allocation2] sm:$0xff] }
 0x1a0   :  { %v546_v38 = vpop.f32.mrb[92].mxu1 }
 0x1a1   :  { %626 = vst [vmem:[#allocation2 + $0x170] sm:$0xff] %v546_v38  ;;  %v5336_v43 = vpop.f32.mrb[93].mxu1  ;;  %5512 = vmatmul.mubr.msk.f32.gmra.mrb[198].mxu1 %vm90_vm1, %v679_v33 }
 0x1a2   :  { %5514 = vmatprep.mubr.msk.f32.mxu1 %vm6172_vm0, %v6955_v56  ;;  %v2404_v43 = vld [vmem:[%s9386_s4 + $0x200] sm:$0xff] }
 0x1a4   :  { %v551_v52 = vpop.f32.mrb[94].mxu1 }
 0x1a5   :  { %627 = vst [vmem:[#allocation2 + $0x178] sm:$0xff] %v551_v52  ;;  %v5339_v59 = vpop.f32.mrb[95].mxu1  ;;  %5515 = vmatmul.mubr.msk.f32.gmra.mrb[200].mxu1 %vm90_vm1, %v680_v46  ;;  %v2406_v46 = vld [vmem:[%s9386_s4 + $0x210] sm:$0xff] }
 0x1a6   :  { %5517 = vmatprep.mubr.msk.f32.mxu1 %vm6172_vm0, %v6955_v56  ;;  %v5622_v48 = vpack.c.bf16 %v2406_v46, %v2404_v43  ;;  %v1277_v59 = vld [vmem:[#allocation2 + $0xf] sm:$0xff] }
 0x1a8   :  { %v556_v0 = vpop.f32.mrb[96].mxu1 }
 0x1a9   :  { %628 = vst [vmem:[#allocation2 + $0x180] sm:$0xff] %v556_v0  ;;  %v5342_v1 = vpop.f32.mrb[97].mxu1  ;;  %5518 = vmatmul.mubr.msk.f32.gmra.mrb[202].mxu1 %vm90_vm1, %v681_v63  ;;  %v7419_v0 = vld [vmem:[%s9387_s3] ss:$0 sm:$0xff] }
 0x1aa   :  { %5520 = vmatprep.mubr.msk.f32.mxu1 %vm6172_vm0, %v6955_v56 }
 0x1ac   :  { %v561_v6 = vpop.f32.mrb[98].mxu1 }
 0x1ad   :  { %629 = vst [vmem:[#allocation2 + $0x188] sm:$0xff] %v561_v6  ;;  %v5345_v7 = vpop.f32.mrb[99].mxu1  ;;  %5521 = vmatmul.mubr.msk.f32.gmra.mrb[204].mxu1 %vm90_vm1, %v682_v5 }
 0x1ae   :  { %5523 = vmatprep.mubr.msk.f32.mxu1 %vm6172_vm0, %v6955_v56 }
 0x1b0   :  { %v566_v11 = vpop.f32.mrb[100].mxu1 }
 0x1b1   :  { %630 = vst [vmem:[#allocation2 + $0x190] sm:$0xff] %v566_v11  ;;  %v5348_v12 = vpop.f32.mrb[101].mxu1  ;;  %5524 = vmatmul.mubr.msk.f32.gmra.mrb[206].mxu1 %vm90_vm1, %v683_v9  ;;  %v2409_v9 = vld [vmem:[%s9386_s4 + $0x228] sm:$0xff]  ;;  %v2411_v11 = vld [vmem:[%s9386_s4 + $0x238] sm:$0xff] }
 0x1b2   :  { %5526 = vmatprep.mubr.msk.f32.mxu1 %vm6172_vm0, %v6955_v56  ;;  %v2408_v12 = vld [vmem:[%s9386_s4 + $0x220] sm:$0xff] }
 0x1b4   :  { %v571_v16 = vpop.f32.mrb[102].mxu1 }
 0x1b5   :  { %631 = vst [vmem:[#allocation2 + $0x198] sm:$0xff] %v571_v16  ;;  %v5351_v20 = vpop.f32.mrb[103].mxu1  ;;  %5527 = vmatmul.mubr.msk.f32.gmra.mrb[208].mxu1 %vm90_vm1, %v684_v15  ;;  %v5624_v15 = vpack.c.bf16 %v2411_v11, %v2409_v9  ;;  %v2410_v16 = vld [vmem:[%s9386_s4 + $0x230] sm:$0xff] }
 0x1b6   :  { %5529 = vmatprep.mubr.msk.f32.mxu1 %vm6172_vm0, %v6955_v56  ;;  %v2405_v56 = vld [vmem:[%s9386_s4 + $0x208] sm:$0xff] }
 0x1b7   :  { %v5620_v45 = vpack.c.bf16 %v2407_v41, %v2405_v56  ;;  %v2413_v20 = vld [vmem:[%s9386_s4 + $0x248] sm:$0xff] }
 0x1b8   :  { %v576_v23 = vpop.f32.mrb[104].mxu1 }
 0x1b9   :  { %632 = vst [vmem:[#allocation2 + $0x1a0] sm:$0xf] %v576_v23  ;;  %v5354_v27 = vpop.f32.mrb[105].mxu1  ;;  %5530 = vmatmul.mubr.msk.f32.gmra.mrb[210].mxu1 %vm90_vm1, %v685_v21  ;;  %5621 = vmatprep.subr.bf16.mxu0 %v5620_v45  ;;  %v2415_v21 = vld [vmem:[%s9386_s4 + $0x258] sm:$0xff]  ;;  %v1272_v23 = vld [vmem:[#allocation2 + $0x8] sm:$0x3f] }
 0x1ba   :  { %5623 = vmatpush1.bf16.msra.mxu0 %v5622_v48 }
 0x1bb   :  { %5625 = vmatprep.subr.bf16.mxu0 %v5624_v15 }
 0x1bc   :  { %v920_v28 = vpop.f32.mrb[106].mxu1 }
 0x1bd   :  { %v1275_v33 = vmax.f32 %v6164_v29, %v920_v28  ;;  %v5375_v34 = vpop.f32.mrb[107].mxu1  ;;  %v5626_v28 = vpack.c.bf16 %v2410_v16, %v2408_v12  ;;  %v5628_v29 = vpack.c.bf16 %v2415_v21, %v2413_v20  ;;  %v1297_v20 = vld [vmem:[#allocation2 + $0x1e] sm:$0xff]  ;;  %v1303_v21 = vld [vmem:[#allocation2 + $0x2d] sm:$0xff] }
 0x1be   :  { %v2412_v34 = vld [vmem:[%s9386_s4 + $0x240] sm:$0xff] }
 0x1bf   :  { %5627 = vmatpush1.bf16.msra.mxu0 %v5626_v28 }
 0x1c0   :  { %v925_v36 = vpop.f32.mrb[108].mxu1  ;;  %5629 = vmatprep.subr.bf16.mxu0 %v5628_v29 }
 0x1c1   :  { %1185 = vst [vmem:[#allocation3 + $0x8] sm:$0xff] %v925_v36  ;;  %v5378_v38 = vpop.f32.mrb[109].mxu1  ;;  %v2414_v36 = vld [vmem:[%s9386_s4 + $0x250] sm:$0xff] }
 0x1c2   :  { %v1278_v38 = vld [vmem:[#allocation2 + $0x17] sm:$0x3f]  ;;  %v5630_v48 = vpack.c.bf16 %v2414_v36, %v2412_v34 }
 0x1c4   :  { %v930_v51 = vpop.f32.mrb[110].mxu1  ;;  %5631 = vmatpush1.bf16.msra.mxu0 %v5630_v48  ;;  %v1298_v48 = vld [vmem:[#allocation2 + $0x26] sm:$0x3f] }
 0x1c5   :  { %1186 = vst [vmem:[#allocation3 + $0x10] sm:$0xff] %v930_v51  ;;  %v5381_v52 = vpop.f32.mrb[111].mxu1  ;;  %v2417_v51 = vld [vmem:[%s9386_s4 + $0x268] sm:$0xff] }
 0x1c6   :  { %v2419_v52 = vld [vmem:[%s9386_s4 + $0x278] sm:$0xff] }
 0x1c8   :  { %v935_v57 = vpop.f32.mrb[112].mxu1  ;;  %v1274_v63 = vld [vmem:[#allocation3 + $0x8] sm:$0x3f] }
 0x1c9   :  { %1187 = vst [vmem:[#allocation3 + $0x18] sm:$0xff] %v935_v57  ;;  %v5384_v4 = vpop.f32.mrb[113].mxu1  ;;  %v1276_v43 = vmax.f32 %v1272_v23, %v1274_v63  ;;  %v5632_v57 = vpack.c.bf16 %v2419_v52, %v2417_v51 }
 0x1ca   :  { %v2416_v4 = vld [vmem:[%s9386_s4 + $0x260] sm:$0xff] }
 0x1cb   :  { %5633 = vmatprep.subr.bf16.mxu0 %v5632_v57 }
 0x1cc   :  { %v1279_v1 = vld [vmem:[#allocation3 + $0xf] sm:$0xff]  ;;  %v940_v5 = vpop.f32.mrb[114].mxu1 }
 0x1cd   :  { %v1281_v6 = vmax.f32 %v1277_v59, %v1279_v1  ;;  %1188 = vst [vmem:[#allocation3 + $0x20] sm:$0xff] %v940_v5  ;;  %v5387_v7 = vpop.f32.mrb[115].mxu1  ;;  %v2418_v59 = vld [vmem:[%s9386_s4 + $0x270] sm:$0xff] }
 0x1ce   :  { %v5634_v9 = vpack.c.bf16 %v2418_v59, %v2416_v4 }
 0x1cf   :  { %v1283_v27 = vmax.f32 %v1275_v33, %v1281_v6 }
 0x1d0   :  { %v1280_v56 = vld [vmem:[#allocation3 + $0x17] sm:$0x3f]  ;;  %v945_v41 = vpop.f32.mrb[116].mxu1  ;;  %5635 = vmatpush1.bf16.msra.mxu0 %v5634_v9  ;;  %v2425_v9 = vld [vmem:[%s9386_s4 + $0x2a8] sm:$0xff] }
 0x1d1   :  { %v1291_v45 = vadd.f32 %v7419_v0, %v1283_v27  ;;  %v1282_v46 = vmax.f32 %v1278_v38, %v1280_v56  ;;  %1189 = vst [vmem:[#allocation3 + $0x28] sm:$0xff] %v945_v41  ;;  %v5390_v33 = vpop.f32.mrb[117].mxu1  ;;  %v2421_v38 = vld [vmem:[%s9386_s4 + $0x288] sm:$0xff]  ;;  %v2423_v56 = vld [vmem:[%s9386_s4 + $0x298] sm:$0xff]  ;;  %v2420_v41 = vld [vmem:[%s9386_s4 + $0x280] sm:$0xff] }
 0x1d2   :  { %v1304_v33 = vld [vmem:[#allocation2 + $0x35] sm:$0x3f] }
 0x1d3   :  { %v1293_v63 = vmax.f32 %v1291_v45, 0.0  ;;  %v1284_v1 = vmax.f32 %v1276_v43, %v1282_v46  ;;  %v5636_v45 = vpack.c.bf16 %v2423_v56, %v2421_v38  ;;  %v2422_v46 = vld [vmem:[%s9386_s4 + $0x290] sm:$0xff] }
 0x1d4   :  { %v950_v5 = vpop.f32.mrb[118].mxu1  ;;  %v1299_v16 = vld [vmem:[#allocation3 + $0x1e] sm:$0xff]  ;;  %v5638_v52 = vpack.c.bf16 %v2422_v46, %v2420_v41  ;;  %v1317_v41 = vld [vmem:[#allocation2 + $0x3c] sm:$0xff] }
 0x1d5   :  { %1295 = vst [vmem:[#allocation4 + $0x11] sm:$0xff] %v1293_v63  ;;  %1190 = vst [vmem:[#allocation3 + $0x30] sm:$0xff] %v950_v5  ;;  %v5393_v6 = vpop.f32.mrb[119].mxu1  ;;  %2704 = vmatprep.mubr.f32.mxu0 %v1293_v63  ;;  %v1292_v7 = vadd.f32 %v7419_v0, %v1284_v1  ;;  %v1301_v29 = vmax.f32 %v1297_v20, %v1299_v16  ;;  %5637 = vmatprep.subr.bf16.mxu0 %v5636_v45  ;;  %v2426_v16 = vld [vmem:[%s9386_s4 + $0x2b0] sm:$0xff] }
 0x1d6   :  { %5639 = vmatpush1.bf16.msra.mxu0 %v5638_v52 }
 0x1d7   :  { %v1294_v11 = vmax.f32 %v1292_v7, 0.0 }
 0x1d8   :  { %v955_v12 = vpop.f32.mrb[120].mxu1  ;;  %v1300_v43 = vld [vmem:[#allocation3 + $0x26] sm:$0x3f] }
 0x1d9   :  { %1191 = vst [vmem:[#allocation3 + $0x38] sm:$0xff] %v955_v12  ;;  %v5396_v15 = vpop.f32.mrb[121].mxu1  ;;  %1296 = vst [vmem:[#allocation4 + $0x19] sm:$0x3f] %v1294_v11  ;;  %v1302_v1 = vmax.f32 %v1298_v48, %v1300_v43  ;;  %v2427_v11 = vld [vmem:[%s9386_s4 + $0x2b8] sm:$0xff]  ;;  %v2424_v12 = vld [vmem:[%s9386_s4 + $0x2a0] sm:$0xff] }
 0x1da   :  { %v5640_v15 = vpack.c.bf16 %v2427_v11, %v2425_v9  ;;  %v1323_v43 = vld [vmem:[#allocation2 + $0x4b] sm:$0xff]  ;;  %v2435_v9 = vld [vmem:[%s9386_s4 + $0x2f8] sm:$0xff] }
 0x1db   :  { %v1324_v11 = vld [vmem:[#allocation2 + $0x53] sm:$0x3f] }
 0x1dc   :  { %v1305_v23 = vld [vmem:[#allocation3 + $0x2d] sm:$0xff]  ;;  %v960_v27 = vpop.f32.mrb[122].mxu1  ;;  %v1559_v28 = vld [vmem:[#allocation4 + $0x10] sm:$0xff]  ;;  %5641 = vmatprep.subr.bf16.mxu0 %v5640_v15 }
 0x1dd   :  { %v1307_v34 = vmax.f32 %v1303_v21, %v1305_v23  ;;  %1192 = vst [vmem:[#allocation3 + $0x40] sm:$0xff] %v960_v27  ;;  %v5399_v36 = vpop.f32.mrb[123].mxu1  ;;  %2705 = vmatmul.mubr.f32.gmra.mrb[4].mxu0 %v1559_v28  ;;  %v5642_v23 = vpack.c.bf16 %v2426_v16, %v2424_v12 }
 0x1df   :  { %v1309_v51 = vmax.f32 %v1301_v29, %v1307_v34  ;;  %5643 = vmatpush1.bf16.msra.mxu0 %v5642_v23 }
 0x1e0   :  { %v1306_v57 = vld [vmem:[#allocation3 + $0x35] sm:$0x3f]  ;;  %v965_v4 = vpop.f32.mrb[124].mxu1  ;;  %v1618_v59 = vld [vmem:[#allocation4 + $0x19] sm:$0xff] }
 0x1e1   :  { %v1560_v63 = vld [vmem:[#allocation4 + $0x18] sm:$0xff]  ;;  %v1311_v5 = vadd.f32 %v7419_v0, %v1309_v51  ;;  %v1308_v6 = vmax.f32 %v1304_v33, %v1306_v57  ;;  %1193 = vst [vmem:[#allocation3 + $0x48] sm:$0xff] %v965_v4  ;;  %v5402_v7 = vpop.f32.mrb[125].mxu1  ;;  %2710 = vmatprep.mubr.f32.mxu0 %v1618_v59 }
 0x1e2   :  { %2711 = vmatmul.mubr.f32.gmra.mrb[6].mxu0 %v1560_v63  ;;  %v1318_v51 = vld [vmem:[#allocation2 + $0x44] sm:$0x3f]  ;;  %v2431_v63 = vld [vmem:[%s9386_s4 + $0x2d8] sm:$0xff] }
 0x1e3   :  { %v1313_v20 = vmax.f32 %v1311_v5, 0.0  ;;  %v1310_v21 = vmax.f32 %v1302_v1, %v1308_v6  ;;  %v2429_v59 = vld [vmem:[%s9386_s4 + $0x2c8] sm:$0xff]  ;;  %v2428_v1 = vld [vmem:[%s9386_s4 + $0x2c0] sm:$0xff]  ;;  %v2430_v6 = vld [vmem:[%s9386_s4 + $0x2d0] sm:$0xff] }
 0x1e4   :  { %v970_v27 = vpop.f32.mrb[126].mxu1  ;;  %v1319_v56 = vld [vmem:[#allocation3 + $0x3c] sm:$0xff]  ;;  %v5644_v5 = vpack.c.bf16 %v2431_v63, %v2429_v59  ;;  %v5646_v15 = vpack.c.bf16 %v2430_v6, %v2428_v1  ;;  %v1337_v63 = vld [vmem:[#allocation2 + $0x5a] sm:$0xff] }
 0x1e5   :  { %1315 = vst [vmem:[#allocation4 + $0x21] sm:$0xff] %v1313_v20  ;;  %1194 = vst [vmem:[#allocation3 + $0x50] sm:$0xff] %v970_v27  ;;  %v5405_v28 = vpop.f32.mrb[127].mxu1  ;;  %2716 = vmatprep.mubr.f32.mxu0 %v1313_v20  ;;  %v1312_v29 = vadd.f32 %v7419_v0, %v1310_v21  ;;  %v1321_v52 = vmax.f32 %v1317_v41, %v1319_v56  ;;  %v2433_v7 = vld [vmem:[%s9386_s4 + $0x2e8] sm:$0xff]  ;;  %v2432_v20 = vld [vmem:[%s9386_s4 + $0x2e0] sm:$0xff] }
 0x1e6   :  { %v5648_v16 = vpack.c.bf16 %v2435_v9, %v2433_v7  ;;  %v2434_v21 = vld [vmem:[%s9386_s4 + $0x2f0] sm:$0xff]  ;;  %5645 = vmatprep.subr.bf16.mxu0 %v5644_v5  ;;  %v1338_v6 = vld [vmem:[#allocation2 + $0x62] sm:$0x3f] }
 0x1e7   :  { %v1314_v34 = vmax.f32 %v1312_v29, 0.0  ;;  %5647 = vmatpush1.bf16.msra.mxu0 %v5646_v15  ;;  %v5650_v41 = vpack.c.bf16 %v2434_v21, %v2432_v20  ;;  %v1343_v7 = vld [vmem:[#allocation2 + $0x69] sm:$0xff]  ;;  %v1344_v9 = vld [vmem:[#allocation2 + $0x71] sm:$0x3f] }
 0x1e8   :  { %v975_v36 = vpop.f32.mrb[128].mxu1  ;;  %v1320_v45 = vld [vmem:[#allocation3 + $0x44] sm:$0x3f]  ;;  %5649 = vmatprep.subr.bf16.mxu0 %v5648_v16 }
 0x1e9   :  { %1195 = vst [vmem:[#allocation3 + $0x58] sm:$0xff] %v975_v36  ;;  %v5408_v38 = vpop.f32.mrb[129].mxu1  ;;  %1316 = vst [vmem:[#allocation4 + $0x29] sm:$0x3f] %v1314_v34  ;;  %v1322_v23 = vmax.f32 %v1318_v51, %v1320_v45 }
 0x1eb   :  { %5651 = vmatpush1.bf16.msra.mxu0 %v5650_v41  ;;  %v2441_v41 = vld [vmem:[%s9386_s4 + $0x328] sm:$0xff] }
 0x1ec   :  { %v1325_v46 = vld [vmem:[#allocation3 + $0x4b] sm:$0xff]  ;;  %v980_v33 = vpop.f32.mrb[130].mxu1 }
 0x1ed   :  { %v1561_v48 = vld [vmem:[#allocation4 + $0x20] sm:$0xff]  ;;  %v1327_v57 = vmax.f32 %v1323_v43, %v1325_v46  ;;  %1196 = vst [vmem:[#allocation3 + $0x60] sm:$0xff] %v980_v33  ;;  %v5411_v4 = vpop.f32.mrb[131].mxu1 }
 0x1ee   :  { %2717 = vmatmul.mubr.f32.gmra.mrb[8].mxu0 %v1561_v48 }
 0x1ef   :  { %v1329_v12 = vmax.f32 %v1321_v52, %v1327_v57  ;;  %v7513_v57 = vld [vmem:[#allocation2 + $0x78] sm:$0xff] }
 0x1f0   :  { %v1326_v27 = vld [vmem:[#allocation3 + $0x53] sm:$0x3f]  ;;  %v985_v28 = vpop.f32.mrb[132].mxu1 }
 0x1f1   :  { %v1620_v29 = vld [vmem:[#allocation4 + $0x29] sm:$0xff]  ;;  %v1331_v36 = vadd.f32 %v7419_v0, %v1329_v12  ;;  %v1328_v38 = vmax.f32 %v1324_v11, %v1326_v27  ;;  %1197 = vst [vmem:[#allocation3 + $0x68] sm:$0xff] %v985_v28  ;;  %v5414_v56 = vpop.f32.mrb[133].mxu1 }
 0x1f2   :  { %v1562_v34 = vld [vmem:[#allocation4 + $0x28] sm:$0xff]  ;;  %2722 = vmatprep.mubr.f32.mxu0 %v1620_v29  ;;  %v2437_v29 = vld [vmem:[%s9386_s4 + $0x308] sm:$0xff]  ;;  %v2438_v56 = vld [vmem:[%s9386_s4 + $0x310] sm:$0xff] }
 0x1f3   :  { %2723 = vmatmul.mubr.f32.gmra.mrb[10].mxu0 %v1562_v34  ;;  %v1333_v43 = vmax.f32 %v1331_v36, 0.0  ;;  %v1330_v46 = vmax.f32 %v1322_v23, %v1328_v38  ;;  %v2439_v34 = vld [vmem:[%s9386_s4 + $0x318] sm:$0xff]  ;;  %v2436_v36 = vld [vmem:[%s9386_s4 + $0x300] sm:$0xff] }
 0x1f4   :  { %v990_v33 = vpop.f32.mrb[134].mxu1  ;;  %v1339_v1 = vld [vmem:[#allocation3 + $0x5a] sm:$0xff]  ;;  %v1340_v5 = vld [vmem:[#allocation3 + $0x62] sm:$0x3f]  ;;  %v5652_v38 = vpack.c.bf16 %v2439_v34, %v2437_v29 }
 0x1f5   :  { %1335 = vst [vmem:[#allocation4 + $0x31] sm:$0xff] %v1333_v43  ;;  %1198 = vst [vmem:[#allocation3 + $0x70] sm:$0xff] %v990_v33  ;;  %v5417_v45 = vpop.f32.mrb[135].mxu1  ;;  %2728 = vmatprep.mubr.f32.mxu0 %v1333_v43  ;;  %v1332_v48 = vadd.f32 %v7419_v0, %v1330_v46  ;;  %v1341_v20 = vmax.f32 %v1337_v63, %v1339_v1  ;;  %v1342_v21 = vmax.f32 %v1338_v6, %v1340_v5  ;;  %v2443_v43 = vld [vmem:[%s9386_s4 + $0x338] sm:$0xff]  ;;  %v2445_v34 = vld [vmem:[%s9386_s4 + $0x348] sm:$0xff] }
 0x1f6   :  { %v5654_v45 = vpack.c.bf16 %v2438_v56, %v2436_v36  ;;  %5653 = vmatprep.subr.bf16.mxu0 %v5652_v38  ;;  %v2447_v36 = vld [vmem:[%s9386_s4 + $0x358] sm:$0xff]  ;;  %v2444_v38 = vld [vmem:[%s9386_s4 + $0x340] sm:$0xff] }
 0x1f7   :  { %v1334_v51 = vmax.f32 %v1332_v48, 0.0  ;;  %v5656_v48 = vpack.c.bf16 %v2443_v43, %v2441_v41  ;;  %v5660_v41 = vpack.c.bf16 %v2447_v36, %v2445_v34  ;;  %v2446_v43 = vld [vmem:[%s9386_s4 + $0x350] sm:$0xff]  ;;  %v2453_v34 = vld [vmem:[%s9386_s4 + $0x388] sm:$0xff]  ;;  %v2455_v36 = vld [vmem:[%s9386_s4 + $0x398] sm:$0xff] }
 0x1f8   :  { %v7511_v52 = vpop.f32.mrb[136].mxu1  ;;  %5655 = vmatpush1.bf16.msra.mxu0 %v5654_v45 }
 0x1f9   :  { %v1361_v4 = vmax.f32 %v7513_v57, %v7511_v52  ;;  %v5420_v59 = vpop.f32.mrb[137].mxu1  ;;  %1336 = vst [vmem:[#allocation4 + $0x39] sm:$0x3f] %v1334_v51  ;;  %v2440_v51 = vld [vmem:[%s9386_s4 + $0x320] sm:$0xff]  ;;  %5657 = vmatprep.subr.bf16.mxu0 %v5656_v48  ;;  %v5662_v48 = vpack.c.bf16 %v2446_v43, %v2444_v38  ;;  %v2451_v52 = vld [vmem:[%s9386_s4 + $0x378] sm:$0xff]  ;;  %v2454_v43 = vld [vmem:[%s9386_s4 + $0x390] sm:$0xff] }
 0x1fa   :  { %v2442_v59 = vld [vmem:[%s9386_s4 + $0x330] sm:$0xff] }
 0x1fc   :  { %v1345_v11 = vld [vmem:[#allocation3 + $0x69] sm:$0xff]  ;;  %v1346_v12 = vld [vmem:[#allocation3 + $0x71] sm:$0x3f]  ;;  %v1000_v15 = vpop.f32.mrb[138].mxu1  ;;  %v1563_v16 = vld [vmem:[#allocation4 + $0x30] sm:$0xff] }
 0x1fd   :  { %v1347_v23 = vmax.f32 %v1343_v7, %v1345_v11  ;;  %v1348_v27 = vmax.f32 %v1344_v9, %v1346_v12  ;;  %1200 = vst [vmem:[#allocation3 + $0x80] sm:$0xff] %v1000_v15  ;;  %v5423_v28 = vpop.f32.mrb[139].mxu1  ;;  %2729 = vmatmul.mubr.f32.gmra.mrb[12].mxu0 %v1563_v16  ;;  %v5658_v11 = vpack.c.bf16 %v2442_v59, %v2440_v51 }
 0x1ff   :  { %v1349_v46 = vmax.f32 %v1341_v20, %v1347_v23  ;;  %v1350_v33 = vmax.f32 %v1342_v21, %v1348_v27  ;;  %5659 = vmatpush1.bf16.msra.mxu0 %v5658_v11  ;;  %v1363_v21 = vld [vmem:[#allocation2 + $0x87] sm:$0xff] }
 0x200   :  { %v1005_v63 = vpop.f32.mrb[140].mxu1  ;;  %v1622_v1 = vld [vmem:[#allocation4 + $0x39] sm:$0xff]  ;;  %5661 = vmatprep.subr.bf16.mxu0 %v5660_v41  ;;  %v2452_v41 = vld [vmem:[%s9386_s4 + $0x380] sm:$0xff] }
 0x201   :  { %v1564_v5 = vld [vmem:[#allocation4 + $0x38] sm:$0xff]  ;;  %v1351_v6 = vadd.f32 %v7419_v0, %v1349_v46  ;;  %1201 = vst [vmem:[#allocation3 + $0x88] sm:$0xff] %v1005_v63  ;;  %v5426_v7 = vpop.f32.mrb[141].mxu1  ;;  %2734 = vmatprep.mubr.f32.mxu0 %v1622_v1  ;;  %v1352_v9 = vadd.f32 %v7419_v0, %v1350_v33  ;;  %v1358_v46 = vld [vmem:[#allocation2 + $0x80] sm:$0x3f] }
 0x202   :  { %2735 = vmatmul.mubr.f32.gmra.mrb[14].mxu0 %v1564_v5  ;;  %v1364_v33 = vld [vmem:[#allocation2 + $0x8f] sm:$0x3f] }
 0x203   :  { %v1353_v12 = vmax.f32 %v1351_v6, 0.0  ;;  %v1354_v15 = vmax.f32 %v1352_v9, 0.0  ;;  %v2449_v11 = vld [vmem:[%s9386_s4 + $0x368] sm:$0xff]  ;;  %5663 = vmatpush1.bf16.msra.mxu0 %v5662_v48 }
 0x204   :  { %v1010_v16 = vpop.f32.mrb[142].mxu1  ;;  %v1360_v56 = vld [vmem:[#allocation3 + $0x80] sm:$0x3f]  ;;  %v5664_v57 = vpack.c.bf16 %v2451_v52, %v2449_v11 }
 0x205   :  { %1355 = vst [vmem:[#allocation4 + $0x41] sm:$0xff] %v1353_v12  ;;  %1202 = vst [vmem:[#allocation3 + $0x90] sm:$0xff] %v1010_v16  ;;  %v5429_v20 = vpop.f32.mrb[143].mxu1  ;;  %2740 = vmatprep.mubr.f32.mxu0 %v1353_v12  ;;  %v1362_v5 = vmax.f32 %v1358_v46, %v1360_v56  ;;  %v2450_v12 = vld [vmem:[%s9386_s4 + $0x370] sm:$0xff]  ;;  %v5668_v56 = vpack.c.bf16 %v2455_v36, %v2453_v34  ;;  %v2465_v36 = vld [vmem:[%s9386_s4 + $0x3e8] sm:$0xff] }
 0x206   :  { %1356 = vst [vmem:[#allocation4 + $0x49] sm:$0x3f] %v1354_v15  ;;  %5665 = vmatprep.subr.bf16.mxu0 %v5664_v57 }
 0x208   :  { %v1365_v23 = vld [vmem:[#allocation3 + $0x87] sm:$0xff]  ;;  %v1015_v27 = vpop.f32.mrb[144].mxu1 }
 0x209   :  { %v1367_v28 = vmax.f32 %v1363_v21, %v1365_v23  ;;  %1203 = vst [vmem:[#allocation3 + $0x98] sm:$0xff] %v1015_v27  ;;  %v5432_v29 = vpop.f32.mrb[145].mxu1 }
 0x20b   :  { %v1369_v45 = vmax.f32 %v1361_v4, %v1367_v28  ;;  %v2448_v4 = vld [vmem:[%s9386_s4 + $0x360] sm:$0xff] }
 0x20c   :  { %v1366_v51 = vld [vmem:[#allocation3 + $0x8f] sm:$0x3f]  ;;  %v1020_v59 = vpop.f32.mrb[146].mxu1  ;;  %v5666_v20 = vpack.c.bf16 %v2450_v12, %v2448_v4  ;;  %v2461_v12 = vld [vmem:[%s9386_s4 + $0x3c8] sm:$0xff] }
 0x20d   :  { %v1565_v63 = vld [vmem:[#allocation4 + $0x40] sm:$0xff]  ;;  %v1624_v1 = vld [vmem:[#allocation4 + $0x49] sm:$0xff]  ;;  %v1371_v6 = vadd.f32 %v7419_v0, %v1369_v45  ;;  %v1368_v7 = vmax.f32 %v1364_v33, %v1366_v51  ;;  %1204 = vst [vmem:[#allocation3 + $0xa0] sm:$0xff] %v1020_v59  ;;  %v5435_v9 = vpop.f32.mrb[147].mxu1  ;;  %v5670_v33 = vpack.c.bf16 %v2454_v43, %v2452_v41  ;;  %v1383_v51 = vld [vmem:[#allocation2 + $0xa5] sm:$0xff] }
 0x20e   :  { %2741 = vmatmul.mubr.f32.gmra.mrb[16].mxu0 %v1565_v63  ;;  %v1566_v23 = vld [vmem:[#allocation4 + $0x48] sm:$0xff]  ;;  %v2457_v59 = vld [vmem:[%s9386_s4 + $0x3a8] sm:$0xff]  ;;  %v2456_v9 = vld [vmem:[%s9386_s4 + $0x3a0] sm:$0xff] }
 0x20f   :  { %2746 = vmatprep.mubr.f32.mxu0 %v1624_v1  ;;  %v1373_v15 = vmax.f32 %v1371_v6, 0.0  ;;  %v1370_v16 = vmax.f32 %v1362_v5, %v1368_v7  ;;  %5667 = vmatpush1.bf16.msra.mxu0 %v5666_v20  ;;  %v1377_v45 = vld [vmem:[#allocation2 + $0x96] sm:$0xff] }
 0x210   :  { %v1025_v21 = vpop.f32.mrb[148].mxu1  ;;  %v1379_v48 = vld [vmem:[#allocation3 + $0x96] sm:$0xff]  ;;  %5669 = vmatprep.subr.bf16.mxu0 %v5668_v56  ;;  %v2458_v4 = vld [vmem:[%s9386_s4 + $0x3b0] sm:$0xff] }
 0x211   :  { %1375 = vst [vmem:[#allocation4 + $0x51] sm:$0xff] %v1373_v15  ;;  %1205 = vst [vmem:[#allocation3 + $0xa8] sm:$0xff] %v1025_v21  ;;  %v5438_v27 = vpop.f32.mrb[149].mxu1  ;;  %v1372_v28 = vadd.f32 %v7419_v0, %v1370_v16  ;;  %v2459_v63 = vld [vmem:[%s9386_s4 + $0x3b8] sm:$0xff]  ;;  %v1381_v11 = vmax.f32 %v1377_v45, %v1379_v48  ;;  %v5674_v21 = vpack.c.bf16 %v2458_v4, %v2456_v9  ;;  %v2466_v9 = vld [vmem:[%s9386_s4 + $0x3f0] sm:$0xff] }
 0x212   :  { %2747 = vmatmul.mubr.f32.gmra.mrb[18].mxu0 %v1566_v23  ;;  %v5672_v7 = vpack.c.bf16 %v2459_v63, %v2457_v59  ;;  %v1378_v16 = vld [vmem:[#allocation2 + $0x9e] sm:$0x3f] }
 0x213   :  { %2752 = vmatprep.mubr.f32.mxu0 %v1373_v15  ;;  %v1374_v29 = vmax.f32 %v1372_v28, 0.0  ;;  %5671 = vmatpush1.bf16.msra.mxu0 %v5670_v33  ;;  %v2463_v15 = vld [vmem:[%s9386_s4 + $0x3d8] sm:$0xff]  ;;  %v2460_v27 = vld [vmem:[%s9386_s4 + $0x3c0] sm:$0xff]  ;;  %v2462_v28 = vld [vmem:[%s9386_s4 + $0x3d0] sm:$0xff] }
 0x214   :  { %v1030_v38 = vpop.f32.mrb[150].mxu1  ;;  %v1380_v20 = vld [vmem:[#allocation3 + $0x9e] sm:$0x3f]  ;;  %5673 = vmatprep.subr.bf16.mxu0 %v5672_v7  ;;  %v5676_v23 = vpack.c.bf16 %v2463_v15, %v2461_v12  ;;  %v5678_v33 = vpack.c.bf16 %v2462_v28, %v2460_v27  ;;  %v7848_v60 = vld [vmem:[#allocation4 + $0x48] sm:$0xff] }
 0x215   :  { %1206 = vst [vmem:[#allocation3 + $0xb0] sm:$0xff] %v1030_v38  ;;  %v5441_v46 = vpop.f32.mrb[151].mxu1  ;;  %1376 = vst [vmem:[#allocation4 + $0x59] sm:$0x3f] %v1374_v29  ;;  %v1384_v29 = vld [vmem:[#allocation2 + $0xad] sm:$0x3f]  ;;  %v1382_v45 = vmax.f32 %v1378_v16, %v1380_v20 }
 0x216   :  { %v2467_v38 = vld [vmem:[%s9386_s4 + $0x3f8] sm:$0xff]  ;;  %v2464_v7 = vld [vmem:[%s9386_s4 + $0x3e0] sm:$0xff]  ;;  %v2469_v20 = vld [vmem:[%s9386_s4 + $0x408] sm:$0xff]  ;;  %9431 = vst [vmem:[#allocation22_spill] sm:$0xff] %v7848_v60 }
 0x217   :  { %5675 = vmatpush1.bf16.msra.mxu0 %v5674_v21  ;;  %v5680_v63 = vpack.c.bf16 %v2467_v38, %v2465_v36  ;;  %v2471_v21 = vld [vmem:[%s9386_s4 + $0x418] sm:$0xff]  ;;  %v1403_v28 = vld [vmem:[#allocation2 + $0xc3] sm:$0xff] }
 0x218   :  { %v1385_v1 = vld [vmem:[#allocation3 + $0xa5] sm:$0xff]  ;;  %v1035_v5 = vpop.f32.mrb[152].mxu1  ;;  %v1567_v6 = vld [vmem:[#allocation4 + $0x50] sm:$0xff]  ;;  %5677 = vmatprep.subr.bf16.mxu0 %v5676_v23  ;;  %v5684_v27 = vpack.c.bf16 %v2471_v21, %v2469_v20 }
 0x219   :  { %v1387_v52 = vmax.f32 %v1383_v51, %v1385_v1  ;;  %1207 = vst [vmem:[#allocation3 + $0xb8] sm:$0xff] %v1035_v5  ;;  %v5444_v57 = vpop.f32.mrb[153].mxu1  ;;  %2753 = vmatmul.mubr.f32.gmra.mrb[20].mxu0 %v1567_v6  ;;  %v1397_v23 = vld [vmem:[#allocation2 + $0xb4] sm:$0xff]  ;;  %v7866_v54 = vld [vmem:[#allocation4 + $0x50] sm:$0xff] }
 0x21a   :  { %v5682_v57 = vpack.c.bf16 %v2466_v9, %v2464_v7  ;;  %v6166_v20 = vld [vmem:[#allocation2 + $0xf0] sm:$0xff]  ;;  %9432 = vst [vmem:[#allocation23_spill] sm:$0xff] %v7866_v54 }
 0x21b   :  { %v1389_v34 = vmax.f32 %v1381_v11, %v1387_v52  ;;  %5679 = vmatpush1.bf16.msra.mxu0 %v5678_v33  ;;  %v1404_v33 = vld [vmem:[#allocation2 + $0xcb] sm:$0x3f] }
 0x21c   :  { %v1386_v56 = vld [vmem:[#allocation3 + $0xad] sm:$0x3f]  ;;  %v1040_v41 = vpop.f32.mrb[154].mxu1  ;;  %v1626_v43 = vld [vmem:[#allocation4 + $0x59] sm:$0xff]  ;;  %5681 = vmatprep.subr.bf16.mxu0 %v5680_v63 }
 0x21d   :  { %v1568_v46 = vld [vmem:[#allocation4 + $0x58] sm:$0xff]  ;;  %v1391_v48 = vadd.f32 %v7419_v0, %v1389_v34  ;;  %v1388_v51 = vmax.f32 %v1384_v29, %v1386_v56  ;;  %1208 = vst [vmem:[#allocation3 + $0xc0] sm:$0xff] %v1040_v41  ;;  %v5447_v59 = vpop.f32.mrb[155].mxu1  ;;  %2758 = vmatprep.mubr.f32.mxu0 %v1626_v43 }
 0x21e   :  { %2759 = vmatmul.mubr.f32.gmra.mrb[22].mxu0 %v1568_v46  ;;  %v1398_v46 = vld [vmem:[#allocation2 + $0xbc] sm:$0x3f]  ;;  %v7884_v47 = vld [vmem:[#allocation4 + $0x58] sm:$0xff] }
 0x21f   :  { %v1393_v1 = vmax.f32 %v1391_v48, 0.0  ;;  %v1390_v5 = vmax.f32 %v1382_v45, %v1388_v51  ;;  %5683 = vmatpush1.bf16.msra.mxu0 %v5682_v57  ;;  %9433 = vst [vmem:[#allocation24_spill] sm:$0xff] %v7884_v47 }
 0x220   :  { %v1045_v6 = vpop.f32.mrb[156].mxu1  ;;  %v1399_v16 = vld [vmem:[#allocation3 + $0xb4] sm:$0xff]  ;;  %5685 = vmatprep.subr.bf16.mxu0 %v5684_v27  ;;  %v1417_v27 = vld [vmem:[#allocation2 + $0xd2] sm:$0xff] }
 0x221   :  { %1395 = vst [vmem:[#allocation4 + $0x61] sm:$0xff] %v1393_v1  ;;  %1209 = vst [vmem:[#allocation3 + $0xc8] sm:$0xff] %v1045_v6  ;;  %v5450_v11 = vpop.f32.mrb[157].mxu1  ;;  %2764 = vmatprep.mubr.f32.mxu0 %v1393_v1  ;;  %3457 = vmatprep.mubr.f32.mxu1 %v1393_v1  ;;  %v1392_v52 = vadd.f32 %v7419_v0, %v1390_v5  ;;  %v1401_v38 = vmax.f32 %v1397_v23, %v1399_v16 }
 0x223   :  { %v1394_v4 = vmax.f32 %v1392_v52, 0.0 }
 0x224   :  { %v1050_v12 = vpop.f32.mrb[158].mxu1  ;;  %v1400_v43 = vld [vmem:[#allocation3 + $0xbc] sm:$0x3f] }
 0x225   :  { %1210 = vst [vmem:[#allocation3 + $0xd0] sm:$0xff] %v1050_v12  ;;  %v5453_v15 = vpop.f32.mrb[159].mxu1  ;;  %1396 = vst [vmem:[#allocation4 + $0x69] sm:$0x3f] %v1394_v4  ;;  %v1402_v1 = vmax.f32 %v1398_v46, %v1400_v43 }
 0x228   :  { %v1405_v29 = vld [vmem:[#allocation3 + $0xc3] sm:$0xff]  ;;  %v1055_v34 = vpop.f32.mrb[160].mxu1 }
 0x229   :  { %v1569_v36 = vld [vmem:[#allocation4 + $0x60] sm:$0xff]  ;;  %v1407_v56 = vmax.f32 %v1403_v28, %v1405_v29  ;;  %1211 = vst [vmem:[#allocation3 + $0xd8] sm:$0xff] %v1055_v34  ;;  %v5456_v41 = vpop.f32.mrb[161].mxu1  ;;  %v1418_v29 = vld [vmem:[#allocation2 + $0xda] sm:$0x3f]  ;;  %v1423_v34 = vld [vmem:[#allocation2 + $0xe1] sm:$0xff] }
 0x22a   :  { %2765 = vmatmul.mubr.f32.gmra.mrb[24].mxu0 %v1569_v36  ;;  %3458 = vmatmul.mubr.f32.vlgmr.msra.gmra.mrb[212].mxu1 %v1569_v36  ;;  %v1424_v36 = vld [vmem:[#allocation2 + $0xe9] sm:$0x3f]  ;;  %v1741_v39 = vld [vmem:[#allocation4 + $0x60] sm:$0xff] }
 0x22b   :  { %v1409_v45 = vmax.f32 %v1401_v38, %v1407_v56 }
 0x22c   :  { %v1406_v48 = vld [vmem:[#allocation3 + $0xcb] sm:$0x3f]  ;;  %v1060_v51 = vpop.f32.mrb[162].mxu1  ;;  %v1628_v59 = vld [vmem:[#allocation4 + $0x69] sm:$0xff] }
 0x22d   :  { %v1570_v63 = vld [vmem:[#allocation4 + $0x68] sm:$0xff]  ;;  %v1411_v5 = vadd.f32 %v7419_v0, %v1409_v45  ;;  %v1408_v6 = vmax.f32 %v1404_v33, %v1406_v48  ;;  %1212 = vst [vmem:[#allocation3 + $0xe0] sm:$0xff] %v1060_v51  ;;  %v5459_v7 = vpop.f32.mrb[163].mxu1  ;;  %2770 = vmatprep.mubr.f32.mxu0 %v1628_v59  ;;  %3463 = vmatprep.mubr.f32.mxu1 %v1628_v59 }
 0x22e   :  { %2771 = vmatmul.mubr.f32.gmra.mrb[26].mxu0 %v1570_v63  ;;  %3464 = vmatmul.mubr.f32.gmra.mrb[214].mxu1 %v1570_v63  ;;  %v1742_v32 = vld [vmem:[#allocation4 + $0x68] sm:$0xff] }
 0x22f   :  { %v1413_v9 = vmax.f32 %v1411_v5, 0.0  ;;  %v1410_v11 = vmax.f32 %v1402_v1, %v1408_v6 }
 0x230   :  { %v1065_v52 = vpop.f32.mrb[164].mxu1  ;;  %v1419_v16 = vld [vmem:[#allocation3 + $0xd2] sm:$0xff]  ;;  %v1420_v28 = vld [vmem:[#allocation3 + $0xda] sm:$0x3f] }
 0x231   :  { %1415 = vst [vmem:[#allocation4 + $0x71] sm:$0xff] %v1413_v9  ;;  %1213 = vst [vmem:[#allocation3 + $0xe8] sm:$0xff] %v1065_v52  ;;  %v5462_v57 = vpop.f32.mrb[165].mxu1  ;;  %2776 = vmatprep.mubr.f32.mxu0 %v1413_v9  ;;  %3469 = vmatprep.mubr.f32.mxu1 %v1413_v9  ;;  %v1412_v4 = vadd.f32 %v7419_v0, %v1410_v11  ;;  %v1421_v38 = vmax.f32 %v1417_v27, %v1419_v16 }
 0x232   :  { %v1422_v33 = vmax.f32 %v1418_v29, %v1420_v28  ;;  %v1438_v29 = vld [vmem:[#allocation2 + $0xf8] sm:$0x3f] }
 0x233   :  { %v1414_v12 = vmax.f32 %v1412_v4, 0.0 }
 0x234   :  { %v1070_v15 = vpop.f32.mrb[166].mxu1 }
 0x235   :  { %v1441_v21 = vmax.f32 %v6166_v20, %v1070_v15  ;;  %v5465_v23 = vpop.f32.mrb[167].mxu1  ;;  %1416 = vst [vmem:[#allocation4 + $0x79] sm:$0x3f] %v1414_v12  ;;  %v1443_v15 = vld [vmem:[#allocation2 + $0xff] sm:$0xff] }
 0x238   :  { %v1425_v56 = vld [vmem:[#allocation3 + $0xe1] sm:$0xff]  ;;  %v1426_v41 = vld [vmem:[#allocation3 + $0xe9] sm:$0x3f]  ;;  %v1075_v43 = vpop.f32.mrb[168].mxu1  ;;  %v7630_v46 = vld [vmem:[#allocation4 + $0x70] sm:$0xff] }
 0x239   :  { %v1427_v45 = vmax.f32 %v1423_v34, %v1425_v56  ;;  %v1428_v48 = vmax.f32 %v1424_v36, %v1426_v41  ;;  %1215 = vst [vmem:[#allocation3 + $0xf8] sm:$0xff] %v1075_v43  ;;  %v5468_v51 = vpop.f32.mrb[169].mxu1  ;;  %2777 = vmatmul.mubr.f32.gmra.mrb[28].mxu0 %v7630_v46  ;;  %3470 = vmatmul.mubr.f32.gmra.mrb[216].mxu1 %v7630_v46  ;;  %v1444_v34 = vld [vmem:[#allocation2 + $0x107] sm:$0x3f] }
 0x23b   :  { %v1429_v59 = vmax.f32 %v1421_v38, %v1427_v45  ;;  %v1430_v63 = vmax.f32 %v1422_v33, %v1428_v48 }
 0x23c   :  { %v1080_v1 = vpop.f32.mrb[170].mxu1  ;;  %v1630_v5 = vld [vmem:[#allocation4 + $0x79] sm:$0xff] }
 0x23d   :  { %v7634_v6 = vld [vmem:[#allocation4 + $0x78] sm:$0xff]  ;;  %v1431_v7 = vadd.f32 %v7419_v0, %v1429_v59  ;;  %1216 = vst [vmem:[#allocation3 + $0x100] sm:$0xff] %v1080_v1  ;;  %v5471_v9 = vpop.f32.mrb[171].mxu1  ;;  %2782 = vmatprep.mubr.f32.mxu0 %v1630_v5  ;;  %3475 = vmatprep.mubr.f32.mxu1 %v1630_v5  ;;  %v1432_v11 = vadd.f32 %v7419_v0, %v1430_v63 }
 0x23e   :  { %2783 = vmatmul.mubr.f32.gmra.mrb[30].mxu0 %v7634_v6  ;;  %3476 = vmatmul.mubr.f32.gmra.mrb[218].mxu1 %v7634_v6 }
 0x23f   :  { %v1433_v52 = vmax.f32 %v1431_v7, 0.0  ;;  %v1434_v57 = vmax.f32 %v1432_v11, 0.0 }
 0x240   :  { %v1085_v4 = vpop.f32.mrb[172].mxu1  ;;  %v1440_v28 = vld [vmem:[#allocation3 + $0xf8] sm:$0x3f] }
 0x241   :  { %1435 = vst [vmem:[#allocation4 + $0x81] sm:$0xff] %v1433_v52  ;;  %1217 = vst [vmem:[#allocation3 + $0x108] sm:$0xff] %v1085_v4  ;;  %v5474_v12 = vpop.f32.mrb[173].mxu1  ;;  %2788 = vmatprep.mubr.f32.mxu0 %v1433_v52  ;;  %3481 = vmatprep.mubr.f32.mxu1 %v1433_v52  ;;  %v1442_v33 = vmax.f32 %v1438_v29, %v1440_v28  ;;  %v1457_v4 = vld [vmem:[#allocation2 + $0x10e] sm:$0xff] }
 0x242   :  { %1436 = vst [vmem:[#allocation4 + $0x89] sm:$0x3f] %v1434_v57  ;;  %v1463_v12 = vld [vmem:[#allocation2 + $0x11d] sm:$0xff] }
 0x244   :  { %v1445_v16 = vld [vmem:[#allocation3 + $0xff] sm:$0xff]  ;;  %v1090_v20 = vpop.f32.mrb[174].mxu1 }
 0x245   :  { %v1447_v23 = vmax.f32 %v1443_v15, %v1445_v16  ;;  %1218 = vst [vmem:[#allocation3 + $0x110] sm:$0xff] %v1090_v20  ;;  %v5477_v27 = vpop.f32.mrb[175].mxu1 }
 0x247   :  { %v1449_v36 = vmax.f32 %v1441_v21, %v1447_v23 }
 0x248   :  { %v1446_v38 = vld [vmem:[#allocation3 + $0x107] sm:$0x3f]  ;;  %v1095_v56 = vpop.f32.mrb[176].mxu1 }
 0x249   :  { %v7640_v41 = vld [vmem:[#allocation4 + $0x80] sm:$0xff]  ;;  %v1632_v43 = vld [vmem:[#allocation4 + $0x89] sm:$0xff]  ;;  %v1451_v45 = vadd.f32 %v7419_v0, %v1449_v36  ;;  %v1448_v48 = vmax.f32 %v1444_v34, %v1446_v38  ;;  %1219 = vst [vmem:[#allocation3 + $0x118] sm:$0xff] %v1095_v56  ;;  %v5480_v51 = vpop.f32.mrb[177].mxu1  ;;  %v1464_v36 = vld [vmem:[#allocation2 + $0x125] sm:$0x3f] }
 0x24a   :  { %2789 = vmatmul.mubr.f32.gmra.mrb[32].mxu0 %v7640_v41  ;;  %3482 = vmatmul.mubr.f32.gmra.mrb[220].mxu1 %v7640_v41  ;;  %v7645_v1 = vld [vmem:[#allocation4 + $0x88] sm:$0xff] }
 0x24b   :  { %2794 = vmatprep.mubr.f32.mxu0 %v1632_v43  ;;  %3487 = vmatprep.mubr.f32.mxu1 %v1632_v43  ;;  %v1453_v59 = vmax.f32 %v1451_v45, 0.0  ;;  %v1450_v63 = vmax.f32 %v1442_v33, %v1448_v48  ;;  %v1458_v34 = vld [vmem:[#allocation2 + $0x116] sm:$0x3f] }
 0x24c   :  { %v1100_v21 = vpop.f32.mrb[178].mxu1  ;;  %v1459_v57 = vld [vmem:[#allocation3 + $0x10e] sm:$0xff] }
 0x24d   :  { %1455 = vst [vmem:[#allocation4 + $0x91] sm:$0xff] %v1453_v59  ;;  %1220 = vst [vmem:[#allocation3 + $0x120] sm:$0xff] %v1100_v21  ;;  %v5483_v5 = vpop.f32.mrb[179].mxu1  ;;  %v1452_v7 = vadd.f32 %v7419_v0, %v1450_v63  ;;  %v1461_v23 = vmax.f32 %v1457_v4, %v1459_v57 }
 0x24e   :  { %2795 = vmatmul.mubr.f32.gmra.mrb[34].mxu0 %v7645_v1  ;;  %3488 = vmatmul.mubr.f32.gmra.mrb[222].mxu1 %v7645_v1 }
 0x24f   :  { %2800 = vmatprep.mubr.f32.mxu0 %v1453_v59  ;;  %3493 = vmatprep.mubr.f32.mxu1 %v1453_v59  ;;  %v1454_v9 = vmax.f32 %v1452_v7, 0.0 }
 0x250   :  { %v1105_v11 = vpop.f32.mrb[180].mxu1  ;;  %v1460_v29 = vld [vmem:[#allocation3 + $0x116] sm:$0x3f] }
 0x251   :  { %1221 = vst [vmem:[#allocation3 + $0x128] sm:$0xff] %v1105_v11  ;;  %v5486_v52 = vpop.f32.mrb[181].mxu1  ;;  %1456 = vst [vmem:[#allocation4 + $0x99] sm:$0x3f] %v1454_v9  ;;  %v1462_v48 = vmax.f32 %v1458_v34, %v1460_v29 }
 0x254   :  { %v1465_v15 = vld [vmem:[#allocation3 + $0x11d] sm:$0xff]  ;;  %v1110_v16 = vpop.f32.mrb[182].mxu1 }
 0x255   :  { %v7650_v20 = vld [vmem:[#allocation4 + $0x90] sm:$0xff]  ;;  %v1467_v27 = vmax.f32 %v1463_v12, %v1465_v15  ;;  %1222 = vst [vmem:[#allocation3 + $0x130] sm:$0xff] %v1110_v16  ;;  %v5489_v28 = vpop.f32.mrb[183].mxu1  ;;  %v1477_v15 = vld [vmem:[#allocation2 + $0x12c] sm:$0xff] }
 0x256   :  { %2801 = vmatmul.mubr.f32.gmra.mrb[36].mxu0 %v7650_v20  ;;  %3494 = vmatmul.mubr.f32.gmra.mrb[224].mxu1 %v7650_v20  ;;  %v1483_v16 = vld [vmem:[#allocation2 + $0x13b] sm:$0xff] }
 0x257   :  { %v1469_v38 = vmax.f32 %v1461_v23, %v1467_v27 }
 0x258   :  { %v1466_v56 = vld [vmem:[#allocation3 + $0x125] sm:$0x3f]  ;;  %v1115_v43 = vpop.f32.mrb[184].mxu1 }
 0x259   :  { %v1634_v33 = vld [vmem:[#allocation4 + $0x99] sm:$0xff]  ;;  %v1471_v51 = vadd.f32 %v7419_v0, %v1469_v38  ;;  %v1468_v59 = vmax.f32 %v1464_v36, %v1466_v56  ;;  %1223 = vst [vmem:[#allocation3 + $0x138] sm:$0xff] %v1115_v43  ;;  %v5492_v63 = vpop.f32.mrb[185].mxu1  ;;  %v1478_v38 = vld [vmem:[#allocation2 + $0x134] sm:$0x3f] }
 0x25a   :  { %v7654_v45 = vld [vmem:[#allocation4 + $0x98] sm:$0xff]  ;;  %2806 = vmatprep.mubr.f32.mxu0 %v1634_v33  ;;  %3499 = vmatprep.mubr.f32.mxu1 %v1634_v33 }
 0x25b   :  { %2807 = vmatmul.mubr.f32.gmra.mrb[38].mxu0 %v7654_v45  ;;  %3500 = vmatmul.mubr.f32.gmra.mrb[226].mxu1 %v7654_v45  ;;  %v1473_v21 = vmax.f32 %v1471_v51, 0.0  ;;  %v1470_v5 = vmax.f32 %v1462_v48, %v1468_v59  ;;  %v1484_v56 = vld [vmem:[#allocation2 + $0x143] sm:$0x3f] }
 0x25c   :  { %v1120_v7 = vpop.f32.mrb[186].mxu1  ;;  %v1479_v12 = vld [vmem:[#allocation3 + $0x12c] sm:$0xff] }
 0x25d   :  { %1475 = vst [vmem:[#allocation4 + $0xa1] sm:$0xff] %v1473_v21  ;;  %1224 = vst [vmem:[#allocation3 + $0x140] sm:$0xff] %v1120_v7  ;;  %v5495_v9 = vpop.f32.mrb[187].mxu1  ;;  %2812 = vmatprep.mubr.f32.mxu0 %v1473_v21  ;;  %3505 = vmatprep.mubr.f32.mxu1 %v1473_v21  ;;  %v1472_v11 = vadd.f32 %v7419_v0, %v1470_v5  ;;  %v1481_v29 = vmax.f32 %v1477_v15, %v1479_v12  ;;  %v7669_v21 = vld [vmem:[%s9387_s3] ss:$0 sm:$0xff] }
 0x25f   :  { %v1474_v52 = vmax.f32 %v1472_v11, 0.0 }
 0x260   :  { %v1125_v57 = vpop.f32.mrb[188].mxu1  ;;  %v1480_v0 = vld [vmem:[#allocation3 + $0x134] sm:$0x3f] }
 0x261   :  { %1225 = vst [vmem:[#allocation3 + $0x148] sm:$0xff] %v1125_v57  ;;  %v5498_v4 = vpop.f32.mrb[189].mxu1  ;;  %1476 = vst [vmem:[#allocation4 + $0xa9] sm:$0x3f] %v1474_v52  ;;  %v1482_v63 = vmax.f32 %v1478_v38, %v1480_v0  ;;  %v1498_v38 = vld [vmem:[#allocation2 + $0x152] sm:$0x3f] }
 0x264   :  { %v1485_v23 = vld [vmem:[#allocation3 + $0x13b] sm:$0xff]  ;;  %v1130_v27 = vpop.f32.mrb[190].mxu1  ;;  %v7660_v28 = vld [vmem:[#allocation4 + $0xa0] sm:$0xff] }
 0x265   :  { %v1487_v34 = vmax.f32 %v1483_v16, %v1485_v23  ;;  %1226 = vst [vmem:[#allocation3 + $0x150] sm:$0xff] %v1130_v27  ;;  %v5501_v36 = vpop.f32.mrb[191].mxu1  ;;  %2813 = vmatmul.mubr.f32.gmra.mrb[40].mxu0 %v7660_v28  ;;  %3506 = vmatmul.mubr.f32.gmra.mrb[228].mxu1 %v7660_v28  ;;  %v6168_v27 = vld [vmem:[#allocation2 + $0x168] sm:$0xff] }
 0x266   :  { %v1497_v36 = vld [vmem:[#allocation2 + $0x14a] sm:$0xff] }
 0x267   :  { %v1489_v43 = vmax.f32 %v1481_v29, %v1487_v34 }
 0x268   :  { %v1486_v33 = vld [vmem:[#allocation3 + $0x143] sm:$0x3f]  ;;  %v1135_v48 = vpop.f32.mrb[192].mxu1  ;;  %v1636_v51 = vld [vmem:[#allocation4 + $0xa9] sm:$0xff] }
 0x269   :  { %v7664_v59 = vld [vmem:[#allocation4 + $0xa8] sm:$0xff]  ;;  %v1491_v5 = vadd.f32 %v7669_v21, %v1489_v43  ;;  %v1488_v7 = vmax.f32 %v1484_v56, %v1486_v33  ;;  %1227 = vst [vmem:[#allocation3 + $0x158] sm:$0xff] %v1135_v48  ;;  %v5504_v9 = vpop.f32.mrb[193].mxu1  ;;  %2818 = vmatprep.mubr.f32.mxu0 %v1636_v51  ;;  %3511 = vmatprep.mubr.f32.mxu1 %v1636_v51  ;;  %v1504_v43 = vld [vmem:[#allocation2 + $0x161] sm:$0x3f] }
 0x26a   :  { %2819 = vmatmul.mubr.f32.gmra.mrb[42].mxu0 %v7664_v59  ;;  %3512 = vmatmul.mubr.f32.gmra.mrb[230].mxu1 %v7664_v59  ;;  %v1503_v56 = vld [vmem:[#allocation2 + $0x159] sm:$0xff] }
 0x26b   :  { %v1493_v11 = vmax.f32 %v1491_v5, 0.0  ;;  %v1490_v52 = vmax.f32 %v1482_v63, %v1488_v7 }
 0x26c   :  { %v1140_v57 = vpop.f32.mrb[194].mxu1  ;;  %v1499_v23 = vld [vmem:[#allocation3 + $0x14a] sm:$0xff]  ;;  %v1500_v0 = vld [vmem:[#allocation3 + $0x152] sm:$0x3f] }
 0x26d   :  { %1495 = vst [vmem:[#allocation4 + $0xb1] sm:$0xff] %v1493_v11  ;;  %1228 = vst [vmem:[#allocation3 + $0x160] sm:$0xff] %v1140_v57  ;;  %v5507_v4 = vpop.f32.mrb[195].mxu1  ;;  %2824 = vmatprep.mubr.f32.mxu0 %v1493_v11  ;;  %3517 = vmatprep.mubr.f32.mxu1 %v1493_v11  ;;  %v1492_v12 = vadd.f32 %v7669_v21, %v1490_v52  ;;  %v1501_v33 = vmax.f32 %v1497_v36, %v1499_v23 }
 0x26e   :  { %v1502_v7 = vmax.f32 %v1498_v38, %v1500_v0 }
 0x26f   :  { %v1494_v15 = vmax.f32 %v1492_v12, 0.0 }
 0x270   :  { %v1145_v16 = vpop.f32.mrb[196].mxu1 }
 0x271   :  { %v1521_v29 = vmax.f32 %v6168_v27, %v1145_v16  ;;  %v5510_v34 = vpop.f32.mrb[197].mxu1  ;;  %1496 = vst [vmem:[#allocation4 + $0xb9] sm:$0x3f] %v1494_v15 }
 0x274   :  { %v1505_v48 = vld [vmem:[#allocation3 + $0x159] sm:$0xff]  ;;  %v1506_v51 = vld [vmem:[#allocation3 + $0x161] sm:$0x3f]  ;;  %v1150_v63 = vpop.f32.mrb[198].mxu1 }
 0x275   :  { %v7675_v5 = vld [vmem:[#allocation4 + $0xb0] sm:$0xff]  ;;  %v1507_v9 = vmax.f32 %v1503_v56, %v1505_v48  ;;  %v1508_v11 = vmax.f32 %v1504_v43, %v1506_v51  ;;  %1230 = vst [vmem:[#allocation3 + $0x170] sm:$0xff] %v1150_v63  ;;  %v5513_v52 = vpop.f32.mrb[199].mxu1  ;;  %v1523_v43 = vld [vmem:[#allocation2 + $0x177] sm:$0xff] }
 0x276   :  { %2825 = vmatmul.mubr.f32.gmra.mrb[44].mxu0 %v7675_v5  ;;  %3518 = vmatmul.mubr.f32.gmra.mrb[232].mxu1 %v7675_v5 }
 0x277   :  { %v1509_v57 = vmax.f32 %v1501_v33, %v1507_v9  ;;  %v1510_v4 = vmax.f32 %v1502_v7, %v1508_v11  ;;  %v1518_v9 = vld [vmem:[#allocation2 + $0x170] sm:$0x3f]  ;;  %v1524_v11 = vld [vmem:[#allocation2 + $0x17f] sm:$0x3f] }
 0x278   :  { %v1155_v12 = vpop.f32.mrb[200].mxu1  ;;  %v1638_v15 = vld [vmem:[#allocation4 + $0xb9] sm:$0xff] }
 0x279   :  { %v7679_v16 = vld [vmem:[#allocation4 + $0xb8] sm:$0xff]  ;;  %v1511_v23 = vadd.f32 %v7669_v21, %v1509_v57  ;;  %1231 = vst [vmem:[#allocation3 + $0x178] sm:$0xff] %v1155_v12  ;;  %v5516_v27 = vpop.f32.mrb[201].mxu1  ;;  %2830 = vmatprep.mubr.f32.mxu0 %v1638_v15  ;;  %3523 = vmatprep.mubr.f32.mxu1 %v1638_v15  ;;  %v1512_v34 = vadd.f32 %v7669_v21, %v1510_v4 }
 0x27a   :  { %2831 = vmatmul.mubr.f32.gmra.mrb[46].mxu0 %v7679_v16  ;;  %3524 = vmatmul.mubr.f32.gmra.mrb[234].mxu1 %v7679_v16 }
 0x27b   :  { %v1513_v36 = vmax.f32 %v1511_v23, 0.0  ;;  %v1514_v0 = vmax.f32 %v1512_v34, 0.0 }
 0x27c   :  { %v1160_v38 = vpop.f32.mrb[202].mxu1  ;;  %v1520_v7 = vld [vmem:[#allocation3 + $0x170] sm:$0x3f] }
 0x27d   :  { %1515 = vst [vmem:[#allocation4 + $0xc1] sm:$0xff] %v1513_v36  ;;  %1232 = vst [vmem:[#allocation3 + $0x180] sm:$0xff] %v1160_v38  ;;  %v5519_v56 = vpop.f32.mrb[203].mxu1  ;;  %2836 = vmatprep.mubr.f32.mxu0 %v1513_v36  ;;  %3529 = vmatprep.mubr.f32.mxu1 %v1513_v36  ;;  %v1522_v23 = vmax.f32 %v1518_v9, %v1520_v7  ;;  %v1537_v9 = vld [vmem:[#allocation2 + $0x186] sm:$0xff] }
 0x27e   :  { %1516 = vst [vmem:[#allocation4 + $0xc9] sm:$0x3f] %v1514_v0 }
 0x280   :  { %v1525_v33 = vld [vmem:[#allocation3 + $0x177] sm:$0xff]  ;;  %v1165_v48 = vpop.f32.mrb[204].mxu1 }
 0x281   :  { %v1527_v51 = vmax.f32 %v1523_v43, %v1525_v33  ;;  %1233 = vst [vmem:[#allocation3 + $0x188] sm:$0xff] %v1165_v48  ;;  %v5522_v63 = vpop.f32.mrb[205].mxu1 }
 0x283   :  { %v1529_v52 = vmax.f32 %v1521_v29, %v1527_v51 }
 0x284   :  { %v1526_v57 = vld [vmem:[#allocation3 + $0x17f] sm:$0x3f]  ;;  %v1170_v4 = vpop.f32.mrb[206].mxu1  ;;  %v7685_v12 = vld [vmem:[#allocation4 + $0xc0] sm:$0xff] }
 0x285   :  { %v7687_v15 = vld [vmem:[#allocation4 + $0xc9] sm:$0xff]  ;;  %v1531_v27 = vadd.f32 %v7669_v21, %v1529_v52  ;;  %v1528_v34 = vmax.f32 %v1524_v11, %v1526_v57  ;;  %1234 = vst [vmem:[#allocation3 + $0x190] sm:$0xff] %v1170_v4  ;;  %v5525_v36 = vpop.f32.mrb[207].mxu1  ;;  %2837 = vmatmul.mubr.f32.gmra.mrb[48].mxu0 %v7685_v12  ;;  %3530 = vmatmul.mubr.f32.gmra.mrb[236].mxu1 %v7685_v12 }
 0x286   :  { %9422 = vst [vmem:[#allocation13_spill] sm:$0xff] %v7687_v15  ;;  %2842 = vmatprep.mubr.f32.mxu0 %v7687_v15  ;;  %3535 = vmatprep.mubr.f32.mxu1 %v7687_v15  ;;  %v7694_v56 = vld [vmem:[#allocation4 + $0xc8] sm:$0xff]  ;;  %v7830_v15 = vld [vmem:[#allocation4 + $0x40] sm:$0xff] }
 0x287   :  { %v1533_v29 = vmax.f32 %v1531_v27, 0.0  ;;  %v1530_v0 = vmax.f32 %v1522_v23, %v1528_v34  ;;  %v1543_v11 = vld [vmem:[#allocation2 + $0x195] sm:$0xff]  ;;  %v1538_v34 = vld [vmem:[#allocation2 + $0x18e] sm:$0x3f]  ;;  %v1544_v36 = vld [vmem:[#allocation2 + $0x19d] sm:$0x3f] }
 0x288   :  { %v1175_v38 = vpop.f32.mrb[208].mxu1  ;;  %v1539_v7 = vld [vmem:[#allocation3 + $0x186] sm:$0xff]  ;;  %9430 = vst [vmem:[#allocation21_spill] sm:$0xff] %v7830_v15 }
 0x289   :  { %1535 = vst [vmem:[#allocation4 + $0xd1] sm:$0xff] %v1533_v29  ;;  %1235 = vst [vmem:[#allocation3 + $0x198] sm:$0xff] %v1175_v38  ;;  %v5528_v43 = vpop.f32.mrb[209].mxu1  ;;  %2843 = vmatmul.mubr.f32.gmra.mrb[50].mxu0 %v7694_v56  ;;  %3536 = vmatmul.mubr.f32.gmra.mrb[238].mxu1 %v7694_v56  ;;  %v1532_v33 = vadd.f32 %v7669_v21, %v1530_v0  ;;  %v1541_v4 = vmax.f32 %v1537_v9, %v1539_v7 }
 0x28a   :  { %2848 = vmatprep.mubr.f32.mxu0 %v1533_v29  ;;  %3541 = vmatprep.mubr.f32.mxu1 %v1533_v29 }
 0x28b   :  { %v1534_v48 = vmax.f32 %v1532_v33, 0.0 }
 0x28c   :  { %v1180_v51 = vpop.f32.mrb[210].mxu1  ;;  %v1540_v27 = vld [vmem:[#allocation3 + $0x18e] sm:$0x3f] }
 0x28d   :  { %1236 = vst [vmem:[#allocation3 + $0x1a0] sm:$0xf] %v1180_v51  ;;  %1536 = vst [vmem:[#allocation4 + $0xd9] sm:$0x3f] %v1534_v48  ;;  %v5531_v63 = vpop.f32.mrb[211].mxu1  ;;  %v1542_v33 = vmax.f32 %v1538_v34, %v1540_v27  ;;  %v1731_v27 = vld [vmem:[#allocation4 + $0x10] sm:$0xff] }
 0x28e   :  { %v2475_v34 = vld [vmem:[%s9386_s4 + $0x438] sm:$0xff] }
 0x290   :  { %v1545_v52 = vld [vmem:[#allocation3 + $0x195] sm:$0xff] }
 0x291   :  { %v7699_v57 = vld [vmem:[#allocation4 + $0xd0] sm:$0xff]  ;;  %v1547_v23 = vmax.f32 %v1543_v11, %v1545_v52 }
 0x292   :  { %2849 = vmatmul.mubr.f32.gmra.mrb[52].mxu0 %v7699_v57  ;;  %3542 = vmatmul.mubr.f32.gmra.mrb[240].mxu1 %v7699_v57 }
 0x293   :  { %v1549_v29 = vmax.f32 %v1541_v4, %v1547_v23  ;;  %v2468_v4 = vld [vmem:[%s9386_s4 + $0x400] sm:$0xff]  ;;  %v2470_v23 = vld [vmem:[%s9386_s4 + $0x410] sm:$0xff] }
 0x294   :  { %v1546_v0 = vld [vmem:[#allocation3 + $0x19d] sm:$0x3f] }
 0x295   :  { %v7703_v38 = vld [vmem:[#allocation4 + $0xd9] sm:$0xff]  ;;  %v1551_v48 = vadd.f32 %v7669_v21, %v1549_v29  ;;  %v1548_v51 = vmax.f32 %v1544_v36, %v1546_v0  ;;  %v1673_v36 = vld [vmem:[#allocation4 + $0x2] sm:$0xff]  ;;  %v5686_v29 = vpack.c.bf16 %v2470_v23, %v2468_v4  ;;  %v2472_v0 = vld [vmem:[%s9386_s4 + $0x420] sm:$0xff] }
 0x296   :  { %9423 = vst [vmem:[#allocation14_spill] sm:$0xff] %v7703_v38  ;;  %v7705_v43 = vld [vmem:[#allocation4 + $0xd8] sm:$0xff]  ;;  %2854 = vmatprep.mubr.f32.mxu0 %v7703_v38  ;;  %3547 = vmatprep.mubr.f32.mxu1 %v7703_v38  ;;  %v2479_v4 = vld [vmem:[%s9386_s4 + $0x458] sm:$0xff] }
 0x297   :  { %2855 = vmatmul.mubr.f32.gmra.mrb[54].mxu0 %v7705_v43  ;;  %3548 = vmatmul.mubr.f32.gmra.mrb[242].mxu1 %v7705_v43  ;;  %v7712_v63 = vmax.f32 %v1551_v48, 0.0  ;;  %v1550_v7 = vmax.f32 %v1542_v33, %v1548_v51  ;;  %v7812_v38 = vld [vmem:[#allocation4 + $0x38] sm:$0xff] }
 0x298   :  { %9429 = vst [vmem:[#allocation20_spill] sm:$0xff] %v7812_v38 }
 0x299   :  { %9424 = vst [vmem:[#allocation15_spill] sm:$0xff] %v7712_v63  ;;  %1555 = vst [vmem:[#allocation4 + $0xe1] sm:$0xff] %v7712_v63  ;;  %2860 = vmatprep.mubr.f32.mxu0 %v7712_v63  ;;  %3553 = vmatprep.mubr.f32.mxu1 %v7712_v63  ;;  %v1552_v9 = vadd.f32 %v7669_v21, %v1550_v7  ;;  %v2473_v21 = vld [vmem:[%s9386_s4 + $0x428] sm:$0xff]  ;;  %v2474_v7 = vld [vmem:[%s9386_s4 + $0x430] sm:$0xff] }
 0x29a   :  { %v5688_v51 = vpack.c.bf16 %v2475_v34, %v2473_v21  ;;  %v5690_v23 = vpack.c.bf16 %v2474_v7, %v2472_v0  ;;  %v2476_v34 = vld [vmem:[%s9386_s4 + $0x440] sm:$0xff] }
 0x29b   :  { %v1554_v11 = vmax.f32 %v1552_v9, 0.0  ;;  %v1732_v9 = vld [vmem:[#allocation4 + $0x18] sm:$0xff]  ;;  %v7794_v63 = vld [vmem:[#allocation4 + $0x30] sm:$0xff] }
 0x29c   :  { %9428 = vst [vmem:[#allocation19_spill] sm:$0xff] %v7794_v63 }
 0x29d   :  { %1556 = vst [vmem:[#allocation4 + $0xe9] sm:$0x3f] %v1554_v11  ;;  %v2477_v11 = vld [vmem:[%s9386_s4 + $0x448] sm:$0xff] }
 0x29e   :  { %v5692_v21 = vpack.c.bf16 %v2479_v4, %v2477_v11  ;;  %v2480_v11 = vld [vmem:[%s9386_s4 + $0x460] sm:$0xff]  ;;  %v2482_v4 = vld [vmem:[%s9386_s4 + $0x470] sm:$0xff] }
 0x2a0   :  { %v7718_v52 = vld [vmem:[#allocation4 + $0xe0] sm:$0xff] }
 0x2a1   :  { %2861 = vmatmul.mubr.f32.gmra.mrb[56].mxu0 %v7718_v52  ;;  %3554 = vmatmul.mubr.f32.gmra.mrb[244].mxu1 %v7718_v52 }
 0x2a2   :  { %2931 = vmatprep.mubr.f32.mxu0 %v1731_v27  ;;  %v1674_v27 = vld [vmem:[#allocation4 + $0xa] sm:$0xff] }
 0x2a4   :  { %v7737_v33 = vld [vmem:[#allocation4 + $0xe9] sm:$0xff] }
 0x2a5   :  { %9425 = vst [vmem:[#allocation16_spill] sm:$0xff] %v7737_v33  ;;  %v7739_v48 = vld [vmem:[#allocation4 + $0xe8] sm:$0xff]  ;;  %3559 = vmatprep.mubr.f32.mxu1 %v7737_v33  ;;  %2932 = vmatmul.mubr.f32.vlgmr.msra.gmra.mrb[0].mxu0 %v1673_v36  ;;  %v2478_v36 = vld [vmem:[%s9386_s4 + $0x450] sm:$0xff] }
 0x2a6   :  { %3560 = vmatmul.mubr.f32.gmra.mrb[246].mxu1 %v7739_v48  ;;  %2937 = vmatprep.mubr.f32.mxu0 %v1732_v9  ;;  %v7758_v33 = vld [vmem:[#allocation4 + $0x20] sm:$0xff]  ;;  %v2481_v9 = vld [vmem:[%s9386_s4 + $0x468] sm:$0xff]  ;;  %v5694_v0 = vpack.c.bf16 %v2478_v36, %v2476_v34  ;;  %v5698_v34 = vpack.c.bf16 %v2482_v4, %v2480_v11 }
 0x2a7   :  { %5687 = vmatpush1.bf16.msra.mxu0 %v5686_v29  ;;  %9426 = vst [vmem:[#allocation17_spill] sm:$0xff] %v7758_v33  ;;  %v2483_v29 = vld [vmem:[%s9386_s4 + $0x478] sm:$0xff]  ;;  %v7785_v36 = vld [vmem:[#allocation4 + $0x1a] sm:$0xff] }
 0x2a8   :  { %5689 = vmatprep.subr.bf16.mxu0 %v5688_v51  ;;  %v7767_v51 = vld [vmem:[#allocation4 + $0x12] sm:$0xff]  ;;  %v5696_v7 = vpack.c.bf16 %v2483_v29, %v2481_v9  ;;  %v7803_v4 = vld [vmem:[#allocation4 + $0x22] sm:$0xff] }
 0x2a9   :  { %2938 = vmatmul.mubr.f32.gmra.mrb[2].mxu0 %v1674_v27  ;;  %v7776_v27 = vld [vmem:[#allocation4 + $0x28] sm:$0xff]  ;;  %v2484_v29 = vld [vmem:[%s9386_s4 + $0x480] sm:$0xff] }
 0x2aa   :  { %2943 = vmatprep.mubr.f32.mxu0 %v7758_v33  ;;  %9427 = vst [vmem:[#allocation18_spill] sm:$0xff] %v7776_v27  ;;  %v2486_v33 = vld [vmem:[%s9386_s4 + $0x490] sm:$0xff] }
 0x2ab   :  { %5691 = vmatpush1.bf16.msra.mxu0 %v5690_v23  ;;  %v2485_v23 = vld [vmem:[%s9386_s4 + $0x488] sm:$0xff]  ;;  %v5702_v11 = vpack.c.bf16 %v2486_v33, %v2484_v29  ;;  %v7821_v29 = vld [vmem:[#allocation4 + $0x2a] sm:$0xff] }
 0x2ac   :  { %5693 = vmatprep.subr.bf16.mxu0 %v5692_v21  ;;  %v2487_v21 = vld [vmem:[%s9386_s4 + $0x498] sm:$0xff]  ;;  %v2493_v33 = vld [vmem:[%s9386_s4 + $0x4c8] sm:$0xff] }
 0x2ad   :  { %2944 = vmatmul.mubr.f32.gmra.mrb[4].mxu0 %v7767_v51  ;;  %v5700_v9 = vpack.c.bf16 %v2487_v21, %v2485_v23  ;;  %v2488_v21 = vld [vmem:[%s9386_s4 + $0x4a0] sm:$0xff] }
 0x2ae   :  { %2949 = vmatprep.mubr.f32.mxu0 %v7776_v27  ;;  %v2490_v27 = vld [vmem:[%s9386_s4 + $0x4b0] sm:$0xff] }
 0x2af   :  { %5695 = vmatpush1.bf16.msra.mxu0 %v5694_v0  ;;  %v2489_v0 = vld [vmem:[%s9386_s4 + $0x4a8] sm:$0xff] }
 0x2b0   :  { %5697 = vmatprep.subr.bf16.mxu0 %v5696_v7  ;;  %v2491_v7 = vld [vmem:[%s9386_s4 + $0x4b8] sm:$0xff] }
 0x2b1   :  { %2950 = vmatmul.mubr.f32.gmra.mrb[6].mxu0 %v7785_v36  ;;  %v5704_v23 = vpack.c.bf16 %v2491_v7, %v2489_v0  ;;  %v2492_v7 = vld [vmem:[%s9386_s4 + $0x4c0] sm:$0xff] }
 0x2b2   :  { %2955 = vmatprep.mubr.f32.mxu0 %v7794_v63  ;;  %v2494_v63 = vld [vmem:[%s9386_s4 + $0x4d0] sm:$0xff] }
 0x2b3   :  { %5699 = vmatpush1.bf16.msra.mxu0 %v5698_v34  ;;  %v2495_v34 = vld [vmem:[%s9386_s4 + $0x4d8] sm:$0xff] }
 0x2b4   :  { %5701 = vmatprep.subr.bf16.mxu0 %v5700_v9  ;;  %v5706_v9 = vpack.c.bf16 %v2490_v27, %v2488_v21  ;;  %v5708_v0 = vpack.c.bf16 %v2495_v34, %v2493_v33  ;;  %v2497_v27 = vld [vmem:[%s9386_s4 + $0x4e8] sm:$0xff]  ;;  %v2496_v34 = vld [vmem:[%s9386_s4 + $0x4e0] sm:$0xff] }
 0x2b5   :  { %2956 = vmatmul.mubr.f32.gmra.mrb[8].mxu0 %v7803_v4  ;;  %v7839_v21 = vld [vmem:[#allocation4 + $0x32] sm:$0xff] }
 0x2b6   :  { %2961 = vmatprep.mubr.f32.mxu0 %v7812_v38  ;;  %v2498_v38 = vld [vmem:[%s9386_s4 + $0x4f0] sm:$0xff] }
 0x2b7   :  { %5703 = vmatpush1.bf16.msra.mxu0 %v5702_v11  ;;  %v2499_v11 = vld [vmem:[%s9386_s4 + $0x4f8] sm:$0xff] }
 0x2b8   :  { %5705 = vmatprep.subr.bf16.mxu0 %v5704_v23  ;;  %v5710_v23 = vpack.c.bf16 %v2494_v63, %v2492_v7  ;;  %v5712_v33 = vpack.c.bf16 %v2499_v11, %v2497_v27  ;;  %v2501_v63 = vld [vmem:[%s9386_s4 + $0x508] sm:$0xff]  ;;  %v2500_v11 = vld [vmem:[%s9386_s4 + $0x500] sm:$0xff] }
 0x2b9   :  { %2962 = vmatmul.mubr.f32.gmra.mrb[10].mxu0 %v7821_v29  ;;  %v7857_v7 = vld [vmem:[#allocation4 + $0x3a] sm:$0xff] }
 0x2ba   :  { %2967 = vmatprep.mubr.f32.mxu0 %v7830_v15  ;;  %v2502_v15 = vld [vmem:[%s9386_s4 + $0x510] sm:$0xff] }
 0x2bb   :  { %5707 = vmatpush1.bf16.msra.mxu0 %v5706_v9  ;;  %v2503_v9 = vld [vmem:[%s9386_s4 + $0x518] sm:$0xff] }
 0x2bc   :  { %5709 = vmatprep.subr.bf16.mxu0 %v5708_v0  ;;  %v5714_v0 = vpack.c.bf16 %v2498_v38, %v2496_v34  ;;  %v5716_v27 = vpack.c.bf16 %v2503_v9, %v2501_v63  ;;  %v2505_v38 = vld [vmem:[%s9386_s4 + $0x528] sm:$0xff]  ;;  %v7875_v34 = vld [vmem:[#allocation4 + $0x42] sm:$0xff]  ;;  %v2504_v9 = vld [vmem:[%s9386_s4 + $0x520] sm:$0xff] }
 0x2bd   :  { %2968 = vmatmul.mubr.f32.gmra.mrb[12].mxu0 %v7839_v21 }
 0x2be   :  { %2973 = vmatprep.mubr.f32.mxu0 %v7848_v60  ;;  %v2506_v60 = vld [vmem:[%s9386_s4 + $0x530] sm:$0xff] }
 0x2bf   :  { %5711 = vmatpush1.bf16.msra.mxu0 %v5710_v23  ;;  %v2507_v23 = vld [vmem:[%s9386_s4 + $0x538] sm:$0xff] }
 0x2c0   :  { %5713 = vmatprep.subr.bf16.mxu0 %v5712_v33  ;;  %v5718_v33 = vpack.c.bf16 %v2502_v15, %v2500_v11  ;;  %v5720_v63 = vpack.c.bf16 %v2507_v23, %v2505_v38  ;;  %v2509_v15 = vld [vmem:[%s9386_s4 + $0x548] sm:$0xff]  ;;  %v7893_v11 = vld [vmem:[#allocation4 + $0x4a] sm:$0xff] }
 0x2c1   :  { %2974 = vmatmul.mubr.f32.gmra.mrb[14].mxu0 %v7857_v7  ;;  %v2508_v23 = vld [vmem:[%s9386_s4 + $0x540] sm:$0xff] }
 0x2c2   :  { %2979 = vmatprep.mubr.f32.mxu0 %v7866_v54  ;;  %v2510_v54 = vld [vmem:[%s9386_s4 + $0x550] sm:$0xff] }
 0x2c3   :  { %5715 = vmatpush1.bf16.msra.mxu0 %v5714_v0  ;;  %v2511_v0 = vld [vmem:[%s9386_s4 + $0x558] sm:$0xff] }
 0x2c4   :  { %5717 = vmatprep.subr.bf16.mxu0 %v5716_v27  ;;  %v5722_v27 = vpack.c.bf16 %v2506_v60, %v2504_v9  ;;  %v5724_v38 = vpack.c.bf16 %v2511_v0, %v2509_v15  ;;  %v2515_v60 = vld [vmem:[%s9386_s4 + $0x578] sm:$0xff]  ;;  %v7908_v9 = vld [vmem:[#allocation4 + $0x52] sm:$0xff] }
 0x2c5   :  { %2980 = vmatmul.mubr.f32.gmra.mrb[16].mxu0 %v7875_v34  ;;  %v2512_v0 = vld [vmem:[%s9386_s4 + $0x560] sm:$0xff] }
 0x2c6   :  { %2985 = vmatprep.mubr.f32.mxu0 %v7884_v47  ;;  %v2514_v47 = vld [vmem:[%s9386_s4 + $0x570] sm:$0xff] }
 0x2c7   :  { %5719 = vmatpush1.bf16.msra.mxu0 %v5718_v33  ;;  %v2513_v33 = vld [vmem:[%s9386_s4 + $0x568] sm:$0xff] }
 0x2c8   :  { %5721 = vmatprep.subr.bf16.mxu0 %v5720_v63  ;;  %v5726_v63 = vpack.c.bf16 %v2510_v54, %v2508_v23  ;;  %v5728_v15 = vpack.c.bf16 %v2515_v60, %v2513_v33  ;;  %v2519_v54 = vld [vmem:[%s9386_s4 + $0x598] sm:$0xff]  ;;  %v2516_v33 = vld [vmem:[%s9386_s4 + $0x580] sm:$0xff]  ;;  %v2518_v60 = vld [vmem:[%s9386_s4 + $0x590] sm:$0xff] }
 0x2c9   :  { %2986 = vmatmul.mubr.f32.gmra.mrb[18].mxu0 %v7893_v11 }
 0x2ca   :  { %2991 = vmatprep.mubr.f32.mxu0 %v1741_v39  ;;  %v2517_v39 = vld [vmem:[%s9386_s4 + $0x588] sm:$0xff] }
 0x2cb   :  { %5723 = vmatpush1.bf16.msra.mxu0 %v5722_v27  ;;  %v5730_v27 = vpack.c.bf16 %v2514_v47, %v2512_v0  ;;  %v5732_v23 = vpack.c.bf16 %v2519_v54, %v2517_v39  ;;  %v2523_v47 = vld [vmem:[%s9386_s4 + $0x5b8] sm:$0xff]  ;;  %v2520_v39 = vld [vmem:[%s9386_s4 + $0x5a0] sm:$0xff]  ;;  %v2522_v54 = vld [vmem:[%s9386_s4 + $0x5b0] sm:$0xff] }
 0x2cc   :  { %5725 = vmatprep.subr.bf16.mxu0 %v5724_v38  ;;  %v7923_v38 = vld [vmem:[#allocation4 + $0x5a] sm:$0xff] }
 0x2cd   :  { %2992 = vmatmul.mubr.f32.gmra.mrb[20].mxu0 %v7908_v9 }
 0x2ce   :  { %2997 = vmatprep.mubr.f32.mxu0 %v1742_v32  ;;  %v2521_v32 = vld [vmem:[%s9386_s4 + $0x5a8] sm:$0xff] }
 0x2cf   :  { %5727 = vmatpush1.bf16.msra.mxu0 %v5726_v63  ;;  %v5734_v63 = vpack.c.bf16 %v2518_v60, %v2516_v33  ;;  %v5736_v0 = vpack.c.bf16 %v2523_v47, %v2521_v32  ;;  %v7955_v33 = vld [vmem:[#allocation4 + $0x6a] sm:$0xff]  ;;  %v2526_v47 = vld [vmem:[%s9386_s4 + $0x5d0] sm:$0xff] }
 0x2d0   :  { %5729 = vmatprep.subr.bf16.mxu0 %v5728_v15  ;;  %v7939_v15 = vld [vmem:[#allocation4 + $0x62] sm:$0xff]  ;;  %v2524_v32 = vld [vmem:[%s9386_s4 + $0x5c0] sm:$0xff] }
 0x2d1   :  { %2998 = vmatmul.mubr.f32.gmra.mrb[22].mxu0 %v7923_v38 }
 0x2d2   :  { %3003 = vmatprep.mubr.f32.mxu0 %v7630_v46  ;;  %v2525_v46 = vld [vmem:[%s9386_s4 + $0x5c8] sm:$0xff] }
 0x2d3   :  { %5731 = vmatpush1.bf16.msra.mxu0 %v5730_v27  ;;  %v2527_v27 = vld [vmem:[%s9386_s4 + $0x5d8] sm:$0xff] }
 0x2d4   :  { %5733 = vmatprep.subr.bf16.mxu0 %v5732_v23  ;;  %v5738_v23 = vpack.c.bf16 %v2522_v54, %v2520_v39  ;;  %v5740_v60 = vpack.c.bf16 %v2527_v27, %v2525_v46  ;;  %v7971_v39 = vld [vmem:[#allocation4 + $0x72] sm:$0xff]  ;;  %v2530_v27 = vld [vmem:[%s9386_s4 + $0x5f0] sm:$0xff] }
 0x2d5   :  { %3004 = vmatmul.mubr.f32.gmra.mrb[24].mxu0 %v7939_v15  ;;  %v2528_v46 = vld [vmem:[%s9386_s4 + $0x5e0] sm:$0xff] }
 0x2d6   :  { %3009 = vmatprep.mubr.f32.mxu0 %v7634_v6  ;;  %v2529_v6 = vld [vmem:[%s9386_s4 + $0x5e8] sm:$0xff] }
 0x2d7   :  { %5735 = vmatpush1.bf16.msra.mxu0 %v5734_v63  ;;  %v2531_v63 = vld [vmem:[%s9386_s4 + $0x5f8] sm:$0xff] }
 0x2d8   :  { %5737 = vmatprep.subr.bf16.mxu0 %v5736_v0  ;;  %v5742_v0 = vpack.c.bf16 %v2526_v47, %v2524_v32  ;;  %v5744_v54 = vpack.c.bf16 %v2531_v63, %v2529_v6  ;;  %v7990_v32 = vld [vmem:[#allocation4 + $0x8a] sm:$0xff]  ;;  %v8023_v6 = vld [vmem:[#allocation4] sm:$0xff] }
 0x2d9   :  { %3010 = vmatmul.mubr.f32.gmra.mrb[26].mxu0 %v7955_v33 }
 0x2da   :  { %3015 = vmatprep.mubr.f32.mxu0 %v7640_v41  ;;  %v5746_v41 = vpack.c.bf16 %v2530_v27, %v2528_v46  ;;  %v8037_v46 = vld [vmem:[#allocation4 + $0xca] sm:$0xff]  ;;  %v8044_v27 = vld [vmem:[#allocation4 + $0xd2] sm:$0xff] }
 0x2db   :  { %5739 = vmatpush1.bf16.msra.mxu0 %v5738_v23  ;;  %v7981_v23 = vld [vmem:[#allocation4 + $0x7a] sm:$0xff] }
 0x2dc   :  { %5741 = vmatprep.subr.bf16.mxu0 %v5740_v60  ;;  %v7985_v60 = vld [vmem:[#allocation4 + $0x82] sm:$0xff] }
 0x2dd   :  { %3016 = vmatmul.mubr.f32.gmra.mrb[28].mxu0 %v7971_v39 }
 0x2de   :  { %3021 = vmatprep.mubr.f32.mxu0 %v7645_v1  ;;  %v7994_v1 = vld [vmem:[#allocation4 + $0x92] sm:$0xff] }
 0x2df   :  { %5743 = vmatpush1.bf16.msra.mxu0 %v5742_v0  ;;  %v1990_v0 = vld [vmem:[#allocation4 + $0xf9] sm:$0xff] }
 0x2e0   :  { %5745 = vmatprep.subr.bf16.mxu0 %v5744_v54  ;;  %v1991_v54 = vld [vmem:[#allocation4 + $0x101] sm:$0xff] }
 0x2e1   :  { %3022 = vmatmul.mubr.f32.gmra.mrb[30].mxu0 %v7981_v23 }
 0x2e2   :  { %3027 = vmatprep.mubr.f32.mxu0 %v7650_v20  ;;  %v7998_v20 = vld [vmem:[#allocation4 + $0x9a] sm:$0xff] }
 0x2e3   :  { %5747 = vmatpush1.bf16.msra.mxu0 %v5746_v41 }
 0x2e4   :  { %5749 = vmatprep.subr.bf16.mxu0 %v7001_v13  ;;  %v8002_v13 = vld [vmem:[#allocation4 + $0xa2] sm:$0xff] }
 0x2e5   :  { %3028 = vmatmul.mubr.f32.gmra.mrb[32].mxu0 %v7985_v60 }
 0x2e6   :  { %3033 = vmatprep.mubr.f32.mxu0 %v7654_v45  ;;  %v8006_v45 = vld [vmem:[#allocation4 + $0xaa] sm:$0xff] }
 0x2e9   :  { %3034 = vmatmul.mubr.f32.gmra.mrb[34].mxu0 %v7990_v32 }
 0x2ea   :  { %3039 = vmatprep.mubr.f32.mxu0 %v7660_v28 }
 0x2ed   :  { %3040 = vmatmul.mubr.f32.gmra.mrb[36].mxu0 %v7994_v1 }
 0x2ee   :  { %3045 = vmatprep.mubr.f32.mxu0 %v7664_v59  ;;  %v8012_v59 = vld [vmem:[#allocation4 + $0xb2] sm:$0xff] }
 0x2f1   :  { %3046 = vmatmul.mubr.f32.gmra.mrb[38].mxu0 %v7998_v20 }
 0x2f2   :  { %3051 = vmatprep.mubr.f32.mxu0 %v7675_v5  ;;  %v8018_v5 = vld [vmem:[#allocation4 + $0xf1] sm:$0xff] }
 0x2f3   :  { %3565 = vmatprep.mubr.f32.mxu1 %v8018_v5 }
 0x2f4   :  { %3566 = vmatmul.mubr.f32.gmra.mrb[248].mxu1 %v8023_v6 }
 0x2f5   :  { %3052 = vmatmul.mubr.f32.gmra.mrb[40].mxu0 %v8002_v13  ;;  %3571 = vmatprep.mubr.f32.mxu1 %v1990_v0 }
 0x2f6   :  { %3057 = vmatprep.mubr.f32.mxu0 %v7679_v16  ;;  %v8021_v16 = vld [vmem:[#allocation4 + $0xba] sm:$0xff] }
 0x2f8   :  { %3572 = vmatmul.mubr.f32.gmra.mrb[250].mxu1 %v8023_v6 }
 0x2f9   :  { %3058 = vmatmul.mubr.f32.gmra.mrb[42].mxu0 %v8006_v45  ;;  %3577 = vmatprep.mubr.f32.mxu1 %v1991_v54 }
 0x2fa   :  { %3063 = vmatprep.mubr.f32.mxu0 %v7685_v12 }
 0x2fc   :  { %3578 = vmatmul.mubr.f32.gmra.mrb[252].mxu1 %v8023_v6 }
 0x2fd   :  { %v8010_v28 = vpop.f32.mrb[212].mxu1  ;;  %3064 = vmatmul.mubr.f32.gmra.mrb[44].mxu0 %v8012_v59 }
 0x2fe   :  { %v8015_v47 = vpop.f32.mrb[213].mxu1  ;;  %3069 = vmatprep.mubr.f32.mxu0 %v7694_v56  ;;  %v8032_v56 = vld [vmem:[#allocation4 + $0xc2] sm:$0xff] }
 0x301   :  { %v8026_v12 = vpop.f32.mrb[214].mxu1  ;;  %3070 = vmatmul.mubr.f32.gmra.mrb[46].mxu0 %v8021_v16 }
 0x302   :  { %v8029_v63 = vpop.f32.mrb[215].mxu1  ;;  %3075 = vmatprep.mubr.f32.mxu0 %v7699_v57 }
 0x305   :  { %3076 = vmatmul.mubr.f32.gmra.mrb[48].mxu0 %v8032_v56 }
 0x306   :  { %3081 = vmatprep.mubr.f32.mxu0 %v7705_v43  ;;  %v8050_v43 = vld [vmem:[#allocation4 + $0xda] sm:$0xff] }
 0x309   :  { %3082 = vmatmul.mubr.f32.gmra.mrb[50].mxu0 %v8037_v46 }
 0x30a   :  { %3087 = vmatprep.mubr.f32.mxu0 %v7718_v52  ;;  %v8058_v52 = vld [vmem:[#allocation4 + $0xe2] sm:$0xff] }
 0x30c   :  { %v8042_v57 = vpop.f32.mrb[216].mxu1 }
 0x30d   :  { %9434 = vst [vmem:[#allocation25_spill] sm:$0xff] %v8042_v57  ;;  %3088 = vmatmul.mubr.f32.gmra.mrb[52].mxu0 %v8044_v27  ;;  %v8047_v41 = vpop.f32.mrb[217].mxu1  ;;  %v1789_v57 = vld [vmem:[#allocation4 + $0x11] sm:$0xff] }
 0x30e   :  { %3093 = vmatprep.mubr.f32.mxu0 %v7739_v48 }
 0x311   :  { %v8052_v0 = vpop.f32.mrb[218].mxu1  ;;  %3094 = vmatmul.mubr.f32.gmra.mrb[54].mxu0 %v8050_v43 }
 0x312   :  { %9435 = vst [vmem:[#allocation26_spill] sm:$0xff] %v8052_v0  ;;  %v8055_v54 = vpop.f32.mrb[219].mxu1  ;;  %3099 = vmatprep.mubr.f32.mxu0 %v8023_v6  ;;  %v1790_v0 = vld [vmem:[#allocation4 + $0x19] sm:$0xff] }
 0x313   :  { %9436 = vst [vmem:[#allocation27_spill] sm:$0xff] %v8055_v54 }
 0x315   :  { %3100 = vmatmul.mubr.f32.gmra.mrb[56].mxu0 %v8058_v52 }
 0x316   :  { %3170 = vmatprep.mubr.f32.mxu0 %v7767_v51 }
 0x319   :  { %3171 = vmatmul.mubr.f32.vlgmr.msra.gmra.mrb[0].mxu0 %v1789_v57  ;;  %v8074_v57 = vld [vmem:[#allocation4 + $0x21] sm:$0xff] }
 0x31a   :  { %3176 = vmatprep.mubr.f32.mxu0 %v7785_v36  ;;  %5751 = vmatpush1.bf16.msra.mxu0 %v7009_v17 }
 0x31b   :  { %5753 = vmatprep.subr.bf16.mxu0 %v7025_v22  ;;  %v8082_v22 = vld [vmem:[#allocation4 + $0x29] sm:$0xff] }
 0x31d   :  { %v8065_v48 = vpop.f32.mrb[220].mxu1  ;;  %3177 = vmatmul.mubr.f32.gmra.mrb[2].mxu0 %v1790_v0 }
 0x31e   :  { %v8067_v54 = vpop.f32.mrb[221].mxu1  ;;  %3182 = vmatprep.mubr.f32.mxu0 %v7803_v4  ;;  %5755 = vmatpush1.bf16.msra.mxu0 %v7033_v26 }
 0x31f   :  { %5757 = vmatprep.subr.bf16.mxu0 %v7049_v31  ;;  %v8090_v31 = vld [vmem:[#allocation4 + $0x31] sm:$0xff] }
 0x321   :  { %v8072_v51 = vpop.f32.mrb[222].mxu1  ;;  %3183 = vmatmul.mubr.f32.gmra.mrb[4].mxu0 %v8074_v57 }
 0x322   :  { %v8077_v17 = vpop.f32.mrb[223].mxu1  ;;  %3188 = vmatprep.mubr.f32.mxu0 %v7821_v29  ;;  %5759 = vmatpush1.bf16.msra.mxu0 %v7057_v35  ;;  %v8098_v35 = vld [vmem:[#allocation4 + $0x39] sm:$0xff] }
 0x323   :  { %5761 = vmatprep.subr.bf16.mxu0 %v7073_v40 }
 0x325   :  { %3189 = vmatmul.mubr.f32.gmra.mrb[6].mxu0 %v8082_v22 }
 0x326   :  { %3194 = vmatprep.mubr.f32.mxu0 %v7839_v21  ;;  %5763 = vmatpush1.bf16.msra.mxu0 %v7081_v44 }
 0x327   :  { %5765 = vmatprep.subr.bf16.mxu0 %v7097_v49  ;;  %v8108_v49 = vld [vmem:[#allocation4 + $0x41] sm:$0xff] }
 0x329   :  { %v8088_v26 = vpop.f32.mrb[224].mxu1  ;;  %3195 = vmatmul.mubr.f32.gmra.mrb[8].mxu0 %v8090_v31 }
 0x32a   :  { %v8093_v36 = vpop.f32.mrb[225].mxu1  ;;  %3200 = vmatprep.mubr.f32.mxu0 %v7857_v7  ;;  %5767 = vmatpush1.bf16.msra.mxu0 %v7105_v53  ;;  %v8114_v53 = vld [vmem:[#allocation4 + $0x49] sm:$0xff] }
 0x32b   :  { %5769 = vmatprep.subr.bf16.mxu0 %v7121_v58 }
 0x32d   :  { %3201 = vmatmul.mubr.f32.gmra.mrb[10].mxu0 %v8098_v35 }
 0x32e   :  { %v8100_v40 = vpop.f32.mrb[226].mxu1  ;;  %3206 = vmatprep.mubr.f32.mxu0 %v7875_v34  ;;  %5771 = vmatpush1.bf16.msra.mxu0 %v7129_v62  ;;  %v8122_v62 = vld [vmem:[#allocation4 + $0x51] sm:$0xff] }
 0x32f   :  { %v8103_v44 = vpop.f32.mrb[227].mxu1  ;;  %5773 = vmatprep.subr.bf16.mxu0 %v7145_v3 }
 0x331   :  { %3207 = vmatmul.mubr.f32.gmra.mrb[12].mxu0 %v8108_v49 }
 0x332   :  { %3212 = vmatprep.mubr.f32.mxu0 %v7893_v11  ;;  %5775 = vmatpush1.bf16.msra.mxu0 %v7153_v8  ;;  %v8130_v8 = vld [vmem:[#allocation4 + $0x59] sm:$0xff] }
 0x333   :  { %5777 = vmatprep.subr.bf16.mxu0 %v7169_v14 }
 0x335   :  { %3213 = vmatmul.mubr.f32.gmra.mrb[14].mxu0 %v8114_v53 }
 0x336   :  { %3218 = vmatprep.mubr.f32.mxu0 %v7908_v9  ;;  %5779 = vmatpush1.bf16.msra.mxu0 %v7177_v19 }
 0x337   :  { %5781 = vmatprep.subr.bf16.mxu0 %v7193_v25  ;;  %v1799_v25 = vld [vmem:[#allocation4 + $0x61] sm:$0xff] }
 0x338   :  { %v8120_v58 = vpop.f32.mrb[228].mxu1 }
 0x339   :  { %3219 = vmatmul.mubr.f32.gmra.mrb[16].mxu0 %v8122_v62  ;;  %v8125_v3 = vpop.f32.mrb[229].mxu1 }
 0x33a   :  { %3224 = vmatprep.mubr.f32.mxu0 %v7923_v38  ;;  %5783 = vmatpush1.bf16.msra.mxu0 %v7201_v30  ;;  %v1800_v30 = vld [vmem:[#allocation4 + $0x69] sm:$0xff] }
 0x33b   :  { %5785 = vmatprep.subr.bf16.mxu0 %v7217_v37 }
 0x33d   :  { %v8132_v14 = vpop.f32.mrb[230].mxu1  ;;  %3225 = vmatmul.mubr.f32.gmra.mrb[18].mxu0 %v8130_v8 }
 0x33e   :  { %v8135_v19 = vpop.f32.mrb[231].mxu1  ;;  %3230 = vmatprep.mubr.f32.mxu0 %v7939_v15  ;;  %5787 = vmatpush1.bf16.msra.mxu0 %v7225_v42  ;;  %v1801_v42 = vld [vmem:[#allocation4 + $0x71] sm:$0xff] }
 0x33f   :  { %5789 = vmatprep.subr.bf16.mxu0 %v7241_v50 }
 0x341   :  { %3231 = vmatmul.mubr.f32.gmra.mrb[20].mxu0 %v1799_v25  ;;  %v1803_v25 = vld [vmem:[#allocation4 + $0x81] sm:$0xff] }
 0x342   :  { %3236 = vmatprep.mubr.f32.mxu0 %v7955_v33  ;;  %5791 = vmatpush1.bf16.msra.mxu0 %v7250_v55  ;;  %v1802_v55 = vld [vmem:[#allocation4 + $0x79] sm:$0xff] }
 0x343   :  { %5793 = vmatprep.subr.bf16.mxu0 %v7265_v61 }
 0x345   :  { %3237 = vmatmul.mubr.f32.gmra.mrb[22].mxu0 %v1800_v30  ;;  %v2597_v30 = vld [vmem:[%s9386_s4 + $0x808] sm:$0xff] }
 0x346   :  { %3242 = vmatprep.mubr.f32.mxu0 %v7971_v39  ;;  %5795 = vmatpush1.bf16.msra.mxu0 %v7274_v2  ;;  %v9441_v2 = vld [vmem:[#allocation8_spill] sm:$0xff] }
 0x347   :  { %5797 = vmatprep.subr.bf16.mxu0 %v7289_v10  ;;  %v9442_v10 = vld [vmem:[#allocation9_spill] sm:$0xff] }
 0x349   :  { %v8146_v37 = vpop.f32.mrb[232].mxu1  ;;  %3243 = vmatmul.mubr.f32.gmra.mrb[24].mxu0 %v1801_v42  ;;  %v9444_v42 = vld [vmem:[#allocation11_spill] sm:$0xff] }
 0x34a   :  { %9437 = vst [vmem:[#allocation28_spill] sm:$0xff] %v8146_v37  ;;  %v8148_v50 = vpop.f32.mrb[233].mxu1  ;;  %3248 = vmatprep.mubr.f32.mxu0 %v7981_v23  ;;  %5799 = vmatpush1.bf16.msra.mxu0 %v7304_v18  ;;  %v2599_v18 = vld [vmem:[%s9386_s4 + $0x818] sm:$0xff] }
 0x34b   :  { %9438 = vst [vmem:[#allocation29_spill] sm:$0xff] %v8148_v50  ;;  %5801 = vmatprep.subr.bf16.mxu0 %v7313_v24  ;;  %v9443_v24 = vld [vmem:[#allocation10_spill] sm:$0xff]  ;;  %v9462_v37 = vld [vmem:[#allocation17_spill] sm:$0xff] }
 0x34d   :  { %v8153_v61 = vpop.f32.mrb[234].mxu1  ;;  %3249 = vmatmul.mubr.f32.gmra.mrb[26].mxu0 %v1802_v55  ;;  %v5812_v55 = vpack.c.bf16 %v2599_v18, %v2597_v30  ;;  %v1807_v18 = vld [vmem:[#allocation4 + $0xa1] sm:$0xff] }
 0x34e   :  { %9439 = vst [vmem:[#allocation30_spill] sm:$0xff] %v8153_v61  ;;  %v8155_v0 = vpop.f32.mrb[235].mxu1  ;;  %3254 = vmatprep.mubr.f32.mxu0 %v7985_v60  ;;  %5803 = vmatpush1.bf16.msra.mxu0 %v9441_v2  ;;  %v1804_v2 = vld [vmem:[#allocation4 + $0x89] sm:$0xff]  ;;  %v1805_v61 = vld [vmem:[#allocation4 + $0x91] sm:$0xff] }
 0x34f   :  { %9440 = vst [vmem:[#allocation31_spill] sm:$0xff] %v8155_v0  ;;  %5805 = vmatprep.subr.bf16.mxu0 %v9442_v10  ;;  %v9445_v10 = vld [vmem:[#allocation12_spill] sm:$0xff] }
 0x351   :  { %3255 = vmatmul.mubr.f32.gmra.mrb[28].mxu0 %v1803_v25 }
 0x352   :  { %3260 = vmatprep.mubr.f32.mxu0 %v7990_v32  ;;  %5807 = vmatpush1.bf16.msra.mxu0 %v9443_v24  ;;  %v1806_v24 = vld [vmem:[#allocation4 + $0x99] sm:$0xff] }
 0x353   :  { %5809 = vmatprep.subr.bf16.mxu0 %v9444_v42 }
 0x355   :  { %3261 = vmatmul.mubr.f32.gmra.mrb[30].mxu0 %v1804_v2  ;;  %v1809_v2 = vld [vmem:[#allocation4 + $0xb1] sm:$0xff] }
 0x356   :  { %3266 = vmatprep.mubr.f32.mxu0 %v7994_v1  ;;  %5811 = vmatpush1.bf16.msra.mxu0 %v9445_v10 }
 0x357   :  { %5813 = vmatprep.subr.bf16.mxu0 %v5812_v55  ;;  %v1808_v55 = vld [vmem:[#allocation4 + $0xa9] sm:$0xff] }
 0x358   :  { %v8171_v0 = vpop.f32.mrb[236].mxu1 }
 0x359   :  { %9446 = vst [vmem:[#allocation8_spill] sm:$0xff] %v8171_v0  ;;  %3267 = vmatmul.mubr.f32.gmra.mrb[32].mxu0 %v1805_v61  ;;  %v8173_v50 = vpop.f32.mrb[237].mxu1  ;;  %v2605_v0 = vld [vmem:[%s9386_s4 + $0x848] sm:$0xff] }
 0x35a   :  { %9447 = vst [vmem:[#allocation9_spill] sm:$0xff] %v8173_v50  ;;  %3272 = vmatprep.mubr.f32.mxu0 %v7998_v20  ;;  %v2602_v50 = vld [vmem:[%s9386_s4 + $0x830] sm:$0xff] }
 0x35c   :  { %v8176_v25 = vpop.f32.mrb[238].mxu1 }
 0x35d   :  { %9448 = vst [vmem:[#allocation10_spill] sm:$0xff] %v8176_v25  ;;  %3273 = vmatmul.mubr.f32.gmra.mrb[34].mxu0 %v1806_v24  ;;  %v8178_v30 = vpop.f32.mrb[239].mxu1  ;;  %v2600_v25 = vld [vmem:[%s9386_s4 + $0x820] sm:$0xff] }
 0x35e   :  { %9449 = vst [vmem:[#allocation11_spill] sm:$0xff] %v8178_v30  ;;  %3278 = vmatprep.mubr.f32.mxu0 %v8002_v13  ;;  %v1810_v30 = vld [vmem:[#allocation4 + $0xb9] sm:$0xff] }
 0x361   :  { %3279 = vmatmul.mubr.f32.gmra.mrb[36].mxu0 %v1807_v18  ;;  %v1811_v18 = vld [vmem:[#allocation4 + $0xc1] sm:$0xff] }
 0x362   :  { %3284 = vmatprep.mubr.f32.mxu0 %v8006_v45 }
 0x365   :  { %v8182_v42 = vpop.f32.mrb[240].mxu1  ;;  %3285 = vmatmul.mubr.f32.gmra.mrb[38].mxu0 %v1808_v55 }
 0x366   :  { %9450 = vst [vmem:[#allocation12_spill] sm:$0xff] %v8182_v42  ;;  %v8184_v61 = vpop.f32.mrb[241].mxu1  ;;  %3290 = vmatprep.mubr.f32.mxu0 %v8012_v59 }
 0x367   :  { %9451 = vst [vmem:[#allocation32_spill] sm:$0xff] %v8184_v61  ;;  %v9455_v61 = vld [vmem:[#allocation13_spill] sm:$0xff] }
 0x369   :  { %3291 = vmatmul.mubr.f32.gmra.mrb[40].mxu0 %v1809_v2  ;;  %v1813_v2 = vld [vmem:[#allocation4 + $0xd1] sm:$0xff] }
 0x36a   :  { %v8187_v10 = vpop.f32.mrb[242].mxu1  ;;  %3296 = vmatprep.mubr.f32.mxu0 %v8021_v16 }
 0x36b   :  { %9452 = vst [vmem:[#allocation33_spill] sm:$0xff] %v8187_v10  ;;  %v8189_v24 = vpop.f32.mrb[243].mxu1 }
 0x36c   :  { %9453 = vst [vmem:[#allocation34_spill] sm:$0xff] %v8189_v24 }
 0x36d   :  { %3297 = vmatmul.mubr.f32.gmra.mrb[42].mxu0 %v1810_v30  ;;  %v9459_v30 = vld [vmem:[#allocation14_spill] sm:$0xff] }
 0x36e   :  { %3302 = vmatprep.mubr.f32.mxu0 %v8032_v56 }
 0x371   :  { %3303 = vmatmul.mubr.f32.gmra.mrb[44].mxu0 %v1811_v18  ;;  %v9460_v18 = vld [vmem:[#allocation15_spill] sm:$0xff] }
 0x372   :  { %3308 = vmatprep.mubr.f32.mxu0 %v8037_v46 }
 0x374   :  { %v8194_v55 = vpop.f32.mrb[244].mxu1 }
 0x375   :  { %9454 = vst [vmem:[#allocation35_spill] sm:$0xff] %v8194_v55  ;;  %3309 = vmatmul.mubr.f32.gmra.mrb[46].mxu0 %v9455_v61  ;;  %v8197_v42 = vpop.f32.mrb[245].mxu1  ;;  %v8208_v55 = vld [vmem:[#allocation4 + $0xea] sm:$0xff]  ;;  %v8211_v61 = vld [vmem:[#allocation4 + $0xf2] sm:$0xff] }
 0x376   :  { %9456 = vst [vmem:[#allocation13_spill] sm:$0xff] %v8197_v42  ;;  %3314 = vmatprep.mubr.f32.mxu0 %v8044_v27  ;;  %v9461_v42 = vld [vmem:[#allocation16_spill] sm:$0xff] }
 0x379   :  { %v8200_v24 = vpop.f32.mrb[246].mxu1  ;;  %3315 = vmatmul.mubr.f32.gmra.mrb[48].mxu0 %v1813_v2  ;;  %v2596_v2 = vld [vmem:[%s9386_s4 + $0x800] sm:$0xff] }
 0x37a   :  { %9457 = vst [vmem:[#allocation36_spill] sm:$0xff] %v8200_v24  ;;  %v8202_v10 = vpop.f32.mrb[247].mxu1  ;;  %3320 = vmatprep.mubr.f32.mxu0 %v8050_v43 }
 0x37b   :  { %9458 = vst [vmem:[#allocation37_spill] sm:$0xff] %v8202_v10  ;;  %v2603_v10 = vld [vmem:[%s9386_s4 + $0x838] sm:$0xff] }
 0x37d   :  { %3321 = vmatmul.mubr.f32.gmra.mrb[50].mxu0 %v9459_v30  ;;  %v2598_v30 = vld [vmem:[%s9386_s4 + $0x810] sm:$0xff] }
 0x37e   :  { %3326 = vmatprep.mubr.f32.mxu0 %v8058_v52 }
 0x381   :  { %3327 = vmatmul.mubr.f32.gmra.mrb[52].mxu0 %v9460_v18  ;;  %v2601_v18 = vld [vmem:[%s9386_s4 + $0x828] sm:$0xff] }
 0x382   :  { %3332 = vmatprep.mubr.f32.mxu0 %v8208_v55  ;;  %v5816_v24 = vpack.c.bf16 %v2603_v10, %v2601_v18  ;;  %v2609_v18 = vld [vmem:[%s9386_s4 + $0x868] sm:$0xff] }
 0x385   :  { %3333 = vmatmul.mubr.f32.gmra.mrb[54].mxu0 %v9461_v42  ;;  %v5814_v42 = vpack.c.bf16 %v2598_v30, %v2596_v2  ;;  %v2604_v2 = vld [vmem:[%s9386_s4 + $0x840] sm:$0xff]  ;;  %v2606_v30 = vld [vmem:[%s9386_s4 + $0x850] sm:$0xff] }
 0x386   :  { %3338 = vmatprep.mubr.f32.mxu0 %v8211_v61 }
 0x389   :  { %3339 = vmatmul.mubr.f32.gmra.mrb[56].mxu0 %v8018_v5  ;;  %v2607_v5 = vld [vmem:[%s9386_s4 + $0x858] sm:$0xff] }
 0x38a   :  { %3409 = vmatprep.mubr.f32.mxu0 %v8074_v57  ;;  %v5818_v57 = vpack.c.bf16 %v2602_v50, %v2600_v25  ;;  %v5820_v10 = vpack.c.bf16 %v2607_v5, %v2605_v0  ;;  %v5822_v50 = vpack.c.bf16 %v2606_v30, %v2604_v2  ;;  %v2608_v25 = vld [vmem:[%s9386_s4 + $0x860] sm:$0xff]  ;;  %v9464_v5 = vld [vmem:[#allocation19_spill] sm:$0xff]  ;;  %v2614_v30 = vld [vmem:[%s9386_s4 + $0x890] sm:$0xff] }
 0x38b   :  { %v2612_v2 = vld [vmem:[%s9386_s4 + $0x880] sm:$0xff] }
 0x38d   :  { %3410 = vmatmul.mubr.f32.vlgmr.msra.gmra.mrb[0].mxu0 %v9462_v37  ;;  %v9463_v37 = vld [vmem:[#allocation18_spill] sm:$0xff] }
 0x38e   :  { %3415 = vmatprep.mubr.f32.mxu0 %v8082_v22  ;;  %5815 = vmatpush1.bf16.msra.mxu0 %v5814_v42  ;;  %v2611_v22 = vld [vmem:[%s9386_s4 + $0x878] sm:$0xff]  ;;  %v2613_v42 = vld [vmem:[%s9386_s4 + $0x888] sm:$0xff] }
 0x38f   :  { %5817 = vmatprep.subr.bf16.mxu0 %v5816_v24  ;;  %v5824_v0 = vpack.c.bf16 %v2611_v22, %v2609_v18  ;;  %v2610_v24 = vld [vmem:[%s9386_s4 + $0x870] sm:$0xff]  ;;  %v2617_v18 = vld [vmem:[%s9386_s4 + $0x8a8] sm:$0xff] }
 0x390   :  { %v9465_v22 = vld [vmem:[#allocation20_spill] sm:$0xff] }
 0x391   :  { %3416 = vmatmul.mubr.f32.gmra.mrb[2].mxu0 %v9463_v37  ;;  %v5830_v37 = vpack.c.bf16 %v2614_v30, %v2612_v2  ;;  %v2625_v2 = vld [vmem:[%s9386_s4 + $0x8e8] sm:$0xff]  ;;  %v9467_v30 = vld [vmem:[#allocation22_spill] sm:$0xff] }
 0x392   :  { %3421 = vmatprep.mubr.f32.mxu0 %v8090_v31  ;;  %5819 = vmatpush1.bf16.msra.mxu0 %v5818_v57  ;;  %v2615_v31 = vld [vmem:[%s9386_s4 + $0x898] sm:$0xff]  ;;  %v5826_v57 = vpack.c.bf16 %v2610_v24, %v2608_v25  ;;  %v2618_v25 = vld [vmem:[%s9386_s4 + $0x8b0] sm:$0xff]  ;;  %v2621_v24 = vld [vmem:[%s9386_s4 + $0x8c8] sm:$0xff] }
 0x393   :  { %5821 = vmatprep.subr.bf16.mxu0 %v5820_v10  ;;  %v5828_v10 = vpack.c.bf16 %v2615_v31, %v2613_v42  ;;  %v9466_v42 = vld [vmem:[#allocation21_spill] sm:$0xff] }
 0x395   :  { %3422 = vmatmul.mubr.f32.gmra.mrb[4].mxu0 %v9464_v5 }
 0x396   :  { %3427 = vmatprep.mubr.f32.mxu0 %v8098_v35  ;;  %5823 = vmatpush1.bf16.msra.mxu0 %v5822_v50  ;;  %v2619_v35 = vld [vmem:[%s9386_s4 + $0x8b8] sm:$0xff] }
 0x397   :  { %5825 = vmatprep.subr.bf16.mxu0 %v5824_v0  ;;  %v5832_v50 = vpack.c.bf16 %v2619_v35, %v2617_v18  ;;  %v2616_v0 = vld [vmem:[%s9386_s4 + $0x8a0] sm:$0xff] }
 0x398   :  { %v5834_v31 = vpack.c.bf16 %v2618_v25, %v2616_v0 }
 0x399   :  { %3428 = vmatmul.mubr.f32.gmra.mrb[6].mxu0 %v9465_v22  ;;  %v2624_v22 = vld [vmem:[%s9386_s4 + $0x8e0] sm:$0xff] }
 0x39a   :  { %3433 = vmatprep.mubr.f32.mxu0 %v8108_v49  ;;  %5827 = vmatpush1.bf16.msra.mxu0 %v5826_v57  ;;  %v2623_v49 = vld [vmem:[%s9386_s4 + $0x8d8] sm:$0xff]  ;;  %v2620_v57 = vld [vmem:[%s9386_s4 + $0x8c0] sm:$0xff] }
 0x39b   :  { %5829 = vmatprep.subr.bf16.mxu0 %v5828_v10  ;;  %v5836_v5 = vpack.c.bf16 %v2623_v49, %v2621_v24  ;;  %v2622_v10 = vld [vmem:[%s9386_s4 + $0x8d0] sm:$0xff] }
 0x39c   :  { %v5838_v18 = vpack.c.bf16 %v2622_v10, %v2620_v57 }
 0x39d   :  { %3434 = vmatmul.mubr.f32.gmra.mrb[8].mxu0 %v9466_v42 }
 0x39e   :  { %3439 = vmatprep.mubr.f32.mxu0 %v8114_v53  ;;  %5831 = vmatpush1.bf16.msra.mxu0 %v5830_v37  ;;  %v2627_v53 = vld [vmem:[%s9386_s4 + $0x8f8] sm:$0xff]  ;;  %v2626_v37 = vld [vmem:[%s9386_s4 + $0x8f0] sm:$0xff] }
 0x39f   :  { %5833 = vmatprep.subr.bf16.mxu0 %v5832_v50  ;;  %v5840_v35 = vpack.c.bf16 %v2627_v53, %v2625_v2  ;;  %v9468_v50 = vld [vmem:[#allocation23_spill] sm:$0xff]  ;;  %v5842_v0 = vpack.c.bf16 %v2626_v37, %v2624_v22  ;;  %v9474_v22 = vld [vmem:[#allocation29_spill] sm:$0xff] }
 0x3a1   :  { %3440 = vmatmul.mubr.f32.gmra.mrb[10].mxu0 %v9467_v30 }
 0x3a2   :  { %3445 = vmatprep.mubr.f32.mxu0 %v8122_v62  ;;  %5835 = vmatpush1.bf16.msra.mxu0 %v5834_v31  ;;  %v9469_v62 = vld [vmem:[#allocation24_spill] sm:$0xff] }
 0x3a3   :  { %5837 = vmatprep.subr.bf16.mxu0 %v5836_v5 }
 0x3a5   :  { %3446 = vmatmul.mubr.f32.gmra.mrb[12].mxu0 %v9468_v50  ;;  %v9475_v50 = vld [vmem:[#allocation30_spill] sm:$0xff] }
 0x3a6   :  { %3451 = vmatprep.mubr.f32.mxu0 %v8130_v8  ;;  %5839 = vmatpush1.bf16.msra.mxu0 %v5838_v18  ;;  %v9473_v18 = vld [vmem:[#allocation28_spill] sm:$0xff] }
 0x3a7   :  { %5841 = vmatprep.subr.bf16.mxu0 %v5840_v35 }
 0x3a9   :  { %3452 = vmatmul.mubr.f32.gmra.mrb[14].mxu0 %v9469_v62  ;;  %v9476_v62 = vld [vmem:[#allocation31_spill] sm:$0xff] }
 0x3aa   :  { %5843 = vmatpush1.bf16.msra.mxu0 %v5842_v0  ;;  %3648 = vmatprep.mubr.f32.mxu0 %v8023_v6 }
 0x3ad   :  { %3649 = vmatmul.mubr.f32.vlgmr.msra.gmra.mrb[0].mxu0 %v7803_v4 }
 0x3ae   :  { %3654 = vmatprep.mubr.f32.mxu0 %v8023_v6 }
 0x3b1   :  { %3655 = vmatmul.mubr.f32.gmra.mrb[2].mxu0 %v7821_v29 }
 0x3b2   :  { %3660 = vmatprep.mubr.f32.mxu0 %v8023_v6 }
 0x3b5   :  { %3661 = vmatmul.mubr.f32.gmra.mrb[4].mxu0 %v7839_v21 }
 0x3b6   :  { %3666 = vmatprep.mubr.f32.mxu0 %v8023_v6 }
 0x3b9   :  { %3667 = vmatmul.mubr.f32.gmra.mrb[6].mxu0 %v7857_v7 }
 0x3ba   :  { %3672 = vmatprep.mubr.f32.mxu0 %v8023_v6 }
 0x3bd   :  { %3673 = vmatmul.mubr.f32.gmra.mrb[8].mxu0 %v7875_v34 }
 0x3be   :  { %3678 = vmatprep.mubr.f32.mxu0 %v8023_v6 }
 0x3c1   :  { %3679 = vmatmul.mubr.f32.gmra.mrb[10].mxu0 %v7893_v11 }
 0x3c2   :  { %3684 = vmatprep.mubr.f32.mxu0 %v8023_v6 }
 0x3c5   :  { %3685 = vmatmul.mubr.f32.gmra.mrb[12].mxu0 %v7908_v9 }
 0x3c6   :  { %3690 = vmatprep.mubr.f32.mxu0 %v8023_v6 }
 0x3c7   :  { %v8343_v4 = vpop.f32.mrb[248].mxu1 }
 0x3c8   :  { %v8346_v29 = vpop.f32.mrb[249].mxu1 }
 0x3c9   :  { %3691 = vmatmul.mubr.f32.gmra.mrb[14].mxu0 %v7923_v38 }
 0x3ca   :  { %3696 = vmatprep.mubr.f32.mxu0 %v8023_v6 }
 0x3cb   :  { %v8349_v21 = vpop.f32.mrb[250].mxu1 }
 0x3cc   :  { %v8352_v7 = vpop.f32.mrb[251].mxu1 }
 0x3cd   :  { %3697 = vmatmul.mubr.f32.gmra.mrb[58].mxu0 %v7939_v15 }
 0x3ce   :  { %3702 = vmatprep.mubr.f32.mxu0 %v8023_v6 }
 0x3cf   :  { %v8355_v34 = vpop.f32.mrb[252].mxu1 }
 0x3d0   :  { %v8358_v11 = vpop.f32.mrb[253].mxu1 }
 0x3d1   :  { %3703 = vmatmul.mubr.f32.gmra.mrb[60].mxu0 %v7955_v33 }
 0x3d2   :  { %3708 = vmatprep.mubr.f32.mxu0 %v8023_v6 }
 0x3d5   :  { %3709 = vmatmul.mubr.f32.gmra.mrb[62].mxu0 %v7971_v39 }
 0x3d6   :  { %3714 = vmatprep.mubr.f32.mxu0 %v8023_v6 }
 0x3d9   :  { %3715 = vmatmul.mubr.f32.gmra.mrb[64].mxu0 %v7981_v23 }
 0x3da   :  { %3720 = vmatprep.mubr.f32.mxu0 %v8023_v6 }
 0x3dd   :  { %3721 = vmatmul.mubr.f32.gmra.mrb[66].mxu0 %v7985_v60 }
 0x3de   :  { %3726 = vmatprep.mubr.f32.mxu0 %v8023_v6 }
 0x3e1   :  { %3727 = vmatmul.mubr.f32.gmra.mrb[68].mxu0 %v7990_v32 }
 0x3e2   :  { %3732 = vmatprep.mubr.f32.mxu0 %v8023_v6 }
 0x3e5   :  { %3733 = vmatmul.mubr.f32.gmra.mrb[70].mxu0 %v7994_v1 }
 0x3e6   :  { %3738 = vmatprep.mubr.f32.mxu0 %v8023_v6 }
 0x3e9   :  { %3739 = vmatmul.mubr.f32.gmra.mrb[72].mxu0 %v7998_v20  ;;  %v9470_v20 = vld [vmem:[#allocation25_spill] sm:$0xff] }
 0x3ea   :  { %3744 = vmatprep.mubr.f32.mxu0 %v8023_v6 }
 0x3ed   :  { %3745 = vmatmul.mubr.f32.gmra.mrb[74].mxu0 %v8002_v13 }
 0x3ee   :  { %3750 = vmatprep.mubr.f32.mxu0 %v8023_v6 }
 0x3f1   :  { %3751 = vmatmul.mubr.f32.gmra.mrb[76].mxu0 %v8006_v45 }
 0x3f2   :  { %3756 = vmatprep.mubr.f32.mxu0 %v8023_v6 }
 0x3f5   :  { %3757 = vmatmul.mubr.f32.gmra.mrb[78].mxu0 %v8012_v59  ;;  %v2048_v59 = vld [vmem:[#allocation4 + $0xfa] sm:$0xff] }
 0x3f6   :  { %3762 = vmatprep.mubr.f32.mxu0 %v8023_v6 }
 0x3f9   :  { %3763 = vmatmul.mubr.f32.gmra.mrb[80].mxu0 %v8021_v16  ;;  %v9471_v16 = vld [vmem:[#allocation26_spill] sm:$0xff] }
 0x3fa   :  { %3768 = vmatprep.mubr.f32.mxu0 %v8023_v6 }
 0x3fd   :  { %3769 = vmatmul.mubr.f32.gmra.mrb[82].mxu0 %v8032_v56  ;;  %v9472_v56 = vld [vmem:[#allocation27_spill] sm:$0xff] }
 0x3fe   :  { %3774 = vmatprep.mubr.f32.mxu0 %v8023_v6 }
 0x401   :  { %3775 = vmatmul.mubr.f32.gmra.mrb[84].mxu0 %v8037_v46 }
 0x402   :  { %3780 = vmatprep.mubr.f32.mxu0 %v8023_v6 }
 0x405   :  { %3781 = vmatmul.mubr.f32.gmra.mrb[86].mxu0 %v8044_v27  ;;  %v2049_v27 = vld [vmem:[#allocation4 + $0x102] sm:$0xff] }
 0x406   :  { %3786 = vmatprep.mubr.f32.mxu0 %v8023_v6 }
 0x409   :  { %3787 = vmatmul.mubr.f32.gmra.mrb[88].mxu0 %v8050_v43 }
 0x40a   :  { %3792 = vmatprep.mubr.f32.mxu0 %v8023_v6 }
 0x40c   :  { %v3220_v9 = vpop.f32.mrb[16].mxu0 }
 0x40d   :  { %v8384_v38 = vadd.f32 %v8010_v28, %v3220_v9  ;;  %v3222_v15 = vpop.f32.mrb[17].mxu0  ;;  %3793 = vmatmul.mubr.f32.gmra.mrb[90].mxu0 %v8058_v52 }
 0x40e   :  { %v8388_v33 = vadd.f32 %v8015_v47, %v3222_v15  ;;  %3798 = vmatprep.mubr.f32.mxu0 %v8023_v6  ;;  %v9478_v15 = vld [vmem:[#allocation8_spill] sm:$0xff] }
 0x410   :  { %v3226_v39 = vpop.f32.mrb[18].mxu0 }
 0x411   :  { %v8392_v23 = vadd.f32 %v8026_v12, %v3226_v39  ;;  %v3228_v60 = vpop.f32.mrb[19].mxu0  ;;  %3799 = vmatmul.mubr.f32.gmra.mrb[92].mxu0 %v8208_v55 }
 0x412   :  { %v8396_v32 = vadd.f32 %v8029_v63, %v3228_v60  ;;  %3804 = vmatprep.mubr.f32.mxu0 %v8023_v6  ;;  %v9480_v60 = vld [vmem:[#allocation9_spill] sm:$0xff] }
 0x414   :  { %v3232_v1 = vpop.f32.mrb[20].mxu0 }
 0x415   :  { %v8400_v13 = vadd.f32 %v9470_v20, %v3232_v1  ;;  %v3234_v45 = vpop.f32.mrb[21].mxu0  ;;  %3805 = vmatmul.mubr.f32.gmra.mrb[94].mxu0 %v8211_v61 }
 0x416   :  { %v8404_v28 = vadd.f32 %v8047_v41, %v3234_v45  ;;  %3810 = vmatprep.mubr.f32.mxu0 %v8023_v6  ;;  %v9482_v45 = vld [vmem:[#allocation10_spill] sm:$0xff] }
 0x418   :  { %v3238_v47 = vpop.f32.mrb[22].mxu0 }
 0x419   :  { %v8408_v12 = vadd.f32 %v9471_v16, %v3238_v47  ;;  %v3240_v63 = vpop.f32.mrb[23].mxu0  ;;  %3811 = vmatmul.mubr.f32.gmra.mrb[96].mxu0 %v2048_v59  ;;  %v9484_v16 = vld [vmem:[#allocation11_spill] sm:$0xff] }
 0x41a   :  { %v8411_v46 = vadd.f32 %v9472_v56, %v3240_v63  ;;  %3816 = vmatprep.mubr.f32.mxu0 %v8023_v6 }
 0x41c   :  { %v3244_v43 = vpop.f32.mrb[24].mxu0 }
 0x41d   :  { %v8415_v52 = vadd.f32 %v8065_v48, %v3244_v43  ;;  %v3246_v41 = vpop.f32.mrb[25].mxu0  ;;  %3817 = vmatmul.mubr.f32.gmra.mrb[98].mxu0 %v2049_v27  ;;  %v9486_v27 = vld [vmem:[#allocation12_spill] sm:$0xff] }
 0x41e   :  { %v8418_v8 = vadd.f32 %v8067_v54, %v3246_v41 }
 0x420   :  { %v3250_v55 = vpop.f32.mrb[26].mxu0 }
 0x421   :  { %v8421_v61 = vadd.f32 %v8072_v51, %v3250_v55  ;;  %v3252_v25 = vpop.f32.mrb[27].mxu0  ;;  %v9488_v55 = vld [vmem:[#allocation32_spill] sm:$0xff] }
 0x422   :  { %v8424_v24 = vadd.f32 %v8077_v17, %v3252_v25 }
 0x424   :  { %v3256_v49 = vpop.f32.mrb[28].mxu0 }
 0x425   :  { %v8427_v6 = vadd.f32 %v8088_v26, %v3256_v49  ;;  %v3258_v42 = vpop.f32.mrb[29].mxu0 }
 0x426   :  { %v8430_v48 = vadd.f32 %v8093_v36, %v3258_v42  ;;  %v9490_v42 = vld [vmem:[#allocation33_spill] sm:$0xff] }
 0x428   :  { %v3262_v31 = vpop.f32.mrb[30].mxu0 }
 0x429   :  { %v8433_v54 = vadd.f32 %v8100_v40, %v3262_v31  ;;  %v3264_v5 = vpop.f32.mrb[31].mxu0 }
 0x42a   :  { %v8436_v51 = vadd.f32 %v8103_v44, %v3264_v5 }
 0x42c   :  { %v3268_v57 = vpop.f32.mrb[32].mxu0 }
 0x42d   :  { %v8439_v17 = vadd.f32 %v8120_v58, %v3268_v57  ;;  %v3270_v10 = vpop.f32.mrb[33].mxu0  ;;  %v9492_v57 = vld [vmem:[#allocation34_spill] sm:$0xff] }
 0x42e   :  { %v8442_v26 = vadd.f32 %v8125_v3, %v3270_v10 }
 0x430   :  { %v3274_v2 = vpop.f32.mrb[34].mxu0 }
 0x431   :  { %v8445_v36 = vadd.f32 %v8132_v14, %v3274_v2  ;;  %v3276_v53 = vpop.f32.mrb[35].mxu0 }
 0x432   :  { %v8448_v40 = vadd.f32 %v8135_v19, %v3276_v53  ;;  %v9494_v53 = vld [vmem:[#allocation35_spill] sm:$0xff] }
 0x434   :  { %v3280_v30 = vpop.f32.mrb[36].mxu0 }
 0x435   :  { %v8451_v44 = vadd.f32 %v9473_v18, %v3280_v30  ;;  %v3282_v35 = vpop.f32.mrb[37].mxu0 }
 0x436   :  { %v8454_v58 = vadd.f32 %v9474_v22, %v3282_v35  ;;  %v9496_v35 = vld [vmem:[#allocation13_spill] sm:$0xff] }
 0x438   :  { %v3286_v37 = vpop.f32.mrb[38].mxu0 }
 0x439   :  { %v8457_v3 = vadd.f32 %v9475_v50, %v3286_v37  ;;  %v3288_v0 = vpop.f32.mrb[39].mxu0  ;;  %v9498_v50 = vld [vmem:[#allocation36_spill] sm:$0xff] }
 0x43a   :  { %v8460_v14 = vadd.f32 %v9476_v62, %v3288_v0 }
 0x43c   :  { %9477 = vst [vmem:[#allocation14_spill] sm:$0xff] %v8460_v14  ;;  %v3292_v9 = vpop.f32.mrb[40].mxu0 }
 0x43d   :  { %v8463_v19 = vadd.f32 %v9478_v15, %v3292_v9  ;;  %v3294_v39 = vpop.f32.mrb[41].mxu0  ;;  %v9500_v9 = vld [vmem:[#allocation37_spill] sm:$0xff] }
 0x43e   :  { %v8466_v1 = vadd.f32 %v9480_v60, %v3294_v39 }
 0x43f   :  { %9479 = vst [vmem:[#allocation15_spill] sm:$0xff] %v8463_v19 }
 0x440   :  { %9481 = vst [vmem:[#allocation16_spill] sm:$0xff] %v8466_v1  ;;  %v3298_v20 = vpop.f32.mrb[42].mxu0 }
 0x441   :  { %v8469_v59 = vadd.f32 %v9482_v45, %v3298_v20  ;;  %v3300_v47 = vpop.f32.mrb[43].mxu0 }
 0x442   :  { %v8472_v63 = vadd.f32 %v9484_v16, %v3300_v47 }
 0x443   :  { %9483 = vst [vmem:[#allocation17_spill] sm:$0xff] %v8469_v59 }
 0x444   :  { %9485 = vst [vmem:[#allocation18_spill] sm:$0xff] %v8472_v63  ;;  %v3304_v56 = vpop.f32.mrb[44].mxu0 }
 0x445   :  { %v8475_v43 = vadd.f32 %v9486_v27, %v3304_v56  ;;  %v3306_v41 = vpop.f32.mrb[45].mxu0 }
 0x446   :  { %v8478_v25 = vadd.f32 %v9488_v55, %v3306_v41 }
 0x447   :  { %9487 = vst [vmem:[#allocation19_spill] sm:$0xff] %v8475_v43 }
 0x448   :  { %9489 = vst [vmem:[#allocation20_spill] sm:$0xff] %v8478_v25  ;;  %v3310_v49 = vpop.f32.mrb[46].mxu0 }
 0x449   :  { %v8481_v31 = vadd.f32 %v9490_v42, %v3310_v49  ;;  %v3312_v5 = vpop.f32.mrb[47].mxu0 }
 0x44a   :  { %v8484_v10 = vadd.f32 %v9492_v57, %v3312_v5 }
 0x44b   :  { %9491 = vst [vmem:[#allocation21_spill] sm:$0xff] %v8481_v31 }
 0x44c   :  { %9493 = vst [vmem:[#allocation22_spill] sm:$0xff] %v8484_v10  ;;  %v3316_v2 = vpop.f32.mrb[48].mxu0 }
 0x44d   :  { %v8487_v30 = vadd.f32 %v9494_v53, %v3316_v2  ;;  %v3318_v18 = vpop.f32.mrb[49].mxu0 }
 0x44e   :  { %v8490_v22 = vadd.f32 %v9496_v35, %v3318_v18 }
 0x44f   :  { %9495 = vst [vmem:[#allocation23_spill] sm:$0xff] %v8487_v30 }
 0x450   :  { %9497 = vst [vmem:[#allocation24_spill] sm:$0xff] %v8490_v22  ;;  %v3322_v37 = vpop.f32.mrb[50].mxu0 }
 0x451   :  { %v8493_v0 = vadd.f32 %v9498_v50, %v3322_v37  ;;  %v3324_v62 = vpop.f32.mrb[51].mxu0 }
 0x452   :  { %v8496_v15 = vadd.f32 %v9500_v9, %v3324_v62 }
 0x453   :  { %9499 = vst [vmem:[#allocation25_spill] sm:$0xff] %v8493_v0 }
 0x454   :  { %9501 = vst [vmem:[#allocation26_spill] sm:$0xff] %v8496_v15  ;;  %v3328_v39 = vpop.f32.mrb[52].mxu0 }
 0x455   :  { %v8499_v60 = vadd.f32 %v8343_v4, %v3328_v39  ;;  %v3330_v20 = vpop.f32.mrb[53].mxu0 }
 0x456   :  { %v8502_v45 = vadd.f32 %v8346_v29, %v3330_v20 }
 0x457   :  { %9502 = vst [vmem:[#allocation27_spill] sm:$0xff] %v8499_v60 }
 0x458   :  { %9503 = vst [vmem:[#allocation28_spill] sm:$0xff] %v8502_v45  ;;  %v3334_v47 = vpop.f32.mrb[54].mxu0 }
 0x459   :  { %v8505_v16 = vadd.f32 %v8349_v21, %v3334_v47  ;;  %v3336_v56 = vpop.f32.mrb[55].mxu0 }
 0x45a   :  { %v8508_v27 = vadd.f32 %v8352_v7, %v3336_v56  ;;  %v4037_v7 = vlaneseq }
 0x45b   :  { %9504 = vst [vmem:[#allocation29_spill] sm:$0xff] %v8505_v16 }
 0x45c   :  { %9505 = vst [vmem:[#allocation30_spill] sm:$0xff] %v8508_v27  ;;  %v3340_v41 = vpop.f32.mrb[56].mxu0  ;;  %v4038_v20 = vshrl.u32 %v4037_v7, 7 }
 0x45d   :  { %v8511_v55 = vadd.f32 %v8355_v34, %v3340_v41  ;;  %v3342_v49 = vpop.f32.mrb[57].mxu0 }
 0x45e   :  { %v8514_v4 = vadd.f32 %v8358_v11, %v3342_v49  ;;  %v4039_v45 = vsub.s32 0, %v4038_v20 }
 0x45f   :  { %9506 = vst [vmem:[#allocation31_spill] sm:$0xff] %v8511_v55 }
 0x460   :  { %9507 = vst [vmem:[#allocation8_spill] sm:$0xff] %v8514_v4 }
 0x480   :  { %v8516_v42 = vpop.f32.mrb[0].mxu0 }
 0x481   :  { %3823 = vst [vmem:[#allocation6] sm:$0xff] %v8516_v42  ;;  %v8519_v29 = vpop.f32.mrb[1].mxu0 }
 0x482   :  { %3824 = vst [vmem:[#allocation6 + $0x8] sm:$0xff] %v8519_v29 }
 0x484   :  { %v3656_v21 = vpop.f32.mrb[2].mxu0 }
 0x485   :  { %v8522_v5 = vpop.f32.mrb[3].mxu0  ;;  %v3915_v11 = vrot.slane %v3656_v21, 1 }
 0x486   :  { %v3918_v50 = vrot.slane %v8522_v5, 1 }
 0x488   :  { %v3895_v57 = vld [vmem:[#allocation6] sm:$0xfe]  ;;  %v8524_v34 = vpop.f32.mrb[4].mxu0 }
 0x489   :  { %v3914_v2 = vrot.slane %v3895_v57, 1  ;;  %v3896_v53 = vld [vmem:[#allocation6 + $0x8] sm:$0xfe]  ;;  %3827 = vst [vmem:[#allocation6 + $0x20] sm:$0xff] %v8524_v34  ;;  %v3920_v18 = vrot.slane %v8524_v34, 1  ;;  %v8528_v35 = vpop.f32.mrb[5].mxu0 }
 0x48a   :  { %v3917_v37 = vrot.slane %v3896_v53, 1  ;;  %3828 = vst [vmem:[#allocation6 + $0x28] sm:$0xff] %v8528_v35  ;;  %v3922_v62 = vrot.slane %v8528_v35, 1 }
 0x48b   :  { %v3916_v9 = vsel %vm3913_vm2, %v3914_v2, %v3915_v11  ;;  %v3921_v39 = vsel %vm3913_vm2, %v3915_v11, %v3920_v18 }
 0x48c   :  { %v3954_v47 = vmax.f32 %v8516_v42, %v3916_v9  ;;  %v3919_v56 = vsel %vm3913_vm2, %v3917_v37, %v3918_v50  ;;  %v3956_v41 = vmax.f32 %v3656_v21, %v3921_v39  ;;  %v3923_v49 = vsel %vm3913_vm2, %v3918_v50, %v3922_v62  ;;  %v3668_v57 = vpop.f32.mrb[6].mxu0  ;;  %v27_v21 = vld [vmem:[%s9388_s5] sm:$0x3] }
 0x48d   :  { %v3955_v53 = vmax.f32 %v8519_v29, %v3919_v56  ;;  %v3957_v4 = vmax.f32 %v8522_v5, %v3923_v49  ;;  %v3924_v55 = vrot.slane %v3668_v57, 1  ;;  %v3670_v27 = vpop.f32.mrb[7].mxu0  ;;  %v4043_v56 = vsub.s32 1, %v4038_v20 }
 0x48e   :  { %v3926_v16 = vrot.slane %v3670_v27, 1  ;;  %v8549_v15 = vrot.slane %v27_v21, %v4039_v45 }
 0x48f   :  { %v3925_v2 = vsel %vm3913_vm2, %v3920_v18, %v3924_v55 }
 0x490   :  { %v3974_v11 = vld [vmem:[#allocation6 + $0x20] sm:$0xfe]  ;;  %v3958_v7 = vmax.f32 %v8524_v34, %v3925_v2  ;;  %v3927_v42 = vsel %vm3913_vm2, %v3922_v62, %v3926_v16  ;;  %v3674_v37 = vpop.f32.mrb[8].mxu0 }
 0x491   :  { %v3986_v50 = vrot.slane %v3974_v11, 1  ;;  %v3975_v29 = vld [vmem:[#allocation6 + $0x28] sm:$0xfe]  ;;  %v3959_v5 = vmax.f32 %v8528_v35, %v3927_v42  ;;  %v3928_v9 = vrot.slane %v3674_v37, 1  ;;  %v3676_v39 = vpop.f32.mrb[9].mxu0 }
 0x492   :  { %v3988_v49 = vrot.slane %v3975_v29, 1  ;;  %v3930_v18 = vrot.slane %v3676_v39, 1 }
 0x493   :  { %v3987_v60 = vsel %vm3913_vm2, %v3986_v50, %v3924_v55  ;;  %v3929_v2 = vsel %vm3913_vm2, %v3924_v55, %v3928_v9  ;;  %v8562_v55 = vrot.slane %v27_v21, %v4043_v56 }
 0x494   :  { %v4012_v62 = vmax.f32 %v8524_v34, %v3987_v60  ;;  %v3989_v0 = vsel %vm3913_vm2, %v3988_v49, %v3926_v16  ;;  %v3960_v22 = vmax.f32 %v3668_v57, %v3929_v2  ;;  %v3931_v11 = vsel %vm3913_vm2, %v3926_v16, %v3930_v18  ;;  %v8554_v30 = vpop.f32.mrb[10].mxu0 }
 0x495   :  { %v4013_v42 = vmax.f32 %v8528_v35, %v3989_v0  ;;  %v3961_v20 = vmax.f32 %v3670_v27, %v3931_v11  ;;  %v8558_v29 = vrot.slane %v8554_v30, 1  ;;  %v8560_v50 = vpop.f32.mrb[11].mxu0 }
 0x496   :  { %v4022_v45 = vmax.f32 %v3954_v47, %v4012_v62  ;;  %v4024_v10 = vmax.f32 %v3956_v41, %v3960_v22  ;;  %v8565_v60 = vrot.slane %v8560_v50, 1 }
 0x497   :  { %v3933_v16 = vsel %vm3913_vm2, %v3928_v9, %v8558_v29  ;;  %v4023_v34 = vmax.f32 %v3955_v53, %v4013_v42  ;;  %v4025_v57 = vmax.f32 %v3957_v4, %v3961_v20 }
 0x498   :  { %v3962_v49 = vmax.f32 %v3674_v37, %v3933_v16  ;;  %v3935_v0 = vsel %vm3913_vm2, %v3930_v18, %v8565_v60  ;;  %v3686_v27 = vpop.f32.mrb[12].mxu0  ;;  %v4047_v35 = vadd.f32 %v8549_v15, %v4022_v45  ;;  %v4049_v21 = vadd.f32 %v8549_v15, %v4024_v10 }
 0x499   :  { %v8573_v56 = vmax.f32 %v3676_v39, %v3935_v0  ;;  %3835 = vst [vmem:[#allocation6 + $0x60] sm:$0xff] %v3686_v27  ;;  %v3990_v47 = vrot.slane %v3686_v27, 1  ;;  %v8575_v41 = vpop.f32.mrb[13].mxu0  ;;  %v4048_v2 = vadd.f32 %v8562_v55, %v4023_v34  ;;  %v4050_v53 = vadd.f32 %v8562_v55, %v4025_v57  ;;  %v4728_v57 = vld [vmem:[%s9389_s6 + $0x8] sm:$0xff] }
 0x49a   :  { %v4026_v4 = vmax.f32 %v3958_v7, %v3962_v49  ;;  %3836 = vst [vmem:[#allocation6 + $0x68] sm:$0xff] %v8575_v41  ;;  %v3992_v37 = vrot.slane %v8575_v41, 1  ;;  %v4061_v9 = vmax.f32 %v4047_v35, 0.0  ;;  %v4063_v18 = vmax.f32 %v4049_v21, 0.0  ;;  %5047 = vmatprep.mubr.msk.f32.mxu1 %vm4793_vm3, %v4728_v57 }
 0x49b   :  { %v3991_v10 = vsel %vm3913_vm2, %v8558_v29, %v3990_v47  ;;  %v4062_v39 = vmax.f32 %v4048_v2, 0.0  ;;  %v4064_v62 = vmax.f32 %v4050_v53, 0.0  ;;  %v4027_v11 = vmax.f32 %v3959_v5, %v8573_v56 }
 0x49c   :  { %v4014_v42 = vmax.f32 %v8554_v30, %v3991_v10  ;;  %v3993_v45 = vsel %vm3913_vm2, %v8565_v60, %v3992_v37  ;;  %v8587_v16 = vpop.f32.mrb[14].mxu0  ;;  %v5846_v7 = vpack.c.bf16 %v4063_v18, %v4061_v9  ;;  %v8590_v34 = vadd.f32 %v8549_v15, %v4026_v4 }
 0x49d   :  { %v4015_v0 = vmax.f32 %v8560_v50, %v3993_v45  ;;  %v8597_v35 = vrot.slane %v8587_v16, 1  ;;  %v8599_v5 = vpop.f32.mrb[15].mxu0  ;;  %v5844_v21 = vpack.c.bf16 %v4064_v62, %v4062_v39  ;;  %v4052_v2 = vadd.f32 %v8562_v55, %v4027_v11 }
 0x49e   :  { %v4028_v53 = vmax.f32 %v3960_v22, %v4014_v42  ;;  %v8603_v9 = vrot.slane %v8599_v5, 1  ;;  %v4065_v4 = vmax.f32 %v8590_v34, 0.0 }
 0x49f   :  { %v3995_v18 = vsel %vm3913_vm2, %v3990_v47, %v8597_v35  ;;  %5845 = vmatprep.subr.bf16.mxu1 %v5844_v21  ;;  %v4029_v10 = vmax.f32 %v3961_v20, %v4015_v0  ;;  %v4066_v45 = vmax.f32 %v4052_v2, 0.0 }
 0x4a0   :  { %v3897_v31 = vld [vmem:[#allocation6 + $0x60] sm:$0x1f]  ;;  %v4016_v25 = vmax.f32 %v3686_v27, %v3995_v18  ;;  %v3997_v39 = vsel %vm3913_vm2, %v3992_v37, %v8603_v9  ;;  %5847 = vmatpush1.bf16.msra.mxu1 %v5846_v7  ;;  %v4103_v62 = vld [vmem:[#allocation6 + $0x60] sm:$0xe0]  ;;  %v3698_v42 = vpop.f32.mrb[58].mxu0 }
 0x4a1   :  { %v3936_v22 = vrot.slane %v3897_v31, 1  ;;  %v4017_v11 = vmax.f32 %v8575_v41, %v3997_v39  ;;  %v4123_v34 = vrot.slane %v4103_v62, 1  ;;  %v3898_v43 = vld [vmem:[#allocation6 + $0x68] sm:$0x1f]  ;;  %v8613_v47 = vadd.f32 %v8384_v38, %v3698_v42  ;;  %v3700_v20 = vpop.f32.mrb[59].mxu0 }
 0x4a2   :  { %v4030_v63 = vmax.f32 %v3962_v49, %v4016_v25  ;;  %v3938_v27 = vrot.slane %v3898_v43, 1  ;;  %v4104_v0 = vld [vmem:[#allocation6 + $0x68] sm:$0xe0]  ;;  %v8620_v37 = vadd.f32 %v8388_v33, %v3700_v20  ;;  %v3893_v31 = vld [vmem:[#allocation6 + $0x60] sm:$0xf]  ;;  %v4054_v25 = vadd.f32 %v8562_v55, %v4029_v10 }
 0x4a3   :  { %v8617_v57 = vsel %vm3913_vm2, %v8558_v29, %v3936_v22  ;;  %3839 = vst [vmem:[#allocation6 + $0x80] sm:$0xff] %v8613_v47  ;;  %v4129_v41 = vrot.slane %v8613_v47, 1  ;;  %v4053_v38 = vadd.f32 %v8549_v15, %v4028_v53  ;;  %v8628_v29 = vmax.f32 %v3893_v31, %v3936_v22  ;;  %v3894_v2 = vld [vmem:[#allocation6 + $0x68] sm:$0xf]  ;;  %v8675_v59 = vld [vmem:[#allocation6 + $0x68] sm:$0xf0] }
 0x4a4   :  { %9508 = vst [vmem:[#allocation9_spill] sm:$0xff] %v8620_v37  ;;  %v3704_v7 = vpop.f32.mrb[60].mxu0  ;;  %v4126_v43 = vrot.slane %v4104_v0, 1  ;;  %3840 = vst [vmem:[#allocation6 + $0x88] sm:$0xff] %v8620_v37  ;;  %v4131_v33 = vrot.slane %v8620_v37, 1  ;;  %v8634_v18 = vsel %vm3913_vm2, %v8565_v60, %v3938_v27  ;;  %v8638_v10 = vsel %vm3913_vm2, %v4123_v34, %v8597_v35 }
 0x4a5   :  { %v3706_v21 = vpop.f32.mrb[61].mxu0  ;;  %v8642_v53 = vsel %vm3913_vm2, %v8597_v35, %v4129_v41  ;;  %v5933_v39 = vadd.f32 %v8392_v23, %v3704_v7  ;;  %v8645_v22 = vmax.f32 %v3894_v2, %v3938_v27  ;;  %v4068_v31 = vmax.f32 %v4054_v25, 0.0 }
 0x4a6   :  { %v4169_v62 = vmax.f32 %v8587_v16, %v8642_v53  ;;  %v8651_v42 = vsel %vm3913_vm2, %v8603_v9, %v4131_v33  ;;  %v8654_v60 = vadd.f32 %v8396_v32, %v3706_v21  ;;  %v4067_v49 = vmax.f32 %v4053_v38, 0.0  ;;  %v4089_v21 = vld [vmem:[#allocation6 + $0x60] sm:$0xf0] }
 0x4a7   :  { %v4133_v20 = vrot.slane %v5933_v39, 1  ;;  %v8660_v23 = vsel %vm3913_vm2, %v4126_v43, %v8603_v9  ;;  %v4031_v32 = vmax.f32 %v8573_v56, %v4017_v11  ;;  %v5848_v25 = vpack.c.bf16 %v4068_v31, %v4066_v45 }
 0x4a8   :  { %v3710_v0 = vpop.f32.mrb[62].mxu0  ;;  %v4135_v27 = vrot.slane %v8654_v60, 1  ;;  %v5850_v38 = vpack.c.bf16 %v4067_v49, %v4065_v4  ;;  %v3965_v43 = vmax.f32 %v8560_v50, %v8634_v18 }
 0x4a9   :  { %v8664_v7 = vadd.f32 %v8400_v13, %v3710_v0  ;;  %v3712_v2 = vpop.f32.mrb[63].mxu0  ;;  %v8668_v53 = vsel %vm3913_vm2, %v4129_v41, %v4133_v20  ;;  %v4167_v13 = vmax.f32 %v4089_v21, %v8638_v10  ;;  %5849 = vmatprep.subr.bf16.mxu1 %v5848_v25 }
 0x4aa   :  { %v8671_v34 = vadd.f32 %v8404_v28, %v3712_v2  ;;  %v3976_v0 = vld [vmem:[#allocation6 + $0x80] sm:$0x1f]  ;;  %v8681_v11 = vsel %vm3913_vm2, %v4131_v33, %v4135_v27  ;;  %v4187_v45 = vld [vmem:[#allocation6 + $0x80] sm:$0xe0]  ;;  %5851 = vmatpush1.bf16.msra.mxu1 %v5850_v38  ;;  %v8690_v33 = vadd.f32 %v8562_v55, %v4031_v32  ;;  %v8693_v2 = vadd.f32 %v8549_v15, %v4030_v63 }
 0x4ab   :  { %9509 = vst [vmem:[#allocation10_spill] sm:$0xff] %v8681_v11  ;;  %v3998_v41 = vrot.slane %v3976_v0, 1  ;;  %v4137_v50 = vrot.slane %v8664_v7, 1  ;;  %v3972_v49 = vld [vmem:[#allocation6 + $0x80] sm:$0xf]  ;;  %v4199_v18 = vrot.slane %v4187_v45, 1 }
 0x4ac   :  { %v3977_v10 = vld [vmem:[#allocation6 + $0x88] sm:$0x1f]  ;;  %v4139_v31 = vrot.slane %v8671_v34, 1  ;;  %v4188_v28 = vld [vmem:[#allocation6 + $0x88] sm:$0xe0]  ;;  %v3716_v56 = vpop.f32.mrb[64].mxu0 }
 0x4ad   :  { %v3999_v21 = vsel %vm3913_vm2, %v8597_v35, %v3998_v41  ;;  %v4020_v0 = vmax.f32 %v3972_v49, %v3998_v41  ;;  %v4000_v4 = vrot.slane %v3977_v10, 1  ;;  %v4138_v25 = vsel %vm3913_vm2, %v4133_v20, %v4137_v50  ;;  %v4181_v1 = vld [vmem:[#allocation6 + $0x80] sm:$0xf0]  ;;  %v3973_v19 = vld [vmem:[#allocation6 + $0x88] sm:$0xf]  ;;  %v3718_v63 = vpop.f32.mrb[65].mxu0 }
 0x4ae   :  { %v4018_v45 = vmax.f32 %v8587_v16, %v3999_v21  ;;  %v4201_v38 = vrot.slane %v4188_v28, 1  ;;  %v4200_v32 = vsel %vm3913_vm2, %v4199_v18, %v4133_v20  ;;  %v8700_v11 = vmax.f32 %v5933_v39, %v4138_v25  ;;  %v8711_v14 = vld [vmem:[#allocation6 + $0x88] sm:$0xf0] }
 0x4af   :  { %v4034_v37 = vmax.f32 %v8628_v29, %v4020_v0  ;;  %v4001_v35 = vsel %vm3913_vm2, %v8603_v9, %v4000_v4  ;;  %v8705_v41 = vmax.f32 %v3973_v19, %v4000_v4  ;;  %v4223_v49 = vmax.f32 %v4181_v1, %v4200_v32 }
 0x4b0   :  { %v3722_v10 = vpop.f32.mrb[66].mxu0  ;;  %v9510_v16 = vmax.f32 %v8554_v30, %v8617_v57  ;;  %v4019_v28 = vmax.f32 %v8599_v5, %v4001_v35  ;;  %v8714_v39 = vsel %vm3913_vm2, %v4201_v38, %v4135_v27  ;;  %v8717_v29 = vmax.f32 %v4169_v62, %v8700_v11 }
 0x4b1   :  { %v3724_v20 = vpop.f32.mrb[67].mxu0  ;;  %v4059_v19 = vadd.f32 %v8549_v15, %v4034_v37  ;;  %v4035_v1 = vmax.f32 %v8645_v22, %v8705_v41  ;;  %v8722_v9 = vmax.f32 %v4167_v13, %v4223_v49  ;;  %v4224_v30 = vmax.f32 %v8711_v14, %v8714_v39 }
 0x4b2   :  { %v4032_v21 = vmax.f32 %v9510_v16, %v4018_v45  ;;  %v4140_v57 = vsel %vm3913_vm2, %v4135_v27, %v4139_v31  ;;  %v5941_v4 = vadd.f32 %v8408_v12, %v3716_v56  ;;  %v5943_v18 = vadd.f32 %v8411_v46, %v3718_v63 }
 0x4b3   :  { %v8730_v62 = vadd.f32 %v8415_v52, %v3722_v10  ;;  %v4073_v0 = vmax.f32 %v4059_v19, 0.0  ;;  %v8733_v37 = vmax.f32 %v8654_v60, %v4140_v57  ;;  %v8736_v22 = vadd.f32 %v8418_v8, %v3724_v20 }
 0x4b4   :  { %v3728_v13 = vpop.f32.mrb[68].mxu0  ;;  %v4033_v25 = vmax.f32 %v3965_v43, %v4019_v28  ;;  %v4141_v45 = vrot.slane %v5941_v4, 1  ;;  %v4143_v38 = vrot.slane %v5943_v18, 1  ;;  %v4070_v43 = vmax.f32 %v8690_v33, 0.0 }
 0x4b5   :  { %v8739_v27 = vrot.slane %v8730_v62, 1  ;;  %v8742_v12 = vadd.f32 %v8421_v61, %v3728_v13  ;;  %v3730_v46 = vpop.f32.mrb[69].mxu0  ;;  %4087 = vst [vmem:[#allocation7 + $0x60] sm:$0xf] %v4073_v0  ;;  %v8745_v52 = vrot.slane %v8736_v22, 1  ;;  %v9511_v16 = vmax.f32 %v8613_v47, %v8668_v53 }
 0x4b6   :  { %v8748_v60 = vadd.f32 %v8424_v24, %v3730_v46  ;;  %v4058_v8 = vadd.f32 %v8562_v55, %v4033_v25  ;;  %v4142_v56 = vsel %vm3913_vm2, %v4137_v50, %v4141_v45  ;;  %v4144_v32 = vsel %vm3913_vm2, %v4139_v31, %v4143_v38 }
 0x4b7   :  { %v4146_v61 = vsel %vm3913_vm2, %v4141_v45, %v8739_v27  ;;  %3849 = vst [vmem:[#allocation6 + $0xd0] sm:$0xff] %v8742_v12  ;;  %v4203_v63 = vrot.slane %v8742_v12, 1  ;;  %v4175_v35 = vmax.f32 %v8664_v7, %v4142_v56  ;;  %v8760_v24 = vmax.f32 %v8671_v34, %v4144_v32 }
 0x4b8   :  { %v8762_v41 = vmax.f32 %v5941_v4, %v4146_v61  ;;  %v4148_v33 = vsel %vm3913_vm2, %v4143_v38, %v8745_v52  ;;  %3850 = vst [vmem:[#allocation6 + $0xd8] sm:$0xff] %v8748_v60  ;;  %v3734_v50 = vpop.f32.mrb[70].mxu0  ;;  %v4205_v10 = vrot.slane %v8748_v60, 1  ;;  %v4057_v47 = vadd.f32 %v8549_v15, %v4032_v21 }
 0x4b9   :  { %v8767_v31 = vmax.f32 %v5943_v18, %v4148_v33  ;;  %v4204_v49 = vsel %vm3913_vm2, %v8739_v27, %v4203_v63  ;;  %v8773_v7 = vadd.f32 %v8427_v6, %v3734_v50  ;;  %v3736_v34 = vpop.f32.mrb[71].mxu0  ;;  %v8778_v28 = vmax.f32 %v9511_v16, %v4175_v35 }
 0x4ba   :  { %v4237_v20 = vmax.f32 %v8700_v11, %v8762_v41  ;;  %v4225_v19 = vmax.f32 %v8730_v62, %v4204_v49  ;;  %v8784_v57 = vadd.f32 %v8430_v48, %v3736_v34  ;;  %v8788_v4 = vsel %vm3913_vm2, %v8745_v52, %v4205_v10 }
 0x4bb   :  { %v8791_v6 = vrot.slane %v8773_v7, 1  ;;  %v4072_v18 = vmax.f32 %v4058_v8, 0.0  ;;  %v4226_v0 = vmax.f32 %v8736_v22, %v8788_v4  ;;  %v4069_v25 = vmax.f32 %v8693_v2, 0.0 }
 0x4bc   :  { %v8794_v53 = vmax.f32 %v4175_v35, %v4225_v19  ;;  %v8799_v13 = vrot.slane %v8784_v57, 1  ;;  %v3740_v48 = vpop.f32.mrb[72].mxu0  ;;  %v4071_v21 = vmax.f32 %v4057_v47, 0.0  ;;  %v4060_v2 = vadd.f32 %v8562_v55, %v4035_v1 }
 0x4bd   :  { %v4208_v45 = vsel %vm3913_vm2, %v4203_v63, %v8791_v6  ;;  %v8805_v38 = vadd.f32 %v8433_v54, %v3740_v48  ;;  %v3742_v46 = vpop.f32.mrb[73].mxu0  ;;  %v5852_v8 = vpack.c.bf16 %v4072_v18, %v4070_v43  ;;  %v4245_v14 = vadd.f32 %v8722_v9, %v8549_v15 }
 0x4be   :  { %v4105_v56 = vld [vmem:[#allocation6 + $0xd0] sm:$0x1]  ;;  %v4301_v32 = vld [vmem:[#allocation6 + $0xd0] sm:$0xfe]  ;;  %v4227_v61 = vmax.f32 %v8742_v12, %v4208_v45  ;;  %v8810_v35 = vsel %vm3913_vm2, %v4205_v10, %v8799_v13  ;;  %v8813_v33 = vadd.f32 %v8436_v51, %v3742_v46  ;;  %v5854_v34 = vpack.c.bf16 %v4071_v21, %v4069_v25 }
 0x4bf   :  { %v4149_v63 = vrot.slane %v4105_v56, 1  ;;  %v4319_v50 = vrot.slane %v4301_v32, 1  ;;  %v4106_v54 = vld [vmem:[#allocation6 + $0xd8] sm:$0x1]  ;;  %v4302_v49 = vld [vmem:[#allocation6 + $0xd8] sm:$0xfe]  ;;  %5853 = vmatprep.subr.bf16.mxu1 %v5852_v8 }
 0x4c0   :  { %3853 = vst [vmem:[#allocation6 + $0xf0] sm:$0xff] %v8805_v38  ;;  %v4151_v16 = vrot.slane %v4106_v54, 1  ;;  %v4322_v19 = vrot.slane %v4302_v49, 1  ;;  %v8820_v10 = vmax.f32 %v8762_v41, %v4227_v61  ;;  %v4325_v51 = vrot.slane %v8805_v38, 1  ;;  %3854 = vst [vmem:[#allocation6 + $0xf8] sm:$0xff] %v8813_v33  ;;  %v3746_v1 = vpop.f32.mrb[74].mxu0  ;;  %5855 = vmatpush1.bf16.msra.mxu1 %v5854_v34 }
 0x4c1   :  { %v4150_v18 = vsel %vm3913_vm2, %v8739_v27, %v4149_v63  ;;  %v4321_v47 = vsel %vm3913_vm2, %v4319_v50, %v8791_v6  ;;  %v4327_v48 = vrot.slane %v8813_v33, 1  ;;  %v5961_v25 = vadd.f32 %v8439_v17, %v3746_v1  ;;  %v3748_v45 = vpop.f32.mrb[75].mxu0 }
 0x4c2   :  { %v4179_v46 = vmax.f32 %v8730_v62, %v4150_v18  ;;  %v8833_v8 = vsel %vm3913_vm2, %v8745_v52, %v4151_v16  ;;  %v4359_v21 = vmax.f32 %v8742_v12, %v4321_v47  ;;  %v8838_v27 = vsel %vm3913_vm2, %v4322_v19, %v8799_v13 }
 0x4c3   :  { %v4326_v32 = vsel %vm3913_vm2, %v8791_v6, %v4325_v51  ;;  %v8848_v62 = vsel %vm3913_vm2, %v8799_v13, %v4327_v48  ;;  %v4329_v61 = vrot.slane %v5961_v25, 1  ;;  %v5963_v63 = vadd.f32 %v8442_v26, %v3748_v45 }
 0x4c4   :  { %v4361_v52 = vmax.f32 %v8773_v7, %v4326_v32  ;;  %v3752_v50 = vpop.f32.mrb[76].mxu0  ;;  %v4074_v34 = vmax.f32 %v4060_v2, 0.0  ;;  %v9512_v16 = vmax.f32 %v8675_v59, %v8660_v23  ;;  %v9513_v1 = vmax.f32 %v8599_v5, %v8651_v42 }
 0x4c5   :  { %v8855_v54 = vadd.f32 %v8445_v36, %v3752_v50  ;;  %v3754_v49 = vpop.f32.mrb[77].mxu0  ;;  %v8868_v45 = vsel %vm3913_vm2, %v4325_v51, %v4329_v61  ;;  %v4331_v36 = vrot.slane %v5963_v63, 1 }
 0x4c6   :  { %v4232_v19 = vmax.f32 %v9512_v16, %v4224_v30  ;;  %v4234_v18 = vmax.f32 %v9513_v1, %v8733_v37  ;;  %v5967_v2 = vadd.f32 %v8448_v40, %v3754_v49  ;;  %v4363_v30 = vmax.f32 %v8805_v38, %v8868_v45  ;;  %4088 = vst [vmem:[#allocation7 + $0x68] sm:$0xf] %v4074_v34 }
 0x4c7   :  { %v4189_v47 = vld [vmem:[#allocation6 + $0xf0] sm:$0x1]  ;;  %v4379_v26 = vld [vmem:[#allocation6 + $0xf0] sm:$0xfe]  ;;  %v4190_v59 = vld [vmem:[#allocation6 + $0xf8] sm:$0x1]  ;;  %v8877_v51 = vsel %vm3913_vm2, %v4327_v48, %v4331_v36 }
 0x4c8   :  { %v4211_v39 = vrot.slane %v4189_v47, 1  ;;  %v4391_v32 = vrot.slane %v4379_v26, 1  ;;  %v4380_v23 = vld [vmem:[#allocation6 + $0xf8] sm:$0xfe]  ;;  %v4246_v5 = vadd.f32 %v4232_v19, %v8562_v55  ;;  %v4213_v42 = vrot.slane %v4190_v59, 1  ;;  %v3758_v49 = vpop.f32.mrb[78].mxu0 }
 0x4c9   :  { %v4393_v50 = vrot.slane %v4380_v23, 1  ;;  %v4333_v40 = vrot.slane %v8855_v54, 1  ;;  %v4335_v47 = vrot.slane %v5967_v2, 1  ;;  %v3760_v34 = vpop.f32.mrb[79].mxu0 }
 0x4ca   :  { %v4212_v9 = vsel %vm3913_vm2, %v8791_v6, %v4211_v39  ;;  %v4392_v16 = vsel %vm3913_vm2, %v4391_v32, %v4329_v61  ;;  %v8888_v26 = vsel %vm3913_vm2, %v8799_v13, %v4213_v42  ;;  %v4260_v1 = vmax.f32 %v4246_v5, 0.0  ;;  %v9522_v39 = vld [vmem:[#allocation17_spill] sm:$0xff] }
 0x4cb   :  { %v4229_v19 = vmax.f32 %v8773_v7, %v4212_v9  ;;  %v4417_v48 = vmax.f32 %v8805_v38, %v4392_v16  ;;  %v8892_v45 = vsel %vm3913_vm2, %v4393_v50, %v4331_v36  ;;  %v4334_v32 = vsel %vm3913_vm2, %v4329_v61, %v4333_v40 }
 0x4cc   :  { %v4336_v59 = vsel %vm3913_vm2, %v4331_v36, %v4335_v47  ;;  %v4365_v13 = vmax.f32 %v5961_v25, %v4334_v32  ;;  %v3764_v38 = vpop.f32.mrb[80].mxu0  ;;  %v8907_v50 = vadd.f32 %v8451_v44, %v3758_v49  ;;  %v8910_v9 = vadd.f32 %v8454_v58, %v3760_v34  ;;  %4274 = vst [vmem:[#allocation7 + $0x68] sm:$0xf0] %v4260_v1  ;;  %v9514_v36 = vld [vmem:[#allocation14_spill] sm:$0xff] }
 0x4cd   :  { %v8900_v7 = vmax.f32 %v4179_v46, %v4229_v19  ;;  %v8902_v23 = vmax.f32 %v4359_v21, %v4417_v48  ;;  %v8904_v42 = vmax.f32 %v5963_v63, %v4336_v59  ;;  %v4248_v16 = vadd.f32 %v4234_v18, %v8562_v55  ;;  %v3766_v61 = vpop.f32.mrb[81].mxu0  ;;  %v9518_v59 = vld [vmem:[#allocation15_spill] sm:$0xff] }
 0x4ce   :  { %v8913_v12 = vmax.f32 %v4361_v52, %v4365_v13  ;;  %v4247_v46 = vadd.f32 %v8717_v29, %v8549_v15  ;;  %v4259_v21 = vmax.f32 %v4245_v14, 0.0  ;;  %v5973_v25 = vadd.f32 %v8457_v3, %v3764_v38  ;;  %v9515_v29 = vld [vmem:[#allocation9_spill] sm:$0xff]  ;;  %v9516_v14 = vld [vmem:[#allocation10_spill] sm:$0xff] }
 0x4cf   :  { %v8919_v63 = vrot.slane %v8907_v50, 1  ;;  %v8922_v44 = vrot.slane %v8910_v9, 1  ;;  %v4262_v58 = vmax.f32 %v4248_v16, 0.0  ;;  %v8925_v18 = vadd.f32 %v9514_v36, %v3766_v61 }
 0x4d0   :  { %v4261_v5 = vmax.f32 %v4247_v46, 0.0  ;;  %4273 = vst [vmem:[#allocation7 + $0x60] sm:$0xf0] %v4259_v21  ;;  %3861 = vst [vmem:[#allocation6 + $0x130] sm:$0xff] %v5973_v25  ;;  %v4395_v52 = vrot.slane %v5973_v25, 1  ;;  %v3770_v49 = vpop.f32.mrb[82].mxu0  ;;  %v9517_v3 = vmax.f32 %v9515_v29, %v9516_v14  ;;  %v4238_v19 = vmax.f32 %v8733_v37, %v8767_v31 }
 0x4d1   :  { %v4338_v48 = vsel %vm3913_vm2, %v4333_v40, %v8919_v63  ;;  %v4340_v1 = vsel %vm3913_vm2, %v4335_v47, %v8922_v44  ;;  %3862 = vst [vmem:[#allocation6 + $0x138] sm:$0xff] %v8925_v18  ;;  %v4397_v32 = vrot.slane %v8925_v18, 1  ;;  %v8940_v38 = vadd.f32 %v9518_v59, %v3770_v49  ;;  %v3772_v16 = vpop.f32.mrb[83].mxu0  ;;  %v9519_v21 = vld [vmem:[#allocation16_spill] sm:$0xff] }
 0x4d2   :  { %v4236_v34 = vmax.f32 %v9517_v3, %v8760_v24  ;;  %v4367_v61 = vmax.f32 %v8855_v54, %v4338_v48  ;;  %v8943_v46 = vmax.f32 %v5967_v2, %v4340_v1  ;;  %v4396_v37 = vsel %vm3913_vm2, %v8919_v63, %v4395_v52 }
 0x4d3   :  { %v8948_v40 = vadd.f32 %v9519_v21, %v3772_v16  ;;  %v4419_v47 = vmax.f32 %v8907_v50, %v4396_v37  ;;  %v8953_v36 = vsel %vm3913_vm2, %v8922_v44, %v4397_v32  ;;  %v8956_v49 = vrot.slane %v8940_v38, 1  ;;  %v4754_v37 = vld [vmem:[#allocation7 + $0x68] sm:$0xff] }
 0x4d4   :  { %v4250_v29 = vadd.f32 %v4236_v34, %v8562_v55  ;;  %v8959_v54 = vmax.f32 %v4363_v30, %v4367_v61  ;;  %v4252_v3 = vadd.f32 %v4238_v19, %v8562_v55  ;;  %v3776_v48 = vpop.f32.mrb[84].mxu0  ;;  %v4249_v34 = vadd.f32 %v8778_v28, %v8549_v15 }
 0x4d5   :  { %v8964_v14 = vrot.slane %v8948_v40, 1  ;;  %v8967_v1 = vmax.f32 %v4365_v13, %v4419_v47  ;;  %v4400_v59 = vsel %vm3913_vm2, %v4395_v52, %v8956_v49  ;;  %v3778_v30 = vpop.f32.mrb[85].mxu0  ;;  %v4251_v13 = vadd.f32 %v4237_v20, %v8549_v15 }
 0x4d6   :  { %v4264_v16 = vmax.f32 %v4250_v29, 0.0  ;;  %v4421_v21 = vmax.f32 %v5973_v25, %v4400_v59  ;;  %v4266_v17 = vmax.f32 %v4252_v3, 0.0  ;;  %v5856_v19 = vpack.c.bf16 %v4262_v58, %v4754_v37  ;;  %v9524_v37 = vld [vmem:[#allocation18_spill] sm:$0xff] }
 0x4d7   :  { %9520 = vst [vmem:[#allocation11_spill] sm:$0xff] %v8967_v1  ;;  %v8975_v2 = vsel %vm3913_vm2, %v4397_v32, %v8964_v14  ;;  %v4753_v47 = vld [vmem:[#allocation7 + $0x60] sm:$0xff]  ;;  %v4263_v28 = vmax.f32 %v4249_v34, 0.0  ;;  %v8984_v56 = vadd.f32 %v9522_v39, %v3776_v48  ;;  %v4265_v58 = vmax.f32 %v4251_v13, 0.0  ;;  %v9526_v34 = vld [vmem:[#allocation19_spill] sm:$0xff] }
 0x4d8   :  { %9521 = vst [vmem:[#allocation12_spill] sm:$0xff] %v8975_v2  ;;  %v4303_v52 = vld [vmem:[#allocation6 + $0x130] sm:$0x1f]  ;;  %v5858_v25 = vpack.c.bf16 %v4261_v5, %v4753_v47  ;;  %v4497_v32 = vld [vmem:[#allocation6 + $0x130] sm:$0xe0]  ;;  %v8986_v6 = vmax.f32 %v4367_v61, %v4421_v21  ;;  %v5860_v3 = vpack.c.bf16 %v4266_v17, %v4264_v16  ;;  %v3782_v43 = vpop.f32.mrb[86].mxu0  ;;  %5857 = vmatprep.subr.bf16.mxu1 %v5856_v19 }
 0x4d9   :  { %v4341_v59 = vrot.slane %v4303_v52, 1  ;;  %v4299_v11 = vld [vmem:[#allocation6 + $0x130] sm:$0xf]  ;;  %v4517_v41 = vrot.slane %v4497_v32, 1  ;;  %v4304_v20 = vld [vmem:[#allocation6 + $0x138] sm:$0x1f]  ;;  %v8990_v29 = vadd.f32 %v9524_v37, %v3778_v30  ;;  %v8993_v39 = vadd.f32 %v9526_v34, %v3782_v43 }
 0x4da   :  { %9523 = vst [vmem:[#allocation32_spill] sm:$0xff] %v8986_v6  ;;  %3865 = vst [vmem:[#allocation6 + $0x150] sm:$0xff] %v8984_v56  ;;  %5859 = vmatpush1.bf16.msra.mxu1 %v5858_v25  ;;  %v4343_v61 = vrot.slane %v4304_v20, 1  ;;  %v4498_v48 = vld [vmem:[#allocation6 + $0x138] sm:$0xe0]  ;;  %v4523_v16 = vrot.slane %v8984_v56, 1 }
 0x4db   :  { %9525 = vst [vmem:[#allocation33_spill] sm:$0xff] %v8990_v29  ;;  %v8997_v5 = vsel %vm3913_vm2, %v8919_v63, %v4341_v59  ;;  %v8999_v17 = vmax.f32 %v4299_v11, %v4341_v59  ;;  %v9004_v13 = vld [vmem:[#allocation6 + $0x130] sm:$0xf0]  ;;  %v4300_v30 = vld [vmem:[#allocation6 + $0x138] sm:$0xf]  ;;  %v4520_v19 = vrot.slane %v4498_v48, 1  ;;  %v9008_v43 = vsel %vm3913_vm2, %v4517_v41, %v8956_v49  ;;  %5861 = vmatprep.subr.bf16.mxu1 %v5860_v3 }
 0x4dc   :  { %v5862_v63 = vpack.c.bf16 %v4265_v58, %v4263_v28  ;;  %3866 = vst [vmem:[#allocation6 + $0x158] sm:$0xff] %v8990_v29  ;;  %v3784_v47 = vpop.f32.mrb[87].mxu0  ;;  %v9013_v52 = vsel %vm3913_vm2, %v8922_v44, %v4343_v61  ;;  %v9015_v25 = vmax.f32 %v4300_v30, %v4343_v61  ;;  %v4561_v59 = vmax.f32 %v9004_v13, %v9008_v43  ;;  %v9025_v3 = vld [vmem:[#allocation6 + $0x138] sm:$0xf0]  ;;  %v9530_v61 = vld [vmem:[#allocation20_spill] sm:$0xff] }
 0x4dd   :  { %9527 = vst [vmem:[#allocation34_spill] sm:$0xff] %v9013_v52  ;;  %v9021_v32 = vsel %vm3913_vm2, %v8956_v49, %v4523_v16  ;;  %v3788_v11 = vpop.f32.mrb[88].mxu0  ;;  %9528 = vst [vmem:[#allocation35_spill] sm:$0xff] %v9025_v3  ;;  %v9029_v41 = vsel %vm3913_vm2, %v4520_v19, %v8964_v14  ;;  %v4525_v20 = vrot.slane %v8990_v29, 1  ;;  %v9037_v34 = vrot.slane %v8993_v39, 1  ;;  %v9533_v37 = vld [vmem:[#allocation21_spill] sm:$0xff] }
 0x4de   :  { %9529 = vst [vmem:[#allocation13_spill] sm:$0xff] %v9029_v41  ;;  %v3790_v58 = vpop.f32.mrb[89].mxu0  ;;  %5863 = vmatpush1.bf16.msra.mxu1 %v5862_v63  ;;  %v9040_v48 = vadd.f32 %v9530_v61, %v3784_v47  ;;  %v4240_v13 = vmax.f32 %v8760_v24, %v4226_v0  ;;  %v9532_v19 = vmax.f32 %v8748_v60, %v8810_v35  ;;  %v9535_v52 = vld [vmem:[#allocation23_spill] sm:$0xff] }
 0x4df   :  { %v9048_v30 = vsel %vm3913_vm2, %v8964_v14, %v4525_v20  ;;  %v4253_v63 = vadd.f32 %v8794_v53, %v8549_v15  ;;  %v4255_v47 = vadd.f32 %v8820_v10, %v8549_v15  ;;  %v9062_v24 = vsel %vm3913_vm2, %v4523_v16, %v9037_v34  ;;  %v9534_v16 = vld [vmem:[#allocation22_spill] sm:$0xff] }
 0x4e0   :  { %9531 = vst [vmem:[#allocation36_spill] sm:$0xff] %v9048_v30  ;;  %v4242_v43 = vmax.f32 %v8767_v31, %v9532_v19  ;;  %v4254_v0 = vadd.f32 %v4240_v13, %v8562_v55  ;;  %v5989_v35 = vadd.f32 %v9533_v37, %v3788_v11  ;;  %v4529_v19 = vrot.slane %v9040_v48, 1  ;;  %v3794_v44 = vpop.f32.mrb[90].mxu0 }
 0x4e1   :  { %v4381_v61 = vld [vmem:[#allocation6 + $0x150] sm:$0x1f]  ;;  %v4581_v31 = vld [vmem:[#allocation6 + $0x150] sm:$0xe0]  ;;  %v5991_v3 = vadd.f32 %v9534_v16, %v3790_v58  ;;  %v9072_v13 = vadd.f32 %v9535_v52, %v3794_v44 }
 0x4e2   :  { %v4403_v28 = vrot.slane %v4381_v61, 1  ;;  %v4256_v10 = vadd.f32 %v4242_v43, %v8562_v55  ;;  %v4377_v21 = vld [vmem:[#allocation6 + $0x150] sm:$0xf]  ;;  %v4613_v4 = vrot.slane %v4581_v31, 1  ;;  %v4268_v41 = vmax.f32 %v4254_v0, 0.0  ;;  %v3796_v43 = vpop.f32.mrb[91].mxu0 }
 0x4e3   :  { %v4382_v30 = vld [vmem:[#allocation6 + $0x158] sm:$0x1f]  ;;  %v4582_v53 = vld [vmem:[#allocation6 + $0x158] sm:$0xe0]  ;;  %v9077_v6 = vsel %vm3913_vm2, %v4525_v20, %v4529_v19  ;;  %v4575_v31 = vld [vmem:[#allocation6 + $0x150] sm:$0xf0] }
 0x4e4   :  { %v4404_v11 = vsel %vm3913_vm2, %v8956_v49, %v4403_v28  ;;  %v4425_v37 = vmax.f32 %v4377_v21, %v4403_v28  ;;  %v4405_v61 = vrot.slane %v4382_v30, 1  ;;  %9536 = vst [vmem:[#allocation37_spill] sm:$0xff] %v9077_v6  ;;  %v4378_v2 = vld [vmem:[#allocation6 + $0x158] sm:$0xf]  ;;  %v4616_v0 = vrot.slane %v4582_v53, 1  ;;  %v3800_v44 = vpop.f32.mrb[92].mxu0 }
 0x4e5   :  { %v4423_v1 = vmax.f32 %v8940_v38, %v4404_v11  ;;  %v4615_v58 = vsel %vm3913_vm2, %v4613_v4, %v9037_v34  ;;  %v3802_v30 = vpop.f32.mrb[93].mxu0  ;;  %v9537_v53 = vmax.f32 %v8907_v50, %v8997_v5  ;;  %v9098_v11 = vld [vmem:[#allocation6 + $0x158] sm:$0xf0]  ;;  %v4267_v5 = vmax.f32 %v4253_v63, 0.0 }
 0x4e6   :  { %v4439_v49 = vmax.f32 %v8999_v17, %v4425_v37  ;;  %v9087_v21 = vsel %vm3913_vm2, %v8964_v14, %v4405_v61  ;;  %v9089_v28 = vmax.f32 %v4378_v2, %v4405_v61  ;;  %v4657_v20 = vmax.f32 %v4575_v31, %v4615_v58 }
 0x4e7   :  { %v9094_v16 = vmax.f32 %v9537_v53, %v4423_v1  ;;  %v9101_v17 = vsel %vm3913_vm2, %v4616_v0, %v4529_v19  ;;  %v4270_v37 = vmax.f32 %v4256_v10, 0.0  ;;  %v4269_v31 = vmax.f32 %v4255_v47, 0.0  ;;  %v9538_v10 = vld [vmem:[#allocation24_spill] sm:$0xff] }
 0x4e8   :  { %v4453_v14 = vadd.f32 %v4439_v49, %v8549_v15  ;;  %v4440_v2 = vmax.f32 %v9015_v25, %v9089_v28  ;;  %v9106_v61 = vmax.f32 %v4561_v59, %v4657_v20  ;;  %v4658_v50 = vmax.f32 %v9098_v11, %v9101_v17  ;;  %v3806_v53 = vpop.f32.mrb[94].mxu0 }
 0x4e9   :  { %v5864_v1 = vpack.c.bf16 %v4270_v37, %v4268_v41  ;;  %v4531_v58 = vrot.slane %v5989_v35, 1  ;;  %v4533_v4 = vrot.slane %v5991_v3, 1  ;;  %v4535_v0 = vrot.slane %v9072_v13, 1  ;;  %v3808_v49 = vpop.f32.mrb[95].mxu0 }
 0x4ea   :  { %v4467_v52 = vmax.f32 %v4453_v14, 0.0  ;;  %v5995_v6 = vadd.f32 %v9538_v10, %v3796_v43  ;;  %v5866_v29 = vpack.c.bf16 %v4269_v31, %v4267_v5  ;;  %v9539_v20 = vmax.f32 %v8784_v57, %v8888_v26 }
 0x4eb   :  { %5865 = vmatprep.subr.bf16.mxu1 %v5864_v1  ;;  %v4532_v59 = vsel %vm3913_vm2, %v9037_v34, %v4531_v58  ;;  %v9540_v41 = vmax.f32 %v8736_v22, %v8833_v8  ;;  %v9541_v47 = vmax.f32 %v8813_v33, %v8892_v45  ;;  %v9542_v37 = vmax.f32 %v8748_v60, %v8838_v27 }
 0x4ec   :  { %4481 = vst [vmem:[#allocation7 + $0x130] sm:$0xf] %v4467_v52  ;;  %v9127_v14 = vmax.f32 %v8993_v39, %v4532_v59  ;;  %v4534_v34 = vsel %vm3913_vm2, %v4529_v19, %v4533_v4  ;;  %v4536_v1 = vsel %vm3913_vm2, %v4531_v58, %v4535_v0  ;;  %v4537_v26 = vrot.slane %v5995_v6, 1  ;;  %5867 = vmatpush1.bf16.msra.mxu1 %v5866_v29  ;;  %v3812_v60 = vpop.f32.mrb[96].mxu0 }
 0x4ed   :  { %v4244_v63 = vmax.f32 %v9540_v41, %v9539_v20  ;;  %v4428_v43 = vmax.f32 %v9542_v37, %v9541_v47  ;;  %v9132_v22 = vmax.f32 %v9040_v48, %v4534_v34  ;;  %v4569_v8 = vmax.f32 %v5989_v35, %v4536_v1  ;;  %v3814_v35 = vpop.f32.mrb[97].mxu0  ;;  %v9545_v20 = vld [vmem:[#allocation25_spill] sm:$0xff]  ;;  %v9546_v41 = vld [vmem:[#allocation26_spill] sm:$0xff]  ;;  %v9548_v37 = vld [vmem:[#allocation28_spill] sm:$0xff] }
 0x4ee   :  { %v9543_v27 = vmax.f32 %v8940_v38, %v9021_v32  ;;  %v4538_v19 = vsel %vm3913_vm2, %v4533_v4, %v4537_v26  ;;  %v4257_v29 = vadd.f32 %v8900_v7, %v8549_v15  ;;  %v4441_v48 = vadd.f32 %v8902_v23, %v8549_v15  ;;  %v9547_v23 = vld [vmem:[#allocation27_spill] sm:$0xff] }
 0x4ef   :  { %v4258_v45 = vadd.f32 %v4244_v63, %v8562_v55  ;;  %v4442_v5 = vadd.f32 %v4428_v43, %v8562_v55  ;;  %v9544_v52 = vmax.f32 %v8984_v56, %v9062_v24  ;;  %v9152_v58 = vmax.f32 %v5991_v3, %v4538_v19 }
 0x4f0   :  { %v9140_v39 = vmax.f32 %v9543_v27, %v9127_v14  ;;  %v4271_v32 = vmax.f32 %v4257_v29, 0.0  ;;  %v4455_v59 = vmax.f32 %v4441_v48, 0.0  ;;  %v9155_v4 = vadd.f32 %v9545_v20, %v3800_v44  ;;  %v3818_v43 = vpop.f32.mrb[98].mxu0 }
 0x4f1   :  { %v9150_v31 = vmax.f32 %v9544_v52, %v4569_v8  ;;  %v4272_v10 = vmax.f32 %v4258_v45, 0.0  ;;  %v4456_v38 = vmax.f32 %v4442_v5, 0.0  ;;  %v9158_v7 = vadd.f32 %v9546_v41, %v3802_v30  ;;  %v3820_v45 = vpop.f32.mrb[99].mxu0 }
 0x4f2   :  { %v9161_v47 = vadd.f32 %v9547_v23, %v3806_v53  ;;  %v9164_v56 = vadd.f32 %v9548_v37, %v3808_v49  ;;  %v9549_v3 = vmax.f32 %v8784_v57, %v8848_v62  ;;  %v5870_v34 = vpack.c.bf16 %v4455_v59, %v4271_v32  ;;  %v9551_v59 = vld [vmem:[#allocation29_spill] sm:$0xff]  ;;  %v9553_v37 = vld [vmem:[#allocation31_spill] sm:$0xff] }
 0x4f3   :  { %v5868_v63 = vpack.c.bf16 %v4456_v38, %v4272_v10  ;;  %v4539_v44 = vrot.slane %v9155_v4, 1  ;;  %v4541_v1 = vrot.slane %v9158_v7, 1  ;;  %v9550_v30 = vmax.f32 %v8813_v33, %v8877_v51 }
 0x4f4   :  { %v4430_v24 = vmax.f32 %v9549_v3, %v8904_v42  ;;  %3875 = vst [vmem:[#allocation6 + $0x1a0] sm:$0xff] %v9161_v47  ;;  %v4631_v49 = vrot.slane %v9161_v47, 1  ;;  %3876 = vst [vmem:[#allocation6 + $0x1a8] sm:$0xff] %v9164_v56  ;;  %v4633_v57 = vrot.slane %v9164_v56, 1  ;;  %v4443_v5 = vadd.f32 %v8913_v12, %v8549_v15 }
 0x4f5   :  { %v4432_v53 = vmax.f32 %v9550_v30, %v8943_v46  ;;  %5869 = vmatprep.subr.bf16.mxu1 %v5868_v63  ;;  %v4540_v27 = vsel %vm3913_vm2, %v4535_v0, %v4539_v44  ;;  %v4542_v33 = vsel %vm3913_vm2, %v4537_v26, %v4541_v1  ;;  %v4445_v19 = vadd.f32 %v8959_v54, %v8549_v15  ;;  %v9552_v63 = vld [vmem:[#allocation30_spill] sm:$0xff]  ;;  %v9554_v30 = vld [vmem:[#allocation8_spill] sm:$0xff] }
 0x4f6   :  { %v4444_v62 = vadd.f32 %v4430_v24, %v8562_v55  ;;  %5871 = vmatpush1.bf16.msra.mxu1 %v5870_v34  ;;  %v9189_v29 = vmax.f32 %v9072_v13, %v4540_v27  ;;  %v9191_v48 = vmax.f32 %v5995_v6, %v4542_v33  ;;  %v4632_v52 = vsel %vm3913_vm2, %v4539_v44, %v4631_v49 }
 0x4f7   :  { %v4446_v51 = vadd.f32 %v4432_v53, %v8562_v55  ;;  %v9195_v10 = vsel %vm3913_vm2, %v4541_v1, %v4633_v57  ;;  %v4665_v12 = vmax.f32 %v9155_v4, %v4632_v52  ;;  %v4457_v32 = vmax.f32 %v4443_v5, 0.0 }
 0x4f8   :  { %v4666_v0 = vmax.f32 %v9158_v7, %v9195_v10  ;;  %v4458_v26 = vmax.f32 %v4444_v62, 0.0  ;;  %v4677_v54 = vmax.f32 %v9127_v14, %v9189_v29  ;;  %v4459_v13 = vmax.f32 %v4445_v19, 0.0 }
 0x4f9   :  { %v4460_v38 = vmax.f32 %v4446_v51, 0.0  ;;  %v9203_v6 = vadd.f32 %v9551_v59, %v3812_v60  ;;  %v9205_v20 = vmax.f32 %v4569_v8, %v4665_v12  ;;  %v9208_v23 = vadd.f32 %v9552_v63, %v3814_v35  ;;  %v9556_v35 = vld [vmem:[#allocation12_spill] sm:$0xff]  ;;  %v9558_v51 = vld [vmem:[#allocation11_spill] sm:$0xff] }
 0x4fa   :  { %v6009_v3 = vadd.f32 %v9553_v37, %v3818_v43  ;;  %v5874_v24 = vpack.c.bf16 %v4459_v13, %v4457_v32  ;;  %v6011_v53 = vadd.f32 %v9554_v30, %v3820_v45  ;;  %v9555_v62 = vmax.f32 %v8910_v9, %v8953_v36  ;;  %v9559_v45 = vld [vmem:[#allocation32_spill] sm:$0xff]  ;;  %v9561_v30 = vld [vmem:[#allocation34_spill] sm:$0xff] }
 0x4fb   :  { %v5872_v41 = vpack.c.bf16 %v4460_v38, %v4458_v26  ;;  %v4635_v34 = vrot.slane %v9203_v6, 1  ;;  %v4499_v60 = vld [vmem:[#allocation6 + $0x1a0] sm:$0x1]  ;;  %v4500_v27 = vld [vmem:[#allocation6 + $0x1a8] sm:$0x1]  ;;  %v4637_v8 = vrot.slane %v9208_v23, 1  ;;  %v9557_v33 = vmax.f32 %v8925_v18, %v9556_v35 }
 0x4fc   :  { %v4434_v5 = vmax.f32 %v8904_v42, %v9555_v62  ;;  %3879 = vst [vmem:[#allocation6 + $0x1c0] sm:$0xff] %v6009_v3  ;;  %v4447_v19 = vadd.f32 %v9558_v51, %v8549_v15  ;;  %v4449_v52 = vadd.f32 %v9559_v45, %v8549_v15  ;;  %v4543_v36 = vrot.slane %v4499_v60, 1  ;;  %3880 = vst [vmem:[#allocation6 + $0x1c8] sm:$0xff] %v6011_v53 }
 0x4fd   :  { %5873 = vmatprep.subr.bf16.mxu1 %v5872_v41  ;;  %v4436_v43 = vmax.f32 %v8943_v46, %v9557_v33  ;;  %v4545_v12 = vrot.slane %v4500_v27, 1  ;;  %v4636_v42 = vsel %vm3913_vm2, %v4631_v49, %v4635_v34  ;;  %v4638_v18 = vsel %vm3913_vm2, %v4633_v57, %v4637_v8  ;;  %v9566_v27 = vld [vmem:[#allocation36_spill] sm:$0xff] }
 0x4fe   :  { %5875 = vmatpush1.bf16.msra.mxu1 %v5874_v24  ;;  %v4448_v26 = vadd.f32 %v4434_v5, %v8562_v55  ;;  %v4667_v38 = vmax.f32 %v9161_v47, %v4636_v42  ;;  %v4461_v32 = vmax.f32 %v4447_v19, 0.0  ;;  %v4544_v13 = vsel %vm3913_vm2, %v4539_v44, %v4543_v36  ;;  %v9568_v19 = vld [vmem:[#allocation33_spill] sm:$0xff] }
 0x4ff   :  { %v4450_v46 = vadd.f32 %v4436_v43, %v8562_v55  ;;  %v4546_v59 = vsel %vm3913_vm2, %v4541_v1, %v4545_v12  ;;  %v4668_v41 = vmax.f32 %v9164_v56, %v4638_v18  ;;  %v4573_v37 = vmax.f32 %v9155_v4, %v4544_v13  ;;  %v9563_v4 = vld [vmem:[#allocation35_spill] sm:$0xff]  ;;  %v9564_v1 = vld [vmem:[#allocation13_spill] sm:$0xff] }
 0x500   :  { %v4462_v63 = vmax.f32 %v4448_v26, 0.0  ;;  %v4574_v49 = vmax.f32 %v9158_v7, %v4546_v59  ;;  %v4681_v3 = vmax.f32 %v9189_v29, %v4667_v38  ;;  %v4463_v47 = vmax.f32 %v4449_v52, 0.0 }
 0x501   :  { %v4464_v24 = vmax.f32 %v4450_v46, 0.0  ;;  %v9560_v57 = vmax.f32 %v8948_v40, %v9087_v21  ;;  %v9562_v53 = vmax.f32 %v8910_v9, %v9561_v30  ;;  %v4454_v56 = vadd.f32 %v4440_v2, %v8562_v55 }
 0x502   :  { %v9565_v62 = vmax.f32 %v9563_v4, %v9564_v1  ;;  %v4451_v21 = vadd.f32 %v9094_v16, %v8549_v15  ;;  %v4685_v9 = vadd.f32 %v9106_v61, %v8549_v15  ;;  %v9567_v35 = vmax.f32 %v8948_v40, %v9566_v27  ;;  %v9569_v61 = vld [vmem:[#allocation37_spill] sm:$0xff] }
 0x503   :  { %v4438_v44 = vmax.f32 %v9562_v53, %v9560_v57  ;;  %v5876_v60 = vpack.c.bf16 %v4464_v24, %v4462_v63  ;;  %v4595_v28 = vld [vmem:[#allocation6 + $0x1c0] sm:$0x1]  ;;  %v5878_v2 = vpack.c.bf16 %v4463_v47, %v4461_v32  ;;  %v4468_v17 = vmax.f32 %v4454_v56, 0.0  ;;  %v4596_v43 = vld [vmem:[#allocation6 + $0x1c8] sm:$0x1] }
 0x504   :  { %v4672_v5 = vmax.f32 %v9565_v62, %v4658_v50  ;;  %v4674_v25 = vmax.f32 %v9567_v35, %v9132_v22  ;;  %v4639_v50 = vrot.slane %v4595_v28, 1  ;;  %v4465_v51 = vmax.f32 %v4451_v21, 0.0  ;;  %v4732_v35 = vld [vmem:[%s9389_s6 + $0x28] sm:$0xff]  ;;  %v4734_v28 = vld [vmem:[%s9389_s6 + $0x38] sm:$0xff] }
 0x505   :  { %v4452_v11 = vadd.f32 %v4438_v44, %v8562_v55  ;;  %5877 = vmatprep.subr.bf16.mxu1 %v5876_v60  ;;  %v4699_v16 = vmax.f32 %v4685_v9, 0.0  ;;  %v9570_v45 = vmax.f32 %v9568_v19, %v9569_v61  ;;  %v4641_v36 = vrot.slane %v4596_v43, 1  ;;  %4482 = vst [vmem:[#allocation7 + $0x138] sm:$0xf] %v4468_v17  ;;  %v4735_v17 = vld [vmem:[%s9389_s6 + $0x40] sm:$0xff]  ;;  %v4740_v43 = vld [vmem:[%s9389_s6 + $0x68] sm:$0xff] }
 0x506   :  { %v4686_v33 = vadd.f32 %v4672_v5, %v8562_v55  ;;  %5879 = vmatpush1.bf16.msra.mxu1 %v5878_v2  ;;  %v4688_v42 = vadd.f32 %v4674_v25, %v8562_v55  ;;  %v4640_v26 = vsel %vm3913_vm2, %v4635_v34, %v4639_v50  ;;  %v4687_v18 = vadd.f32 %v9140_v39, %v8549_v15  ;;  %v4731_v25 = vld [vmem:[%s9389_s6 + $0x20] sm:$0xff]  ;;  %v4733_v2 = vld [vmem:[%s9389_s6 + $0x30] sm:$0xff] }
 0x507   :  { %v4676_v52 = vmax.f32 %v9570_v45, %v9152_v58  ;;  %v4466_v40 = vmax.f32 %v4452_v11, 0.0  ;;  %4713 = vst [vmem:[#allocation7 + $0x130] sm:$0xf0] %v4699_v16  ;;  %v4689_v46 = vadd.f32 %v9150_v31, %v8549_v15  ;;  %v4669_v32 = vmax.f32 %v9203_v6, %v4640_v26  ;;  %v4736_v11 = vld [vmem:[%s9389_s6 + $0x48] sm:$0xff]  ;;  %v4737_v50 = vld [vmem:[%s9389_s6 + $0x50] sm:$0xff] }
 0x508   :  { %v4700_v12 = vmax.f32 %v4686_v33, 0.0  ;;  %v4642_v13 = vsel %vm3913_vm2, %v4637_v8, %v4641_v36  ;;  %v4702_v59 = vmax.f32 %v4688_v42, 0.0  ;;  %v4678_v63 = vmax.f32 %v9132_v22, %v9191_v48  ;;  %v4738_v33 = vld [vmem:[%s9389_s6 + $0x58] sm:$0xff] }
 0x509   :  { %v4690_v38 = vadd.f32 %v4676_v52, %v8562_v55  ;;  %v4670_v34 = vmax.f32 %v9208_v23, %v4642_v13  ;;  %v4701_v47 = vmax.f32 %v4687_v18, 0.0  ;;  %v4703_v57 = vmax.f32 %v4689_v46, 0.0 }
 0x50a   :  { %4714 = vst [vmem:[#allocation7 + $0x138] sm:$0xf0] %v4700_v12  ;;  %v4683_v30 = vmax.f32 %v4573_v37, %v4669_v32  ;;  %v4680_v39 = vmax.f32 %v9152_v58, %v4666_v0  ;;  %v4692_v31 = vadd.f32 %v4678_v63, %v8562_v55  ;;  %v4691_v6 = vadd.f32 %v4677_v54, %v8549_v15 }
 0x50b   :  { %v4704_v24 = vmax.f32 %v4690_v38, 0.0  ;;  %v5886_v22 = vpack.c.bf16 %v4703_v57, %v4701_v47  ;;  %v4693_v23 = vadd.f32 %v9205_v20, %v8549_v15  ;;  %v4682_v53 = vmax.f32 %v9191_v48, %v4668_v41 }
 0x50c   :  { %v4694_v37 = vadd.f32 %v4680_v39, %v8562_v55  ;;  %v4706_v44 = vmax.f32 %v4692_v31, 0.0  ;;  %v4705_v7 = vmax.f32 %v4691_v6, 0.0  ;;  %v4684_v10 = vmax.f32 %v4574_v49, %v4670_v34 }
 0x50d   :  { %v5884_v8 = vpack.c.bf16 %v4704_v24, %v4702_v59  ;;  %v4707_v58 = vmax.f32 %v4693_v23, 0.0  ;;  %v4696_v0 = vadd.f32 %v4682_v53, %v8562_v55  ;;  %v4695_v56 = vadd.f32 %v4681_v3, %v8549_v15  ;;  %v4729_v3 = vld [vmem:[%s9389_s6 + $0x10] sm:$0xff] }
 0x50e   :  { %v4697_v14 = vadd.f32 %v4683_v30, %v8549_v15  ;;  %v4779_v29 = vld [vmem:[#allocation7 + $0x130] sm:$0xff]  ;;  %v4708_v54 = vmax.f32 %v4694_v37, 0.0  ;;  %v4698_v4 = vadd.f32 %v4684_v10, %v8562_v55  ;;  %v4730_v55 = vld [vmem:[%s9389_s6 + $0x18] sm:$0xff] }
 0x50f   :  { %v5890_v20 = vpack.c.bf16 %v4707_v58, %v4705_v7  ;;  %v4710_v62 = vmax.f32 %v4696_v0, 0.0  ;;  %v4709_v48 = vmax.f32 %v4695_v56, 0.0  ;;  %v5882_v49 = vpack.c.bf16 %v4779_v29, %v4465_v51  ;;  %v4727_v15 = vld [vmem:[%s9389_s6] sm:$0xff] }
 0x510   :  { %v5888_v5 = vpack.c.bf16 %v4708_v54, %v4706_v44  ;;  %v4712_v60 = vmax.f32 %v4698_v4, 0.0  ;;  %v4711_v21 = vmax.f32 %v4697_v14, 0.0  ;;  %v4739_v51 = vld [vmem:[%s9389_s6 + $0x60] sm:$0xff] }
 0x511   :  { %v4780_v1 = vld [vmem:[#allocation7 + $0x138] sm:$0xff] }
 0x512   :  { %v5880_v41 = vpack.c.bf16 %v4780_v1, %v4466_v40  ;;  %v5892_v9 = vpack.c.bf16 %v4712_v60, %v4710_v62  ;;  %v5894_v27 = vpack.c.bf16 %v4711_v21, %v4709_v48 }
 0x514   :  { %5881 = vmatprep.subr.bf16.mxu1 %v5880_v41 }
 0x515   :  { %5883 = vmatpush1.bf16.msra.mxu1 %v5882_v49 }
 0x516   :  { %5885 = vmatprep.subr.bf16.mxu1 %v5884_v8 }
 0x519   :  { %5887 = vmatpush1.bf16.msra.mxu1 %v5886_v22 }
 0x51a   :  { %5889 = vmatprep.subr.bf16.mxu1 %v5888_v5 }
 0x51d   :  { %5891 = vmatpush1.bf16.msra.mxu1 %v5890_v20 }
 0x51e   :  { %5893 = vmatprep.subr.bf16.mxu1 %v5892_v9 }
 0x521   :  { %5895 = vmatpush1.bf16.msra.mxu1 %v5894_v27 }
 0x524   :  { %4880 = vmatmul.mubr.f32.vlgmr.msra.gmra.mrb[254].mxu1 %v4727_v15 }
 0x525   :  { %5048 = vmatprep.mubr.msk.f32.mxu1 %vm4793_vm3, %v4730_v55 }
 0x528   :  { %4886 = vmatmul.mubr.f32.gmra.mrb[0].mxu1 %v4729_v3 }
 0x529   :  { %5049 = vmatprep.mubr.msk.f32.mxu1 %vm4793_vm3, %v4732_v35 }
 0x52c   :  { %4892 = vmatmul.mubr.f32.gmra.mrb[2].mxu1 %v4731_v25 }
 0x52d   :  { %5050 = vmatprep.mubr.msk.f32.mxu1 %vm4793_vm3, %v4734_v28 }
 0x530   :  { %4898 = vmatmul.mubr.f32.gmra.mrb[4].mxu1 %v4733_v2 }
 0x531   :  { %5051 = vmatprep.mubr.msk.f32.mxu1 %vm4793_vm3, %v4736_v11 }
 0x534   :  { %4904 = vmatmul.mubr.f32.gmra.mrb[6].mxu1 %v4735_v17 }
 0x535   :  { %5052 = vmatprep.mubr.msk.f32.mxu1 %vm4793_vm3, %v4738_v33 }
 0x538   :  { %4910 = vmatmul.mubr.f32.gmra.mrb[8].mxu1 %v4737_v50 }
 0x539   :  { %5053 = vmatprep.mubr.msk.f32.mxu1 %vm4793_vm3, %v4740_v43 }
 0x53c   :  { %4916 = vmatmul.mubr.f32.gmra.mrb[10].mxu1 %v4739_v51 }
 0x5f7   :  { %v4881_v16 = vpop.f32.mrb[254].mxu1 }
 0x5f8   :  { %4922 = vst [vmem:[%s9390_s7] sm:$0xff] %v4881_v16  ;;  %v4883_v19 = vpop.f32.mrb[255].mxu1 }
 0x5f9   :  { %4923 = vst [vmem:[%s9390_s7 + $0x8] sm:$0xff] %v4883_v19 }
 0x5fb   :  { %v4887_v61 = vpop.f32.mrb[0].mxu1 }
 0x5fc   :  { %4924 = vst [vmem:[%s9390_s7 + $0x10] sm:$0xff] %v4887_v61  ;;  %v4889_v45 = vpop.f32.mrb[1].mxu1 }
 0x5fd   :  { %4925 = vst [vmem:[%s9390_s7 + $0x18] sm:$0xff] %v4889_v45 }
 0x5ff   :  { %v4893_v52 = vpop.f32.mrb[2].mxu1 }
 0x600   :  { %4926 = vst [vmem:[%s9390_s7 + $0x20] sm:$0xff] %v4893_v52  ;;  %v4895_v36 = vpop.f32.mrb[3].mxu1 }
 0x601   :  { %4927 = vst [vmem:[%s9390_s7 + $0x28] sm:$0xff] %v4895_v36 }
 0x603   :  { %v4899_v40 = vpop.f32.mrb[4].mxu1 }
 0x604   :  { %4928 = vst [vmem:[%s9390_s7 + $0x30] sm:$0xff] %v4899_v40  ;;  %v4901_v12 = vpop.f32.mrb[5].mxu1 }
 0x605   :  { %4929 = vst [vmem:[%s9390_s7 + $0x38] sm:$0xff] %v4901_v12 }
 0x607   :  { %v4905_v42 = vpop.f32.mrb[6].mxu1 }
 0x608   :  { %4930 = vst [vmem:[%s9390_s7 + $0x40] sm:$0xff] %v4905_v42  ;;  %v4907_v26 = vpop.f32.mrb[7].mxu1 }
 0x609   :  { %4931 = vst [vmem:[%s9390_s7 + $0x48] sm:$0xff] %v4907_v26 }
 0x60b   :  { %v4911_v38 = vpop.f32.mrb[8].mxu1 }
 0x60c   :  { %4932 = vst [vmem:[%s9390_s7 + $0x50] sm:$0xff] %v4911_v38  ;;  %v4913_v18 = vpop.f32.mrb[9].mxu1 }
 0x60d   :  { %4933 = vst [vmem:[%s9390_s7 + $0x58] sm:$0xff] %v4913_v18 }
 0x60f   :  { %v4917_v46 = vpop.f32.mrb[10].mxu1 }
 0x610   :  { %4934 = vst [vmem:[%s9390_s7 + $0x60] sm:$0xff] %v4917_v46  ;;  %v4919_v32 = vpop.f32.mrb[11].mxu1 }
 0x611   :  { %4935 = vst [vmem:[%s9390_s7 + $0x68] sm:$0xff] %v4919_v32 }

</bundles_post_ra>
